<compile_context>
chip_gen: v6e
topology: v6e:2x2x1
jax: 0.10.0
libtpu: 0.0.40
codegen_flags: <defaults>
</compile_context>

<pallas_src>
import jax
import jax.numpy as jnp
from jax import lax
from jax.experimental import pallas as pl
from jax.experimental.pallas import tpu as pltpu


# padded sizes
_K1P, _C1P = 32, 128      # conv1: K 25 -> 32, Cout 10 -> 128
_K2P, _C2P = 256, 128     # conv2: K 250 -> 256, Cout 20 -> 128
_CFC, _HFC = 32, 64       # fc1: consumes 32 channel lanes (20 real), hidden 50 -> 64
_OUTP = 128               # fc2 logits padded to 128 lanes


# ------------------------------ fused kernel -------------------------------

def _fused_kernel(p1_ref, w1_ref, b1_ref, w2_ref, b2_ref,
                  wf1_ref, bf1_ref, wf2_ref, bf2_ref,
                  o_ref,
                  c1_scr, y1_scr, p2_scr, y2_scr):
    n_batch = o_ref.shape[0]
    m1 = n_batch * 144                      # pooled conv1 positions per pool-offset slab
    assert p1_ref.shape[0] == 4 * m1

    # ---- conv1: ONE merged matmul over all 4 pool offsets, then pool-max, bias, ReLU
    c1_scr[...] = jnp.dot(p1_ref[...], w1_ref[...],
                          preferred_element_type=jnp.float32)          # (4*m1, 128)
    mx = jnp.maximum(
        jnp.maximum(c1_scr[0 * m1:1 * m1, :], c1_scr[1 * m1:2 * m1, :]),
        jnp.maximum(c1_scr[2 * m1:3 * m1, :], c1_scr[3 * m1:4 * m1, :]))
    y1 = jnp.maximum(mx + b1_ref[...], 0.0)                            # (m1, 128)
    for n in range(n_batch):
        # y1_scr[n] rows are (pa, pb, jh, jw): pooled conv1 coord = (2*jh+pa, 2*jw+pb)
        y1_scr[n] = y1[n * 144:(n + 1) * 144, :]

    # ---- conv2 im2col fully in VMEM (contiguous copies only, no strided access).
    # p2_scr[n] rows: pool-offset-major slabs of 24, row-in-slab = oh2*6 + ow2
    # (rows with ow2 >= 4 / 22..23 are junk and never read); lanes = (kh*5+kw)*10 + cin.
    p2_scr[...] = jnp.zeros(p2_scr.shape, p2_scr.dtype)
    for ph in range(2):
        for pw in range(2):
            q = ph * 2 + pw
            for kh in range(5):
                for kw in range(5):
                    a, b = ph + kh, pw + kw
                    pa, ah = a % 2, a // 2
                    pb, bh = b % 2, b // 2
                    src = (pa * 2 + pb) * 36 + ah * 6 + bh
                    lane = (kh * 5 + kw) * 10
                    p2_scr[:, pl.ds(q * 24, 22), pl.ds(lane, 10)] = (
                        y1_scr[:, pl.ds(src, 22), 0:10])

    # ---- conv2 matmul + pool-max + bias + ReLU (dropout2d is identity in eval mode)
    for n in range(n_batch):
        c2 = jnp.dot(p2_scr[n], w2_ref[...],
                     preferred_element_type=jnp.float32)               # (96, 128)
        m2 = jnp.maximum(jnp.maximum(c2[0:24, :], c2[24:48, :]),
                         jnp.maximum(c2[48:72, :], c2[72:96, :]))      # (24, 128)
        y2_scr[n] = jnp.maximum(m2 + b2_ref[...], 0.0)

    # ---- fc1 + ReLU: the NCHW flatten is folded into wf1's layout at init,
    # so we just accumulate one small matmul per spatial position.
    h = None
    for oh2 in range(4):
        for ow2 in range(4):
            xv = y2_scr[:, oh2 * 6 + ow2, 0:_CFC]                      # (N, 32)
            t = jnp.dot(xv, wf1_ref[oh2 * 4 + ow2],
                        preferred_element_type=jnp.float32)            # (N, 64)
            h = t if h is None else h + t
    h = jnp.maximum(h + bf1_ref[...], 0.0)                              # (N, 64)
    # TODO(synk): F.dropout / nn.Dropout2d are identity here (eval mode, as in the tutorial).

    # ---- fc2 + log_softmax (padded logit lanes carry a -1e30 bias -> masked out)
    logits = jnp.dot(h, wf2_ref[...],
                     preferred_element_type=jnp.float32) + bf2_ref[...]  # (N, 128)
    m = jnp.max(logits, axis=-1, keepdims=True)
    s = logits - m
    lse = jnp.log(jnp.sum(jnp.exp(s), axis=-1, keepdims=True))
    o_ref[...] = s - lse


# ----------------------------- pallas_call glue ----------------------------

def _full_spec(shape):
    nd = len(shape)
    return pl.BlockSpec(shape, lambda i, nd=nd: (0,) * nd)


def _fused_forward(p1, params, n_batch):
    args = (p1, params["w1p"], params["b1p"], params["w2p"], params["b2p"],
            params["wf1p"], params["bf1p"], params["wf2p"], params["bf2p"])
    return pl.pallas_call(
        _fused_kernel,
        grid=(1,),
        in_specs=[_full_spec(a.shape) for a in args],
        out_specs=_full_spec((n_batch, _OUTP)),
        out_shape=jax.ShapeDtypeStruct((n_batch, _OUTP), jnp.float32),
        scratch_shapes=[
            pltpu.VMEM((4 * n_batch * 144, _C1P), jnp.float32),   # conv1 matmul result
            pltpu.VMEM((n_batch, 144, _C1P), jnp.float32),        # y1 (pooled conv1)
            pltpu.VMEM((n_batch, 96, _K2P), jnp.float32),         # conv2 im2col patches
            pltpu.VMEM((n_batch, 24, _C2P), jnp.float32),         # y2 (pooled conv2)
        ],
    )(*args)


# --------------------- conv1 patch extraction (host glue) -------------------

def _conv1_patches(x):
    """x: (N, 28, 28) -> (4*N*144, 32) conv1 patches.

    Row order: (pool offset (qh,qw), n, pa, pb, jh, jw) where the pooled conv1
    output coordinate is (oh1, ow1) = (2*jh+pa, 2*jw+pb); lane order = kh*5+kw.
    """
    n = x.shape[0]
    cols = [x[:, kh:kh + 24, kw:kw + 24] for kh in range(5) for kw in range(5)]
    p = jnp.stack(cols, axis=-1)                          # (N, 24, 24, 25)
    p = jnp.pad(p, ((0, 0), (0, 0), (0, 0), (0, 7)))      # (N, 24, 24, 32)
    # pre-pool coord h2 = 4*jh + 2*pa + qh (same for w2)
    p = p.reshape(n, 6, 2, 2, 6, 2, 2, 32)                # (N, jh, pa, qh, jw, pb, qw, k)
    p = p.transpose(3, 6, 0, 2, 5, 1, 4, 7)               # (qh, qw, N, pa, pb, jh, jw, k)
    return p.reshape(4 * n * 144, 32)


def net_forward(x_nchw, params):
    n = x_nchw.shape[0]
    assert x_nchw.shape[1:] == (1, 28, 28)
    x = x_nchw.reshape(n, 28, 28)
    p1 = _conv1_patches(x)
    out = _fused_forward(p1, params, n)
    return out[:, :10]


# ------------------------- deterministic parameters ------------------------

def init_params(key):
    ks = jax.random.split(key, 8)

    def u(k, shape, fan_in):
        bound = 1.0 / jnp.sqrt(float(fan_in))
        return jax.random.uniform(k, shape, jnp.float32, -bound, bound)

    w1 = u(ks[0], (10, 1, 5, 5), 25)      # conv1.weight
    b1 = u(ks[1], (10,), 25)              # conv1.bias
    w2 = u(ks[2], (20, 10, 5, 5), 250)    # conv2.weight
    b2 = u(ks[3], (20,), 250)             # conv2.bias
    fw1 = u(ks[4], (50, 320), 320)        # fc1.weight
    fb1 = u(ks[5], (50,), 320)            # fc1.bias
    fw2 = u(ks[6], (10, 50), 50)          # fc2.weight
    fb2 = u(ks[7], (10,), 50)             # fc2.bias
    raw = dict(w1=w1, b1=b1, w2=w2, b2=b2, fw1=fw1, fb1=fb1, fw2=fw2, fb2=fb2)

    # conv1: (Cout,1,5,5) -> (25, Cout), k = kh*5+kw, pad to (32, 128)
    w1p = jnp.zeros((_K1P, _C1P), jnp.float32).at[:25, :10].set(w1.reshape(10, 25).T)
    b1p = jnp.zeros((1, _C1P), jnp.float32).at[0, :10].set(b1)
    # conv2: (Cout,Cin,5,5) -> (kh,kw,Cin,Cout) -> (250, 20), pad to (256, 128);
    # matches the in-kernel patch lane order (kh*5+kw)*10 + cin
    w2r = jnp.transpose(w2, (2, 3, 1, 0)).reshape(250, 20)
    w2p = jnp.zeros((_K2P, _C2P), jnp.float32).at[:250, :20].set(w2r)
    b2p = jnp.zeros((1, _C2P), jnp.float32).at[0, :20].set(b2)
    # fc1: PyTorch feature index = c*16 + oh2*4 + ow2 -> one (32, 64) block per
    # spatial position, so the kernel needs no activation transpose/flatten.
    f1 = jnp.transpose(fw1.reshape(50, 20, 16), (2, 1, 0))   # (r=16, c=20, j=50)
    wf1p = jnp.zeros((16, _CFC, _HFC), jnp.float32).at[:, :20, :50].set(f1)
    bf1p = jnp.zeros((1, _HFC), jnp.float32).at[0, :50].set(fb1)
    # fc2: pad to (64, 128); padded logit lanes get a -1e30 bias (log_softmax mask)
    wf2p = jnp.zeros((_HFC, _OUTP), jnp.float32).at[:50, :10].set(fw2.T)
    bf2p = jnp.full((1, _OUTP), -1e30, jnp.float32).at[0, :10].set(fb2)

    packed = dict(w1p=w1p, b1p=b1p, w2p=w2p, b2p=b2p,
                  wf1p=wf1p, bf1p=bf1p, wf2p=wf2p, bf2p=bf2p)
    return raw, packed


# ----------------------------- pure-JAX reference ---------------------------

def _maxpool2(x):
    return lax.reduce_window(x, -jnp.inf, lax.max, (1, 1, 2, 2), (1, 1, 2, 2), "VALID")


def _reference_forward(x_nchw, raw):
    dn = ("NCHW", "OIHW", "NCHW")
    y = lax.conv_general_dilated(x_nchw, raw["w1"], (1, 1), "VALID",
                                 dimension_numbers=dn) + raw["b1"][None, :, None, None]
    y = jnp.maximum(_maxpool2(y), 0.0)
    y = lax.conv_general_dilated(y, raw["w2"], (1, 1), "VALID",
                                 dimension_numbers=dn) + raw["b2"][None, :, None, None]
    y = jnp.maximum(_maxpool2(y), 0.0)
    y = y.reshape(y.shape[0], 320)
    y = jnp.maximum(y @ raw["fw1"].T + raw["fb1"], 0.0)
    y = y @ raw["fw2"].T + raw["fb2"]
    return jax.nn.log_softmax(y, axis=-1)


if __name__ == "__main__":
    key = jax.random.PRNGKey(0)
    pkey, xkey = jax.random.split(key)
    raw, packed = init_params(pkey)
    # fc1(320) pins the spatial size to 28x28 (MNIST); batch=2, 1 channel.
    x = jax.random.normal(xkey, (2, 1, 28, 28), dtype=jnp.float32)

    out = jax.jit(net_forward)(x, packed)
    out = jax.block_until_ready(out)
    assert out.shape == (2, 10)
    # log_softmax rows sum (in prob space) to ~1
    assert jnp.allclose(jnp.sum(jnp.exp(out), axis=1), 1.0, atol=1e-4)
    # matches a pure-JAX reference of the PyTorch module (eval mode)
    ref = _reference_forward(x, raw)
    assert jnp.max(jnp.abs(out - ref)) < 0.1, float(jnp.max(jnp.abs(out - ref)))
    print("KERNEL_OK")
</pallas_src>

<mosaic_0001>
module attributes {stable_mosaic.version = 11 : i64} {
  func.func @_fused_kernel(%arg0: i32, %arg1: memref<1152x32xf32, #tpu.memory_space<vmem>>, %arg2: memref<32x128xf32, #tpu.memory_space<vmem>>, %arg3: memref<1x128xf32, #tpu.memory_space<vmem>>, %arg4: memref<256x128xf32, #tpu.memory_space<vmem>>, %arg5: memref<1x128xf32, #tpu.memory_space<vmem>>, %arg6: memref<16x32x64xf32, #tpu.memory_space<vmem>>, %arg7: memref<1x64xf32, #tpu.memory_space<vmem>>, %arg8: memref<64x128xf32, #tpu.memory_space<vmem>>, %arg9: memref<1x128xf32, #tpu.memory_space<vmem>>, %arg10: memref<2x128xf32, #tpu.memory_space<vmem>>, %arg11: memref<1152x128xf32, #tpu.memory_space<vmem>>, %arg12: memref<2x144x128xf32, #tpu.memory_space<vmem>>, %arg13: memref<2x96x256xf32, #tpu.memory_space<vmem>>, %arg14: memref<2x24x128xf32, #tpu.memory_space<vmem>>) attributes {dimension_semantics = [#tpu.dimension_semantics<arbitrary>], iteration_bounds = array<i64: 1>, scalar_prefetch = 0 : i64, scratch_operands = 4 : i64, tpu.core_type = #tpu.core_type<tc>, window_params = [{pipeline_mode = #tpu.pipeline_mode<synchronous>, transform_indices = @transform_0, window_bounds = array<i64: 1152, 32>}, {pipeline_mode = #tpu.pipeline_mode<synchronous>, transform_indices = @transform_1, window_bounds = array<i64: 32, 128>}, {pipeline_mode = #tpu.pipeline_mode<synchronous>, transform_indices = @transform_2, window_bounds = array<i64: 1, 128>}, {pipeline_mode = #tpu.pipeline_mode<synchronous>, transform_indices = @transform_3, window_bounds = array<i64: 256, 128>}, {pipeline_mode = #tpu.pipeline_mode<synchronous>, transform_indices = @transform_4, window_bounds = array<i64: 1, 128>}, {pipeline_mode = #tpu.pipeline_mode<synchronous>, transform_indices = @transform_5, window_bounds = array<i64: 16, 32, 64>}, {pipeline_mode = #tpu.pipeline_mode<synchronous>, transform_indices = @transform_6, window_bounds = array<i64: 1, 64>}, {pipeline_mode = #tpu.pipeline_mode<synchronous>, transform_indices = @transform_7, window_bounds = array<i64: 64, 128>}, {pipeline_mode = #tpu.pipeline_mode<synchronous>, transform_indices = @transform_8, window_bounds = array<i64: 1, 128>}, {pipeline_mode = #tpu.pipeline_mode<synchronous>, transform_indices = @transform_9, window_bounds = array<i64: 2, 128>}]} {
    %c0 = arith.constant 0 : index
    %c0_0 = arith.constant 0 : index
    %0 = vector.load %arg1[%c0, %c0_0] : memref<1152x32xf32, #tpu.memory_space<vmem>>, vector<1152x32xf32>
    %c0_1 = arith.constant 0 : index
    %c0_2 = arith.constant 0 : index
    %1 = vector.load %arg2[%c0_1, %c0_2] : memref<32x128xf32, #tpu.memory_space<vmem>>, vector<32x128xf32>
    %cst = arith.constant dense<0.000000e+00> : vector<1152x128xf32>
    %2 = tpu.matmul %0, %1, %cst {dimension_numbers = #tpu.dot_dimension_numbers<[1], [0], [0], [1], [0, 0, 1, 1], [], []>} : vector<1152x32xf32>, vector<32x128xf32>, vector<1152x128xf32> -> vector<1152x128xf32>
    %c0_3 = arith.constant 0 : index
    %c0_4 = arith.constant 0 : index
    %3 = vector.load %arg11[%c0_3, %c0_4] : memref<1152x128xf32, #tpu.memory_space<vmem>>, vector<1152x128xf32>
    tpu.vector_store %arg11[%c0_3, %c0_4], %2 {strides = array<i32>} : memref<1152x128xf32, #tpu.memory_space<vmem>>, vector<1152x128xf32>,
    %c0_5 = arith.constant 0 : index
    %c0_6 = arith.constant 0 : index
    %4 = vector.load %arg11[%c0_5, %c0_6] : memref<1152x128xf32, #tpu.memory_space<vmem>>, vector<288x128xf32>
    %c288 = arith.constant 288 : index
    %c0_7 = arith.constant 0 : index
    %5 = vector.load %arg11[%c288, %c0_7] : memref<1152x128xf32, #tpu.memory_space<vmem>>, vector<288x128xf32>
    %6 = arith.maximumf %4, %5 : vector<288x128xf32>
    %c576 = arith.constant 576 : index
    %c0_8 = arith.constant 0 : index
    %7 = vector.load %arg11[%c576, %c0_8] : memref<1152x128xf32, #tpu.memory_space<vmem>>, vector<288x128xf32>
    %c864 = arith.constant 864 : index
    %c0_9 = arith.constant 0 : index
    %8 = vector.load %arg11[%c864, %c0_9] : memref<1152x128xf32, #tpu.memory_space<vmem>>, vector<288x128xf32>
    %9 = arith.maximumf %7, %8 : vector<288x128xf32>
    %10 = arith.maximumf %6, %9 : vector<288x128xf32>
    %c0_10 = arith.constant 0 : index
    %c0_11 = arith.constant 0 : index
    %11 = vector.load %arg3[%c0_10, %c0_11] : memref<1x128xf32, #tpu.memory_space<vmem>>, vector<1x128xf32>
    %12 = vector.broadcast %11 : vector<1x128xf32> to vector<288x128xf32>
    %13 = arith.addf %10, %12 : vector<288x128xf32>
    %cst_12 = arith.constant 0.000000e+00 : f32
    %14 = vector.broadcast %cst_12 : f32 to vector<288x128xf32>
    %15 = arith.maximumf %13, %14 : vector<288x128xf32>
    %16 = vector.extract_strided_slice %15 {offsets = [0, 0], sizes = [144, 128], strides = [1, 1]} : vector<288x128xf32> to vector<144x128xf32>
    %c0_13 = arith.constant 0 : index
    %c0_14 = arith.constant 0 : index
    %c0_15 = arith.constant 0 : index
    %17 = vector.load %arg12[%c0_13, %c0_14, %c0_15] : memref<2x144x128xf32, #tpu.memory_space<vmem>>, vector<1x144x128xf32>
    %18 = vector.shape_cast %17 : vector<1x144x128xf32> to vector<144x128xf32>
    %19 = vector.shape_cast %16 : vector<144x128xf32> to vector<1x144x128xf32>
    tpu.vector_store %arg12[%c0_13, %c0_14, %c0_15], %19 {strides = array<i32>} : memref<2x144x128xf32, #tpu.memory_space<vmem>>, vector<1x144x128xf32>,
    %20 = vector.extract_strided_slice %15 {offsets = [144, 0], sizes = [144, 128], strides = [1, 1]} : vector<288x128xf32> to vector<144x128xf32>
    %c1 = arith.constant 1 : index
    %c0_16 = arith.constant 0 : index
    %c0_17 = arith.constant 0 : index
    %21 = vector.load %arg12[%c1, %c0_16, %c0_17] : memref<2x144x128xf32, #tpu.memory_space<vmem>>, vector<1x144x128xf32>
    %22 = vector.shape_cast %21 : vector<1x144x128xf32> to vector<144x128xf32>
    %23 = vector.shape_cast %20 : vector<144x128xf32> to vector<1x144x128xf32>
    tpu.vector_store %arg12[%c1, %c0_16, %c0_17], %23 {strides = array<i32>} : memref<2x144x128xf32, #tpu.memory_space<vmem>>, vector<1x144x128xf32>,
    %cst_18 = arith.constant 0.000000e+00 : f32
    %24 = vector.broadcast %cst_18 : f32 to vector<2x96x256xf32>
    %c0_19 = arith.constant 0 : index
    %c0_20 = arith.constant 0 : index
    %c0_21 = arith.constant 0 : index
    %25 = vector.load %arg13[%c0_19, %c0_20, %c0_21] : memref<2x96x256xf32, #tpu.memory_space<vmem>>, vector<2x96x256xf32>
    tpu.vector_store %arg13[%c0_19, %c0_20, %c0_21], %24 {strides = array<i32>} : memref<2x96x256xf32, #tpu.memory_space<vmem>>, vector<2x96x256xf32>,
    %c0_22 = arith.constant 0 : index
    %c0_23 = arith.constant 0 : index
    %c0_24 = arith.constant 0 : index
    %26 = vector.load %arg12[%c0_22, %c0_23, %c0_24] : memref<2x144x128xf32, #tpu.memory_space<vmem>>, vector<2x22x10xf32>
    %c0_25 = arith.constant 0 : index
    %c0_26 = arith.constant 0 : index
    %c0_27 = arith.constant 0 : index
    %27 = vector.load %arg13[%c0_25, %c0_26, %c0_27] : memref<2x96x256xf32, #tpu.memory_space<vmem>>, vector<2x22x10xf32>
    tpu.vector_store %arg13[%c0_25, %c0_26, %c0_27], %26 {strides = array<i32>} : memref<2x96x256xf32, #tpu.memory_space<vmem>>, vector<2x22x10xf32>,
    %c0_28 = arith.constant 0 : index
    %c36 = arith.constant 36 : index
    %c0_29 = arith.constant 0 : index
    %28 = vector.load %arg12[%c0_28, %c36, %c0_29] : memref<2x144x128xf32, #tpu.memory_space<vmem>>, vector<2x22x10xf32>
    %c0_30 = arith.constant 0 : index
    %c0_31 = arith.constant 0 : index
    %c10 = arith.constant 10 : index
    %29 = vector.load %arg13[%c0_30, %c0_31, %c10] : memref<2x96x256xf32, #tpu.memory_space<vmem>>, vector<2x22x10xf32>
    tpu.vector_store %arg13[%c0_30, %c0_31, %c10], %28 {strides = array<i32>} : memref<2x96x256xf32, #tpu.memory_space<vmem>>, vector<2x22x10xf32>,
    %c0_32 = arith.constant 0 : index
    %c1_33 = arith.constant 1 : index
    %c0_34 = arith.constant 0 : index
    %30 = vector.load %arg12[%c0_32, %c1_33, %c0_34] : memref<2x144x128xf32, #tpu.memory_space<vmem>>, vector<2x22x10xf32>
    %c0_35 = arith.constant 0 : index
    %c0_36 = arith.constant 0 : index
    %c20 = arith.constant 20 : index
    %31 = vector.load %arg13[%c0_35, %c0_36, %c20] : memref<2x96x256xf32, #tpu.memory_space<vmem>>, vector<2x22x10xf32>
    tpu.vector_store %arg13[%c0_35, %c0_36, %c20], %30 {strides = array<i32>} : memref<2x96x256xf32, #tpu.memory_space<vmem>>, vector<2x22x10xf32>,
    %c0_37 = arith.constant 0 : index
    %c37 = arith.constant 37 : index
    %c0_38 = arith.constant 0 : index
    %32 = vector.load %arg12[%c0_37, %c37, %c0_38] : memref<2x144x128xf32, #tpu.memory_space<vmem>>, vector<2x22x10xf32>
    %c0_39 = arith.constant 0 : index
    %c0_40 = arith.constant 0 : index
    %c30 = arith.constant 30 : index
    %33 = vector.load %arg13[%c0_39, %c0_40, %c30] : memref<2x96x256xf32, #tpu.memory_space<vmem>>, vector<2x22x10xf32>
    tpu.vector_store %arg13[%c0_39, %c0_40, %c30], %32 {strides = array<i32>} : memref<2x96x256xf32, #tpu.memory_space<vmem>>, vector<2x22x10xf32>,
    %c0_41 = arith.constant 0 : index
    %c2 = arith.constant 2 : index
    %c0_42 = arith.constant 0 : index
    %34 = vector.load %arg12[%c0_41, %c2, %c0_42] : memref<2x144x128xf32, #tpu.memory_space<vmem>>, vector<2x22x10xf32>
    %c0_43 = arith.constant 0 : index
    %c0_44 = arith.constant 0 : index
    %c40 = arith.constant 40 : index
    %35 = vector.load %arg13[%c0_43, %c0_44, %c40] : memref<2x96x256xf32, #tpu.memory_space<vmem>>, vector<2x22x10xf32>
    tpu.vector_store %arg13[%c0_43, %c0_44, %c40], %34 {strides = array<i32>} : memref<2x96x256xf32, #tpu.memory_space<vmem>>, vector<2x22x10xf32>,
    %c0_45 = arith.constant 0 : index
    %c72 = arith.constant 72 : index
    %c0_46 = arith.constant 0 : index
    %36 = vector.load %arg12[%c0_45, %c72, %c0_46] : memref<2x144x128xf32, #tpu.memory_space<vmem>>, vector<2x22x10xf32>
    %c0_47 = arith.constant 0 : index
    %c0_48 = arith.constant 0 : index
    %c50 = arith.constant 50 : index
    %37 = vector.load %arg13[%c0_47, %c0_48, %c50] : memref<2x96x256xf32, #tpu.memory_space<vmem>>, vector<2x22x10xf32>
    tpu.vector_store %arg13[%c0_47, %c0_48, %c50], %36 {strides = array<i32>} : memref<2x96x256xf32, #tpu.memory_space<vmem>>, vector<2x22x10xf32>,
    %c0_49 = arith.constant 0 : index
    %c108 = arith.constant 108 : index
    %c0_50 = arith.constant 0 : index
    %38 = vector.load %arg12[%c0_49, %c108, %c0_50] : memref<2x144x128xf32, #tpu.memory_space<vmem>>, vector<2x22x10xf32>
    %c0_51 = arith.constant 0 : index
    %c0_52 = arith.constant 0 : index
    %c60 = arith.constant 60 : index
    %39 = vector.load %arg13[%c0_51, %c0_52, %c60] : memref<2x96x256xf32, #tpu.memory_space<vmem>>, vector<2x22x10xf32>
    tpu.vector_store %arg13[%c0_51, %c0_52, %c60], %38 {strides = array<i32>} : memref<2x96x256xf32, #tpu.memory_space<vmem>>, vector<2x22x10xf32>,
    %c0_53 = arith.constant 0 : index
    %c73 = arith.constant 73 : index
    %c0_54 = arith.constant 0 : index
    %40 = vector.load %arg12[%c0_53, %c73, %c0_54] : memref<2x144x128xf32, #tpu.memory_space<vmem>>, vector<2x22x10xf32>
    %c0_55 = arith.constant 0 : index
    %c0_56 = arith.constant 0 : index
    %c70 = arith.constant 70 : index
    %41 = vector.load %arg13[%c0_55, %c0_56, %c70] : memref<2x96x256xf32, #tpu.memory_space<vmem>>, vector<2x22x10xf32>
    tpu.vector_store %arg13[%c0_55, %c0_56, %c70], %40 {strides = array<i32>} : memref<2x96x256xf32, #tpu.memory_space<vmem>>, vector<2x22x10xf32>,
    %c0_57 = arith.constant 0 : index
    %c109 = arith.constant 109 : index
    %c0_58 = arith.constant 0 : index
    %42 = vector.load %arg12[%c0_57, %c109, %c0_58] : memref<2x144x128xf32, #tpu.memory_space<vmem>>, vector<2x22x10xf32>
    %c0_59 = arith.constant 0 : index
    %c0_60 = arith.constant 0 : index
    %c80 = arith.constant 80 : index
    %43 = vector.load %arg13[%c0_59, %c0_60, %c80] : memref<2x96x256xf32, #tpu.memory_space<vmem>>, vector<2x22x10xf32>
    tpu.vector_store %arg13[%c0_59, %c0_60, %c80], %42 {strides = array<i32>} : memref<2x96x256xf32, #tpu.memory_space<vmem>>, vector<2x22x10xf32>,
    %c0_61 = arith.constant 0 : index
    %c74 = arith.constant 74 : index
    %c0_62 = arith.constant 0 : index
    %44 = vector.load %arg12[%c0_61, %c74, %c0_62] : memref<2x144x128xf32, #tpu.memory_space<vmem>>, vector<2x22x10xf32>
    %c0_63 = arith.constant 0 : index
    %c0_64 = arith.constant 0 : index
    %c90 = arith.constant 90 : index
    %45 = vector.load %arg13[%c0_63, %c0_64, %c90] : memref<2x96x256xf32, #tpu.memory_space<vmem>>, vector<2x22x10xf32>
    tpu.vector_store %arg13[%c0_63, %c0_64, %c90], %44 {strides = array<i32>} : memref<2x96x256xf32, #tpu.memory_space<vmem>>, vector<2x22x10xf32>,
    %c0_65 = arith.constant 0 : index
    %c6 = arith.constant 6 : index
    %c0_66 = arith.constant 0 : index
    %46 = vector.load %arg12[%c0_65, %c6, %c0_66] : memref<2x144x128xf32, #tpu.memory_space<vmem>>, vector<2x22x10xf32>
    %c0_67 = arith.constant 0 : index
    %c0_68 = arith.constant 0 : index
    %c100 = arith.constant 100 : index
    %47 = vector.load %arg13[%c0_67, %c0_68, %c100] : memref<2x96x256xf32, #tpu.memory_space<vmem>>, vector<2x22x10xf32>
    tpu.vector_store %arg13[%c0_67, %c0_68, %c100], %46 {strides = array<i32>} : memref<2x96x256xf32, #tpu.memory_space<vmem>>, vector<2x22x10xf32>,
    %c0_69 = arith.constant 0 : index
    %c42 = arith.constant 42 : index
    %c0_70 = arith.constant 0 : index
    %48 = vector.load %arg12[%c0_69, %c42, %c0_70] : memref<2x144x128xf32, #tpu.memory_space<vmem>>, vector<2x22x10xf32>
    %c0_71 = arith.constant 0 : index
    %c0_72 = arith.constant 0 : index
    %c110 = arith.constant 110 : index
    %49 = vector.load %arg13[%c0_71, %c0_72, %c110] : memref<2x96x256xf32, #tpu.memory_space<vmem>>, vector<2x22x10xf32>
    tpu.vector_store %arg13[%c0_71, %c0_72, %c110], %48 {strides = array<i32>} : memref<2x96x256xf32, #tpu.memory_space<vmem>>, vector<2x22x10xf32>,
    %c0_73 = arith.constant 0 : index
    %c7 = arith.constant 7 : index
    %c0_74 = arith.constant 0 : index
    %50 = vector.load %arg12[%c0_73, %c7, %c0_74] : memref<2x144x128xf32, #tpu.memory_space<vmem>>, vector<2x22x10xf32>
    %c0_75 = arith.constant 0 : index
    %c0_76 = arith.constant 0 : index
    %c120 = arith.constant 120 : index
    %51 = vector.load %arg13[%c0_75, %c0_76, %c120] : memref<2x96x256xf32, #tpu.memory_space<vmem>>, vector<2x22x10xf32>
    tpu.vector_store %arg13[%c0_75, %c0_76, %c120], %50 {strides = array<i32>} : memref<2x96x256xf32, #tpu.memory_space<vmem>>, vector<2x22x10xf32>,
    %c0_77 = arith.constant 0 : index
    %c43 = arith.constant 43 : index
    %c0_78 = arith.constant 0 : index
    %52 = vector.load %arg12[%c0_77, %c43, %c0_78] : memref<2x144x128xf32, #tpu.memory_space<vmem>>, vector<2x22x10xf32>
    %c0_79 = arith.constant 0 : index
    %c0_80 = arith.constant 0 : index
    %c130 = arith.constant 130 : index
    %53 = vector.load %arg13[%c0_79, %c0_80, %c130] : memref<2x96x256xf32, #tpu.memory_space<vmem>>, vector<2x22x10xf32>
    tpu.vector_store %arg13[%c0_79, %c0_80, %c130], %52 {strides = array<i32>} : memref<2x96x256xf32, #tpu.memory_space<vmem>>, vector<2x22x10xf32>,
    %c0_81 = arith.constant 0 : index
    %c8 = arith.constant 8 : index
    %c0_82 = arith.constant 0 : index
    %54 = vector.load %arg12[%c0_81, %c8, %c0_82] : memref<2x144x128xf32, #tpu.memory_space<vmem>>, vector<2x22x10xf32>
    %c0_83 = arith.constant 0 : index
    %c0_84 = arith.constant 0 : index
    %c140 = arith.constant 140 : index
    %55 = vector.load %arg13[%c0_83, %c0_84, %c140] : memref<2x96x256xf32, #tpu.memory_space<vmem>>, vector<2x22x10xf32>
    tpu.vector_store %arg13[%c0_83, %c0_84, %c140], %54 {strides = array<i32>} : memref<2x96x256xf32, #tpu.memory_space<vmem>>, vector<2x22x10xf32>,
    %c0_85 = arith.constant 0 : index
    %c78 = arith.constant 78 : index
    %c0_86 = arith.constant 0 : index
    %56 = vector.load %arg12[%c0_85, %c78, %c0_86] : memref<2x144x128xf32, #tpu.memory_space<vmem>>, vector<2x22x10xf32>
    %c0_87 = arith.constant 0 : index
    %c0_88 = arith.constant 0 : index
    %c150 = arith.constant 150 : index
    %57 = vector.load %arg13[%c0_87, %c0_88, %c150] : memref<2x96x256xf32, #tpu.memory_space<vmem>>, vector<2x22x10xf32>
    tpu.vector_store %arg13[%c0_87, %c0_88, %c150], %56 {strides = array<i32>} : memref<2x96x256xf32, #tpu.memory_space<vmem>>, vector<2x22x10xf32>,
    %c0_89 = arith.constant 0 : index
    %c114 = arith.constant 114 : index
    %c0_90 = arith.constant 0 : index
    %58 = vector.load %arg12[%c0_89, %c114, %c0_90] : memref<2x144x128xf32, #tpu.memory_space<vmem>>, vector<2x22x10xf32>
    %c0_91 = arith.constant 0 : index
    %c0_92 = arith.constant 0 : index
    %c160 = arith.constant 160 : index
    %59 = vector.load %arg13[%c0_91, %c0_92, %c160] : memref<2x96x256xf32, #tpu.memory_space<vmem>>, vector<2x22x10xf32>
    tpu.vector_store %arg13[%c0_91, %c0_92, %c160], %58 {strides = array<i32>} : memref<2x96x256xf32, #tpu.memory_space<vmem>>, vector<2x22x10xf32>,
    %c0_93 = arith.constant 0 : index
    %c79 = arith.constant 79 : index
    %c0_94 = arith.constant 0 : index
    %60 = vector.load %arg12[%c0_93, %c79, %c0_94] : memref<2x144x128xf32, #tpu.memory_space<vmem>>, vector<2x22x10xf32>
    %c0_95 = arith.constant 0 : index
    %c0_96 = arith.constant 0 : index
    %c170 = arith.constant 170 : index
    %61 = vector.load %arg13[%c0_95, %c0_96, %c170] : memref<2x96x256xf32, #tpu.memory_space<vmem>>, vector<2x22x10xf32>
    tpu.vector_store %arg13[%c0_95, %c0_96, %c170], %60 {strides = array<i32>} : memref<2x96x256xf32, #tpu.memory_space<vmem>>, vector<2x22x10xf32>,
    %c0_97 = arith.constant 0 : index
    %c115 = arith.constant 115 : index
    %c0_98 = arith.constant 0 : index
    %62 = vector.load %arg12[%c0_97, %c115, %c0_98] : memref<2x144x128xf32, #tpu.memory_space<vmem>>, vector<2x22x10xf32>
    %c0_99 = arith.constant 0 : index
    %c0_100 = arith.constant 0 : index
    %c180 = arith.constant 180 : index
    %63 = vector.load %arg13[%c0_99, %c0_100, %c180] : memref<2x96x256xf32, #tpu.memory_space<vmem>>, vector<2x22x10xf32>
    tpu.vector_store %arg13[%c0_99, %c0_100, %c180], %62 {strides = array<i32>} : memref<2x96x256xf32, #tpu.memory_space<vmem>>, vector<2x22x10xf32>,
    %c0_101 = arith.constant 0 : index
    %c80_102 = arith.constant 80 : index
    %c0_103 = arith.constant 0 : index
    %64 = vector.load %arg12[%c0_101, %c80_102, %c0_103] : memref<2x144x128xf32, #tpu.memory_space<vmem>>, vector<2x22x10xf32>
    %c0_104 = arith.constant 0 : index
    %c0_105 = arith.constant 0 : index
    %c190 = arith.constant 190 : index
    %65 = vector.load %arg13[%c0_104, %c0_105, %c190] : memref<2x96x256xf32, #tpu.memory_space<vmem>>, vector<2x22x10xf32>
    tpu.vector_store %arg13[%c0_104, %c0_105, %c190], %64 {strides = array<i32>} : memref<2x96x256xf32, #tpu.memory_space<vmem>>, vector<2x22x10xf32>,
    %c0_106 = arith.constant 0 : index
    %c12 = arith.constant 12 : index
    %c0_107 = arith.constant 0 : index
    %66 = vector.load %arg12[%c0_106, %c12, %c0_107] : memref<2x144x128xf32, #tpu.memory_space<vmem>>, vector<2x22x10xf32>
    %c0_108 = arith.constant 0 : index
    %c0_109 = arith.constant 0 : index
    %c200 = arith.constant 200 : index
    %67 = vector.load %arg13[%c0_108, %c0_109, %c200] : memref<2x96x256xf32, #tpu.memory_space<vmem>>, vector<2x22x10xf32>
    tpu.vector_store %arg13[%c0_108, %c0_109, %c200], %66 {strides = array<i32>} : memref<2x96x256xf32, #tpu.memory_space<vmem>>, vector<2x22x10xf32>,
    %c0_110 = arith.constant 0 : index
    %c48 = arith.constant 48 : index
    %c0_111 = arith.constant 0 : index
    %68 = vector.load %arg12[%c0_110, %c48, %c0_111] : memref<2x144x128xf32, #tpu.memory_space<vmem>>, vector<2x22x10xf32>
    %c0_112 = arith.constant 0 : index
    %c0_113 = arith.constant 0 : index
    %c210 = arith.constant 210 : index
    %69 = vector.load %arg13[%c0_112, %c0_113, %c210] : memref<2x96x256xf32, #tpu.memory_space<vmem>>, vector<2x22x10xf32>
    tpu.vector_store %arg13[%c0_112, %c0_113, %c210], %68 {strides = array<i32>} : memref<2x96x256xf32, #tpu.memory_space<vmem>>, vector<2x22x10xf32>,
    %c0_114 = arith.constant 0 : index
    %c13 = arith.constant 13 : index
    %c0_115 = arith.constant 0 : index
    %70 = vector.load %arg12[%c0_114, %c13, %c0_115] : memref<2x144x128xf32, #tpu.memory_space<vmem>>, vector<2x22x10xf32>
    %c0_116 = arith.constant 0 : index
    %c0_117 = arith.constant 0 : index
    %c220 = arith.constant 220 : index
    %71 = vector.load %arg13[%c0_116, %c0_117, %c220] : memref<2x96x256xf32, #tpu.memory_space<vmem>>, vector<2x22x10xf32>
    tpu.vector_store %arg13[%c0_116, %c0_117, %c220], %70 {strides = array<i32>} : memref<2x96x256xf32, #tpu.memory_space<vmem>>, vector<2x22x10xf32>,
    %c0_118 = arith.constant 0 : index
    %c49 = arith.constant 49 : index
    %c0_119 = arith.constant 0 : index
    %72 = vector.load %arg12[%c0_118, %c49, %c0_119] : memref<2x144x128xf32, #tpu.memory_space<vmem>>, vector<2x22x10xf32>
    %c0_120 = arith.constant 0 : index
    %c0_121 = arith.constant 0 : index
    %c230 = arith.constant 230 : index
    %73 = vector.load %arg13[%c0_120, %c0_121, %c230] : memref<2x96x256xf32, #tpu.memory_space<vmem>>, vector<2x22x10xf32>
    tpu.vector_store %arg13[%c0_120, %c0_121, %c230], %72 {strides = array<i32>} : memref<2x96x256xf32, #tpu.memory_space<vmem>>, vector<2x22x10xf32>,
    %c0_122 = arith.constant 0 : index
    %c14 = arith.constant 14 : index
    %c0_123 = arith.constant 0 : index
    %74 = vector.load %arg12[%c0_122, %c14, %c0_123] : memref<2x144x128xf32, #tpu.memory_space<vmem>>, vector<2x22x10xf32>
    %c0_124 = arith.constant 0 : index
    %c0_125 = arith.constant 0 : index
    %c240 = arith.constant 240 : index
    %75 = vector.load %arg13[%c0_124, %c0_125, %c240] : memref<2x96x256xf32, #tpu.memory_space<vmem>>, vector<2x22x10xf32>
    tpu.vector_store %arg13[%c0_124, %c0_125, %c240], %74 {strides = array<i32>} : memref<2x96x256xf32, #tpu.memory_space<vmem>>, vector<2x22x10xf32>,
    %c0_126 = arith.constant 0 : index
    %c36_127 = arith.constant 36 : index
    %c0_128 = arith.constant 0 : index
    %76 = vector.load %arg12[%c0_126, %c36_127, %c0_128] : memref<2x144x128xf32, #tpu.memory_space<vmem>>, vector<2x22x10xf32>
    %c0_129 = arith.constant 0 : index
    %c24 = arith.constant 24 : index
    %c0_130 = arith.constant 0 : index
    %77 = vector.load %arg13[%c0_129, %c24, %c0_130] : memref<2x96x256xf32, #tpu.memory_space<vmem>>, vector<2x22x10xf32>
    tpu.vector_store %arg13[%c0_129, %c24, %c0_130], %76 {strides = array<i32>} : memref<2x96x256xf32, #tpu.memory_space<vmem>>, vector<2x22x10xf32>,
    %c0_131 = arith.constant 0 : index
    %c1_132 = arith.constant 1 : index
    %c0_133 = arith.constant 0 : index
    %78 = vector.load %arg12[%c0_131, %c1_132, %c0_133] : memref<2x144x128xf32, #tpu.memory_space<vmem>>, vector<2x22x10xf32>
    %c0_134 = arith.constant 0 : index
    %c24_135 = arith.constant 24 : index
    %c10_136 = arith.constant 10 : index
    %79 = vector.load %arg13[%c0_134, %c24_135, %c10_136] : memref<2x96x256xf32, #tpu.memory_space<vmem>>, vector<2x22x10xf32>
    tpu.vector_store %arg13[%c0_134, %c24_135, %c10_136], %78 {strides = array<i32>} : memref<2x96x256xf32, #tpu.memory_space<vmem>>, vector<2x22x10xf32>,
    %c0_137 = arith.constant 0 : index
    %c37_138 = arith.constant 37 : index
    %c0_139 = arith.constant 0 : index
    %80 = vector.load %arg12[%c0_137, %c37_138, %c0_139] : memref<2x144x128xf32, #tpu.memory_space<vmem>>, vector<2x22x10xf32>
    %c0_140 = arith.constant 0 : index
    %c24_141 = arith.constant 24 : index
    %c20_142 = arith.constant 20 : index
    %81 = vector.load %arg13[%c0_140, %c24_141, %c20_142] : memref<2x96x256xf32, #tpu.memory_space<vmem>>, vector<2x22x10xf32>
    tpu.vector_store %arg13[%c0_140, %c24_141, %c20_142], %80 {strides = array<i32>} : memref<2x96x256xf32, #tpu.memory_space<vmem>>, vector<2x22x10xf32>,
    %c0_143 = arith.constant 0 : index
    %c2_144 = arith.constant 2 : index
    %c0_145 = arith.constant 0 : index
    %82 = vector.load %arg12[%c0_143, %c2_144, %c0_145] : memref<2x144x128xf32, #tpu.memory_space<vmem>>, vector<2x22x10xf32>
    %c0_146 = arith.constant 0 : index
    %c24_147 = arith.constant 24 : index
    %c30_148 = arith.constant 30 : index
    %83 = vector.load %arg13[%c0_146, %c24_147, %c30_148] : memref<2x96x256xf32, #tpu.memory_space<vmem>>, vector<2x22x10xf32>
    tpu.vector_store %arg13[%c0_146, %c24_147, %c30_148], %82 {strides = array<i32>} : memref<2x96x256xf32, #tpu.memory_space<vmem>>, vector<2x22x10xf32>,
    %c0_149 = arith.constant 0 : index
    %c38 = arith.constant 38 : index
    %c0_150 = arith.constant 0 : index
    %84 = vector.load %arg12[%c0_149, %c38, %c0_150] : memref<2x144x128xf32, #tpu.memory_space<vmem>>, vector<2x22x10xf32>
    %c0_151 = arith.constant 0 : index
    %c24_152 = arith.constant 24 : index
    %c40_153 = arith.constant 40 : index
    %85 = vector.load %arg13[%c0_151, %c24_152, %c40_153] : memref<2x96x256xf32, #tpu.memory_space<vmem>>, vector<2x22x10xf32>
    tpu.vector_store %arg13[%c0_151, %c24_152, %c40_153], %84 {strides = array<i32>} : memref<2x96x256xf32, #tpu.memory_space<vmem>>, vector<2x22x10xf32>,
    %c0_154 = arith.constant 0 : index
    %c108_155 = arith.constant 108 : index
    %c0_156 = arith.constant 0 : index
    %86 = vector.load %arg12[%c0_154, %c108_155, %c0_156] : memref<2x144x128xf32, #tpu.memory_space<vmem>>, vector<2x22x10xf32>
    %c0_157 = arith.constant 0 : index
    %c24_158 = arith.constant 24 : index
    %c50_159 = arith.constant 50 : index
    %87 = vector.load %arg13[%c0_157, %c24_158, %c50_159] : memref<2x96x256xf32, #tpu.memory_space<vmem>>, vector<2x22x10xf32>
    tpu.vector_store %arg13[%c0_157, %c24_158, %c50_159], %86 {strides = array<i32>} : memref<2x96x256xf32, #tpu.memory_space<vmem>>, vector<2x22x10xf32>,
    %c0_160 = arith.constant 0 : index
    %c73_161 = arith.constant 73 : index
    %c0_162 = arith.constant 0 : index
    %88 = vector.load %arg12[%c0_160, %c73_161, %c0_162] : memref<2x144x128xf32, #tpu.memory_space<vmem>>, vector<2x22x10xf32>
    %c0_163 = arith.constant 0 : index
    %c24_164 = arith.constant 24 : index
    %c60_165 = arith.constant 60 : index
    %89 = vector.load %arg13[%c0_163, %c24_164, %c60_165] : memref<2x96x256xf32, #tpu.memory_space<vmem>>, vector<2x22x10xf32>
    tpu.vector_store %arg13[%c0_163, %c24_164, %c60_165], %88 {strides = array<i32>} : memref<2x96x256xf32, #tpu.memory_space<vmem>>, vector<2x22x10xf32>,
    %c0_166 = arith.constant 0 : index
    %c109_167 = arith.constant 109 : index
    %c0_168 = arith.constant 0 : index
    %90 = vector.load %arg12[%c0_166, %c109_167, %c0_168] : memref<2x144x128xf32, #tpu.memory_space<vmem>>, vector<2x22x10xf32>
    %c0_169 = arith.constant 0 : index
    %c24_170 = arith.constant 24 : index
    %c70_171 = arith.constant 70 : index
    %91 = vector.load %arg13[%c0_169, %c24_170, %c70_171] : memref<2x96x256xf32, #tpu.memory_space<vmem>>, vector<2x22x10xf32>
    tpu.vector_store %arg13[%c0_169, %c24_170, %c70_171], %90 {strides = array<i32>} : memref<2x96x256xf32, #tpu.memory_space<vmem>>, vector<2x22x10xf32>,
    %c0_172 = arith.constant 0 : index
    %c74_173 = arith.constant 74 : index
    %c0_174 = arith.constant 0 : index
    %92 = vector.load %arg12[%c0_172, %c74_173, %c0_174] : memref<2x144x128xf32, #tpu.memory_space<vmem>>, vector<2x22x10xf32>
    %c0_175 = arith.constant 0 : index
    %c24_176 = arith.constant 24 : index
    %c80_177 = arith.constant 80 : index
    %93 = vector.load %arg13[%c0_175, %c24_176, %c80_177] : memref<2x96x256xf32, #tpu.memory_space<vmem>>, vector<2x22x10xf32>
    tpu.vector_store %arg13[%c0_175, %c24_176, %c80_177], %92 {strides = array<i32>} : memref<2x96x256xf32, #tpu.memory_space<vmem>>, vector<2x22x10xf32>,
    %c0_178 = arith.constant 0 : index
    %c110_179 = arith.constant 110 : index
    %c0_180 = arith.constant 0 : index
    %94 = vector.load %arg12[%c0_178, %c110_179, %c0_180] : memref<2x144x128xf32, #tpu.memory_space<vmem>>, vector<2x22x10xf32>
    %c0_181 = arith.constant 0 : index
    %c24_182 = arith.constant 24 : index
    %c90_183 = arith.constant 90 : index
    %95 = vector.load %arg13[%c0_181, %c24_182, %c90_183] : memref<2x96x256xf32, #tpu.memory_space<vmem>>, vector<2x22x10xf32>
    tpu.vector_store %arg13[%c0_181, %c24_182, %c90_183], %94 {strides = array<i32>} : memref<2x96x256xf32, #tpu.memory_space<vmem>>, vector<2x22x10xf32>,
    %c0_184 = arith.constant 0 : index
    %c42_185 = arith.constant 42 : index
    %c0_186 = arith.constant 0 : index
    %96 = vector.load %arg12[%c0_184, %c42_185, %c0_186] : memref<2x144x128xf32, #tpu.memory_space<vmem>>, vector<2x22x10xf32>
    %c0_187 = arith.constant 0 : index
    %c24_188 = arith.constant 24 : index
    %c100_189 = arith.constant 100 : index
    %97 = vector.load %arg13[%c0_187, %c24_188, %c100_189] : memref<2x96x256xf32, #tpu.memory_space<vmem>>, vector<2x22x10xf32>
    tpu.vector_store %arg13[%c0_187, %c24_188, %c100_189], %96 {strides = array<i32>} : memref<2x96x256xf32, #tpu.memory_space<vmem>>, vector<2x22x10xf32>,
    %c0_190 = arith.constant 0 : index
    %c7_191 = arith.constant 7 : index
    %c0_192 = arith.constant 0 : index
    %98 = vector.load %arg12[%c0_190, %c7_191, %c0_192] : memref<2x144x128xf32, #tpu.memory_space<vmem>>, vector<2x22x10xf32>
    %c0_193 = arith.constant 0 : index
    %c24_194 = arith.constant 24 : index
    %c110_195 = arith.constant 110 : index
    %99 = vector.load %arg13[%c0_193, %c24_194, %c110_195] : memref<2x96x256xf32, #tpu.memory_space<vmem>>, vector<2x22x10xf32>
    tpu.vector_store %arg13[%c0_193, %c24_194, %c110_195], %98 {strides = array<i32>} : memref<2x96x256xf32, #tpu.memory_space<vmem>>, vector<2x22x10xf32>,
    %c0_196 = arith.constant 0 : index
    %c43_197 = arith.constant 43 : index
    %c0_198 = arith.constant 0 : index
    %100 = vector.load %arg12[%c0_196, %c43_197, %c0_198] : memref<2x144x128xf32, #tpu.memory_space<vmem>>, vector<2x22x10xf32>
    %c0_199 = arith.constant 0 : index
    %c24_200 = arith.constant 24 : index
    %c120_201 = arith.constant 120 : index
    %101 = vector.load %arg13[%c0_199, %c24_200, %c120_201] : memref<2x96x256xf32, #tpu.memory_space<vmem>>, vector<2x22x10xf32>
    tpu.vector_store %arg13[%c0_199, %c24_200, %c120_201], %100 {strides = array<i32>} : memref<2x96x256xf32, #tpu.memory_space<vmem>>, vector<2x22x10xf32>,
    %c0_202 = arith.constant 0 : index
    %c8_203 = arith.constant 8 : index
    %c0_204 = arith.constant 0 : index
    %102 = vector.load %arg12[%c0_202, %c8_203, %c0_204] : memref<2x144x128xf32, #tpu.memory_space<vmem>>, vector<2x22x10xf32>
    %c0_205 = arith.constant 0 : index
    %c24_206 = arith.constant 24 : index
    %c130_207 = arith.constant 130 : index
    %103 = vector.load %arg13[%c0_205, %c24_206, %c130_207] : memref<2x96x256xf32, #tpu.memory_space<vmem>>, vector<2x22x10xf32>
    tpu.vector_store %arg13[%c0_205, %c24_206, %c130_207], %102 {strides = array<i32>} : memref<2x96x256xf32, #tpu.memory_space<vmem>>, vector<2x22x10xf32>,
    %c0_208 = arith.constant 0 : index
    %c44 = arith.constant 44 : index
    %c0_209 = arith.constant 0 : index
    %104 = vector.load %arg12[%c0_208, %c44, %c0_209] : memref<2x144x128xf32, #tpu.memory_space<vmem>>, vector<2x22x10xf32>
    %c0_210 = arith.constant 0 : index
    %c24_211 = arith.constant 24 : index
    %c140_212 = arith.constant 140 : index
    %105 = vector.load %arg13[%c0_210, %c24_211, %c140_212] : memref<2x96x256xf32, #tpu.memory_space<vmem>>, vector<2x22x10xf32>
    tpu.vector_store %arg13[%c0_210, %c24_211, %c140_212], %104 {strides = array<i32>} : memref<2x96x256xf32, #tpu.memory_space<vmem>>, vector<2x22x10xf32>,
    %c0_213 = arith.constant 0 : index
    %c114_214 = arith.constant 114 : index
    %c0_215 = arith.constant 0 : index
    %106 = vector.load %arg12[%c0_213, %c114_214, %c0_215] : memref<2x144x128xf32, #tpu.memory_space<vmem>>, vector<2x22x10xf32>
    %c0_216 = arith.constant 0 : index
    %c24_217 = arith.constant 24 : index
    %c150_218 = arith.constant 150 : index
    %107 = vector.load %arg13[%c0_216, %c24_217, %c150_218] : memref<2x96x256xf32, #tpu.memory_space<vmem>>, vector<2x22x10xf32>
    tpu.vector_store %arg13[%c0_216, %c24_217, %c150_218], %106 {strides = array<i32>} : memref<2x96x256xf32, #tpu.memory_space<vmem>>, vector<2x22x10xf32>,
    %c0_219 = arith.constant 0 : index
    %c79_220 = arith.constant 79 : index
    %c0_221 = arith.constant 0 : index
    %108 = vector.load %arg12[%c0_219, %c79_220, %c0_221] : memref<2x144x128xf32, #tpu.memory_space<vmem>>, vector<2x22x10xf32>
    %c0_222 = arith.constant 0 : index
    %c24_223 = arith.constant 24 : index
    %c160_224 = arith.constant 160 : index
    %109 = vector.load %arg13[%c0_222, %c24_223, %c160_224] : memref<2x96x256xf32, #tpu.memory_space<vmem>>, vector<2x22x10xf32>
    tpu.vector_store %arg13[%c0_222, %c24_223, %c160_224], %108 {strides = array<i32>} : memref<2x96x256xf32, #tpu.memory_space<vmem>>, vector<2x22x10xf32>,
    %c0_225 = arith.constant 0 : index
    %c115_226 = arith.constant 115 : index
    %c0_227 = arith.constant 0 : index
    %110 = vector.load %arg12[%c0_225, %c115_226, %c0_227] : memref<2x144x128xf32, #tpu.memory_space<vmem>>, vector<2x22x10xf32>
    %c0_228 = arith.constant 0 : index
    %c24_229 = arith.constant 24 : index
    %c170_230 = arith.constant 170 : index
    %111 = vector.load %arg13[%c0_228, %c24_229, %c170_230] : memref<2x96x256xf32, #tpu.memory_space<vmem>>, vector<2x22x10xf32>
    tpu.vector_store %arg13[%c0_228, %c24_229, %c170_230], %110 {strides = array<i32>} : memref<2x96x256xf32, #tpu.memory_space<vmem>>, vector<2x22x10xf32>,
    %c0_231 = arith.constant 0 : index
    %c80_232 = arith.constant 80 : index
    %c0_233 = arith.constant 0 : index
    %112 = vector.load %arg12[%c0_231, %c80_232, %c0_233] : memref<2x144x128xf32, #tpu.memory_space<vmem>>, vector<2x22x10xf32>
    %c0_234 = arith.constant 0 : index
    %c24_235 = arith.constant 24 : index
    %c180_236 = arith.constant 180 : index
    %113 = vector.load %arg13[%c0_234, %c24_235, %c180_236] : memref<2x96x256xf32, #tpu.memory_space<vmem>>, vector<2x22x10xf32>
    tpu.vector_store %arg13[%c0_234, %c24_235, %c180_236], %112 {strides = array<i32>} : memref<2x96x256xf32, #tpu.memory_space<vmem>>, vector<2x22x10xf32>,
    %c0_237 = arith.constant 0 : index
    %c116 = arith.constant 116 : index
    %c0_238 = arith.constant 0 : index
    %114 = vector.load %arg12[%c0_237, %c116, %c0_238] : memref<2x144x128xf32, #tpu.memory_space<vmem>>, vector<2x22x10xf32>
    %c0_239 = arith.constant 0 : index
    %c24_240 = arith.constant 24 : index
    %c190_241 = arith.constant 190 : index
    %115 = vector.load %arg13[%c0_239, %c24_240, %c190_241] : memref<2x96x256xf32, #tpu.memory_space<vmem>>, vector<2x22x10xf32>
    tpu.vector_store %arg13[%c0_239, %c24_240, %c190_241], %114 {strides = array<i32>} : memref<2x96x256xf32, #tpu.memory_space<vmem>>, vector<2x22x10xf32>,
    %c0_242 = arith.constant 0 : index
    %c48_243 = arith.constant 48 : index
    %c0_244 = arith.constant 0 : index
    %116 = vector.load %arg12[%c0_242, %c48_243, %c0_244] : memref<2x144x128xf32, #tpu.memory_space<vmem>>, vector<2x22x10xf32>
    %c0_245 = arith.constant 0 : index
    %c24_246 = arith.constant 24 : index
    %c200_247 = arith.constant 200 : index
    %117 = vector.load %arg13[%c0_245, %c24_246, %c200_247] : memref<2x96x256xf32, #tpu.memory_space<vmem>>, vector<2x22x10xf32>
    tpu.vector_store %arg13[%c0_245, %c24_246, %c200_247], %116 {strides = array<i32>} : memref<2x96x256xf32, #tpu.memory_space<vmem>>, vector<2x22x10xf32>,
    %c0_248 = arith.constant 0 : index
    %c13_249 = arith.constant 13 : index
    %c0_250 = arith.constant 0 : index
    %118 = vector.load %arg12[%c0_248, %c13_249, %c0_250] : memref<2x144x128xf32, #tpu.memory_space<vmem>>, vector<2x22x10xf32>
    %c0_251 = arith.constant 0 : index
    %c24_252 = arith.constant 24 : index
    %c210_253 = arith.constant 210 : index
    %119 = vector.load %arg13[%c0_251, %c24_252, %c210_253] : memref<2x96x256xf32, #tpu.memory_space<vmem>>, vector<2x22x10xf32>
    tpu.vector_store %arg13[%c0_251, %c24_252, %c210_253], %118 {strides = array<i32>} : memref<2x96x256xf32, #tpu.memory_space<vmem>>, vector<2x22x10xf32>,
    %c0_254 = arith.constant 0 : index
    %c49_255 = arith.constant 49 : index
    %c0_256 = arith.constant 0 : index
    %120 = vector.load %arg12[%c0_254, %c49_255, %c0_256] : memref<2x144x128xf32, #tpu.memory_space<vmem>>, vector<2x22x10xf32>
    %c0_257 = arith.constant 0 : index
    %c24_258 = arith.constant 24 : index
    %c220_259 = arith.constant 220 : index
    %121 = vector.load %arg13[%c0_257, %c24_258, %c220_259] : memref<2x96x256xf32, #tpu.memory_space<vmem>>, vector<2x22x10xf32>
    tpu.vector_store %arg13[%c0_257, %c24_258, %c220_259], %120 {strides = array<i32>} : memref<2x96x256xf32, #tpu.memory_space<vmem>>, vector<2x22x10xf32>,
    %c0_260 = arith.constant 0 : index
    %c14_261 = arith.constant 14 : index
    %c0_262 = arith.constant 0 : index
    %122 = vector.load %arg12[%c0_260, %c14_261, %c0_262] : memref<2x144x128xf32, #tpu.memory_space<vmem>>, vector<2x22x10xf32>
    %c0_263 = arith.constant 0 : index
    %c24_264 = arith.constant 24 : index
    %c230_265 = arith.constant 230 : index
    %123 = vector.load %arg13[%c0_263, %c24_264, %c230_265] : memref<2x96x256xf32, #tpu.memory_space<vmem>>, vector<2x22x10xf32>
    tpu.vector_store %arg13[%c0_263, %c24_264, %c230_265], %122 {strides = array<i32>} : memref<2x96x256xf32, #tpu.memory_space<vmem>>, vector<2x22x10xf32>,
    %c0_266 = arith.constant 0 : index
    %c50_267 = arith.constant 50 : index
    %c0_268 = arith.constant 0 : index
    %124 = vector.load %arg12[%c0_266, %c50_267, %c0_268] : memref<2x144x128xf32, #tpu.memory_space<vmem>>, vector<2x22x10xf32>
    %c0_269 = arith.constant 0 : index
    %c24_270 = arith.constant 24 : index
    %c240_271 = arith.constant 240 : index
    %125 = vector.load %arg13[%c0_269, %c24_270, %c240_271] : memref<2x96x256xf32, #tpu.memory_space<vmem>>, vector<2x22x10xf32>
    tpu.vector_store %arg13[%c0_269, %c24_270, %c240_271], %124 {strides = array<i32>} : memref<2x96x256xf32, #tpu.memory_space<vmem>>, vector<2x22x10xf32>,
    %c0_272 = arith.constant 0 : index
    %c72_273 = arith.constant 72 : index
    %c0_274 = arith.constant 0 : index
    %126 = vector.load %arg12[%c0_272, %c72_273, %c0_274] : memref<2x144x128xf32, #tpu.memory_space<vmem>>, vector<2x22x10xf32>
    %c0_275 = arith.constant 0 : index
    %c48_276 = arith.constant 48 : index
    %c0_277 = arith.constant 0 : index
    %127 = vector.load %arg13[%c0_275, %c48_276, %c0_277] : memref<2x96x256xf32, #tpu.memory_space<vmem>>, vector<2x22x10xf32>
    tpu.vector_store %arg13[%c0_275, %c48_276, %c0_277], %126 {strides = array<i32>} : memref<2x96x256xf32, #tpu.memory_space<vmem>>, vector<2x22x10xf32>,
    %c0_278 = arith.constant 0 : index
    %c108_279 = arith.constant 108 : index
    %c0_280 = arith.constant 0 : index
    %128 = vector.load %arg12[%c0_278, %c108_279, %c0_280] : memref<2x144x128xf32, #tpu.memory_space<vmem>>, vector<2x22x10xf32>
    %c0_281 = arith.constant 0 : index
    %c48_282 = arith.constant 48 : index
    %c10_283 = arith.constant 10 : index
    %129 = vector.load %arg13[%c0_281, %c48_282, %c10_283] : memref<2x96x256xf32, #tpu.memory_space<vmem>>, vector<2x22x10xf32>
    tpu.vector_store %arg13[%c0_281, %c48_282, %c10_283], %128 {strides = array<i32>} : memref<2x96x256xf32, #tpu.memory_space<vmem>>, vector<2x22x10xf32>,
    %c0_284 = arith.constant 0 : index
    %c73_285 = arith.constant 73 : index
    %c0_286 = arith.constant 0 : index
    %130 = vector.load %arg12[%c0_284, %c73_285, %c0_286] : memref<2x144x128xf32, #tpu.memory_space<vmem>>, vector<2x22x10xf32>
    %c0_287 = arith.constant 0 : index
    %c48_288 = arith.constant 48 : index
    %c20_289 = arith.constant 20 : index
    %131 = vector.load %arg13[%c0_287, %c48_288, %c20_289] : memref<2x96x256xf32, #tpu.memory_space<vmem>>, vector<2x22x10xf32>
    tpu.vector_store %arg13[%c0_287, %c48_288, %c20_289], %130 {strides = array<i32>} : memref<2x96x256xf32, #tpu.memory_space<vmem>>, vector<2x22x10xf32>,
    %c0_290 = arith.constant 0 : index
    %c109_291 = arith.constant 109 : index
    %c0_292 = arith.constant 0 : index
    %132 = vector.load %arg12[%c0_290, %c109_291, %c0_292] : memref<2x144x128xf32, #tpu.memory_space<vmem>>, vector<2x22x10xf32>
    %c0_293 = arith.constant 0 : index
    %c48_294 = arith.constant 48 : index
    %c30_295 = arith.constant 30 : index
    %133 = vector.load %arg13[%c0_293, %c48_294, %c30_295] : memref<2x96x256xf32, #tpu.memory_space<vmem>>, vector<2x22x10xf32>
    tpu.vector_store %arg13[%c0_293, %c48_294, %c30_295], %132 {strides = array<i32>} : memref<2x96x256xf32, #tpu.memory_space<vmem>>, vector<2x22x10xf32>,
    %c0_296 = arith.constant 0 : index
    %c74_297 = arith.constant 74 : index
    %c0_298 = arith.constant 0 : index
    %134 = vector.load %arg12[%c0_296, %c74_297, %c0_298] : memref<2x144x128xf32, #tpu.memory_space<vmem>>, vector<2x22x10xf32>
    %c0_299 = arith.constant 0 : index
    %c48_300 = arith.constant 48 : index
    %c40_301 = arith.constant 40 : index
    %135 = vector.load %arg13[%c0_299, %c48_300, %c40_301] : memref<2x96x256xf32, #tpu.memory_space<vmem>>, vector<2x22x10xf32>
    tpu.vector_store %arg13[%c0_299, %c48_300, %c40_301], %134 {strides = array<i32>} : memref<2x96x256xf32, #tpu.memory_space<vmem>>, vector<2x22x10xf32>,
    %c0_302 = arith.constant 0 : index
    %c6_303 = arith.constant 6 : index
    %c0_304 = arith.constant 0 : index
    %136 = vector.load %arg12[%c0_302, %c6_303, %c0_304] : memref<2x144x128xf32, #tpu.memory_space<vmem>>, vector<2x22x10xf32>
    %c0_305 = arith.constant 0 : index
    %c48_306 = arith.constant 48 : index
    %c50_307 = arith.constant 50 : index
    %137 = vector.load %arg13[%c0_305, %c48_306, %c50_307] : memref<2x96x256xf32, #tpu.memory_space<vmem>>, vector<2x22x10xf32>
    tpu.vector_store %arg13[%c0_305, %c48_306, %c50_307], %136 {strides = array<i32>} : memref<2x96x256xf32, #tpu.memory_space<vmem>>, vector<2x22x10xf32>,
    %c0_308 = arith.constant 0 : index
    %c42_309 = arith.constant 42 : index
    %c0_310 = arith.constant 0 : index
    %138 = vector.load %arg12[%c0_308, %c42_309, %c0_310] : memref<2x144x128xf32, #tpu.memory_space<vmem>>, vector<2x22x10xf32>
    %c0_311 = arith.constant 0 : index
    %c48_312 = arith.constant 48 : index
    %c60_313 = arith.constant 60 : index
    %139 = vector.load %arg13[%c0_311, %c48_312, %c60_313] : memref<2x96x256xf32, #tpu.memory_space<vmem>>, vector<2x22x10xf32>
    tpu.vector_store %arg13[%c0_311, %c48_312, %c60_313], %138 {strides = array<i32>} : memref<2x96x256xf32, #tpu.memory_space<vmem>>, vector<2x22x10xf32>,
    %c0_314 = arith.constant 0 : index
    %c7_315 = arith.constant 7 : index
    %c0_316 = arith.constant 0 : index
    %140 = vector.load %arg12[%c0_314, %c7_315, %c0_316] : memref<2x144x128xf32, #tpu.memory_space<vmem>>, vector<2x22x10xf32>
    %c0_317 = arith.constant 0 : index
    %c48_318 = arith.constant 48 : index
    %c70_319 = arith.constant 70 : index
    %141 = vector.load %arg13[%c0_317, %c48_318, %c70_319] : memref<2x96x256xf32, #tpu.memory_space<vmem>>, vector<2x22x10xf32>
    tpu.vector_store %arg13[%c0_317, %c48_318, %c70_319], %140 {strides = array<i32>} : memref<2x96x256xf32, #tpu.memory_space<vmem>>, vector<2x22x10xf32>,
    %c0_320 = arith.constant 0 : index
    %c43_321 = arith.constant 43 : index
    %c0_322 = arith.constant 0 : index
    %142 = vector.load %arg12[%c0_320, %c43_321, %c0_322] : memref<2x144x128xf32, #tpu.memory_space<vmem>>, vector<2x22x10xf32>
    %c0_323 = arith.constant 0 : index
    %c48_324 = arith.constant 48 : index
    %c80_325 = arith.constant 80 : index
    %143 = vector.load %arg13[%c0_323, %c48_324, %c80_325] : memref<2x96x256xf32, #tpu.memory_space<vmem>>, vector<2x22x10xf32>
    tpu.vector_store %arg13[%c0_323, %c48_324, %c80_325], %142 {strides = array<i32>} : memref<2x96x256xf32, #tpu.memory_space<vmem>>, vector<2x22x10xf32>,
    %c0_326 = arith.constant 0 : index
    %c8_327 = arith.constant 8 : index
    %c0_328 = arith.constant 0 : index
    %144 = vector.load %arg12[%c0_326, %c8_327, %c0_328] : memref<2x144x128xf32, #tpu.memory_space<vmem>>, vector<2x22x10xf32>
    %c0_329 = arith.constant 0 : index
    %c48_330 = arith.constant 48 : index
    %c90_331 = arith.constant 90 : index
    %145 = vector.load %arg13[%c0_329, %c48_330, %c90_331] : memref<2x96x256xf32, #tpu.memory_space<vmem>>, vector<2x22x10xf32>
    tpu.vector_store %arg13[%c0_329, %c48_330, %c90_331], %144 {strides = array<i32>} : memref<2x96x256xf32, #tpu.memory_space<vmem>>, vector<2x22x10xf32>,
    %c0_332 = arith.constant 0 : index
    %c78_333 = arith.constant 78 : index
    %c0_334 = arith.constant 0 : index
    %146 = vector.load %arg12[%c0_332, %c78_333, %c0_334] : memref<2x144x128xf32, #tpu.memory_space<vmem>>, vector<2x22x10xf32>
    %c0_335 = arith.constant 0 : index
    %c48_336 = arith.constant 48 : index
    %c100_337 = arith.constant 100 : index
    %147 = vector.load %arg13[%c0_335, %c48_336, %c100_337] : memref<2x96x256xf32, #tpu.memory_space<vmem>>, vector<2x22x10xf32>
    tpu.vector_store %arg13[%c0_335, %c48_336, %c100_337], %146 {strides = array<i32>} : memref<2x96x256xf32, #tpu.memory_space<vmem>>, vector<2x22x10xf32>,
    %c0_338 = arith.constant 0 : index
    %c114_339 = arith.constant 114 : index
    %c0_340 = arith.constant 0 : index
    %148 = vector.load %arg12[%c0_338, %c114_339, %c0_340] : memref<2x144x128xf32, #tpu.memory_space<vmem>>, vector<2x22x10xf32>
    %c0_341 = arith.constant 0 : index
    %c48_342 = arith.constant 48 : index
    %c110_343 = arith.constant 110 : index
    %149 = vector.load %arg13[%c0_341, %c48_342, %c110_343] : memref<2x96x256xf32, #tpu.memory_space<vmem>>, vector<2x22x10xf32>
    tpu.vector_store %arg13[%c0_341, %c48_342, %c110_343], %148 {strides = array<i32>} : memref<2x96x256xf32, #tpu.memory_space<vmem>>, vector<2x22x10xf32>,
    %c0_344 = arith.constant 0 : index
    %c79_345 = arith.constant 79 : index
    %c0_346 = arith.constant 0 : index
    %150 = vector.load %arg12[%c0_344, %c79_345, %c0_346] : memref<2x144x128xf32, #tpu.memory_space<vmem>>, vector<2x22x10xf32>
    %c0_347 = arith.constant 0 : index
    %c48_348 = arith.constant 48 : index
    %c120_349 = arith.constant 120 : index
    %151 = vector.load %arg13[%c0_347, %c48_348, %c120_349] : memref<2x96x256xf32, #tpu.memory_space<vmem>>, vector<2x22x10xf32>
    tpu.vector_store %arg13[%c0_347, %c48_348, %c120_349], %150 {strides = array<i32>} : memref<2x96x256xf32, #tpu.memory_space<vmem>>, vector<2x22x10xf32>,
    %c0_350 = arith.constant 0 : index
    %c115_351 = arith.constant 115 : index
    %c0_352 = arith.constant 0 : index
    %152 = vector.load %arg12[%c0_350, %c115_351, %c0_352] : memref<2x144x128xf32, #tpu.memory_space<vmem>>, vector<2x22x10xf32>
    %c0_353 = arith.constant 0 : index
    %c48_354 = arith.constant 48 : index
    %c130_355 = arith.constant 130 : index
    %153 = vector.load %arg13[%c0_353, %c48_354, %c130_355] : memref<2x96x256xf32, #tpu.memory_space<vmem>>, vector<2x22x10xf32>
    tpu.vector_store %arg13[%c0_353, %c48_354, %c130_355], %152 {strides = array<i32>} : memref<2x96x256xf32, #tpu.memory_space<vmem>>, vector<2x22x10xf32>,
    %c0_356 = arith.constant 0 : index
    %c80_357 = arith.constant 80 : index
    %c0_358 = arith.constant 0 : index
    %154 = vector.load %arg12[%c0_356, %c80_357, %c0_358] : memref<2x144x128xf32, #tpu.memory_space<vmem>>, vector<2x22x10xf32>
    %c0_359 = arith.constant 0 : index
    %c48_360 = arith.constant 48 : index
    %c140_361 = arith.constant 140 : index
    %155 = vector.load %arg13[%c0_359, %c48_360, %c140_361] : memref<2x96x256xf32, #tpu.memory_space<vmem>>, vector<2x22x10xf32>
    tpu.vector_store %arg13[%c0_359, %c48_360, %c140_361], %154 {strides = array<i32>} : memref<2x96x256xf32, #tpu.memory_space<vmem>>, vector<2x22x10xf32>,
    %c0_362 = arith.constant 0 : index
    %c12_363 = arith.constant 12 : index
    %c0_364 = arith.constant 0 : index
    %156 = vector.load %arg12[%c0_362, %c12_363, %c0_364] : memref<2x144x128xf32, #tpu.memory_space<vmem>>, vector<2x22x10xf32>
    %c0_365 = arith.constant 0 : index
    %c48_366 = arith.constant 48 : index
    %c150_367 = arith.constant 150 : index
    %157 = vector.load %arg13[%c0_365, %c48_366, %c150_367] : memref<2x96x256xf32, #tpu.memory_space<vmem>>, vector<2x22x10xf32>
    tpu.vector_store %arg13[%c0_365, %c48_366, %c150_367], %156 {strides = array<i32>} : memref<2x96x256xf32, #tpu.memory_space<vmem>>, vector<2x22x10xf32>,
    %c0_368 = arith.constant 0 : index
    %c48_369 = arith.constant 48 : index
    %c0_370 = arith.constant 0 : index
    %158 = vector.load %arg12[%c0_368, %c48_369, %c0_370] : memref<2x144x128xf32, #tpu.memory_space<vmem>>, vector<2x22x10xf32>
    %c0_371 = arith.constant 0 : index
    %c48_372 = arith.constant 48 : index
    %c160_373 = arith.constant 160 : index
    %159 = vector.load %arg13[%c0_371, %c48_372, %c160_373] : memref<2x96x256xf32, #tpu.memory_space<vmem>>, vector<2x22x10xf32>
    tpu.vector_store %arg13[%c0_371, %c48_372, %c160_373], %158 {strides = array<i32>} : memref<2x96x256xf32, #tpu.memory_space<vmem>>, vector<2x22x10xf32>,
    %c0_374 = arith.constant 0 : index
    %c13_375 = arith.constant 13 : index
    %c0_376 = arith.constant 0 : index
    %160 = vector.load %arg12[%c0_374, %c13_375, %c0_376] : memref<2x144x128xf32, #tpu.memory_space<vmem>>, vector<2x22x10xf32>
    %c0_377 = arith.constant 0 : index
    %c48_378 = arith.constant 48 : index
    %c170_379 = arith.constant 170 : index
    %161 = vector.load %arg13[%c0_377, %c48_378, %c170_379] : memref<2x96x256xf32, #tpu.memory_space<vmem>>, vector<2x22x10xf32>
    tpu.vector_store %arg13[%c0_377, %c48_378, %c170_379], %160 {strides = array<i32>} : memref<2x96x256xf32, #tpu.memory_space<vmem>>, vector<2x22x10xf32>,
    %c0_380 = arith.constant 0 : index
    %c49_381 = arith.constant 49 : index
    %c0_382 = arith.constant 0 : index
    %162 = vector.load %arg12[%c0_380, %c49_381, %c0_382] : memref<2x144x128xf32, #tpu.memory_space<vmem>>, vector<2x22x10xf32>
    %c0_383 = arith.constant 0 : index
    %c48_384 = arith.constant 48 : index
    %c180_385 = arith.constant 180 : index
    %163 = vector.load %arg13[%c0_383, %c48_384, %c180_385] : memref<2x96x256xf32, #tpu.memory_space<vmem>>, vector<2x22x10xf32>
    tpu.vector_store %arg13[%c0_383, %c48_384, %c180_385], %162 {strides = array<i32>} : memref<2x96x256xf32, #tpu.memory_space<vmem>>, vector<2x22x10xf32>,
    %c0_386 = arith.constant 0 : index
    %c14_387 = arith.constant 14 : index
    %c0_388 = arith.constant 0 : index
    %164 = vector.load %arg12[%c0_386, %c14_387, %c0_388] : memref<2x144x128xf32, #tpu.memory_space<vmem>>, vector<2x22x10xf32>
    %c0_389 = arith.constant 0 : index
    %c48_390 = arith.constant 48 : index
    %c190_391 = arith.constant 190 : index
    %165 = vector.load %arg13[%c0_389, %c48_390, %c190_391] : memref<2x96x256xf32, #tpu.memory_space<vmem>>, vector<2x22x10xf32>
    tpu.vector_store %arg13[%c0_389, %c48_390, %c190_391], %164 {strides = array<i32>} : memref<2x96x256xf32, #tpu.memory_space<vmem>>, vector<2x22x10xf32>,
    %c0_392 = arith.constant 0 : index
    %c84 = arith.constant 84 : index
    %c0_393 = arith.constant 0 : index
    %166 = vector.load %arg12[%c0_392, %c84, %c0_393] : memref<2x144x128xf32, #tpu.memory_space<vmem>>, vector<2x22x10xf32>
    %c0_394 = arith.constant 0 : index
    %c48_395 = arith.constant 48 : index
    %c200_396 = arith.constant 200 : index
    %167 = vector.load %arg13[%c0_394, %c48_395, %c200_396] : memref<2x96x256xf32, #tpu.memory_space<vmem>>, vector<2x22x10xf32>
    tpu.vector_store %arg13[%c0_394, %c48_395, %c200_396], %166 {strides = array<i32>} : memref<2x96x256xf32, #tpu.memory_space<vmem>>, vector<2x22x10xf32>,
    %c0_397 = arith.constant 0 : index
    %c120_398 = arith.constant 120 : index
    %c0_399 = arith.constant 0 : index
    %168 = vector.load %arg12[%c0_397, %c120_398, %c0_399] : memref<2x144x128xf32, #tpu.memory_space<vmem>>, vector<2x22x10xf32>
    %c0_400 = arith.constant 0 : index
    %c48_401 = arith.constant 48 : index
    %c210_402 = arith.constant 210 : index
    %169 = vector.load %arg13[%c0_400, %c48_401, %c210_402] : memref<2x96x256xf32, #tpu.memory_space<vmem>>, vector<2x22x10xf32>
    tpu.vector_store %arg13[%c0_400, %c48_401, %c210_402], %168 {strides = array<i32>} : memref<2x96x256xf32, #tpu.memory_space<vmem>>, vector<2x22x10xf32>,
    %c0_403 = arith.constant 0 : index
    %c85 = arith.constant 85 : index
    %c0_404 = arith.constant 0 : index
    %170 = vector.load %arg12[%c0_403, %c85, %c0_404] : memref<2x144x128xf32, #tpu.memory_space<vmem>>, vector<2x22x10xf32>
    %c0_405 = arith.constant 0 : index
    %c48_406 = arith.constant 48 : index
    %c220_407 = arith.constant 220 : index
    %171 = vector.load %arg13[%c0_405, %c48_406, %c220_407] : memref<2x96x256xf32, #tpu.memory_space<vmem>>, vector<2x22x10xf32>
    tpu.vector_store %arg13[%c0_405, %c48_406, %c220_407], %170 {strides = array<i32>} : memref<2x96x256xf32, #tpu.memory_space<vmem>>, vector<2x22x10xf32>,
    %c0_408 = arith.constant 0 : index
    %c121 = arith.constant 121 : index
    %c0_409 = arith.constant 0 : index
    %172 = vector.load %arg12[%c0_408, %c121, %c0_409] : memref<2x144x128xf32, #tpu.memory_space<vmem>>, vector<2x22x10xf32>
    %c0_410 = arith.constant 0 : index
    %c48_411 = arith.constant 48 : index
    %c230_412 = arith.constant 230 : index
    %173 = vector.load %arg13[%c0_410, %c48_411, %c230_412] : memref<2x96x256xf32, #tpu.memory_space<vmem>>, vector<2x22x10xf32>
    tpu.vector_store %arg13[%c0_410, %c48_411, %c230_412], %172 {strides = array<i32>} : memref<2x96x256xf32, #tpu.memory_space<vmem>>, vector<2x22x10xf32>,
    %c0_413 = arith.constant 0 : index
    %c86 = arith.constant 86 : index
    %c0_414 = arith.constant 0 : index
    %174 = vector.load %arg12[%c0_413, %c86, %c0_414] : memref<2x144x128xf32, #tpu.memory_space<vmem>>, vector<2x22x10xf32>
    %c0_415 = arith.constant 0 : index
    %c48_416 = arith.constant 48 : index
    %c240_417 = arith.constant 240 : index
    %175 = vector.load %arg13[%c0_415, %c48_416, %c240_417] : memref<2x96x256xf32, #tpu.memory_space<vmem>>, vector<2x22x10xf32>
    tpu.vector_store %arg13[%c0_415, %c48_416, %c240_417], %174 {strides = array<i32>} : memref<2x96x256xf32, #tpu.memory_space<vmem>>, vector<2x22x10xf32>,
    %c0_418 = arith.constant 0 : index
    %c108_419 = arith.constant 108 : index
    %c0_420 = arith.constant 0 : index
    %176 = vector.load %arg12[%c0_418, %c108_419, %c0_420] : memref<2x144x128xf32, #tpu.memory_space<vmem>>, vector<2x22x10xf32>
    %c0_421 = arith.constant 0 : index
    %c72_422 = arith.constant 72 : index
    %c0_423 = arith.constant 0 : index
    %177 = vector.load %arg13[%c0_421, %c72_422, %c0_423] : memref<2x96x256xf32, #tpu.memory_space<vmem>>, vector<2x22x10xf32>
    tpu.vector_store %arg13[%c0_421, %c72_422, %c0_423], %176 {strides = array<i32>} : memref<2x96x256xf32, #tpu.memory_space<vmem>>, vector<2x22x10xf32>,
    %c0_424 = arith.constant 0 : index
    %c73_425 = arith.constant 73 : index
    %c0_426 = arith.constant 0 : index
    %178 = vector.load %arg12[%c0_424, %c73_425, %c0_426] : memref<2x144x128xf32, #tpu.memory_space<vmem>>, vector<2x22x10xf32>
    %c0_427 = arith.constant 0 : index
    %c72_428 = arith.constant 72 : index
    %c10_429 = arith.constant 10 : index
    %179 = vector.load %arg13[%c0_427, %c72_428, %c10_429] : memref<2x96x256xf32, #tpu.memory_space<vmem>>, vector<2x22x10xf32>
    tpu.vector_store %arg13[%c0_427, %c72_428, %c10_429], %178 {strides = array<i32>} : memref<2x96x256xf32, #tpu.memory_space<vmem>>, vector<2x22x10xf32>,
    %c0_430 = arith.constant 0 : index
    %c109_431 = arith.constant 109 : index
    %c0_432 = arith.constant 0 : index
    %180 = vector.load %arg12[%c0_430, %c109_431, %c0_432] : memref<2x144x128xf32, #tpu.memory_space<vmem>>, vector<2x22x10xf32>
    %c0_433 = arith.constant 0 : index
    %c72_434 = arith.constant 72 : index
    %c20_435 = arith.constant 20 : index
    %181 = vector.load %arg13[%c0_433, %c72_434, %c20_435] : memref<2x96x256xf32, #tpu.memory_space<vmem>>, vector<2x22x10xf32>
    tpu.vector_store %arg13[%c0_433, %c72_434, %c20_435], %180 {strides = array<i32>} : memref<2x96x256xf32, #tpu.memory_space<vmem>>, vector<2x22x10xf32>,
    %c0_436 = arith.constant 0 : index
    %c74_437 = arith.constant 74 : index
    %c0_438 = arith.constant 0 : index
    %182 = vector.load %arg12[%c0_436, %c74_437, %c0_438] : memref<2x144x128xf32, #tpu.memory_space<vmem>>, vector<2x22x10xf32>
    %c0_439 = arith.constant 0 : index
    %c72_440 = arith.constant 72 : index
    %c30_441 = arith.constant 30 : index
    %183 = vector.load %arg13[%c0_439, %c72_440, %c30_441] : memref<2x96x256xf32, #tpu.memory_space<vmem>>, vector<2x22x10xf32>
    tpu.vector_store %arg13[%c0_439, %c72_440, %c30_441], %182 {strides = array<i32>} : memref<2x96x256xf32, #tpu.memory_space<vmem>>, vector<2x22x10xf32>,
    %c0_442 = arith.constant 0 : index
    %c110_443 = arith.constant 110 : index
    %c0_444 = arith.constant 0 : index
    %184 = vector.load %arg12[%c0_442, %c110_443, %c0_444] : memref<2x144x128xf32, #tpu.memory_space<vmem>>, vector<2x22x10xf32>
    %c0_445 = arith.constant 0 : index
    %c72_446 = arith.constant 72 : index
    %c40_447 = arith.constant 40 : index
    %185 = vector.load %arg13[%c0_445, %c72_446, %c40_447] : memref<2x96x256xf32, #tpu.memory_space<vmem>>, vector<2x22x10xf32>
    tpu.vector_store %arg13[%c0_445, %c72_446, %c40_447], %184 {strides = array<i32>} : memref<2x96x256xf32, #tpu.memory_space<vmem>>, vector<2x22x10xf32>,
    %c0_448 = arith.constant 0 : index
    %c42_449 = arith.constant 42 : index
    %c0_450 = arith.constant 0 : index
    %186 = vector.load %arg12[%c0_448, %c42_449, %c0_450] : memref<2x144x128xf32, #tpu.memory_space<vmem>>, vector<2x22x10xf32>
    %c0_451 = arith.constant 0 : index
    %c72_452 = arith.constant 72 : index
    %c50_453 = arith.constant 50 : index
    %187 = vector.load %arg13[%c0_451, %c72_452, %c50_453] : memref<2x96x256xf32, #tpu.memory_space<vmem>>, vector<2x22x10xf32>
    tpu.vector_store %arg13[%c0_451, %c72_452, %c50_453], %186 {strides = array<i32>} : memref<2x96x256xf32, #tpu.memory_space<vmem>>, vector<2x22x10xf32>,
    %c0_454 = arith.constant 0 : index
    %c7_455 = arith.constant 7 : index
    %c0_456 = arith.constant 0 : index
    %188 = vector.load %arg12[%c0_454, %c7_455, %c0_456] : memref<2x144x128xf32, #tpu.memory_space<vmem>>, vector<2x22x10xf32>
    %c0_457 = arith.constant 0 : index
    %c72_458 = arith.constant 72 : index
    %c60_459 = arith.constant 60 : index
    %189 = vector.load %arg13[%c0_457, %c72_458, %c60_459] : memref<2x96x256xf32, #tpu.memory_space<vmem>>, vector<2x22x10xf32>
    tpu.vector_store %arg13[%c0_457, %c72_458, %c60_459], %188 {strides = array<i32>} : memref<2x96x256xf32, #tpu.memory_space<vmem>>, vector<2x22x10xf32>,
    %c0_460 = arith.constant 0 : index
    %c43_461 = arith.constant 43 : index
    %c0_462 = arith.constant 0 : index
    %190 = vector.load %arg12[%c0_460, %c43_461, %c0_462] : memref<2x144x128xf32, #tpu.memory_space<vmem>>, vector<2x22x10xf32>
    %c0_463 = arith.constant 0 : index
    %c72_464 = arith.constant 72 : index
    %c70_465 = arith.constant 70 : index
    %191 = vector.load %arg13[%c0_463, %c72_464, %c70_465] : memref<2x96x256xf32, #tpu.memory_space<vmem>>, vector<2x22x10xf32>
    tpu.vector_store %arg13[%c0_463, %c72_464, %c70_465], %190 {strides = array<i32>} : memref<2x96x256xf32, #tpu.memory_space<vmem>>, vector<2x22x10xf32>,
    %c0_466 = arith.constant 0 : index
    %c8_467 = arith.constant 8 : index
    %c0_468 = arith.constant 0 : index
    %192 = vector.load %arg12[%c0_466, %c8_467, %c0_468] : memref<2x144x128xf32, #tpu.memory_space<vmem>>, vector<2x22x10xf32>
    %c0_469 = arith.constant 0 : index
    %c72_470 = arith.constant 72 : index
    %c80_471 = arith.constant 80 : index
    %193 = vector.load %arg13[%c0_469, %c72_470, %c80_471] : memref<2x96x256xf32, #tpu.memory_space<vmem>>, vector<2x22x10xf32>
    tpu.vector_store %arg13[%c0_469, %c72_470, %c80_471], %192 {strides = array<i32>} : memref<2x96x256xf32, #tpu.memory_space<vmem>>, vector<2x22x10xf32>,
    %c0_472 = arith.constant 0 : index
    %c44_473 = arith.constant 44 : index
    %c0_474 = arith.constant 0 : index
    %194 = vector.load %arg12[%c0_472, %c44_473, %c0_474] : memref<2x144x128xf32, #tpu.memory_space<vmem>>, vector<2x22x10xf32>
    %c0_475 = arith.constant 0 : index
    %c72_476 = arith.constant 72 : index
    %c90_477 = arith.constant 90 : index
    %195 = vector.load %arg13[%c0_475, %c72_476, %c90_477] : memref<2x96x256xf32, #tpu.memory_space<vmem>>, vector<2x22x10xf32>
    tpu.vector_store %arg13[%c0_475, %c72_476, %c90_477], %194 {strides = array<i32>} : memref<2x96x256xf32, #tpu.memory_space<vmem>>, vector<2x22x10xf32>,
    %c0_478 = arith.constant 0 : index
    %c114_479 = arith.constant 114 : index
    %c0_480 = arith.constant 0 : index
    %196 = vector.load %arg12[%c0_478, %c114_479, %c0_480] : memref<2x144x128xf32, #tpu.memory_space<vmem>>, vector<2x22x10xf32>
    %c0_481 = arith.constant 0 : index
    %c72_482 = arith.constant 72 : index
    %c100_483 = arith.constant 100 : index
    %197 = vector.load %arg13[%c0_481, %c72_482, %c100_483] : memref<2x96x256xf32, #tpu.memory_space<vmem>>, vector<2x22x10xf32>
    tpu.vector_store %arg13[%c0_481, %c72_482, %c100_483], %196 {strides = array<i32>} : memref<2x96x256xf32, #tpu.memory_space<vmem>>, vector<2x22x10xf32>,
    %c0_484 = arith.constant 0 : index
    %c79_485 = arith.constant 79 : index
    %c0_486 = arith.constant 0 : index
    %198 = vector.load %arg12[%c0_484, %c79_485, %c0_486] : memref<2x144x128xf32, #tpu.memory_space<vmem>>, vector<2x22x10xf32>
    %c0_487 = arith.constant 0 : index
    %c72_488 = arith.constant 72 : index
    %c110_489 = arith.constant 110 : index
    %199 = vector.load %arg13[%c0_487, %c72_488, %c110_489] : memref<2x96x256xf32, #tpu.memory_space<vmem>>, vector<2x22x10xf32>
    tpu.vector_store %arg13[%c0_487, %c72_488, %c110_489], %198 {strides = array<i32>} : memref<2x96x256xf32, #tpu.memory_space<vmem>>, vector<2x22x10xf32>,
    %c0_490 = arith.constant 0 : index
    %c115_491 = arith.constant 115 : index
    %c0_492 = arith.constant 0 : index
    %200 = vector.load %arg12[%c0_490, %c115_491, %c0_492] : memref<2x144x128xf32, #tpu.memory_space<vmem>>, vector<2x22x10xf32>
    %c0_493 = arith.constant 0 : index
    %c72_494 = arith.constant 72 : index
    %c120_495 = arith.constant 120 : index
    %201 = vector.load %arg13[%c0_493, %c72_494, %c120_495] : memref<2x96x256xf32, #tpu.memory_space<vmem>>, vector<2x22x10xf32>
    tpu.vector_store %arg13[%c0_493, %c72_494, %c120_495], %200 {strides = array<i32>} : memref<2x96x256xf32, #tpu.memory_space<vmem>>, vector<2x22x10xf32>,
    %c0_496 = arith.constant 0 : index
    %c80_497 = arith.constant 80 : index
    %c0_498 = arith.constant 0 : index
    %202 = vector.load %arg12[%c0_496, %c80_497, %c0_498] : memref<2x144x128xf32, #tpu.memory_space<vmem>>, vector<2x22x10xf32>
    %c0_499 = arith.constant 0 : index
    %c72_500 = arith.constant 72 : index
    %c130_501 = arith.constant 130 : index
    %203 = vector.load %arg13[%c0_499, %c72_500, %c130_501] : memref<2x96x256xf32, #tpu.memory_space<vmem>>, vector<2x22x10xf32>
    tpu.vector_store %arg13[%c0_499, %c72_500, %c130_501], %202 {strides = array<i32>} : memref<2x96x256xf32, #tpu.memory_space<vmem>>, vector<2x22x10xf32>,
    %c0_502 = arith.constant 0 : index
    %c116_503 = arith.constant 116 : index
    %c0_504 = arith.constant 0 : index
    %204 = vector.load %arg12[%c0_502, %c116_503, %c0_504] : memref<2x144x128xf32, #tpu.memory_space<vmem>>, vector<2x22x10xf32>
    %c0_505 = arith.constant 0 : index
    %c72_506 = arith.constant 72 : index
    %c140_507 = arith.constant 140 : index
    %205 = vector.load %arg13[%c0_505, %c72_506, %c140_507] : memref<2x96x256xf32, #tpu.memory_space<vmem>>, vector<2x22x10xf32>
    tpu.vector_store %arg13[%c0_505, %c72_506, %c140_507], %204 {strides = array<i32>} : memref<2x96x256xf32, #tpu.memory_space<vmem>>, vector<2x22x10xf32>,
    %c0_508 = arith.constant 0 : index
    %c48_509 = arith.constant 48 : index
    %c0_510 = arith.constant 0 : index
    %206 = vector.load %arg12[%c0_508, %c48_509, %c0_510] : memref<2x144x128xf32, #tpu.memory_space<vmem>>, vector<2x22x10xf32>
    %c0_511 = arith.constant 0 : index
    %c72_512 = arith.constant 72 : index
    %c150_513 = arith.constant 150 : index
    %207 = vector.load %arg13[%c0_511, %c72_512, %c150_513] : memref<2x96x256xf32, #tpu.memory_space<vmem>>, vector<2x22x10xf32>
    tpu.vector_store %arg13[%c0_511, %c72_512, %c150_513], %206 {strides = array<i32>} : memref<2x96x256xf32, #tpu.memory_space<vmem>>, vector<2x22x10xf32>,
    %c0_514 = arith.constant 0 : index
    %c13_515 = arith.constant 13 : index
    %c0_516 = arith.constant 0 : index
    %208 = vector.load %arg12[%c0_514, %c13_515, %c0_516] : memref<2x144x128xf32, #tpu.memory_space<vmem>>, vector<2x22x10xf32>
    %c0_517 = arith.constant 0 : index
    %c72_518 = arith.constant 72 : index
    %c160_519 = arith.constant 160 : index
    %209 = vector.load %arg13[%c0_517, %c72_518, %c160_519] : memref<2x96x256xf32, #tpu.memory_space<vmem>>, vector<2x22x10xf32>
    tpu.vector_store %arg13[%c0_517, %c72_518, %c160_519], %208 {strides = array<i32>} : memref<2x96x256xf32, #tpu.memory_space<vmem>>, vector<2x22x10xf32>,
    %c0_520 = arith.constant 0 : index
    %c49_521 = arith.constant 49 : index
    %c0_522 = arith.constant 0 : index
    %210 = vector.load %arg12[%c0_520, %c49_521, %c0_522] : memref<2x144x128xf32, #tpu.memory_space<vmem>>, vector<2x22x10xf32>
    %c0_523 = arith.constant 0 : index
    %c72_524 = arith.constant 72 : index
    %c170_525 = arith.constant 170 : index
    %211 = vector.load %arg13[%c0_523, %c72_524, %c170_525] : memref<2x96x256xf32, #tpu.memory_space<vmem>>, vector<2x22x10xf32>
    tpu.vector_store %arg13[%c0_523, %c72_524, %c170_525], %210 {strides = array<i32>} : memref<2x96x256xf32, #tpu.memory_space<vmem>>, vector<2x22x10xf32>,
    %c0_526 = arith.constant 0 : index
    %c14_527 = arith.constant 14 : index
    %c0_528 = arith.constant 0 : index
    %212 = vector.load %arg12[%c0_526, %c14_527, %c0_528] : memref<2x144x128xf32, #tpu.memory_space<vmem>>, vector<2x22x10xf32>
    %c0_529 = arith.constant 0 : index
    %c72_530 = arith.constant 72 : index
    %c180_531 = arith.constant 180 : index
    %213 = vector.load %arg13[%c0_529, %c72_530, %c180_531] : memref<2x96x256xf32, #tpu.memory_space<vmem>>, vector<2x22x10xf32>
    tpu.vector_store %arg13[%c0_529, %c72_530, %c180_531], %212 {strides = array<i32>} : memref<2x96x256xf32, #tpu.memory_space<vmem>>, vector<2x22x10xf32>,
    %c0_532 = arith.constant 0 : index
    %c50_533 = arith.constant 50 : index
    %c0_534 = arith.constant 0 : index
    %214 = vector.load %arg12[%c0_532, %c50_533, %c0_534] : memref<2x144x128xf32, #tpu.memory_space<vmem>>, vector<2x22x10xf32>
    %c0_535 = arith.constant 0 : index
    %c72_536 = arith.constant 72 : index
    %c190_537 = arith.constant 190 : index
    %215 = vector.load %arg13[%c0_535, %c72_536, %c190_537] : memref<2x96x256xf32, #tpu.memory_space<vmem>>, vector<2x22x10xf32>
    tpu.vector_store %arg13[%c0_535, %c72_536, %c190_537], %214 {strides = array<i32>} : memref<2x96x256xf32, #tpu.memory_space<vmem>>, vector<2x22x10xf32>,
    %c0_538 = arith.constant 0 : index
    %c120_539 = arith.constant 120 : index
    %c0_540 = arith.constant 0 : index
    %216 = vector.load %arg12[%c0_538, %c120_539, %c0_540] : memref<2x144x128xf32, #tpu.memory_space<vmem>>, vector<2x22x10xf32>
    %c0_541 = arith.constant 0 : index
    %c72_542 = arith.constant 72 : index
    %c200_543 = arith.constant 200 : index
    %217 = vector.load %arg13[%c0_541, %c72_542, %c200_543] : memref<2x96x256xf32, #tpu.memory_space<vmem>>, vector<2x22x10xf32>
    tpu.vector_store %arg13[%c0_541, %c72_542, %c200_543], %216 {strides = array<i32>} : memref<2x96x256xf32, #tpu.memory_space<vmem>>, vector<2x22x10xf32>,
    %c0_544 = arith.constant 0 : index
    %c85_545 = arith.constant 85 : index
    %c0_546 = arith.constant 0 : index
    %218 = vector.load %arg12[%c0_544, %c85_545, %c0_546] : memref<2x144x128xf32, #tpu.memory_space<vmem>>, vector<2x22x10xf32>
    %c0_547 = arith.constant 0 : index
    %c72_548 = arith.constant 72 : index
    %c210_549 = arith.constant 210 : index
    %219 = vector.load %arg13[%c0_547, %c72_548, %c210_549] : memref<2x96x256xf32, #tpu.memory_space<vmem>>, vector<2x22x10xf32>
    tpu.vector_store %arg13[%c0_547, %c72_548, %c210_549], %218 {strides = array<i32>} : memref<2x96x256xf32, #tpu.memory_space<vmem>>, vector<2x22x10xf32>,
    %c0_550 = arith.constant 0 : index
    %c121_551 = arith.constant 121 : index
    %c0_552 = arith.constant 0 : index
    %220 = vector.load %arg12[%c0_550, %c121_551, %c0_552] : memref<2x144x128xf32, #tpu.memory_space<vmem>>, vector<2x22x10xf32>
    %c0_553 = arith.constant 0 : index
    %c72_554 = arith.constant 72 : index
    %c220_555 = arith.constant 220 : index
    %221 = vector.load %arg13[%c0_553, %c72_554, %c220_555] : memref<2x96x256xf32, #tpu.memory_space<vmem>>, vector<2x22x10xf32>
    tpu.vector_store %arg13[%c0_553, %c72_554, %c220_555], %220 {strides = array<i32>} : memref<2x96x256xf32, #tpu.memory_space<vmem>>, vector<2x22x10xf32>,
    %c0_556 = arith.constant 0 : index
    %c86_557 = arith.constant 86 : index
    %c0_558 = arith.constant 0 : index
    %222 = vector.load %arg12[%c0_556, %c86_557, %c0_558] : memref<2x144x128xf32, #tpu.memory_space<vmem>>, vector<2x22x10xf32>
    %c0_559 = arith.constant 0 : index
    %c72_560 = arith.constant 72 : index
    %c230_561 = arith.constant 230 : index
    %223 = vector.load %arg13[%c0_559, %c72_560, %c230_561] : memref<2x96x256xf32, #tpu.memory_space<vmem>>, vector<2x22x10xf32>
    tpu.vector_store %arg13[%c0_559, %c72_560, %c230_561], %222 {strides = array<i32>} : memref<2x96x256xf32, #tpu.memory_space<vmem>>, vector<2x22x10xf32>,
    %c0_562 = arith.constant 0 : index
    %c122 = arith.constant 122 : index
    %c0_563 = arith.constant 0 : index
    %224 = vector.load %arg12[%c0_562, %c122, %c0_563] : memref<2x144x128xf32, #tpu.memory_space<vmem>>, vector<2x22x10xf32>
    %c0_564 = arith.constant 0 : index
    %c72_565 = arith.constant 72 : index
    %c240_566 = arith.constant 240 : index
    %225 = vector.load %arg13[%c0_564, %c72_565, %c240_566] : memref<2x96x256xf32, #tpu.memory_space<vmem>>, vector<2x22x10xf32>
    tpu.vector_store %arg13[%c0_564, %c72_565, %c240_566], %224 {strides = array<i32>} : memref<2x96x256xf32, #tpu.memory_space<vmem>>, vector<2x22x10xf32>,
    %c0_567 = arith.constant 0 : index
    %c0_568 = arith.constant 0 : index
    %c0_569 = arith.constant 0 : index
    %226 = vector.load %arg13[%c0_567, %c0_568, %c0_569] : memref<2x96x256xf32, #tpu.memory_space<vmem>>, vector<1x96x256xf32>
    %227 = vector.shape_cast %226 : vector<1x96x256xf32> to vector<96x256xf32>
    %c0_570 = arith.constant 0 : index
    %c0_571 = arith.constant 0 : index
    %228 = vector.load %arg4[%c0_570, %c0_571] : memref<256x128xf32, #tpu.memory_space<vmem>>, vector<256x128xf32>
    %cst_572 = arith.constant dense<0.000000e+00> : vector<96x128xf32>
    %229 = tpu.matmul %227, %228, %cst_572 {dimension_numbers = #tpu.dot_dimension_numbers<[1], [0], [0], [1], [0, 0, 1, 1], [], []>} : vector<96x256xf32>, vector<256x128xf32>, vector<96x128xf32> -> vector<96x128xf32>
    %230 = vector.extract_strided_slice %229 {offsets = [0, 0], sizes = [24, 128], strides = [1, 1]} : vector<96x128xf32> to vector<24x128xf32>
    %231 = vector.extract_strided_slice %229 {offsets = [24, 0], sizes = [24, 128], strides = [1, 1]} : vector<96x128xf32> to vector<24x128xf32>
    %232 = arith.maximumf %230, %231 : vector<24x128xf32>
    %233 = vector.extract_strided_slice %229 {offsets = [48, 0], sizes = [24, 128], strides = [1, 1]} : vector<96x128xf32> to vector<24x128xf32>
    %234 = vector.extract_strided_slice %229 {offsets = [72, 0], sizes = [24, 128], strides = [1, 1]} : vector<96x128xf32> to vector<24x128xf32>
    %235 = arith.maximumf %233, %234 : vector<24x128xf32>
    %236 = arith.maximumf %232, %235 : vector<24x128xf32>
    %c0_573 = arith.constant 0 : index
    %c0_574 = arith.constant 0 : index
    %237 = vector.load %arg5[%c0_573, %c0_574] : memref<1x128xf32, #tpu.memory_space<vmem>>, vector<1x128xf32>
    %238 = vector.broadcast %237 : vector<1x128xf32> to vector<24x128xf32>
    %239 = arith.addf %236, %238 : vector<24x128xf32>
    %cst_575 = arith.constant 0.000000e+00 : f32
    %240 = vector.broadcast %cst_575 : f32 to vector<24x128xf32>
    %241 = arith.maximumf %239, %240 : vector<24x128xf32>
    %c0_576 = arith.constant 0 : index
    %c0_577 = arith.constant 0 : index
    %c0_578 = arith.constant 0 : index
    %242 = vector.load %arg14[%c0_576, %c0_577, %c0_578] : memref<2x24x128xf32, #tpu.memory_space<vmem>>, vector<1x24x128xf32>
    %243 = vector.shape_cast %242 : vector<1x24x128xf32> to vector<24x128xf32>
    %244 = vector.shape_cast %241 : vector<24x128xf32> to vector<1x24x128xf32>
    tpu.vector_store %arg14[%c0_576, %c0_577, %c0_578], %244 {strides = array<i32>} : memref<2x24x128xf32, #tpu.memory_space<vmem>>, vector<1x24x128xf32>,
    %c1_579 = arith.constant 1 : index
    %c0_580 = arith.constant 0 : index
    %c0_581 = arith.constant 0 : index
    %245 = vector.load %arg13[%c1_579, %c0_580, %c0_581] : memref<2x96x256xf32, #tpu.memory_space<vmem>>, vector<1x96x256xf32>
    %246 = vector.shape_cast %245 : vector<1x96x256xf32> to vector<96x256xf32>
    %c0_582 = arith.constant 0 : index
    %c0_583 = arith.constant 0 : index
    %247 = vector.load %arg4[%c0_582, %c0_583] : memref<256x128xf32, #tpu.memory_space<vmem>>, vector<256x128xf32>
    %cst_584 = arith.constant dense<0.000000e+00> : vector<96x128xf32>
    %248 = tpu.matmul %246, %247, %cst_584 {dimension_numbers = #tpu.dot_dimension_numbers<[1], [0], [0], [1], [0, 0, 1, 1], [], []>} : vector<96x256xf32>, vector<256x128xf32>, vector<96x128xf32> -> vector<96x128xf32>
    %249 = vector.extract_strided_slice %248 {offsets = [0, 0], sizes = [24, 128], strides = [1, 1]} : vector<96x128xf32> to vector<24x128xf32>
    %250 = vector.extract_strided_slice %248 {offsets = [24, 0], sizes = [24, 128], strides = [1, 1]} : vector<96x128xf32> to vector<24x128xf32>
    %251 = arith.maximumf %249, %250 : vector<24x128xf32>
    %252 = vector.extract_strided_slice %248 {offsets = [48, 0], sizes = [24, 128], strides = [1, 1]} : vector<96x128xf32> to vector<24x128xf32>
    %253 = vector.extract_strided_slice %248 {offsets = [72, 0], sizes = [24, 128], strides = [1, 1]} : vector<96x128xf32> to vector<24x128xf32>
    %254 = arith.maximumf %252, %253 : vector<24x128xf32>
    %255 = arith.maximumf %251, %254 : vector<24x128xf32>
    %c0_585 = arith.constant 0 : index
    %c0_586 = arith.constant 0 : index
    %256 = vector.load %arg5[%c0_585, %c0_586] : memref<1x128xf32, #tpu.memory_space<vmem>>, vector<1x128xf32>
    %257 = vector.broadcast %256 : vector<1x128xf32> to vector<24x128xf32>
    %258 = arith.addf %255, %257 : vector<24x128xf32>
    %cst_587 = arith.constant 0.000000e+00 : f32
    %259 = vector.broadcast %cst_587 : f32 to vector<24x128xf32>
    %260 = arith.maximumf %258, %259 : vector<24x128xf32>
    %c1_588 = arith.constant 1 : index
    %c0_589 = arith.constant 0 : index
    %c0_590 = arith.constant 0 : index
    %261 = vector.load %arg14[%c1_588, %c0_589, %c0_590] : memref<2x24x128xf32, #tpu.memory_space<vmem>>, vector<1x24x128xf32>
    %262 = vector.shape_cast %261 : vector<1x24x128xf32> to vector<24x128xf32>
    %263 = vector.shape_cast %260 : vector<24x128xf32> to vector<1x24x128xf32>
    tpu.vector_store %arg14[%c1_588, %c0_589, %c0_590], %263 {strides = array<i32>} : memref<2x24x128xf32, #tpu.memory_space<vmem>>, vector<1x24x128xf32>,
    %c0_591 = arith.constant 0 : index
    %c0_592 = arith.constant 0 : index
    %c0_593 = arith.constant 0 : index
    %264 = vector.load %arg14[%c0_591, %c0_592, %c0_593] : memref<2x24x128xf32, #tpu.memory_space<vmem>>, vector<2x1x32xf32>
    %265 = vector.shape_cast %264 : vector<2x1x32xf32> to vector<2x32xf32>
    %c0_594 = arith.constant 0 : index
    %c0_595 = arith.constant 0 : index
    %c0_596 = arith.constant 0 : index
    %266 = vector.load %arg6[%c0_594, %c0_595, %c0_596] : memref<16x32x64xf32, #tpu.memory_space<vmem>>, vector<1x32x64xf32>
    %267 = vector.shape_cast %266 : vector<1x32x64xf32> to vector<32x64xf32>
    %cst_597 = arith.constant dense<0.000000e+00> : vector<2x64xf32>
    %268 = tpu.matmul %265, %267, %cst_597 {dimension_numbers = #tpu.dot_dimension_numbers<[1], [0], [0], [1], [0, 0, 1, 1], [], []>} : vector<2x32xf32>, vector<32x64xf32>, vector<2x64xf32> -> vector<2x64xf32>
    %c0_598 = arith.constant 0 : index
    %c1_599 = arith.constant 1 : index
    %c0_600 = arith.constant 0 : index
    %269 = vector.load %arg14[%c0_598, %c1_599, %c0_600] : memref<2x24x128xf32, #tpu.memory_space<vmem>>, vector<2x1x32xf32>
    %270 = vector.shape_cast %269 : vector<2x1x32xf32> to vector<2x32xf32>
    %c1_601 = arith.constant 1 : index
    %c0_602 = arith.constant 0 : index
    %c0_603 = arith.constant 0 : index
    %271 = vector.load %arg6[%c1_601, %c0_602, %c0_603] : memref<16x32x64xf32, #tpu.memory_space<vmem>>, vector<1x32x64xf32>
    %272 = vector.shape_cast %271 : vector<1x32x64xf32> to vector<32x64xf32>
    %cst_604 = arith.constant dense<0.000000e+00> : vector<2x64xf32>
    %273 = tpu.matmul %270, %272, %cst_604 {dimension_numbers = #tpu.dot_dimension_numbers<[1], [0], [0], [1], [0, 0, 1, 1], [], []>} : vector<2x32xf32>, vector<32x64xf32>, vector<2x64xf32> -> vector<2x64xf32>
    %274 = arith.addf %268, %273 : vector<2x64xf32>
    %c0_605 = arith.constant 0 : index
    %c2_606 = arith.constant 2 : index
    %c0_607 = arith.constant 0 : index
    %275 = vector.load %arg14[%c0_605, %c2_606, %c0_607] : memref<2x24x128xf32, #tpu.memory_space<vmem>>, vector<2x1x32xf32>
    %276 = vector.shape_cast %275 : vector<2x1x32xf32> to vector<2x32xf32>
    %c2_608 = arith.constant 2 : index
    %c0_609 = arith.constant 0 : index
    %c0_610 = arith.constant 0 : index
    %277 = vector.load %arg6[%c2_608, %c0_609, %c0_610] : memref<16x32x64xf32, #tpu.memory_space<vmem>>, vector<1x32x64xf32>
    %278 = vector.shape_cast %277 : vector<1x32x64xf32> to vector<32x64xf32>
    %cst_611 = arith.constant dense<0.000000e+00> : vector<2x64xf32>
    %279 = tpu.matmul %276, %278, %cst_611 {dimension_numbers = #tpu.dot_dimension_numbers<[1], [0], [0], [1], [0, 0, 1, 1], [], []>} : vector<2x32xf32>, vector<32x64xf32>, vector<2x64xf32> -> vector<2x64xf32>
    %280 = arith.addf %274, %279 : vector<2x64xf32>
    %c0_612 = arith.constant 0 : index
    %c3 = arith.constant 3 : index
    %c0_613 = arith.constant 0 : index
    %281 = vector.load %arg14[%c0_612, %c3, %c0_613] : memref<2x24x128xf32, #tpu.memory_space<vmem>>, vector<2x1x32xf32>
    %282 = vector.shape_cast %281 : vector<2x1x32xf32> to vector<2x32xf32>
    %c3_614 = arith.constant 3 : index
    %c0_615 = arith.constant 0 : index
    %c0_616 = arith.constant 0 : index
    %283 = vector.load %arg6[%c3_614, %c0_615, %c0_616] : memref<16x32x64xf32, #tpu.memory_space<vmem>>, vector<1x32x64xf32>
    %284 = vector.shape_cast %283 : vector<1x32x64xf32> to vector<32x64xf32>
    %cst_617 = arith.constant dense<0.000000e+00> : vector<2x64xf32>
    %285 = tpu.matmul %282, %284, %cst_617 {dimension_numbers = #tpu.dot_dimension_numbers<[1], [0], [0], [1], [0, 0, 1, 1], [], []>} : vector<2x32xf32>, vector<32x64xf32>, vector<2x64xf32> -> vector<2x64xf32>
    %286 = arith.addf %280, %285 : vector<2x64xf32>
    %c0_618 = arith.constant 0 : index
    %c6_619 = arith.constant 6 : index
    %c0_620 = arith.constant 0 : index
    %287 = vector.load %arg14[%c0_618, %c6_619, %c0_620] : memref<2x24x128xf32, #tpu.memory_space<vmem>>, vector<2x1x32xf32>
    %288 = vector.shape_cast %287 : vector<2x1x32xf32> to vector<2x32xf32>
    %c4 = arith.constant 4 : index
    %c0_621 = arith.constant 0 : index
    %c0_622 = arith.constant 0 : index
    %289 = vector.load %arg6[%c4, %c0_621, %c0_622] : memref<16x32x64xf32, #tpu.memory_space<vmem>>, vector<1x32x64xf32>
    %290 = vector.shape_cast %289 : vector<1x32x64xf32> to vector<32x64xf32>
    %cst_623 = arith.constant dense<0.000000e+00> : vector<2x64xf32>
    %291 = tpu.matmul %288, %290, %cst_623 {dimension_numbers = #tpu.dot_dimension_numbers<[1], [0], [0], [1], [0, 0, 1, 1], [], []>} : vector<2x32xf32>, vector<32x64xf32>, vector<2x64xf32> -> vector<2x64xf32>
    %292 = arith.addf %286, %291 : vector<2x64xf32>
    %c0_624 = arith.constant 0 : index
    %c7_625 = arith.constant 7 : index
    %c0_626 = arith.constant 0 : index
    %293 = vector.load %arg14[%c0_624, %c7_625, %c0_626] : memref<2x24x128xf32, #tpu.memory_space<vmem>>, vector<2x1x32xf32>
    %294 = vector.shape_cast %293 : vector<2x1x32xf32> to vector<2x32xf32>
    %c5 = arith.constant 5 : index
    %c0_627 = arith.constant 0 : index
    %c0_628 = arith.constant 0 : index
    %295 = vector.load %arg6[%c5, %c0_627, %c0_628] : memref<16x32x64xf32, #tpu.memory_space<vmem>>, vector<1x32x64xf32>
    %296 = vector.shape_cast %295 : vector<1x32x64xf32> to vector<32x64xf32>
    %cst_629 = arith.constant dense<0.000000e+00> : vector<2x64xf32>
    %297 = tpu.matmul %294, %296, %cst_629 {dimension_numbers = #tpu.dot_dimension_numbers<[1], [0], [0], [1], [0, 0, 1, 1], [], []>} : vector<2x32xf32>, vector<32x64xf32>, vector<2x64xf32> -> vector<2x64xf32>
    %298 = arith.addf %292, %297 : vector<2x64xf32>
    %c0_630 = arith.constant 0 : index
    %c8_631 = arith.constant 8 : index
    %c0_632 = arith.constant 0 : index
    %299 = vector.load %arg14[%c0_630, %c8_631, %c0_632] : memref<2x24x128xf32, #tpu.memory_space<vmem>>, vector<2x1x32xf32>
    %300 = vector.shape_cast %299 : vector<2x1x32xf32> to vector<2x32xf32>
    %c6_633 = arith.constant 6 : index
    %c0_634 = arith.constant 0 : index
    %c0_635 = arith.constant 0 : index
    %301 = vector.load %arg6[%c6_633, %c0_634, %c0_635] : memref<16x32x64xf32, #tpu.memory_space<vmem>>, vector<1x32x64xf32>
    %302 = vector.shape_cast %301 : vector<1x32x64xf32> to vector<32x64xf32>
    %cst_636 = arith.constant dense<0.000000e+00> : vector<2x64xf32>
    %303 = tpu.matmul %300, %302, %cst_636 {dimension_numbers = #tpu.dot_dimension_numbers<[1], [0], [0], [1], [0, 0, 1, 1], [], []>} : vector<2x32xf32>, vector<32x64xf32>, vector<2x64xf32> -> vector<2x64xf32>
    %304 = arith.addf %298, %303 : vector<2x64xf32>
    %c0_637 = arith.constant 0 : index
    %c9 = arith.constant 9 : index
    %c0_638 = arith.constant 0 : index
    %305 = vector.load %arg14[%c0_637, %c9, %c0_638] : memref<2x24x128xf32, #tpu.memory_space<vmem>>, vector<2x1x32xf32>
    %306 = vector.shape_cast %305 : vector<2x1x32xf32> to vector<2x32xf32>
    %c7_639 = arith.constant 7 : index
    %c0_640 = arith.constant 0 : index
    %c0_641 = arith.constant 0 : index
    %307 = vector.load %arg6[%c7_639, %c0_640, %c0_641] : memref<16x32x64xf32, #tpu.memory_space<vmem>>, vector<1x32x64xf32>
    %308 = vector.shape_cast %307 : vector<1x32x64xf32> to vector<32x64xf32>
    %cst_642 = arith.constant dense<0.000000e+00> : vector<2x64xf32>
    %309 = tpu.matmul %306, %308, %cst_642 {dimension_numbers = #tpu.dot_dimension_numbers<[1], [0], [0], [1], [0, 0, 1, 1], [], []>} : vector<2x32xf32>, vector<32x64xf32>, vector<2x64xf32> -> vector<2x64xf32>
    %310 = arith.addf %304, %309 : vector<2x64xf32>
    %c0_643 = arith.constant 0 : index
    %c12_644 = arith.constant 12 : index
    %c0_645 = arith.constant 0 : index
    %311 = vector.load %arg14[%c0_643, %c12_644, %c0_645] : memref<2x24x128xf32, #tpu.memory_space<vmem>>, vector<2x1x32xf32>
    %312 = vector.shape_cast %311 : vector<2x1x32xf32> to vector<2x32xf32>
    %c8_646 = arith.constant 8 : index
    %c0_647 = arith.constant 0 : index
    %c0_648 = arith.constant 0 : index
    %313 = vector.load %arg6[%c8_646, %c0_647, %c0_648] : memref<16x32x64xf32, #tpu.memory_space<vmem>>, vector<1x32x64xf32>
    %314 = vector.shape_cast %313 : vector<1x32x64xf32> to vector<32x64xf32>
    %cst_649 = arith.constant dense<0.000000e+00> : vector<2x64xf32>
    %315 = tpu.matmul %312, %314, %cst_649 {dimension_numbers = #tpu.dot_dimension_numbers<[1], [0], [0], [1], [0, 0, 1, 1], [], []>} : vector<2x32xf32>, vector<32x64xf32>, vector<2x64xf32> -> vector<2x64xf32>
    %316 = arith.addf %310, %315 : vector<2x64xf32>
    %c0_650 = arith.constant 0 : index
    %c13_651 = arith.constant 13 : index
    %c0_652 = arith.constant 0 : index
    %317 = vector.load %arg14[%c0_650, %c13_651, %c0_652] : memref<2x24x128xf32, #tpu.memory_space<vmem>>, vector<2x1x32xf32>
    %318 = vector.shape_cast %317 : vector<2x1x32xf32> to vector<2x32xf32>
    %c9_653 = arith.constant 9 : index
    %c0_654 = arith.constant 0 : index
    %c0_655 = arith.constant 0 : index
    %319 = vector.load %arg6[%c9_653, %c0_654, %c0_655] : memref<16x32x64xf32, #tpu.memory_space<vmem>>, vector<1x32x64xf32>
    %320 = vector.shape_cast %319 : vector<1x32x64xf32> to vector<32x64xf32>
    %cst_656 = arith.constant dense<0.000000e+00> : vector<2x64xf32>
    %321 = tpu.matmul %318, %320, %cst_656 {dimension_numbers = #tpu.dot_dimension_numbers<[1], [0], [0], [1], [0, 0, 1, 1], [], []>} : vector<2x32xf32>, vector<32x64xf32>, vector<2x64xf32> -> vector<2x64xf32>
    %322 = arith.addf %316, %321 : vector<2x64xf32>
    %c0_657 = arith.constant 0 : index
    %c14_658 = arith.constant 14 : index
    %c0_659 = arith.constant 0 : index
    %323 = vector.load %arg14[%c0_657, %c14_658, %c0_659] : memref<2x24x128xf32, #tpu.memory_space<vmem>>, vector<2x1x32xf32>
    %324 = vector.shape_cast %323 : vector<2x1x32xf32> to vector<2x32xf32>
    %c10_660 = arith.constant 10 : index
    %c0_661 = arith.constant 0 : index
    %c0_662 = arith.constant 0 : index
    %325 = vector.load %arg6[%c10_660, %c0_661, %c0_662] : memref<16x32x64xf32, #tpu.memory_space<vmem>>, vector<1x32x64xf32>
    %326 = vector.shape_cast %325 : vector<1x32x64xf32> to vector<32x64xf32>
    %cst_663 = arith.constant dense<0.000000e+00> : vector<2x64xf32>
    %327 = tpu.matmul %324, %326, %cst_663 {dimension_numbers = #tpu.dot_dimension_numbers<[1], [0], [0], [1], [0, 0, 1, 1], [], []>} : vector<2x32xf32>, vector<32x64xf32>, vector<2x64xf32> -> vector<2x64xf32>
    %328 = arith.addf %322, %327 : vector<2x64xf32>
    %c0_664 = arith.constant 0 : index
    %c15 = arith.constant 15 : index
    %c0_665 = arith.constant 0 : index
    %329 = vector.load %arg14[%c0_664, %c15, %c0_665] : memref<2x24x128xf32, #tpu.memory_space<vmem>>, vector<2x1x32xf32>
    %330 = vector.shape_cast %329 : vector<2x1x32xf32> to vector<2x32xf32>
    %c11 = arith.constant 11 : index
    %c0_666 = arith.constant 0 : index
    %c0_667 = arith.constant 0 : index
    %331 = vector.load %arg6[%c11, %c0_666, %c0_667] : memref<16x32x64xf32, #tpu.memory_space<vmem>>, vector<1x32x64xf32>
    %332 = vector.shape_cast %331 : vector<1x32x64xf32> to vector<32x64xf32>
    %cst_668 = arith.constant dense<0.000000e+00> : vector<2x64xf32>
    %333 = tpu.matmul %330, %332, %cst_668 {dimension_numbers = #tpu.dot_dimension_numbers<[1], [0], [0], [1], [0, 0, 1, 1], [], []>} : vector<2x32xf32>, vector<32x64xf32>, vector<2x64xf32> -> vector<2x64xf32>
    %334 = arith.addf %328, %333 : vector<2x64xf32>
    %c0_669 = arith.constant 0 : index
    %c18 = arith.constant 18 : index
    %c0_670 = arith.constant 0 : index
    %335 = vector.load %arg14[%c0_669, %c18, %c0_670] : memref<2x24x128xf32, #tpu.memory_space<vmem>>, vector<2x1x32xf32>
    %336 = vector.shape_cast %335 : vector<2x1x32xf32> to vector<2x32xf32>
    %c12_671 = arith.constant 12 : index
    %c0_672 = arith.constant 0 : index
    %c0_673 = arith.constant 0 : index
    %337 = vector.load %arg6[%c12_671, %c0_672, %c0_673] : memref<16x32x64xf32, #tpu.memory_space<vmem>>, vector<1x32x64xf32>
    %338 = vector.shape_cast %337 : vector<1x32x64xf32> to vector<32x64xf32>
    %cst_674 = arith.constant dense<0.000000e+00> : vector<2x64xf32>
    %339 = tpu.matmul %336, %338, %cst_674 {dimension_numbers = #tpu.dot_dimension_numbers<[1], [0], [0], [1], [0, 0, 1, 1], [], []>} : vector<2x32xf32>, vector<32x64xf32>, vector<2x64xf32> -> vector<2x64xf32>
    %340 = arith.addf %334, %339 : vector<2x64xf32>
    %c0_675 = arith.constant 0 : index
    %c19 = arith.constant 19 : index
    %c0_676 = arith.constant 0 : index
    %341 = vector.load %arg14[%c0_675, %c19, %c0_676] : memref<2x24x128xf32, #tpu.memory_space<vmem>>, vector<2x1x32xf32>
    %342 = vector.shape_cast %341 : vector<2x1x32xf32> to vector<2x32xf32>
    %c13_677 = arith.constant 13 : index
    %c0_678 = arith.constant 0 : index
    %c0_679 = arith.constant 0 : index
    %343 = vector.load %arg6[%c13_677, %c0_678, %c0_679] : memref<16x32x64xf32, #tpu.memory_space<vmem>>, vector<1x32x64xf32>
    %344 = vector.shape_cast %343 : vector<1x32x64xf32> to vector<32x64xf32>
    %cst_680 = arith.constant dense<0.000000e+00> : vector<2x64xf32>
    %345 = tpu.matmul %342, %344, %cst_680 {dimension_numbers = #tpu.dot_dimension_numbers<[1], [0], [0], [1], [0, 0, 1, 1], [], []>} : vector<2x32xf32>, vector<32x64xf32>, vector<2x64xf32> -> vector<2x64xf32>
    %346 = arith.addf %340, %345 : vector<2x64xf32>
    %c0_681 = arith.constant 0 : index
    %c20_682 = arith.constant 20 : index
    %c0_683 = arith.constant 0 : index
    %347 = vector.load %arg14[%c0_681, %c20_682, %c0_683] : memref<2x24x128xf32, #tpu.memory_space<vmem>>, vector<2x1x32xf32>
    %348 = vector.shape_cast %347 : vector<2x1x32xf32> to vector<2x32xf32>
    %c14_684 = arith.constant 14 : index
    %c0_685 = arith.constant 0 : index
    %c0_686 = arith.constant 0 : index
    %349 = vector.load %arg6[%c14_684, %c0_685, %c0_686] : memref<16x32x64xf32, #tpu.memory_space<vmem>>, vector<1x32x64xf32>
    %350 = vector.shape_cast %349 : vector<1x32x64xf32> to vector<32x64xf32>
    %cst_687 = arith.constant dense<0.000000e+00> : vector<2x64xf32>
    %351 = tpu.matmul %348, %350, %cst_687 {dimension_numbers = #tpu.dot_dimension_numbers<[1], [0], [0], [1], [0, 0, 1, 1], [], []>} : vector<2x32xf32>, vector<32x64xf32>, vector<2x64xf32> -> vector<2x64xf32>
    %352 = arith.addf %346, %351 : vector<2x64xf32>
    %c0_688 = arith.constant 0 : index
    %c21 = arith.constant 21 : index
    %c0_689 = arith.constant 0 : index
    %353 = vector.load %arg14[%c0_688, %c21, %c0_689] : memref<2x24x128xf32, #tpu.memory_space<vmem>>, vector<2x1x32xf32>
    %354 = vector.shape_cast %353 : vector<2x1x32xf32> to vector<2x32xf32>
    %c15_690 = arith.constant 15 : index
    %c0_691 = arith.constant 0 : index
    %c0_692 = arith.constant 0 : index
    %355 = vector.load %arg6[%c15_690, %c0_691, %c0_692] : memref<16x32x64xf32, #tpu.memory_space<vmem>>, vector<1x32x64xf32>
    %356 = vector.shape_cast %355 : vector<1x32x64xf32> to vector<32x64xf32>
    %cst_693 = arith.constant dense<0.000000e+00> : vector<2x64xf32>
    %357 = tpu.matmul %354, %356, %cst_693 {dimension_numbers = #tpu.dot_dimension_numbers<[1], [0], [0], [1], [0, 0, 1, 1], [], []>} : vector<2x32xf32>, vector<32x64xf32>, vector<2x64xf32> -> vector<2x64xf32>
    %358 = arith.addf %352, %357 : vector<2x64xf32>
    %c0_694 = arith.constant 0 : index
    %c0_695 = arith.constant 0 : index
    %359 = vector.load %arg7[%c0_694, %c0_695] : memref<1x64xf32, #tpu.memory_space<vmem>>, vector<1x64xf32>
    %360 = vector.broadcast %359 : vector<1x64xf32> to vector<2x64xf32>
    %361 = arith.addf %358, %360 : vector<2x64xf32>
    %cst_696 = arith.constant 0.000000e+00 : f32
    %362 = vector.broadcast %cst_696 : f32 to vector<2x64xf32>
    %363 = arith.maximumf %361, %362 : vector<2x64xf32>
    %c0_697 = arith.constant 0 : index
    %c0_698 = arith.constant 0 : index
    %364 = vector.load %arg8[%c0_697, %c0_698] : memref<64x128xf32, #tpu.memory_space<vmem>>, vector<64x128xf32>
    %cst_699 = arith.constant dense<0.000000e+00> : vector<2x128xf32>
    %365 = tpu.matmul %363, %364, %cst_699 {dimension_numbers = #tpu.dot_dimension_numbers<[1], [0], [0], [1], [0, 0, 1, 1], [], []>} : vector<2x64xf32>, vector<64x128xf32>, vector<2x128xf32> -> vector<2x128xf32>
    %c0_700 = arith.constant 0 : index
    %c0_701 = arith.constant 0 : index
    %366 = vector.load %arg9[%c0_700, %c0_701] : memref<1x128xf32, #tpu.memory_space<vmem>>, vector<1x128xf32>
    %367 = vector.broadcast %366 : vector<1x128xf32> to vector<2x128xf32>
    %368 = arith.addf %365, %367 : vector<2x128xf32>
    %cst_702 = arith.constant dense<0xFF800000> : vector<2xf32>
    %369 = vector.multi_reduction <maximumf>, %368, %cst_702 [1] : vector<2x128xf32> to vector<2xf32>
    %370 = vector.shape_cast %369 : vector<2xf32> to vector<2x1xf32>
    %371 = vector.broadcast %370 : vector<2x1xf32> to vector<2x128xf32>
    %372 = arith.subf %368, %371 : vector<2x128xf32>
    %373 = math.exp %372 : vector<2x128xf32>
    %cst_703 = arith.constant dense<0.000000e+00> : vector<2xf32>
    %374 = vector.multi_reduction <add>, %373, %cst_703 [1] : vector<2x128xf32> to vector<2xf32>
    %375 = vector.shape_cast %374 : vector<2xf32> to vector<2x1xf32>
    %376 = math.log %375 : vector<2x1xf32>
    %377 = vector.broadcast %376 : vector<2x1xf32> to vector<2x128xf32>
    %378 = arith.subf %372, %377 : vector<2x128xf32>
    %c0_704 = arith.constant 0 : index
    %c0_705 = arith.constant 0 : index
    %379 = vector.load %arg10[%c0_704, %c0_705] : memref<2x128xf32, #tpu.memory_space<vmem>>, vector<2x128xf32>
    tpu.vector_store %arg10[%c0_704, %c0_705], %378 {strides = array<i32>} : memref<2x128xf32, #tpu.memory_space<vmem>>, vector<2x128xf32>,
    return
  }
  func.func @transform_0(%arg0: i32) -> (i32, i32) {
    %c0_i32 = arith.constant 0 : i32
    %c0_i32_0 = arith.constant 0 : i32
    %c0_i32_1 = arith.constant 0 : i32
    return %c0_i32, %c0_i32_0 : i32, i32
  }
  func.func @transform_1(%arg0: i32) -> (i32, i32) {
    %c0_i32 = arith.constant 0 : i32
    %c0_i32_0 = arith.constant 0 : i32
    %c0_i32_1 = arith.constant 0 : i32
    return %c0_i32, %c0_i32_0 : i32, i32
  }
  func.func @transform_2(%arg0: i32) -> (i32, i32) {
    %c0_i32 = arith.constant 0 : i32
    %c0_i32_0 = arith.constant 0 : i32
    %c0_i32_1 = arith.constant 0 : i32
    return %c0_i32, %c0_i32_0 : i32, i32
  }
  func.func @transform_3(%arg0: i32) -> (i32, i32) {
    %c0_i32 = arith.constant 0 : i32
    %c0_i32_0 = arith.constant 0 : i32
    %c0_i32_1 = arith.constant 0 : i32
    return %c0_i32, %c0_i32_0 : i32, i32
  }
  func.func @transform_4(%arg0: i32) -> (i32, i32) {
    %c0_i32 = arith.constant 0 : i32
    %c0_i32_0 = arith.constant 0 : i32
    %c0_i32_1 = arith.constant 0 : i32
    return %c0_i32, %c0_i32_0 : i32, i32
  }
  func.func @transform_5(%arg0: i32) -> (i32, i32, i32) {
    %c0_i32 = arith.constant 0 : i32
    %c0_i32_0 = arith.constant 0 : i32
    %c0_i32_1 = arith.constant 0 : i32
    %c0_i32_2 = arith.constant 0 : i32
    return %c0_i32, %c0_i32_0, %c0_i32_1 : i32, i32, i32
  }
  func.func @transform_6(%arg0: i32) -> (i32, i32) {
    %c0_i32 = arith.constant 0 : i32
    %c0_i32_0 = arith.constant 0 : i32
    %c0_i32_1 = arith.constant 0 : i32
    return %c0_i32, %c0_i32_0 : i32, i32
  }
  func.func @transform_7(%arg0: i32) -> (i32, i32) {
    %c0_i32 = arith.constant 0 : i32
    %c0_i32_0 = arith.constant 0 : i32
    %c0_i32_1 = arith.constant 0 : i32
    return %c0_i32, %c0_i32_0 : i32, i32
  }
  func.func @transform_8(%arg0: i32) -> (i32, i32) {
    %c0_i32 = arith.constant 0 : i32
    %c0_i32_0 = arith.constant 0 : i32
    %c0_i32_1 = arith.constant 0 : i32
    return %c0_i32, %c0_i32_0 : i32, i32
  }
  func.func @transform_9(%arg0: i32) -> (i32, i32) {
    %c0_i32 = arith.constant 0 : i32
    %c0_i32_0 = arith.constant 0 : i32
    %c0_i32_1 = arith.constant 0 : i32
    return %c0_i32, %c0_i32_0 : i32, i32
  }
}

</mosaic_0001>

<bundles_post_ra>
// kernel: net_forward.1
= control target key start
LH: loop header
LB: loop body
LE: loop exit
PB: predicated region body
PF: predicated region fallthrough
CT: control target
= control target key end

     0   :  { %vm12374_vm0 = vcmask 261120   ;;  %s12341_s0 = inlined_call_operand.vmem [shape: f32[1152,32], index: 0, kind: input, shape index: {}]   ;;  %s12342_s1 = inlined_call_operand.vmem [shape: f32[32,128], index: 1, kind: input, shape index: {}]   ;;  %s12343_s2 = inlined_call_operand.vmem [shape: f32[1,128], index: 2, kind: input, shape index: {}]   ;;  %s12344_s3 = inlined_call_operand.vmem [shape: f32[256,128], index: 3, kind: input, shape index: {}]   ;;  %s12345_s4 = inlined_call_operand.vmem [shape: f32[1,128], index: 4, kind: input, shape index: {}]   ;;  %s12346_s5 = inlined_call_operand.vmem [shape: f32[16,32,64], index: 5, kind: input, shape index: {}]   ;;  %s12347_s6 = inlined_call_operand.vmem [shape: f32[1,64], index: 6, kind: input, shape index: {}]   ;;  %s12348_s7 = inlined_call_operand.vmem [shape: f32[64,128], index: 7, kind: input, shape index: {}]   ;;  %s12349_s8 = inlined_call_operand.vmem [shape: f32[1,128], index: 8, kind: input, shape index: {}]   ;;  %s12350_s9 = inlined_call_operand.hbm [shape: f32[2,128], index: 9, kind: output, shape index: {}]  }
   0x1   :  { %v180_v0 = vld [vmem:[%s12342_s1 + $0x18] sm:$0xff]  ;;  %v179_v1 = vld [vmem:[%s12342_s1 + $0x10] sm:$0xff]  ;;  %v33_v2 = vld [vmem:[%s12341_s0] sm:$0xff] }
   0x2   :  { %8020 = vmatprep.subr.mxu0 %v180_v0  ;;  %v178_v3 = vld [vmem:[%s12342_s1 + $0x8] sm:$0xff]  ;;  %8028 = vmatprep.mubr.msk.f32.mxu0 %vm12374_vm0, %v33_v2  ;;  %v177_v4 = vld [vmem:[%s12342_s1] sm:$0xff]  ;;  %v35_v6 = vld [vmem:[%s12341_s0 + $0x10] sm:$0xff] }
   0x3   :  { %8021 = vmatpush3.msra.mxu0 %v180_v0  ;;  %v34_v5 = vld [vmem:[%s12341_s0 + $0x8] sm:$0xff]  ;;  %v36_v7 = vld [vmem:[%s12341_s0 + $0x18] sm:$0xff]  ;;  %v37_v8 = vld [vmem:[%s12341_s0 + $0x20] sm:$0xff] }
   0x4   :  { %8022 = vmatprep.subr.mxu0 %v179_v1  ;;  %v38_v9 = vld [vmem:[%s12341_s0 + $0x28] sm:$0xff]  ;;  %v39_v10 = vld [vmem:[%s12341_s0 + $0x30] sm:$0xff]  ;;  %v40_v11 = vld [vmem:[%s12341_s0 + $0x38] sm:$0xff] }
   0x5   :  { %8023 = vmatpush3.msra.mxu0 %v179_v1  ;;  %v41_v12 = vld [vmem:[%s12341_s0 + $0x40] sm:$0xff]  ;;  %v42_v13 = vld [vmem:[%s12341_s0 + $0x48] sm:$0xff]  ;;  %v43_v14 = vld [vmem:[%s12341_s0 + $0x50] sm:$0xff] }
   0x6   :  { %8024 = vmatprep.subr.mxu0 %v178_v3  ;;  %v44_v15 = vld [vmem:[%s12341_s0 + $0x58] sm:$0xff] }
   0x7   :  { %8025 = vmatpush3.msra.mxu0 %v178_v3 }
   0x8   :  { %8026 = vmatprep.subr.mxu0 %v177_v4 }
   0x9   :  { %8027 = vmatpush3.msra.mxu0 %v177_v4 }
   0xa   :  { %8029 = vmatmul.mubr.msk.f32.vlgmr.msra.gmra.mxu0 %vm12374_vm0, %v34_v5 }
   0xb   :  { %8031 = vmatprep.mubr.msk.f32.mxu0 %vm12374_vm0, %v35_v6 }
   0xe   :  { %8032 = vmatmul.mubr.msk.f32.gmra.mxu0 %vm12374_vm0, %v36_v7 }
   0xf   :  { %8034 = vmatprep.mubr.msk.f32.mxu0 %vm12374_vm0, %v37_v8 }
  0x12   :  { %8035 = vmatmul.mubr.msk.f32.gmra.mxu0 %vm12374_vm0, %v38_v9 }
  0x13   :  { %8037 = vmatprep.mubr.msk.f32.mxu0 %vm12374_vm0, %v39_v10 }
  0x16   :  { %8038 = vmatmul.mubr.msk.f32.gmra.mxu0 %vm12374_vm0, %v40_v11 }
  0x17   :  { %8040 = vmatprep.mubr.msk.f32.mxu0 %vm12374_vm0, %v41_v12 }
  0x1a   :  { %8041 = vmatmul.mubr.msk.f32.gmra.mxu0 %vm12374_vm0, %v42_v13 }
  0x1b   :  { %8043 = vmatprep.mubr.msk.f32.mxu0 %vm12374_vm0, %v43_v14 }
  0x1c   :  { %14 = vsyncpa [#allocation7], 0  ;;  %v45_v16 = vld [vmem:[%s12341_s0 + $0x60] sm:$0xff]  ;;  %v46_v17 = vld [vmem:[%s12341_s0 + $0x68] sm:$0xff]  ;;  %s8496_s20 = smov 2   ;;  %vm1965_vm1 = vcmask 80896  }
  0x1d   :  { %v47_v18 = vld [vmem:[%s12341_s0 + $0x70] sm:$0xff]  ;;  %v48_v19 = vld [vmem:[%s12341_s0 + $0x78] sm:$0xff]  ;;  %v49_v20 = vld [vmem:[%s12341_s0 + $0x80] sm:$0xff]  ;;  %s8497_s21 = smov 90   ;;  %s12358_s22 = smov 100   ;;  %vm1968_vm2 = vcmask 78848  }
  0x1e   :  { %8044 = vmatmul.mubr.msk.f32.gmra.mxu0 %vm12374_vm0, %v44_v15  ;;  %v50_v21 = vld [vmem:[%s12341_s0 + $0x88] sm:$0xff]  ;;  %v51_v22 = vld [vmem:[%s12341_s0 + $0x90] sm:$0xff]  ;;  %v52_v23 = vld [vmem:[%s12341_s0 + $0x98] sm:$0xff]  ;;  %s12369_s23 = smov 20   ;;  %s12431_s24 = smov 10   ;;  %vm12396_vm3 = vcmask 162896  }
  0x1f   :  { %8046 = vmatprep.mubr.msk.f32.mxu0 %vm12374_vm0, %v45_v16  ;;  %v53_v24 = vld [vmem:[%s12341_s0 + $0xa0] sm:$0xff]  ;;  %v54_v25 = vld [vmem:[%s12341_s0 + $0xa8] sm:$0xff]  ;;  %v55_v26 = vld [vmem:[%s12341_s0 + $0xb0] sm:$0xff]  ;;  %s12366_s1 = smov 40   ;;  %s12429_s25 = smov 30   ;;  %vm12389_vm4 = vcmask 15360  }
  0x20   :  { %v56_v27 = vld [vmem:[%s12341_s0 + $0xb8] sm:$0xff]  ;;  %v57_v28 = vld [vmem:[%s12341_s0 + $0xc0] sm:$0xff]  ;;  %v58_v29 = vld [vmem:[%s12341_s0 + $0xc8] sm:$0xff]  ;;  %s8503_s26 = smov 120   ;;  %s12427_s27 = smov 50   ;;  %vm12393_vm5 = vcmask 13312  }
  0x21   :  { %v59_v30 = vld [vmem:[%s12341_s0 + $0xd0] sm:$0xff]  ;;  %v60_v31 = vld [vmem:[%s12341_s0 + $0xd8] sm:$0xff]  ;;  %v61_v32 = vld [vmem:[%s12341_s0 + $0xe0] sm:$0xff]  ;;  %s8505_s28 = smov 110   ;;  %s12423_s29 = smov 70   ;;  %vm12383_vm6 = vcmask 160848  }
  0x22   :  { %8047 = vmatmul.mubr.msk.f32.gmra.mxu0 %vm12374_vm0, %v46_v17  ;;  %v62_v33 = vld [vmem:[%s12341_s0 + $0xe8] sm:$0xff]  ;;  %v63_v34 = vld [vmem:[%s12341_s0 + $0xf0] sm:$0xff]  ;;  %v64_v35 = vld [vmem:[%s12341_s0 + $0xf8] sm:$0xff]  ;;  %s8507_s30 = smov 72   ;;  %s12364_s10 = smov 82   ;;  %vm12382_vm7 = vcmask 242848  }
  0x23   :  { %8049 = vmatprep.mubr.msk.f32.mxu0 %vm12374_vm0, %v47_v18  ;;  %v65_v36 = vld [vmem:[%s12341_s0 + $0x100] sm:$0xff]  ;;  %v66_v37 = vld [vmem:[%s12341_s0 + $0x108] sm:$0xff]  ;;  %v67_v38 = vld [vmem:[%s12341_s0 + $0x110] sm:$0xff]  ;;  %s12362_s11 = smov 102   ;;  %s12360_s12 = smov 92   ;;  %vm12395_vm8 = vcmask 244896  }
  0x24   :  { %v68_v39 = vld [vmem:[%s12341_s0 + $0x118] sm:$0xff]  ;;  %v69_v40 = vld [vmem:[%s12341_s0 + $0x120] sm:$0xff]  ;;  %v70_v41 = vld [vmem:[%s12341_s0 + $0x128] sm:$0xff]  ;;  %s12437_s13 = smov 22   ;;  %s12356_s14 = smov 112   ;;  %vm12394_vm9 = vcmask 326896  }
  0x25   :  { %v71_v42 = vld [vmem:[%s12341_s0 + $0x130] sm:$0xff]  ;;  %v72_v43 = vld [vmem:[%s12341_s0 + $0x138] sm:$0xff]  ;;  %v73_v44 = vld [vmem:[%s12341_s0 + $0x140] sm:$0xff]  ;;  %s12433_s15 = smov 42   ;;  %s8514_s16 = smov 62   ;;  %vm12392_vm10 = vcmask 408896  }
  0x26   :  { %8050 = vmatmul.mubr.msk.f32.gmra.mxu0 %vm12374_vm0, %v48_v19  ;;  %v74_v45 = vld [vmem:[%s12341_s0 + $0x148] sm:$0xff]  ;;  %v75_v46 = vld [vmem:[%s12341_s0 + $0x150] sm:$0xff]  ;;  %v76_v47 = vld [vmem:[%s12341_s0 + $0x158] sm:$0xff]  ;;  %s8515_s17 = smov 52   ;;  %s12435_s18 = smov 32   ;;  %vm12391_vm11 = vcmask 97296  }
  0x27   :  { %8052 = vmatprep.mubr.msk.f32.mxu0 %vm12374_vm0, %v49_v20  ;;  %v77_v48 = vld [vmem:[%s12341_s0 + $0x160] sm:$0xff]  ;;  %v78_v49 = vld [vmem:[%s12341_s0 + $0x168] sm:$0xff]  ;;  %v79_v50 = vld [vmem:[%s12341_s0 + $0x170] sm:$0xff]  ;;  %s12421_s19 = smov 80   ;;  %vm12390_vm12 = vcmask 179296   ;;  %vm12381_vm13 = vcmask 324848  }
  0x28   :  { %v80_v51 = vld [vmem:[%s12341_s0 + $0x178] sm:$0xff]  ;;  %v81_v52 = vld [vmem:[%s12341_s0 + $0x180] sm:$0xff]  ;;  %v82_v53 = vld [vmem:[%s12341_s0 + $0x188] sm:$0xff]  ;;  %vm12375_vm14 = vcmask 406848   ;;  %vm12386_vm15 = vcmask 95248  }
  0x29   :  { %v83_v54 = vld [vmem:[%s12341_s0 + $0x190] sm:$0xff]  ;;  %v84_v55 = vld [vmem:[%s12341_s0 + $0x198] sm:$0xff]  ;;  %v85_v56 = vld [vmem:[%s12341_s0 + $0x1a0] sm:$0xff] }
  0x2a   :  { %8053 = vmatmul.mubr.msk.f32.gmra.mxu0 %vm12374_vm0, %v50_v21  ;;  %v86_v57 = vld [vmem:[%s12341_s0 + $0x1a8] sm:$0xff]  ;;  %v87_v58 = vld [vmem:[%s12341_s0 + $0x1b0] sm:$0xff]  ;;  %v88_v59 = vld [vmem:[%s12341_s0 + $0x1b8] sm:$0xff] }
  0x2b   :  { %8055 = vmatprep.mubr.msk.f32.mxu0 %vm12374_vm0, %v51_v22  ;;  %v89_v60 = vld [vmem:[%s12341_s0 + $0x1c0] sm:$0xff]  ;;  %v90_v61 = vld [vmem:[%s12341_s0 + $0x1c8] sm:$0xff]  ;;  %v91_v62 = vld [vmem:[%s12341_s0 + $0x1d0] sm:$0xff] }
  0x2c   :  { %v92_v63 = vld [vmem:[%s12341_s0 + $0x1d8] sm:$0xff]  ;;  %v93_v0 = vld [vmem:[%s12341_s0 + $0x1e0] sm:$0xff]  ;;  %v94_v1 = vld [vmem:[%s12341_s0 + $0x1e8] sm:$0xff] }
  0x2d   :  { %v95_v2 = vld [vmem:[%s12341_s0 + $0x1f0] sm:$0xff]  ;;  %v96_v3 = vld [vmem:[%s12341_s0 + $0x1f8] sm:$0xff]  ;;  %v97_v4 = vld [vmem:[%s12341_s0 + $0x200] sm:$0xff] }
  0x2e   :  { %8056 = vmatmul.mubr.msk.f32.gmra.mxu0 %vm12374_vm0, %v52_v23  ;;  %v98_v5 = vld [vmem:[%s12341_s0 + $0x208] sm:$0xff]  ;;  %v99_v6 = vld [vmem:[%s12341_s0 + $0x210] sm:$0xff]  ;;  %v100_v7 = vld [vmem:[%s12341_s0 + $0x218] sm:$0xff] }
  0x2f   :  { %8058 = vmatprep.mubr.msk.f32.mxu0 %vm12374_vm0, %v53_v24  ;;  %v101_v8 = vld [vmem:[%s12341_s0 + $0x220] sm:$0xff]  ;;  %v102_v9 = vld [vmem:[%s12341_s0 + $0x228] sm:$0xff]  ;;  %v103_v10 = vld [vmem:[%s12341_s0 + $0x230] sm:$0xff] }
  0x30   :  { %v104_v11 = vld [vmem:[%s12341_s0 + $0x238] sm:$0xff]  ;;  %v105_v12 = vld [vmem:[%s12341_s0 + $0x240] sm:$0xff]  ;;  %v106_v13 = vld [vmem:[%s12341_s0 + $0x248] sm:$0xff] }
  0x31   :  { %v107_v14 = vld [vmem:[%s12341_s0 + $0x250] sm:$0xff]  ;;  %v108_v15 = vld [vmem:[%s12341_s0 + $0x258] sm:$0xff]  ;;  %v109_v16 = vld [vmem:[%s12341_s0 + $0x260] sm:$0xff] }
  0x32   :  { %8059 = vmatmul.mubr.msk.f32.gmra.mxu0 %vm12374_vm0, %v54_v25  ;;  %v110_v17 = vld [vmem:[%s12341_s0 + $0x268] sm:$0xff]  ;;  %v111_v18 = vld [vmem:[%s12341_s0 + $0x270] sm:$0xff]  ;;  %v112_v19 = vld [vmem:[%s12341_s0 + $0x278] sm:$0xff] }
  0x33   :  { %8061 = vmatprep.mubr.msk.f32.mxu0 %vm12374_vm0, %v55_v26  ;;  %v113_v20 = vld [vmem:[%s12341_s0 + $0x280] sm:$0xff]  ;;  %v114_v21 = vld [vmem:[%s12341_s0 + $0x288] sm:$0xff]  ;;  %v115_v22 = vld [vmem:[%s12341_s0 + $0x290] sm:$0xff] }
  0x34   :  { %v116_v23 = vld [vmem:[%s12341_s0 + $0x298] sm:$0xff]  ;;  %v117_v24 = vld [vmem:[%s12341_s0 + $0x2a0] sm:$0xff]  ;;  %v118_v25 = vld [vmem:[%s12341_s0 + $0x2a8] sm:$0xff] }
  0x35   :  { %v119_v26 = vld [vmem:[%s12341_s0 + $0x2b0] sm:$0xff] }
  0x36   :  { %8062 = vmatmul.mubr.msk.f32.gmra.mxu0 %vm12374_vm0, %v56_v27  ;;  %v120_v27 = vld [vmem:[%s12341_s0 + $0x2b8] sm:$0xff] }
  0x37   :  { %8064 = vmatprep.mubr.msk.f32.mxu0 %vm12374_vm0, %v57_v28  ;;  %v121_v28 = vld [vmem:[%s12341_s0 + $0x2c0] sm:$0xff] }
  0x3a   :  { %8065 = vmatmul.mubr.msk.f32.gmra.mxu0 %vm12374_vm0, %v58_v29  ;;  %v122_v29 = vld [vmem:[%s12341_s0 + $0x2c8] sm:$0xff] }
  0x3b   :  { %8067 = vmatprep.mubr.msk.f32.mxu0 %vm12374_vm0, %v59_v30  ;;  %v123_v30 = vld [vmem:[%s12341_s0 + $0x2d0] sm:$0xff] }
  0x3e   :  { %8068 = vmatmul.mubr.msk.f32.gmra.mxu0 %vm12374_vm0, %v60_v31  ;;  %v124_v31 = vld [vmem:[%s12341_s0 + $0x2d8] sm:$0xff] }
  0x3f   :  { %8070 = vmatprep.mubr.msk.f32.mxu0 %vm12374_vm0, %v61_v32  ;;  %v125_v32 = vld [vmem:[%s12341_s0 + $0x2e0] sm:$0xff] }
  0x42   :  { %8071 = vmatmul.mubr.msk.f32.gmra.mxu0 %vm12374_vm0, %v62_v33  ;;  %v126_v33 = vld [vmem:[%s12341_s0 + $0x2e8] sm:$0xff] }
  0x43   :  { %8073 = vmatprep.mubr.msk.f32.mxu0 %vm12374_vm0, %v63_v34  ;;  %v127_v34 = vld [vmem:[%s12341_s0 + $0x2f0] sm:$0xff] }
  0x46   :  { %8074 = vmatmul.mubr.msk.f32.gmra.mxu0 %vm12374_vm0, %v64_v35  ;;  %v128_v35 = vld [vmem:[%s12341_s0 + $0x2f8] sm:$0xff] }
  0x47   :  { %8076 = vmatprep.mubr.msk.f32.mxu0 %vm12374_vm0, %v65_v36  ;;  %v129_v36 = vld [vmem:[%s12341_s0 + $0x300] sm:$0xff] }
  0x4a   :  { %8077 = vmatmul.mubr.msk.f32.gmra.mxu0 %vm12374_vm0, %v66_v37  ;;  %v130_v37 = vld [vmem:[%s12341_s0 + $0x308] sm:$0xff] }
  0x4b   :  { %8079 = vmatprep.mubr.msk.f32.mxu0 %vm12374_vm0, %v67_v38  ;;  %v131_v38 = vld [vmem:[%s12341_s0 + $0x310] sm:$0xff] }
  0x4e   :  { %8080 = vmatmul.mubr.msk.f32.gmra.mxu0 %vm12374_vm0, %v68_v39 }
  0x4f   :  { %8082 = vmatprep.mubr.msk.f32.mxu0 %vm12374_vm0, %v69_v40  ;;  %v132_v40 = vld [vmem:[%s12341_s0 + $0x318] sm:$0xff] }
  0x52   :  { %8083 = vmatmul.mubr.msk.f32.gmra.mxu0 %vm12374_vm0, %v70_v41 }
  0x53   :  { %8085 = vmatprep.mubr.msk.f32.mxu0 %vm12374_vm0, %v71_v42  ;;  %v133_v42 = vld [vmem:[%s12341_s0 + $0x320] sm:$0xff] }
  0x56   :  { %8086 = vmatmul.mubr.msk.f32.gmra.mxu0 %vm12374_vm0, %v72_v43 }
  0x57   :  { %8088 = vmatprep.mubr.msk.f32.mxu0 %vm12374_vm0, %v73_v44  ;;  %v134_v44 = vld [vmem:[%s12341_s0 + $0x328] sm:$0xff] }
  0x5a   :  { %8089 = vmatmul.mubr.msk.f32.gmra.mxu0 %vm12374_vm0, %v74_v45 }
  0x5b   :  { %8091 = vmatprep.mubr.msk.f32.mxu0 %vm12374_vm0, %v75_v46  ;;  %v135_v46 = vld [vmem:[%s12341_s0 + $0x330] sm:$0xff] }
  0x5e   :  { %8092 = vmatmul.mubr.msk.f32.gmra.mxu0 %vm12374_vm0, %v76_v47 }
  0x5f   :  { %8094 = vmatprep.mubr.msk.f32.mxu0 %vm12374_vm0, %v77_v48  ;;  %v136_v48 = vld [vmem:[%s12341_s0 + $0x338] sm:$0xff] }
  0x62   :  { %8095 = vmatmul.mubr.msk.f32.gmra.mxu0 %vm12374_vm0, %v78_v49 }
  0x63   :  { %8097 = vmatprep.mubr.msk.f32.mxu0 %vm12374_vm0, %v79_v50  ;;  %v137_v50 = vld [vmem:[%s12341_s0 + $0x340] sm:$0xff] }
  0x66   :  { %8098 = vmatmul.mubr.msk.f32.gmra.mxu0 %vm12374_vm0, %v80_v51 }
  0x67   :  { %8100 = vmatprep.mubr.msk.f32.mxu0 %vm12374_vm0, %v81_v52  ;;  %v138_v52 = vld [vmem:[%s12341_s0 + $0x348] sm:$0xff] }
  0x6a   :  { %8101 = vmatmul.mubr.msk.f32.gmra.mxu0 %vm12374_vm0, %v82_v53 }
  0x6b   :  { %8103 = vmatprep.mubr.msk.f32.mxu0 %vm12374_vm0, %v83_v54  ;;  %v139_v54 = vld [vmem:[%s12341_s0 + $0x350] sm:$0xff] }
  0x6e   :  { %8104 = vmatmul.mubr.msk.f32.gmra.mxu0 %vm12374_vm0, %v84_v55 }
  0x6f   :  { %8106 = vmatprep.mubr.msk.f32.mxu0 %vm12374_vm0, %v85_v56  ;;  %v140_v56 = vld [vmem:[%s12341_s0 + $0x358] sm:$0xff] }
  0x72   :  { %8107 = vmatmul.mubr.msk.f32.gmra.mxu0 %vm12374_vm0, %v86_v57 }
  0x73   :  { %8109 = vmatprep.mubr.msk.f32.mxu0 %vm12374_vm0, %v87_v58  ;;  %v141_v58 = vld [vmem:[%s12341_s0 + $0x360] sm:$0xff] }
  0x76   :  { %8110 = vmatmul.mubr.msk.f32.gmra.mxu0 %vm12374_vm0, %v88_v59 }
  0x77   :  { %8112 = vmatprep.mubr.msk.f32.mxu0 %vm12374_vm0, %v89_v60  ;;  %v142_v60 = vld [vmem:[%s12341_s0 + $0x368] sm:$0xff] }
  0x7a   :  { %8113 = vmatmul.mubr.msk.f32.gmra.mxu0 %vm12374_vm0, %v90_v61 }
  0x7b   :  { %8115 = vmatprep.mubr.msk.f32.mxu0 %vm12374_vm0, %v91_v62  ;;  %v143_v62 = vld [vmem:[%s12341_s0 + $0x370] sm:$0xff] }
  0x7e   :  { %8116 = vmatmul.mubr.msk.f32.gmra.mxu0 %vm12374_vm0, %v92_v63 }
  0x7f   :  { %8118 = vmatprep.mubr.msk.f32.mxu0 %vm12374_vm0, %v93_v0  ;;  %v144_v0 = vld [vmem:[%s12341_s0 + $0x378] sm:$0xff] }
  0x82   :  { %8119 = vmatmul.mubr.msk.f32.gmra.mxu0 %vm12374_vm0, %v94_v1 }
  0x83   :  { %8121 = vmatprep.mubr.msk.f32.mxu0 %vm12374_vm0, %v95_v2  ;;  %v145_v2 = vld [vmem:[%s12341_s0 + $0x380] sm:$0xff] }
  0x86   :  { %8122 = vmatmul.mubr.msk.f32.gmra.mxu0 %vm12374_vm0, %v96_v3 }
  0x87   :  { %8124 = vmatprep.mubr.msk.f32.mxu0 %vm12374_vm0, %v97_v4  ;;  %v146_v4 = vld [vmem:[%s12341_s0 + $0x388] sm:$0xff] }
  0x8a   :  { %8125 = vmatmul.mubr.msk.f32.gmra.mxu0 %vm12374_vm0, %v98_v5 }
  0x8b   :  { %8127 = vmatprep.mubr.msk.f32.mxu0 %vm12374_vm0, %v99_v6  ;;  %v147_v6 = vld [vmem:[%s12341_s0 + $0x390] sm:$0xff] }
  0x8e   :  { %8128 = vmatmul.mubr.msk.f32.gmra.mxu0 %vm12374_vm0, %v100_v7 }
  0x8f   :  { %8130 = vmatprep.mubr.msk.f32.mxu0 %vm12374_vm0, %v101_v8  ;;  %v148_v8 = vld [vmem:[%s12341_s0 + $0x398] sm:$0xff] }
  0x92   :  { %8131 = vmatmul.mubr.msk.f32.gmra.mxu0 %vm12374_vm0, %v102_v9 }
  0x93   :  { %8133 = vmatprep.mubr.msk.f32.mxu0 %vm12374_vm0, %v103_v10  ;;  %v149_v10 = vld [vmem:[%s12341_s0 + $0x3a0] sm:$0xff] }
  0x96   :  { %8134 = vmatmul.mubr.msk.f32.gmra.mxu0 %vm12374_vm0, %v104_v11 }
  0x97   :  { %8136 = vmatprep.mubr.msk.f32.mxu0 %vm12374_vm0, %v105_v12  ;;  %v150_v12 = vld [vmem:[%s12341_s0 + $0x3a8] sm:$0xff] }
  0x9a   :  { %8137 = vmatmul.mubr.msk.f32.gmra.mxu0 %vm12374_vm0, %v106_v13 }
  0x9b   :  { %8139 = vmatprep.mubr.msk.f32.mxu0 %vm12374_vm0, %v107_v14  ;;  %v151_v14 = vld [vmem:[%s12341_s0 + $0x3b0] sm:$0xff] }
  0x9e   :  { %8140 = vmatmul.mubr.msk.f32.gmra.mxu0 %vm12374_vm0, %v108_v15 }
  0x9f   :  { %8142 = vmatprep.mubr.msk.f32.mxu0 %vm12374_vm0, %v109_v16  ;;  %v152_v16 = vld [vmem:[%s12341_s0 + $0x3b8] sm:$0xff] }
  0xa2   :  { %8143 = vmatmul.mubr.msk.f32.gmra.mxu0 %vm12374_vm0, %v110_v17 }
  0xa3   :  { %8145 = vmatprep.mubr.msk.f32.mxu0 %vm12374_vm0, %v111_v18  ;;  %v153_v18 = vld [vmem:[%s12341_s0 + $0x3c0] sm:$0xff] }
  0xa6   :  { %8146 = vmatmul.mubr.msk.f32.gmra.mxu0 %vm12374_vm0, %v112_v19 }
  0xa7   :  { %8148 = vmatprep.mubr.msk.f32.mxu0 %vm12374_vm0, %v113_v20  ;;  %v154_v20 = vld [vmem:[%s12341_s0 + $0x3c8] sm:$0xff] }
  0xaa   :  { %8149 = vmatmul.mubr.msk.f32.gmra.mxu0 %vm12374_vm0, %v114_v21 }
  0xab   :  { %8151 = vmatprep.mubr.msk.f32.mxu0 %vm12374_vm0, %v115_v22  ;;  %v155_v22 = vld [vmem:[%s12341_s0 + $0x3d0] sm:$0xff] }
  0xae   :  { %8152 = vmatmul.mubr.msk.f32.gmra.mxu0 %vm12374_vm0, %v116_v23 }
  0xaf   :  { %8154 = vmatprep.mubr.msk.f32.mxu0 %vm12374_vm0, %v117_v24  ;;  %v156_v24 = vld [vmem:[%s12341_s0 + $0x3d8] sm:$0xff] }
  0xb2   :  { %8155 = vmatmul.mubr.msk.f32.gmra.mxu0 %vm12374_vm0, %v118_v25 }
  0xb3   :  { %8157 = vmatprep.mubr.msk.f32.mxu0 %vm12374_vm0, %v119_v26  ;;  %v157_v26 = vld [vmem:[%s12341_s0 + $0x3e0] sm:$0xff] }
  0xb6   :  { %8158 = vmatmul.mubr.msk.f32.gmra.mxu0 %vm12374_vm0, %v120_v27 }
  0xb7   :  { %8160 = vmatprep.mubr.msk.f32.mxu0 %vm12374_vm0, %v121_v28  ;;  %v158_v28 = vld [vmem:[%s12341_s0 + $0x3e8] sm:$0xff] }
  0xba   :  { %8161 = vmatmul.mubr.msk.f32.gmra.mxu0 %vm12374_vm0, %v122_v29 }
  0xbb   :  { %8163 = vmatprep.mubr.msk.f32.mxu0 %vm12374_vm0, %v123_v30  ;;  %v159_v30 = vld [vmem:[%s12341_s0 + $0x3f0] sm:$0xff] }
  0xbe   :  { %8164 = vmatmul.mubr.msk.f32.gmra.mxu0 %vm12374_vm0, %v124_v31 }
  0xbf   :  { %8166 = vmatprep.mubr.msk.f32.mxu0 %vm12374_vm0, %v125_v32  ;;  %v160_v32 = vld [vmem:[%s12341_s0 + $0x3f8] sm:$0xff] }
  0xc2   :  { %8167 = vmatmul.mubr.msk.f32.gmra.mxu0 %vm12374_vm0, %v126_v33 }
  0xc3   :  { %8169 = vmatprep.mubr.msk.f32.mxu0 %vm12374_vm0, %v127_v34  ;;  %v161_v34 = vld [vmem:[%s12341_s0 + $0x400] sm:$0xff] }
  0xc6   :  { %8170 = vmatmul.mubr.msk.f32.gmra.mxu0 %vm12374_vm0, %v128_v35 }
  0xc7   :  { %8172 = vmatprep.mubr.msk.f32.mxu0 %vm12374_vm0, %v129_v36  ;;  %v162_v36 = vld [vmem:[%s12341_s0 + $0x408] sm:$0xff] }
  0xca   :  { %v8977_v39 = vpop.f32.mrf.mxu0  ;;  %8173 = vmatmul.mubr.msk.f32.gmra.mxu0 %vm12374_vm0, %v130_v37 }
  0xcb   :  { %8175 = vmatprep.mubr.msk.f32.mxu0 %vm12374_vm0, %v131_v38  ;;  %v163_v38 = vld [vmem:[%s12341_s0 + $0x410] sm:$0xff] }
  0xcc   :  { %v8984_v41 = vpop.f32.mrf.mxu0 }
  0xce   :  { %v8989_v43 = vpop.f32.mrf.mxu0  ;;  %8176 = vmatmul.mubr.msk.f32.gmra.mxu0 %vm12374_vm0, %v132_v40 }
  0xcf   :  { %8178 = vmatprep.mubr.msk.f32.mxu0 %vm12374_vm0, %v133_v42  ;;  %v164_v42 = vld [vmem:[%s12341_s0 + $0x418] sm:$0xff] }
  0xd0   :  { %v8996_v45 = vpop.f32.mrf.mxu0 }
  0xd2   :  { %v9001_v47 = vpop.f32.mrf.mxu0  ;;  %8179 = vmatmul.mubr.msk.f32.gmra.mxu0 %vm12374_vm0, %v134_v44 }
  0xd3   :  { %8181 = vmatprep.mubr.msk.f32.mxu0 %vm12374_vm0, %v135_v46  ;;  %v165_v46 = vld [vmem:[%s12341_s0 + $0x420] sm:$0xff] }
  0xd4   :  { %v9008_v49 = vpop.f32.mrf.mxu0 }
  0xd6   :  { %v9013_v51 = vpop.f32.mrf.mxu0  ;;  %8182 = vmatmul.mubr.msk.f32.gmra.mxu0 %vm12374_vm0, %v136_v48 }
  0xd7   :  { %8184 = vmatprep.mubr.msk.f32.mxu0 %vm12374_vm0, %v137_v50  ;;  %v166_v50 = vld [vmem:[%s12341_s0 + $0x428] sm:$0xff] }
  0xd8   :  { %v9020_v53 = vpop.f32.mrf.mxu0 }
  0xda   :  { %v9025_v55 = vpop.f32.mrf.mxu0  ;;  %8185 = vmatmul.mubr.msk.f32.gmra.mxu0 %vm12374_vm0, %v138_v52 }
  0xdb   :  { %8187 = vmatprep.mubr.msk.f32.mxu0 %vm12374_vm0, %v139_v54  ;;  %v167_v54 = vld [vmem:[%s12341_s0 + $0x430] sm:$0xff] }
  0xdc   :  { %v9032_v57 = vpop.f32.mrf.mxu0 }
  0xde   :  { %v9037_v59 = vpop.f32.mrf.mxu0  ;;  %8188 = vmatmul.mubr.msk.f32.gmra.mxu0 %vm12374_vm0, %v140_v56 }
  0xdf   :  { %8190 = vmatprep.mubr.msk.f32.mxu0 %vm12374_vm0, %v141_v58  ;;  %v168_v58 = vld [vmem:[%s12341_s0 + $0x438] sm:$0xff] }
  0xe0   :  { %v9044_v61 = vpop.f32.mrf.mxu0 }
  0xe2   :  { %v9049_v63 = vpop.f32.mrf.mxu0  ;;  %8191 = vmatmul.mubr.msk.f32.gmra.mxu0 %vm12374_vm0, %v142_v60 }
  0xe3   :  { %8193 = vmatprep.mubr.msk.f32.mxu0 %vm12374_vm0, %v143_v62  ;;  %v169_v62 = vld [vmem:[%s12341_s0 + $0x440] sm:$0xff] }
  0xe4   :  { %v9056_v1 = vpop.f32.mrf.mxu0 }
  0xe6   :  { %v9061_v3 = vpop.f32.mrf.mxu0  ;;  %8194 = vmatmul.mubr.msk.f32.gmra.mxu0 %vm12374_vm0, %v144_v0 }
  0xe7   :  { %8196 = vmatprep.mubr.msk.f32.mxu0 %vm12374_vm0, %v145_v2  ;;  %v170_v2 = vld [vmem:[%s12341_s0 + $0x448] sm:$0xff] }
  0xe8   :  { %v9068_v5 = vpop.f32.mrf.mxu0 }
  0xea   :  { %v9073_v7 = vpop.f32.mrf.mxu0  ;;  %8197 = vmatmul.mubr.msk.f32.gmra.mxu0 %vm12374_vm0, %v146_v4 }
  0xeb   :  { %12440 = vst [vmem:[#allocation9_spill] sm:$0xff] %v9073_v7  ;;  %8199 = vmatprep.mubr.msk.f32.mxu0 %vm12374_vm0, %v147_v6  ;;  %v171_v6 = vld [vmem:[%s12341_s0 + $0x450] sm:$0xff] }
  0xec   :  { %v9080_v9 = vpop.f32.mrf.mxu0 }
  0xed   :  { %12441 = vst [vmem:[#allocation10_spill] sm:$0xff] %v9080_v9 }
  0xee   :  { %v9085_v11 = vpop.f32.mrf.mxu0  ;;  %8200 = vmatmul.mubr.msk.f32.gmra.mxu0 %vm12374_vm0, %v148_v8 }
  0xef   :  { %12442 = vst [vmem:[#allocation11_spill] sm:$0xff] %v9085_v11  ;;  %8202 = vmatprep.mubr.msk.f32.mxu0 %vm12374_vm0, %v149_v10  ;;  %v172_v10 = vld [vmem:[%s12341_s0 + $0x458] sm:$0xff] }
  0xf0   :  { %v9092_v13 = vpop.f32.mrf.mxu0 }
  0xf1   :  { %12443 = vst [vmem:[#allocation12_spill] sm:$0xff] %v9092_v13 }
  0xf2   :  { %v9097_v15 = vpop.f32.mrf.mxu0  ;;  %8203 = vmatmul.mubr.msk.f32.gmra.mxu0 %vm12374_vm0, %v150_v12 }
  0xf3   :  { %12444 = vst [vmem:[#allocation13_spill] sm:$0xff] %v9097_v15  ;;  %8205 = vmatprep.mubr.msk.f32.mxu0 %vm12374_vm0, %v151_v14  ;;  %v173_v14 = vld [vmem:[%s12341_s0 + $0x460] sm:$0xff] }
  0xf4   :  { %v9104_v17 = vpop.f32.mrf.mxu0 }
  0xf5   :  { %12445 = vst [vmem:[#allocation14_spill] sm:$0xff] %v9104_v17 }
  0xf6   :  { %v9109_v19 = vpop.f32.mrf.mxu0  ;;  %8206 = vmatmul.mubr.msk.f32.gmra.mxu0 %vm12374_vm0, %v152_v16 }
  0xf7   :  { %12446 = vst [vmem:[#allocation15_spill] sm:$0xff] %v9109_v19  ;;  %8208 = vmatprep.mubr.msk.f32.mxu0 %vm12374_vm0, %v153_v18  ;;  %v174_v18 = vld [vmem:[%s12341_s0 + $0x468] sm:$0xff] }
  0xf8   :  { %v9116_v21 = vpop.f32.mrf.mxu0 }
  0xf9   :  { %12447 = vst [vmem:[#allocation16_spill] sm:$0xff] %v9116_v21 }
  0xfa   :  { %v9121_v23 = vpop.f32.mrf.mxu0  ;;  %8209 = vmatmul.mubr.msk.f32.gmra.mxu0 %vm12374_vm0, %v154_v20 }
  0xfb   :  { %12448 = vst [vmem:[#allocation17_spill] sm:$0xff] %v9121_v23  ;;  %8211 = vmatprep.mubr.msk.f32.mxu0 %vm12374_vm0, %v155_v22  ;;  %v175_v22 = vld [vmem:[%s12341_s0 + $0x470] sm:$0xff] }
  0xfc   :  { %v9128_v25 = vpop.f32.mrf.mxu0 }
  0xfd   :  { %12449 = vst [vmem:[#allocation18_spill] sm:$0xff] %v9128_v25 }
  0xfe   :  { %v9133_v27 = vpop.f32.mrf.mxu0  ;;  %8212 = vmatmul.mubr.msk.f32.gmra.mxu0 %vm12374_vm0, %v156_v24 }
  0xff   :  { %12450 = vst [vmem:[#allocation19_spill] sm:$0xff] %v9133_v27  ;;  %8214 = vmatprep.mubr.msk.f32.mxu0 %vm12374_vm0, %v157_v26  ;;  %v176_v26 = vld [vmem:[%s12341_s0 + $0x478] sm:$0xff]  ;;  %s12425_s0 = smov 60  }
 0x100   :  { %v9140_v29 = vpop.f32.mrf.mxu0 }
 0x101   :  { %12451 = vst [vmem:[#allocation20_spill] sm:$0xff] %v9140_v29 }
 0x102   :  { %v9145_v31 = vpop.f32.mrf.mxu0  ;;  %8215 = vmatmul.mubr.msk.f32.gmra.mxu0 %vm12374_vm0, %v158_v28 }
 0x103   :  { %12452 = vst [vmem:[#allocation21_spill] sm:$0xff] %v9145_v31  ;;  %8217 = vmatprep.mubr.msk.f32.mxu0 %vm12374_vm0, %v159_v30 }
 0x104   :  { %v9152_v33 = vpop.f32.mrf.mxu0 }
 0x105   :  { %12453 = vst [vmem:[#allocation22_spill] sm:$0xff] %v9152_v33 }
 0x106   :  { %v9157_v35 = vpop.f32.mrf.mxu0  ;;  %8218 = vmatmul.mubr.msk.f32.gmra.mxu0 %vm12374_vm0, %v160_v32 }
 0x107   :  { %12454 = vst [vmem:[#allocation23_spill] sm:$0xff] %v9157_v35  ;;  %8220 = vmatprep.mubr.msk.f32.mxu0 %vm12374_vm0, %v161_v34 }
 0x108   :  { %v9164_v37 = vpop.f32.mrf.mxu0 }
 0x109   :  { %12455 = vst [vmem:[#allocation24_spill] sm:$0xff] %v9164_v37 }
 0x10a   :  { %v9169_v40 = vpop.f32.mrf.mxu0  ;;  %8221 = vmatmul.mubr.msk.f32.gmra.mxu0 %vm12374_vm0, %v162_v36 }
 0x10b   :  { %12456 = vst [vmem:[#allocation25_spill] sm:$0xff] %v9169_v40  ;;  %8223 = vmatprep.mubr.msk.f32.mxu0 %vm12374_vm0, %v163_v38 }
 0x10c   :  { %v9176_v44 = vpop.f32.mrf.mxu0 }
 0x10d   :  { %12457 = vst [vmem:[#allocation26_spill] sm:$0xff] %v9176_v44 }
 0x10e   :  { %v9181_v48 = vpop.f32.mrf.mxu0  ;;  %8224 = vmatmul.mubr.msk.f32.gmra.mxu0 %vm12374_vm0, %v164_v42 }
 0x10f   :  { %12458 = vst [vmem:[#allocation27_spill] sm:$0xff] %v9181_v48  ;;  %8226 = vmatprep.mubr.msk.f32.mxu0 %vm12374_vm0, %v165_v46 }
 0x110   :  { %v9188_v52 = vpop.f32.mrf.mxu0 }
 0x111   :  { %12459 = vst [vmem:[#allocation28_spill] sm:$0xff] %v9188_v52 }
 0x112   :  { %v9193_v56 = vpop.f32.mrf.mxu0  ;;  %8227 = vmatmul.mubr.msk.f32.gmra.mxu0 %vm12374_vm0, %v166_v50 }
 0x113   :  { %8229 = vmatprep.mubr.msk.f32.mxu0 %vm12374_vm0, %v167_v54 }
 0x114   :  { %v9200_v60 = vpop.f32.mrf.mxu0 }
 0x116   :  { %v9205_v0 = vpop.f32.mrf.mxu0  ;;  %8230 = vmatmul.mubr.msk.f32.gmra.mxu0 %vm12374_vm0, %v168_v58 }
 0x117   :  { %8232 = vmatprep.mubr.msk.f32.mxu0 %vm12374_vm0, %v169_v62  ;;  %v8494_v62 = vmov 0.0  }
 0x118   :  { %v9212_v4 = vpop.f32.mrf.mxu0  ;;  %1917 = vst [vmem:[#allocation4 + $0x30] sm:$0xff] %v8494_v62  ;;  %1911 = vst [vmem:[#allocation4] sm:$0xff] %v8494_v62 }
 0x119   :  { %1912 = vst [vmem:[#allocation4 + $0x8] sm:$0xff] %v8494_v62  ;;  %1913 = vst [vmem:[#allocation4 + $0x10] sm:$0xff] %v8494_v62 }
 0x11a   :  { %v9217_v8 = vpop.f32.mrf.mxu0  ;;  %8233 = vmatmul.mubr.msk.f32.gmra.mxu0 %vm12374_vm0, %v170_v2  ;;  %1914 = vst [vmem:[#allocation4 + $0x18] sm:$0xff] %v8494_v62  ;;  %1915 = vst [vmem:[#allocation4 + $0x20] sm:$0xff] %v8494_v62 }
 0x11b   :  { %8235 = vmatprep.mubr.msk.f32.mxu0 %vm12374_vm0, %v171_v6  ;;  %1916 = vst [vmem:[#allocation4 + $0x28] sm:$0xff] %v8494_v62  ;;  %1918 = vst [vmem:[#allocation4 + $0x38] sm:$0xff] %v8494_v62 }
 0x11c   :  { %v9224_v12 = vpop.f32.mrf.mxu0  ;;  %1919 = vst [vmem:[#allocation4 + $0x40] sm:$0xff] %v8494_v62  ;;  %1920 = vst [vmem:[#allocation4 + $0x48] sm:$0xff] %v8494_v62 }
 0x11d   :  { %1921 = vst [vmem:[#allocation4 + $0x50] sm:$0xff] %v8494_v62  ;;  %1922 = vst [vmem:[#allocation4 + $0x58] sm:$0xff] %v8494_v62 }
 0x11e   :  { %v9229_v16 = vpop.f32.mrf.mxu0  ;;  %8236 = vmatmul.mubr.msk.f32.gmra.mxu0 %vm12374_vm0, %v172_v10  ;;  %1923 = vst [vmem:[#allocation4 + $0x60] sm:$0xff] %v8494_v62  ;;  %1924 = vst [vmem:[#allocation4 + $0x68] sm:$0xff] %v8494_v62 }
 0x11f   :  { %8238 = vmatprep.mubr.msk.f32.mxu0 %vm12374_vm0, %v173_v14  ;;  %1925 = vst [vmem:[#allocation4 + $0x70] sm:$0xff] %v8494_v62  ;;  %1926 = vst [vmem:[#allocation4 + $0x78] sm:$0xff] %v8494_v62 }
 0x120   :  { %v9236_v20 = vpop.f32.mrf.mxu0  ;;  %1927 = vst [vmem:[#allocation4 + $0x80] sm:$0xff] %v8494_v62  ;;  %1928 = vst [vmem:[#allocation4 + $0x88] sm:$0xff] %v8494_v62 }
 0x121   :  { %1929 = vst [vmem:[#allocation4 + $0x90] sm:$0xff] %v8494_v62  ;;  %1930 = vst [vmem:[#allocation4 + $0x98] sm:$0xff] %v8494_v62 }
 0x122   :  { %v9241_v24 = vpop.f32.mrf.mxu0  ;;  %8239 = vmatmul.mubr.msk.f32.gmra.mxu0 %vm12374_vm0, %v174_v18  ;;  %1931 = vst [vmem:[#allocation4 + $0xa0] sm:$0xff] %v8494_v62  ;;  %1932 = vst [vmem:[#allocation4 + $0xa8] sm:$0xff] %v8494_v62 }
 0x123   :  { %8241 = vmatprep.mubr.msk.f32.mxu0 %vm12374_vm0, %v175_v22  ;;  %1933 = vst [vmem:[#allocation4 + $0xb0] sm:$0xff] %v8494_v62  ;;  %1934 = vst [vmem:[#allocation4 + $0xb8] sm:$0xff] %v8494_v62 }
 0x124   :  { %v9248_v28 = vpop.f32.mrf.mxu0  ;;  %1935 = vst [vmem:[#allocation4 + $0xc0] sm:$0xff] %v8494_v62  ;;  %1936 = vst [vmem:[#allocation4 + $0xc8] sm:$0xff] %v8494_v62 }
 0x125   :  { %1937 = vst [vmem:[#allocation4 + $0xd0] sm:$0xff] %v8494_v62  ;;  %1938 = vst [vmem:[#allocation4 + $0xd8] sm:$0xff] %v8494_v62 }
 0x126   :  { %v9250_v30 = vpop.f32.mrf.mxu0  ;;  %8242 = vmatmul.mubr.msk.f32.gmra.mxu0 %vm12374_vm0, %v176_v26  ;;  %1939 = vst [vmem:[#allocation4 + $0xe0] sm:$0xff] %v8494_v62  ;;  %1940 = vst [vmem:[#allocation4 + $0xe8] sm:$0xff] %v8494_v62  ;;  %vm12384_vm0 = vcmask 488848  }
 0x127   :  { %1941 = vst [vmem:[#allocation4 + $0xf0] sm:$0xff] %v8494_v62  ;;  %1942 = vst [vmem:[#allocation4 + $0xf8] sm:$0xff] %v8494_v62 }
 0x128   :  { %v9253_v32 = vpop.f32.mrf.mxu0  ;;  %1943 = vst [vmem:[#allocation4 + $0x100] sm:$0xff] %v8494_v62  ;;  %1944 = vst [vmem:[#allocation4 + $0x108] sm:$0xff] %v8494_v62 }
 0x129   :  { %1945 = vst [vmem:[#allocation4 + $0x110] sm:$0xff] %v8494_v62  ;;  %1946 = vst [vmem:[#allocation4 + $0x118] sm:$0xff] %v8494_v62 }
 0x12a   :  { %v9255_v34 = vpop.f32.mrf.mxu0  ;;  %1947 = vst [vmem:[#allocation4 + $0x120] sm:$0xff] %v8494_v62  ;;  %1948 = vst [vmem:[#allocation4 + $0x128] sm:$0xff] %v8494_v62 }
 0x12b   :  { %1949 = vst [vmem:[#allocation4 + $0x130] sm:$0xff] %v8494_v62  ;;  %1950 = vst [vmem:[#allocation4 + $0x138] sm:$0xff] %v8494_v62 }
 0x12c   :  { %v9257_v36 = vpop.f32.mrf.mxu0  ;;  %1951 = vst [vmem:[#allocation4 + $0x140] sm:$0xff] %v8494_v62  ;;  %1952 = vst [vmem:[#allocation4 + $0x148] sm:$0xff] %v8494_v62 }
 0x12d   :  { %1953 = vst [vmem:[#allocation4 + $0x150] sm:$0xff] %v8494_v62  ;;  %1954 = vst [vmem:[#allocation4 + $0x158] sm:$0xff] %v8494_v62 }
 0x12e   :  { %v9259_v38 = vpop.f32.mrf.mxu0  ;;  %1955 = vst [vmem:[#allocation4 + $0x160] sm:$0xff] %v8494_v62  ;;  %1956 = vst [vmem:[#allocation4 + $0x168] sm:$0xff] %v8494_v62 }
 0x12f   :  { %1957 = vst [vmem:[#allocation4 + $0x170] sm:$0xff] %v8494_v62  ;;  %1958 = vst [vmem:[#allocation4 + $0x178] sm:$0xff] %v8494_v62 }
 0x130   :  { %v9261_v42 = vpop.f32.mrf.mxu0 }
 0x132   :  { %v9263_v46 = vpop.f32.mrf.mxu0 }
 0x134   :  { %v9265_v50 = vpop.f32.mrf.mxu0 }
 0x135   :  { %12460 = vst [vmem:[#allocation29_spill] sm:$0xff] %v9265_v50 }
 0x136   :  { %v9267_v54 = vpop.f32.mrf.mxu0 }
 0x137   :  { %12461 = vst [vmem:[#allocation30_spill] sm:$0xff] %v9267_v54 }
 0x138   :  { %v9269_v58 = vpop.f32.mrf.mxu0 }
 0x139   :  { %12462 = vst [vmem:[#allocation31_spill] sm:$0xff] %v9269_v58 }
 0x13a   :  { %v9271_v2 = vpop.f32.mrf.mxu0 }
 0x13b   :  { %12463 = vst [vmem:[#allocation32_spill] sm:$0xff] %v9271_v2 }
 0x13c   :  { %v9273_v6 = vpop.f32.mrf.mxu0 }
 0x13d   :  { %12464 = vst [vmem:[#allocation33_spill] sm:$0xff] %v9273_v6 }
 0x13e   :  { %v9275_v10 = vpop.f32.mrf.mxu0 }
 0x13f   :  { %12465 = vst [vmem:[#allocation34_spill] sm:$0xff] %v9275_v10 }
 0x140   :  { %v9277_v14 = vpop.f32.mrf.mxu0 }
 0x141   :  { %12466 = vst [vmem:[#allocation35_spill] sm:$0xff] %v9277_v14 }
 0x142   :  { %v9279_v18 = vpop.f32.mrf.mxu0 }
 0x143   :  { %12467 = vst [vmem:[#allocation36_spill] sm:$0xff] %v9279_v18 }
 0x144   :  { %v9281_v22 = vpop.f32.mrf.mxu0 }
 0x145   :  { %12468 = vst [vmem:[#allocation37_spill] sm:$0xff] %v9281_v22 }
 0x146   :  { %v9283_v26 = vpop.f32.mrf.mxu0 }
 0x147   :  { %12469 = vst [vmem:[#allocation38_spill] sm:$0xff] %v9283_v26 }
 0x148   :  { %v9285_v52 = vpop.f32.mrf.mxu0 }
 0x149   :  { %12470 = vst [vmem:[#allocation39_spill] sm:$0xff] %v9285_v52 }
 0x14a   :  { %v9287_v48 = vpop.f32.mrf.mxu0 }
 0x14b   :  { %12471 = vst [vmem:[#allocation40_spill] sm:$0xff] %v9287_v48 }
 0x14c   :  { %v9289_v44 = vpop.f32.mrf.mxu0 }
 0x14d   :  { %12472 = vst [vmem:[#allocation41_spill] sm:$0xff] %v9289_v44 }
 0x14e   :  { %v9291_v62 = vpop.f32.mrf.mxu0 }
 0x14f   :  { %12473 = vst [vmem:[#allocation42_spill] sm:$0xff] %v9291_v62 }
 0x150   :  { %v9293_v40 = vpop.f32.mrf.mxu0 }
 0x151   :  { %12474 = vst [vmem:[#allocation43_spill] sm:$0xff] %v9293_v40 }
 0x152   :  { %v9295_v37 = vpop.f32.mrf.mxu0 }
 0x153   :  { %12475 = vst [vmem:[#allocation44_spill] sm:$0xff] %v9295_v37 }
 0x154   :  { %v9297_v35 = vpop.f32.mrf.mxu0 }
 0x155   :  { %12476 = vst [vmem:[#allocation45_spill] sm:$0xff] %v9297_v35 }
 0x156   :  { %v9299_v33 = vpop.f32.mrf.mxu0 }
 0x157   :  { %12477 = vst [vmem:[#allocation46_spill] sm:$0xff] %v9299_v33 }
 0x158   :  { %v9301_v31 = vpop.f32.mrf.mxu0 }
 0x159   :  { %12478 = vst [vmem:[#allocation47_spill] sm:$0xff] %v9301_v31 }
 0x15a   :  { %v8138_v29 = vpop.f32.mrf.mxu0 }
 0x15c   :  { %v1040_v27 = vpop.f32.mrf.mxu0 }
 0x15e   :  { %v8141_v26 = vpop.f32.mrf.mxu0 }
 0x160   :  { %v1050_v52 = vpop.f32.mrf.mxu0 }
 0x162   :  { %v9303_v25 = vpop.f32.mrf.mxu0 }
 0x164   :  { %v9305_v48 = vpop.f32.mrf.mxu0 }
 0x166   :  { %v9307_v44 = vpop.f32.mrf.mxu0 }
 0x168   :  { %v9309_v62 = vpop.f32.mrf.mxu0 }
 0x16a   :  { %v9311_v40 = vpop.f32.mrf.mxu0 }
 0x16c   :  { %v9313_v37 = vpop.f32.mrf.mxu0 }
 0x16e   :  { %v9315_v35 = vpop.f32.mrf.mxu0 }
 0x170   :  { %v9317_v33 = vpop.f32.mrf.mxu0 }
 0x172   :  { %v9319_v31 = vpop.f32.mrf.mxu0 }
 0x174   :  { %v9321_v22 = vpop.f32.mrf.mxu0 }
 0x176   :  { %v9323_v23 = vpop.f32.mrf.mxu0 }
 0x178   :  { %v9325_v18 = vpop.f32.mrf.mxu0 }
 0x17a   :  { %v9327_v21 = vpop.f32.mrf.mxu0 }
 0x17b   :  { %12479 = vst [vmem:[#allocation48_spill] sm:$0xff] %v9327_v21 }
 0x17c   :  { %v9329_v14 = vpop.f32.mrf.mxu0 }
 0x17d   :  { %12480 = vst [vmem:[#allocation49_spill] sm:$0xff] %v9329_v14 }
 0x17e   :  { %v9331_v19 = vpop.f32.mrf.mxu0 }
 0x17f   :  { %12481 = vst [vmem:[#allocation50_spill] sm:$0xff] %v9331_v19 }
 0x180   :  { %v9333_v10 = vpop.f32.mrf.mxu0 }
 0x181   :  { %12482 = vst [vmem:[#allocation51_spill] sm:$0xff] %v9333_v10 }
 0x182   :  { %v9335_v17 = vpop.f32.mrf.mxu0 }
 0x183   :  { %12483 = vst [vmem:[#allocation52_spill] sm:$0xff] %v9335_v17 }
 0x184   :  { %v9337_v6 = vpop.f32.mrf.mxu0 }
 0x185   :  { %12484 = vst [vmem:[#allocation53_spill] sm:$0xff] %v9337_v6 }
 0x186   :  { %v9339_v15 = vpop.f32.mrf.mxu0 }
 0x187   :  { %12485 = vst [vmem:[#allocation54_spill] sm:$0xff] %v9339_v15 }
 0x188   :  { %v9341_v2 = vpop.f32.mrf.mxu0 }
 0x189   :  { %12486 = vst [vmem:[#allocation55_spill] sm:$0xff] %v9341_v2 }
 0x18a   :  { %v9343_v13 = vpop.f32.mrf.mxu0 }
 0x18b   :  { %12487 = vst [vmem:[#allocation56_spill] sm:$0xff] %v9343_v13 }
 0x18c   :  { %v9345_v58 = vpop.f32.mrf.mxu0 }
 0x18d   :  { %12488 = vst [vmem:[#allocation57_spill] sm:$0xff] %v9345_v58 }
 0x18e   :  { %v9347_v11 = vpop.f32.mrf.mxu0 }
 0x18f   :  { %12489 = vst [vmem:[#allocation58_spill] sm:$0xff] %v9347_v11 }
 0x190   :  { %v9349_v54 = vpop.f32.mrf.mxu0 }
 0x191   :  { %12490 = vst [vmem:[#allocation59_spill] sm:$0xff] %v9349_v54  ;;  %v1616_v54 = vmax.f32 %v8977_v39, %v9193_v56 }
 0x192   :  { %v9351_v14 = vpop.f32.mrf.mxu0 }
 0x193   :  { %12491 = vst [vmem:[#allocation60_spill] sm:$0xff] %v9351_v14 }
 0x194   :  { %v9353_v19 = vpop.f32.mrf.mxu0 }
 0x195   :  { %12492 = vst [vmem:[#allocation61_spill] sm:$0xff] %v9353_v19  ;;  %v9372_v19 = vld [vmem:[%s12343_s2] ss:$0 sm:$0xff]  ;;  %s12371_s2 = smov 12  }
 0x196   :  { %v9355_v10 = vpop.f32.mrf.mxu0 }
 0x197   :  { %12493 = vst [vmem:[#allocation62_spill] sm:$0xff] %v9355_v10 }
 0x198   :  { %v9357_v17 = vpop.f32.mrf.mxu0 }
 0x199   :  { %12494 = vst [vmem:[#allocation63_spill] sm:$0xff] %v9357_v17 }
 0x19a   :  { %v9359_v6 = vpop.f32.mrf.mxu0 }
 0x19b   :  { %12495 = vst [vmem:[#allocation64_spill] sm:$0xff] %v9359_v6  ;;  %v1615_v6 = vmax.f32 %v8984_v41, %v9200_v60  ;;  %v1620_v41 = vmax.f32 %v9001_v47, %v9217_v8  ;;  %v1621_v8 = vmax.f32 %v9020_v53, %v9236_v20 }
 0x19c   :  { %v9361_v15 = vpop.f32.mrf.mxu0 }
 0x19d   :  { %12496 = vst [vmem:[#allocation65_spill] sm:$0xff] %v9361_v15 }
 0x19e   :  { %v9363_v2 = vpop.f32.mrf.mxu0 }
 0x19f   :  { %12497 = vst [vmem:[#allocation66_spill] sm:$0xff] %v9363_v2 }
 0x1a0   :  { %v9365_v13 = vpop.f32.mrf.mxu0 }
 0x1a1   :  { %12498 = vst [vmem:[#allocation67_spill] sm:$0xff] %v9365_v13  ;;  %v1618_v13 = vmax.f32 %v8989_v43, %v9205_v0 }
 0x1a2   :  { %v8192_v58 = vpop.f32.mrf.mxu0 }
 0x1a3   :  { %v1724_v11 = vmax.f32 %v8138_v29, %v8192_v58  ;;  %v1617_v29 = vmax.f32 %v8996_v45, %v9212_v4  ;;  %v1619_v45 = vmax.f32 %v9008_v49, %v9224_v12 }
 0x1a4   :  { %v1220_v10 = vpop.f32.mrf.mxu0 }
 0x1a5   :  { %v1760_v17 = vmax.f32 %v1616_v54, %v1724_v11  ;;  %v1723_v15 = vmax.f32 %v1040_v27, %v1220_v10  ;;  %v1624_v54 = vmax.f32 %v9025_v55, %v9241_v24 }
 0x1a6   :  { %v8195_v14 = vpop.f32.mrf.mxu0 }
 0x1a7   :  { %v1803_v2 = vadd.f32 %v9372_v19, %v1760_v17  ;;  %v1759_v9 = vmax.f32 %v1615_v6, %v1723_v15  ;;  %v1726_v39 = vmax.f32 %v8141_v26, %v8195_v14  ;;  %v1623_v14 = vmax.f32 %v9032_v57, %v9248_v28 }
 0x1a8   :  { %v1230_v56 = vpop.f32.mrf.mxu0 }
 0x1a9   :  { %v1839_v58 = vmax.f32 %v1803_v2, 0.0  ;;  %v1802_v50 = vadd.f32 %v9372_v19, %v1759_v9  ;;  %v1762_v21 = vmax.f32 %v1618_v13, %v1726_v39  ;;  %v1725_v7 = vmax.f32 %v1050_v52, %v1230_v56 }
 0x1aa   :  { %v8198_v11 = vpop.f32.mrf.mxu0  ;;  %v1626_v56 = vmax.f32 %v9037_v59, %v9250_v30 }
 0x1ab   :  { %1875 = vst [vmem:[#allocation3 + $0x8] sm:$0xff] %v1839_v58  ;;  %v1838_v27 = vmax.f32 %v1802_v50, 0.0  ;;  %v1805_v43 = vadd.f32 %v9372_v19, %v1762_v21  ;;  %v1761_v17 = vmax.f32 %v1617_v29, %v1725_v7  ;;  %v1728_v15 = vmax.f32 %v9303_v25, %v8198_v11  ;;  %2487 = vrot.lane.b32.xlu0 %v1839_v58, %s12371_s2 }
 0x1ac   :  { %v1240_v9 = vpop.f32.mrf.mxu0  ;;  %v1622_v21 = vmax.f32 %v9013_v51, %v9229_v16 }
 0x1ad   :  { %1874 = vst [vmem:[#allocation3] sm:$0xff] %v1838_v27  ;;  %v1841_v13 = vmax.f32 %v1805_v43, 0.0  ;;  %v1804_v52 = vadd.f32 %v9372_v19, %v1761_v17  ;;  %v1764_v47 = vmax.f32 %v1620_v41, %v1728_v15  ;;  %v1727_v60 = vmax.f32 %v9305_v48, %v1240_v9 }
 0x1ae   :  { %v8201_v7 = vpop.f32.mrf.mxu0  ;;  %v1625_v27 = vmax.f32 %v9044_v61, %v9253_v32 }
 0x1af   :  { %1877 = vst [vmem:[#allocation3 + $0x18] sm:$0xff] %v1841_v13  ;;  %v9393_v25 = vmax.f32 %v1804_v52, 0.0  ;;  %v1807_v0 = vadd.f32 %v9372_v19, %v1764_v47  ;;  %v1763_v4 = vmax.f32 %v1619_v45, %v1727_v60  ;;  %v1730_v49 = vmax.f32 %v9307_v44, %v8201_v7  ;;  %3355 = vrot.lane.b32.xlu0 %v1839_v58, %s8496_s20 }
 0x1b0   :  { %v1250_v12 = vpop.f32.mrf.mxu0 }
 0x1b1   :  { %1876 = vst [vmem:[#allocation3 + $0x10] sm:$0xff] %v9393_v25  ;;  %v1843_v51 = vmax.f32 %v1807_v0, 0.0  ;;  %v1806_v48 = vadd.f32 %v9372_v19, %v1763_v4  ;;  %v1766_v16 = vmax.f32 %v1622_v21, %v1730_v49  ;;  %v1729_v50 = vmax.f32 %v9309_v62, %v1250_v12 }
 0x1b2   :  { %v8204_v44 = vpop.f32.mrf.mxu0  ;;  %v1960_v2 = vld [vmem:[#allocation3 + $0x8] sm:$0xff] }
 0x1b3   :  { %1879 = vst [vmem:[#allocation3 + $0x28] sm:$0xff] %v1843_v51  ;;  %v1842_v6 = vmax.f32 %v1806_v48, 0.0  ;;  %v1809_v10 = vadd.f32 %v9372_v19, %v1766_v16  ;;  %v1765_v53 = vmax.f32 %v1621_v8, %v1729_v50  ;;  %v1732_v20 = vmax.f32 %v9311_v40, %v8204_v44  ;;  %4087 = vrot.lane.b32.xlu0 %v1839_v58, %s8497_s21  ;;  %v12500_v44 = vld [vmem:[#allocation48_spill] sm:$0xff] }
 0x1b4   :  { %1967 = vst.msk [vmem:[#allocation4 + $0x10] sm:$0xff] %vm1965_vm1, %v1960_v2  ;;  %v1260_v26 = vpop.f32.mrf.mxu0  ;;  %v9411_v62 = vld [vmem:[#allocation3 + $0x6] sm:$0xff]  ;;  %v1629_v8 = vmax.f32 %v9068_v5, %v9261_v42 }
 0x1b5   :  { %1878 = vst [vmem:[#allocation3 + $0x20] sm:$0xff] %v1842_v6  ;;  %v9413_v55 = vmax.f32 %v1809_v10, 0.0  ;;  %v1808_v24 = vadd.f32 %v9372_v19, %v1765_v53  ;;  %v1768_v39 = vmax.f32 %v1624_v54, %v1732_v20  ;;  %v1731_v29 = vmax.f32 %v9313_v37, %v1260_v26  ;;  %2327 = vrot.lane.b32.xlu1 %v9411_v62, %s12358_s22  ;;  %v1959_v40 = vld [vmem:[#allocation3] sm:$0xff]  ;;  %v12501_v6 = vld [vmem:[#allocation29_spill] sm:$0xff] }
 0x1b6   :  { %v8207_v57 = vpop.f32.mrf.mxu0  ;;  %v2905_v28 = vld [vmem:[#allocation3 + $0x1] sm:$0xff]  ;;  %1966 = vst.msk [vmem:[#allocation4] sm:$0xff] %vm1965_vm1, %v1959_v40  ;;  %v12503_v26 = vld [vmem:[#allocation49_spill] sm:$0xff] }
 0x1b7   :  { %1881 = vst [vmem:[#allocation3 + $0x38] sm:$0xff] %v9413_v55  ;;  %v9423_v58 = vmax.f32 %v1808_v24, 0.0  ;;  %v1811_v41 = vadd.f32 %v9372_v19, %v1768_v39  ;;  %v1767_v11 = vmax.f32 %v1623_v14, %v1731_v29  ;;  %v1734_v37 = vmax.f32 %v9315_v35, %v8207_v57  ;;  %2023 = vrot.lane.b32.xlu0 %v2905_v28, %s12369_s23  ;;  %v2977_v9 = vld [vmem:[#allocation3 + $0x2] sm:$0xff]  ;;  %v12504_v39 = vld [vmem:[#allocation30_spill] sm:$0xff] }
 0x1b8   :  { %v1270_v59 = vpop.f32.mrf.mxu0  ;;  %v1628_v35 = vmax.f32 %v9049_v63, %v9255_v34  ;;  %v4003_v4 = vld [vmem:[#allocation3 + $0x7] sm:$0xff]  ;;  %v2477_v57 = vld [vmem:[#allocation3 + $0x18] sm:$0x3f] }
 0x1b9   :  { %1880 = vst [vmem:[#allocation3 + $0x30] sm:$0xff] %v9423_v58  ;;  %v1847_v30 = vmax.f32 %v1811_v41, 0.0  ;;  %v1810_v43 = vadd.f32 %v9372_v19, %v1767_v11  ;;  %v1770_v17 = vmax.f32 %v1626_v56, %v1734_v37  ;;  %v1733_v15 = vmax.f32 %v9317_v33, %v1270_v59  ;;  %2917 = vrot.lane.b32.xlu1 %v2905_v28, %s12431_s24  ;;  %v12505_v29 = vld [vmem:[#allocation11_spill] sm:$0xff]  ;;  %v12506_v37 = vld [vmem:[#allocation50_spill] sm:$0xff] }
 0x1ba   :  { %v8210_v45 = vpop.f32.mrf.mxu0  ;;  %v1627_v33 = vmax.f32 %v9056_v1, %v9257_v36  ;;  %v1634_v40 = vmax.f32 %v12505_v29, %v12504_v39  ;;  %v12507_v59 = vld [vmem:[#allocation31_spill] sm:$0xff] }
 0x1bb   :  { %1883 = vst [vmem:[#allocation3 + $0x48] sm:$0xff] %v1847_v30  ;;  %v1846_v13 = vmax.f32 %v1810_v43, 0.0  ;;  %v1813_v61 = vadd.f32 %v9372_v19, %v1770_v17  ;;  %v1769_v32 = vmax.f32 %v1625_v27, %v1733_v15  ;;  %v1736_v52 = vmax.f32 %v9319_v31, %v8210_v45  ;;  %2099 = vrot.lane.b32.xlu0 %v2977_v9, %s12366_s1  ;;  %v12508_v30 = vld [vmem:[#allocation12_spill] sm:$0xff]  ;;  %v3345_v15 = vld [vmem:[#allocation3 + $0x18] sm:$0x3f] }
 0x1bc   :  { %v1280_v47 = vpop.f32.mrf.mxu0  ;;  %v9444_v7 = vld [vmem:[#allocation3 + $0x24] sm:$0xff]  ;;  %v1630_v31 = vmax.f32 %v9061_v3, %v9259_v38  ;;  %v1633_v43 = vmax.f32 %v12508_v30, %v12507_v59 }
 0x1bd   :  { %1882 = vst [vmem:[#allocation3 + $0x40] sm:$0xff] %v1846_v13  ;;  %v1849_v60 = vmax.f32 %v1813_v61, 0.0  ;;  %v1812_v63 = vadd.f32 %v9372_v19, %v1769_v32  ;;  %v1772_v34 = vmax.f32 %v1628_v35, %v1736_v52  ;;  %v1735_v21 = vmax.f32 %v9321_v22, %v1280_v47  ;;  %2989 = vrot.lane.b32.xlu1 %v2977_v9, %s12429_s25  ;;  %v12509_v61 = vld [vmem:[#allocation51_spill] sm:$0xff]  ;;  %v12510_v52 = vld [vmem:[#allocation32_spill] sm:$0xff] }
 0x1be   :  { %v8213_v0 = vpop.f32.mrf.mxu0  ;;  %2899 = vst.msk [vmem:[#allocation4 + $0x30] sm:$0xff] %vm1965_vm1, %v9444_v7 }
 0x1bf   :  { %1885 = vst [vmem:[#allocation3 + $0x58] sm:$0xff] %v1849_v60  ;;  %v1848_v1 = vmax.f32 %v1812_v63, 0.0  ;;  %v1815_v36 = vadd.f32 %v9372_v19, %v1772_v34  ;;  %v1771_v49 = vmax.f32 %v1627_v33, %v1735_v21  ;;  %v1738_v22 = vmax.f32 %v9323_v23, %v8213_v0  ;;  %2403 = vrot.lane.b32.xlu0 %v4003_v4, %s8503_s26  ;;  %v12499_v23 = vld [vmem:[#allocation9_spill] sm:$0xff]  ;;  %v12512_v0 = vld [vmem:[#allocation52_spill] sm:$0xff] }
 0x1c0   :  { %v1290_v12 = vpop.f32.mrf.mxu0  ;;  %v1632_v16 = vmax.f32 %v12499_v23, %v9263_v46  ;;  %v9469_v24 = vld [vmem:[#allocation3 + $0x2c] sm:$0xff]  ;;  %v2895_v35 = vld [vmem:[#allocation3 + $0x34] sm:$0x3f] }
 0x1c1   :  { %1884 = vst [vmem:[#allocation3 + $0x50] sm:$0xff] %v1848_v1  ;;  %v1851_v3 = vmax.f32 %v1815_v36, 0.0  ;;  %v1814_v38 = vadd.f32 %v9372_v19, %v1771_v49  ;;  %v1774_v51 = vmax.f32 %v1630_v31, %v1738_v22  ;;  %v1737_v48 = vmax.f32 %v9325_v18, %v1290_v12  ;;  %3943 = vrot.lane.b32.xlu1 %v9411_v62, %s12427_s27  ;;  %v12502_v18 = vld [vmem:[#allocation10_spill] sm:$0xff]  ;;  %v12511_v33 = vld [vmem:[#allocation13_spill] sm:$0xff] }
 0x1c2   :  { %v8216_v50 = vpop.f32.mrf.mxu0  ;;  %v1631_v10 = vmax.f32 %v12502_v18, %v12501_v6  ;;  %2900 = vst.msk [vmem:[#allocation4 + $0x40] sm:$0xff] %vm1965_vm1, %v9469_v24  ;;  %v1636_v47 = vmax.f32 %v12511_v33, %v12510_v52  ;;  %v4077_v63 = vld [vmem:[#allocation3 + $0x18] sm:$0x3f]  ;;  %v1961_v12 = vld [vmem:[#allocation3 + $0x10] sm:$0x3f] }
 0x1c3   :  { %1887 = vst [vmem:[#allocation3 + $0x68] sm:$0xff] %v1851_v3  ;;  %v1850_v54 = vmax.f32 %v1814_v38, 0.0  ;;  %v1817_v5 = vadd.f32 %v9372_v19, %v1774_v51  ;;  %v1773_v42 = vmax.f32 %v1629_v8, %v1737_v48  ;;  %v1740_v2 = vmax.f32 %v12500_v44, %v8216_v50  ;;  %3277 = vrot.lane.b32.xlu0 %v4003_v4, %s8505_s28  ;;  %v12513_v1 = vld [vmem:[#allocation33_spill] sm:$0xff]  ;;  %v12514_v36 = vld [vmem:[#allocation14_spill] sm:$0xff]  ;;  %v9491_v8 = vld [vmem:[#allocation3 + $0x9] sm:$0xff] }
 0x1c4   :  { %v1300_v53 = vpop.f32.mrf.mxu0  ;;  %2901 = vst.msk [vmem:[#allocation4 + $0x50] sm:$0x3f] %vm1968_vm2, %v2895_v35  ;;  %v1635_v49 = vmax.f32 %v12514_v36, %v12513_v1  ;;  %v12515_v48 = vld [vmem:[#allocation53_spill] sm:$0xff]  ;;  %1969 = vst.msk [vmem:[#allocation4 + $0x20] sm:$0x3f] %vm1968_vm2, %v1961_v12  ;;  %v12517_v50 = vld [vmem:[#allocation15_spill] sm:$0xff] }
 0x1c5   :  { %1886 = vst [vmem:[#allocation3 + $0x60] sm:$0xff] %v1850_v54  ;;  %v1853_v20 = vmax.f32 %v1817_v5, 0.0  ;;  %v1816_v14 = vadd.f32 %v9372_v19, %v1773_v42  ;;  %v1776_v46 = vmax.f32 %v1632_v16, %v1740_v2  ;;  %v1739_v62 = vmax.f32 %v12503_v26, %v1300_v53  ;;  %4015 = vrot.lane.b32.xlu1 %v4003_v4, %s12423_s29  ;;  %v12516_v16 = vld [vmem:[#allocation34_spill] sm:$0xff]  ;;  %v2013_v42 = vld [vmem:[#allocation3 + $0x11] sm:$0x3f]  ;;  %v12519_v53 = vld [vmem:[#allocation35_spill] sm:$0xff] }
 0x1c6   :  { %v8219_v56 = vpop.f32.mrf.mxu0  ;;  %v1638_v54 = vmax.f32 %v12517_v50, %v12516_v16  ;;  %v12518_v18 = vld [vmem:[#allocation54_spill] sm:$0xff]  ;;  %v9505_v26 = vld [vmem:[#allocation3 + $0xa] sm:$0xff]  ;;  %v12527_v33 = vld [vmem:[#allocation57_spill] sm:$0xff] }
 0x1c7   :  { %1889 = vst [vmem:[#allocation3 + $0x78] sm:$0xff] %v1853_v20  ;;  %v1852_v28 = vmax.f32 %v1816_v14, 0.0  ;;  %v1819_v41 = vadd.f32 %v9372_v19, %v1776_v46  ;;  %v1775_v11 = vmax.f32 %v1631_v10, %v1739_v62  ;;  %v1742_v27 = vmax.f32 %v12506_v37, %v8219_v56  ;;  %2491 = vrot.lane.b32.xlu0 %v2477_v57, %s12371_s2  ;;  %v12520_v20 = vld [vmem:[#allocation16_spill] sm:$0xff]  ;;  %v2089_v37 = vld [vmem:[#allocation3 + $0x12] sm:$0x3f]  ;;  %v12526_v35 = vld [vmem:[#allocation18_spill] sm:$0xff] }
 0x1c8   :  { %v1310_v17 = vpop.f32.mrf.mxu0  ;;  %v1637_v14 = vmax.f32 %v12520_v20, %v12519_v53  ;;  %v12522_v57 = vld [vmem:[#allocation36_spill] sm:$0xff]  ;;  %v12531_v12 = vld [vmem:[#allocation39_spill] sm:$0xff] }
 0x1c9   :  { %1888 = vst [vmem:[#allocation3 + $0x70] sm:$0xff] %v1852_v28  ;;  %v1855_v45 = vmax.f32 %v1819_v41, 0.0  ;;  %v1818_v9 = vadd.f32 %v9372_v19, %v1775_v11  ;;  %v1778_v13 = vmax.f32 %v1634_v40, %v1742_v27  ;;  %v1741_v32 = vmax.f32 %v12509_v61, %v1310_v17  ;;  %3359 = vrot.lane.b32.xlu1 %v3345_v15, %s8496_s20  ;;  %v12521_v40 = vld [vmem:[#allocation55_spill] sm:$0xff]  ;;  %v12523_v28 = vld [vmem:[#allocation17_spill] sm:$0xff] }
 0x1ca   :  { %v8222_v60 = vpop.f32.mrf.mxu0  ;;  %v1640_v41 = vmax.f32 %v12523_v28, %v12522_v57  ;;  %v12525_v15 = vld [vmem:[#allocation37_spill] sm:$0xff] }
 0x1cb   :  { %1891 = vst [vmem:[#allocation3 + $0x88] sm:$0xff] %v1855_v45  ;;  %v1854_v34 = vmax.f32 %v1818_v9, 0.0  ;;  %v1821_v21 = vadd.f32 %v9372_v19, %v1778_v13  ;;  %v1777_v31 = vmax.f32 %v1633_v43, %v1741_v32  ;;  %v1744_v4 = vmax.f32 %v12512_v0, %v8222_v60  ;;  %4091 = vrot.lane.b32.xlu0 %v4077_v63, %s8497_s21  ;;  %v12524_v43 = vld [vmem:[#allocation56_spill] sm:$0xff]  ;;  %v9518_v13 = vld [vmem:[#allocation3 + $0x14] sm:$0xff] }
 0x1cc   :  { %v1320_v22 = vpop.f32.mrf.mxu0  ;;  %v1639_v45 = vmax.f32 %v12526_v35, %v12525_v15  ;;  %v12528_v63 = vld [vmem:[#allocation38_spill] sm:$0xff]  ;;  %v9528_v0 = vld [vmem:[#allocation3 + $0xf] sm:$0xff] }
 0x1cd   :  { %1890 = vst [vmem:[#allocation3 + $0x80] sm:$0xff] %v1854_v34  ;;  %v1857_v3 = vmax.f32 %v1821_v21, 0.0  ;;  %v1820_v38 = vadd.f32 %v9372_v19, %v1777_v31  ;;  %v1780_v51 = vmax.f32 %v1636_v47, %v1744_v4  ;;  %v1743_v23 = vmax.f32 %v12515_v48, %v1320_v22  ;;  %2025 = vrot.lane.b32.xlu1 %v9491_v8, %s12369_s23  ;;  %v12529_v34 = vld [vmem:[#allocation19_spill] sm:$0xff]  ;;  %v9538_v48 = vld [vmem:[#allocation3 + $0xe] sm:$0xff] }
 0x1ce   :  { %v8225_v5 = vpop.f32.mrf.mxu0  ;;  %v1642_v21 = vmax.f32 %v12529_v34, %v12528_v63 }
 0x1cf   :  { %1894 = vst [vmem:[#allocation3 + $0x98] sm:$0xff] %v1857_v3  ;;  %v1856_v44 = vmax.f32 %v1820_v38, 0.0  ;;  %v1823_v2 = vadd.f32 %v9372_v19, %v1780_v51  ;;  %v1779_v6 = vmax.f32 %v1635_v49, %v1743_v23  ;;  %v1746_v10 = vmax.f32 %v12518_v18, %v8225_v5  ;;  %2027 = vrot.lane.b32.xlu0 %v2013_v42, %s12369_s23  ;;  %v12530_v49 = vld [vmem:[#allocation58_spill] sm:$0xff]  ;;  %v12532_v3 = vld [vmem:[#allocation20_spill] sm:$0xff]  ;;  %v12533_v5 = vld [vmem:[#allocation59_spill] sm:$0xff] }
 0x1d0   :  { %v1330_v46 = vpop.f32.mrf.mxu0  ;;  %v9524_v60 = vld [vmem:[#allocation3 + $0x74] sm:$0xff]  ;;  %v1641_v38 = vmax.f32 %v12532_v3, %v12531_v12  ;;  %v9540_v23 = vld [vmem:[#allocation3 + $0x6c] sm:$0xff] }
 0x1d1   :  { %1893 = vst [vmem:[#allocation3 + $0x90] sm:$0xff] %v1856_v44  ;;  %v1859_v62 = vmax.f32 %v1823_v2, 0.0  ;;  %v1822_v39 = vadd.f32 %v9372_v19, %v1779_v6  ;;  %v1782_v29 = vmax.f32 %v1638_v54, %v1746_v10  ;;  %v1745_v56 = vmax.f32 %v12521_v40, %v1330_v46  ;;  %2101 = vrot.lane.b32.xlu1 %v9505_v26, %s12366_s1  ;;  %v12534_v44 = vld [vmem:[#allocation40_spill] sm:$0xff]  ;;  %v12535_v2 = vld [vmem:[#allocation21_spill] sm:$0xff] }
 0x1d2   :  { %v8228_v11 = vpop.f32.mrf.mxu0  ;;  %4664 = vst.msk [vmem:[#allocation4 + $0xa0] sm:$0xff] %vm1965_vm1, %v9524_v60  ;;  %4663 = vst.msk [vmem:[#allocation4 + $0x90] sm:$0xff] %vm1965_vm1, %v9540_v23  ;;  %v1644_v6 = vmax.f32 %v12535_v2, %v12534_v44  ;;  %v4297_v12 = vld [vmem:[#allocation3 + $0xc] sm:$0xff] }
 0x1d3   :  { %1896 = vst [vmem:[#allocation3 + $0xa8] sm:$0xff] %v1859_v62  ;;  %v1858_v27 = vmax.f32 %v1822_v39, 0.0  ;;  %v1825_v59 = vadd.f32 %v9372_v19, %v1782_v29  ;;  %v1781_v30 = vmax.f32 %v1637_v14, %v1745_v56  ;;  %v1748_v17 = vmax.f32 %v12524_v43, %v8228_v11  ;;  %2103 = vrot.lane.b32.xlu0 %v2089_v37, %s12366_s1  ;;  %v12536_v14 = vld [vmem:[#allocation60_spill] sm:$0xff]  ;;  %v12537_v62 = vld [vmem:[#allocation41_spill] sm:$0xff]  ;;  %v12538_v39 = vld [vmem:[#allocation22_spill] sm:$0xff] }
 0x1d4   :  { %v1340_v9 = vpop.f32.mrf.mxu0  ;;  %v1643_v29 = vmax.f32 %v12538_v39, %v12537_v62  ;;  %v9556_v56 = vld [vmem:[#allocation3 + $0xd] sm:$0xff]  ;;  %v12552_v62 = vld [vmem:[#allocation46_spill] sm:$0xff]  ;;  %v12553_v39 = vld [vmem:[#allocation27_spill] sm:$0xff] }
 0x1d5   :  { %1895 = vst [vmem:[#allocation3 + $0xa0] sm:$0xff] %v1858_v27  ;;  %v1861_v61 = vmax.f32 %v1825_v59, 0.0  ;;  %v1824_v32 = vadd.f32 %v9372_v19, %v1781_v30  ;;  %v1784_v52 = vmax.f32 %v1640_v41, %v1748_v17  ;;  %v1747_v47 = vmax.f32 %v12527_v33, %v1340_v9  ;;  %2717 = vrot.lane.b32.xlu1 %v9518_v13, %s8507_s30  ;;  %v12539_v11 = vld [vmem:[#allocation61_spill] sm:$0xff]  ;;  %v12540_v27 = vld [vmem:[#allocation42_spill] sm:$0xff]  ;;  %v12541_v59 = vld [vmem:[#allocation23_spill] sm:$0xff] }
 0x1d6   :  { %v8231_v31 = vpop.f32.mrf.mxu0  ;;  %v1646_v30 = vmax.f32 %v12541_v59, %v12540_v27  ;;  %v2393_v17 = vld [vmem:[#allocation3 + $0x17] sm:$0x3f]  ;;  %v12555_v27 = vld [vmem:[#allocation47_spill] sm:$0xff]  ;;  %v12556_v59 = vld [vmem:[#allocation28_spill] sm:$0xff] }
 0x1d7   :  { %1898 = vst [vmem:[#allocation3 + $0xb8] sm:$0xff] %v1861_v61  ;;  %v1860_v4 = vmax.f32 %v1824_v32, 0.0  ;;  %v1827_v1 = vadd.f32 %v9372_v19, %v1784_v52  ;;  %v1783_v36 = vmax.f32 %v1639_v45, %v1747_v47  ;;  %v1750_v22 = vmax.f32 %v12530_v49, %v8231_v31  ;;  %2405 = vrot.lane.b32.xlu0 %v9528_v0, %s8503_s26  ;;  %v12542_v9 = vld [vmem:[#allocation62_spill] sm:$0xff]  ;;  %v12543_v32 = vld [vmem:[#allocation43_spill] sm:$0xff]  ;;  %v12544_v52 = vld [vmem:[#allocation24_spill] sm:$0xff] }
 0x1d8   :  { %v1350_v51 = vpop.f32.mrf.mxu0  ;;  %v1645_v33 = vmax.f32 %v12544_v52, %v12543_v32  ;;  %v12545_v31 = vld [vmem:[#allocation63_spill] sm:$0xff] }
 0x1d9   :  { %1897 = vst [vmem:[#allocation3 + $0xb0] sm:$0xff] %v1860_v4  ;;  %v1863_v16 = vmax.f32 %v1827_v1, 0.0  ;;  %v1826_v50 = vadd.f32 %v9372_v19, %v1783_v36  ;;  %v1786_v54 = vmax.f32 %v1642_v21, %v1750_v22  ;;  %v1749_v42 = vmax.f32 %v12533_v5, %v1350_v51  ;;  %2329 = vrot.lane.b32.xlu1 %v9538_v48, %s12358_s22  ;;  %v12546_v1 = vld [vmem:[#allocation44_spill] sm:$0xff]  ;;  %v12547_v36 = vld [vmem:[#allocation25_spill] sm:$0xff] }
 0x1da   :  { %v8234_v18 = vpop.f32.mrf.mxu0  ;;  %v1648_v49 = vmax.f32 %v12547_v36, %v12546_v1  ;;  %v12549_v5 = vld [vmem:[#allocation45_spill] sm:$0xff]  ;;  %v4659_v36 = vld [vmem:[#allocation3 + $0x7c] sm:$0x3f] }
 0x1db   :  { %1900 = vst [vmem:[#allocation3 + $0xc8] sm:$0xff] %v1863_v16  ;;  %v1862_v10 = vmax.f32 %v1826_v50, 0.0  ;;  %v1829_v53 = vadd.f32 %v9372_v19, %v1786_v54  ;;  %v1785_v20 = vmax.f32 %v1641_v38, %v1749_v42  ;;  %v1752_v46 = vmax.f32 %v12536_v14, %v8234_v18  ;;  %2489 = vrot.lane.b32.xlu0 %v9393_v25, %s12371_s2  ;;  %v12548_v16 = vld [vmem:[#allocation64_spill] sm:$0xff]  ;;  %v12550_v42 = vld [vmem:[#allocation26_spill] sm:$0xff] }
 0x1dc   :  { %v1360_v40 = vpop.f32.mrf.mxu0  ;;  %v3775_v54 = vld [vmem:[#allocation3 + $0x48] sm:$0xff]  ;;  %v1647_v44 = vmax.f32 %v12550_v42, %v12549_v5  ;;  %v2317_v1 = vld [vmem:[#allocation3 + $0x16] sm:$0x3f]  ;;  %4665 = vst.msk [vmem:[#allocation4 + $0xb0] sm:$0x3f] %vm1968_vm2, %v4659_v36 }
 0x1dd   :  { %1899 = vst [vmem:[#allocation3 + $0xc0] sm:$0xff] %v1862_v10  ;;  %v1865_v57 = vmax.f32 %v1829_v53, 0.0  ;;  %v1828_v28 = vadd.f32 %v9372_v19, %v1785_v20  ;;  %v1788_v41 = vmax.f32 %v1644_v6, %v1752_v46  ;;  %v1751_v37 = vmax.f32 %v12539_v11, %v1360_v40  ;;  %3643 = vrot.lane.b32.xlu1 %v9556_v56, %s12364_s10  ;;  %v9580_v6 = vld [vmem:[#allocation3 + $0x16] sm:$0xff] }
 0x1de   :  { %v8237_v43 = vpop.f32.mrf.mxu0  ;;  %3781 = vst.msk [vmem:[#allocation4 + $0x60] sm:$0xff] %vm1965_vm1, %v3775_v54  ;;  %v12551_v20 = vld [vmem:[#allocation65_spill] sm:$0xff]  ;;  %v12554_v11 = vld [vmem:[#allocation66_spill] sm:$0xff] }
 0x1df   :  { %1902 = vst [vmem:[#allocation3 + $0xd8] sm:$0xff] %v1865_v57  ;;  %v1864_v15 = vmax.f32 %v1828_v28, 0.0  ;;  %v1831_v35 = vadd.f32 %v9372_v19, %v1788_v41  ;;  %v1787_v45 = vmax.f32 %v1643_v29, %v1751_v37  ;;  %v1754_v61 = vmax.f32 %v12542_v9, %v8237_v43  ;;  %2407 = vrot.lane.b32.xlu0 %v2393_v17, %s8503_s26  ;;  %v3776_v46 = vld [vmem:[#allocation3 + $0x50] sm:$0xff] }
 0x1e0   :  { %v1370_v47 = vpop.f32.mrf.mxu0  ;;  %v1650_v29 = vmax.f32 %v12553_v39, %v12552_v62  ;;  %3782 = vst.msk [vmem:[#allocation4 + $0x70] sm:$0xff] %vm1965_vm1, %v3776_v46  ;;  %v3933_v5 = vld [vmem:[#allocation3 + $0x16] sm:$0x3f]  ;;  %v9692_v39 = vld [vmem:[#allocation3 + $0x2d] sm:$0xff] }
 0x1e1   :  { %1901 = vst [vmem:[#allocation3 + $0xd0] sm:$0xff] %v1864_v15  ;;  %v1867_v63 = vmax.f32 %v1831_v35, 0.0  ;;  %v1830_v34 = vadd.f32 %v9372_v19, %v1787_v45  ;;  %v1790_v21 = vmax.f32 %v1646_v30, %v1754_v61  ;;  %v1753_v4 = vmax.f32 %v12545_v31, %v1370_v47  ;;  %3715 = vrot.lane.b32.xlu1 %v9538_v48, %s12362_s11  ;;  %v12557_v45 = vld [vmem:[#allocation67_spill] sm:$0xff]  ;;  %v1962_v31 = vld [vmem:[#allocation3 + $0x90] sm:$0xff] }
 0x1e2   :  { %v8240_v22 = vpop.f32.mrf.mxu0  ;;  %v1649_v30 = vmax.f32 %v12556_v59, %v12555_v27  ;;  %1970 = vst.msk [vmem:[#allocation4 + $0xc0] sm:$0xff] %vm1965_vm1, %v1962_v31  ;;  %v3633_v27 = vld [vmem:[#allocation3 + $0x1d] sm:$0x3f]  ;;  %v3739_v31 = vld [vmem:[#allocation3 + $0x32] sm:$0xff] }
 0x1e3   :  { %1904 = vst [vmem:[#allocation3 + $0xe8] sm:$0xff] %v1867_v63  ;;  %v1866_v3 = vmax.f32 %v1830_v34, 0.0  ;;  %v1833_v38 = vadd.f32 %v9372_v19, %v1790_v21  ;;  %v1789_v51 = vmax.f32 %v1645_v33, %v1753_v4  ;;  %v1756_v50 = vmax.f32 %v12548_v16, %v8240_v22  ;;  %2715 = vrot.lane.b32.xlu0 %v4297_v12, %s8507_s30  ;;  %v2780_v63 = vld [vmem:[#allocation3 + $0x15] sm:$0xff]  ;;  %v3013_v22 = vld [vmem:[#allocation3 + $0x26] sm:$0xff] }
 0x1e4   :  { %v1380_v2 = vpop.f32.mrf.mxu0  ;;  %v3777_v21 = vld [vmem:[#allocation3 + $0x58] sm:$0x3f] }
 0x1e5   :  { %1903 = vst [vmem:[#allocation3 + $0xe0] sm:$0xff] %v1866_v3  ;;  %v1869_v18 = vmax.f32 %v1833_v38, 0.0  ;;  %v1832_v10 = vadd.f32 %v9372_v19, %v1789_v51  ;;  %v1792_v53 = vmax.f32 %v1648_v49, %v1756_v50  ;;  %v1755_v14 = vmax.f32 %v12551_v20, %v1380_v2  ;;  %3717 = vrot.lane.b32.xlu1 %v9580_v6, %s12362_s11  ;;  %v9613_v4 = vld [vmem:[#allocation3 + $0x98] sm:$0xff] }
 0x1e6   :  { %v8243_v40 = vpop.f32.mrf.mxu0  ;;  %3783 = vst.msk [vmem:[#allocation4 + $0x80] sm:$0x3f] %vm1968_vm2, %v3777_v21  ;;  %12558 = vst [vmem:[#allocation9_spill] sm:$0xff] %v9613_v4  ;;  %v2705_v49 = vld [vmem:[#allocation3 + $0x1c] sm:$0x3f] }
 0x1e7   :  { %1906 = vst [vmem:[#allocation3 + $0xf8] sm:$0xff] %v1869_v18  ;;  %v1868_v57 = vmax.f32 %v1832_v10, 0.0  ;;  %v1835_v28 = vadd.f32 %v9372_v19, %v1792_v53  ;;  %v1791_v41 = vmax.f32 %v1647_v44, %v1755_v14  ;;  %v1758_v37 = vmax.f32 %v12554_v11, %v8243_v40  ;;  %2791 = vrot.lane.b32.xlu0 %v9556_v56, %s12360_s12  ;;  %v3267_v3 = vld [vmem:[#allocation3 + $0x17] sm:$0x3f]  ;;  %v3705_v38 = vld [vmem:[#allocation3 + $0x1e] sm:$0x3f] }
 0x1e8   :  { %v1390_v43 = vpop.f32.mrf.mxu0  ;;  %1971 = vst.msk [vmem:[#allocation4 + $0xd0] sm:$0xff] %vm1965_vm1, %v9613_v4  ;;  %v4299_v51 = vld [vmem:[#allocation3 + $0x1c] sm:$0x3f]  ;;  %v1975_v14 = vld [vmem:[#allocation3 + $0x34] sm:$0x3f]  ;;  %v2049_v40 = vld [vmem:[#allocation3 + $0x25] sm:$0xff] }
 0x1e9   :  { %1905 = vst [vmem:[#allocation3 + $0xf0] sm:$0xff] %v1868_v57  ;;  %v1871_v17 = vmax.f32 %v1835_v28, 0.0  ;;  %v1834_v15 = vadd.f32 %v9372_v19, %v1791_v41  ;;  %v1794_v35 = vmax.f32 %v1650_v29, %v1758_v37  ;;  %v1757_v9 = vmax.f32 %v12557_v45, %v1390_v43  ;;  %4309 = vrot.lane.b32.xlu1 %v4297_v12, %s12437_s13  ;;  %v2896_v12 = vld [vmem:[#allocation3 + $0xb4] sm:$0xff]  ;;  %v4371_v50 = vld [vmem:[#allocation3 + $0x1d] sm:$0x3f] }
 0x1ea   :  { %2902 = vst.msk [vmem:[#allocation4 + $0xf0] sm:$0xff] %vm1965_vm1, %v2896_v12  ;;  %v3778_v44 = vld [vmem:[#allocation3 + $0xd8] sm:$0xff]  ;;  %v3780_v29 = vld [vmem:[#allocation3 + $0xe8] sm:$0x3f] }
 0x1eb   :  { %1908 = vst [vmem:[#allocation3 + $0x108] sm:$0xff] %v1871_v17  ;;  %v1870_v61 = vmax.f32 %v1834_v15, 0.0  ;;  %v1837_v32 = vadd.f32 %v9372_v19, %v1794_v35  ;;  %v1793_v52 = vmax.f32 %v1649_v30, %v1757_v9  ;;  %2867 = vrot.lane.b32.xlu0 %v9538_v48, %s12356_s14  ;;  %v4005_v2 = vld [vmem:[#allocation3 + $0x17] sm:$0x3f]  ;;  %3784 = vst.msk [vmem:[#allocation4 + $0x120] sm:$0xff] %vm1965_vm1, %v3778_v44  ;;  %v9721_v30 = vld [vmem:[#allocation3 + $0x2a] sm:$0xff] }
 0x1ec   :  { %v9674_v10 = vld [vmem:[#allocation3 + $0xe0] sm:$0xff]  ;;  %3786 = vst.msk [vmem:[#allocation4 + $0x140] sm:$0x3f] %vm1968_vm2, %v3780_v29  ;;  %v2355_v9 = vld [vmem:[#allocation3 + $0x3a] sm:$0x3f] }
 0x1ed   :  { %1907 = vst [vmem:[#allocation3 + $0x100] sm:$0xff] %v1870_v61  ;;  %v1873_v33 = vmax.f32 %v1837_v32, 0.0  ;;  %v1836_v47 = vadd.f32 %v9372_v19, %v1793_v52  ;;  %3279 = vrot.lane.b32.xlu1 %v9528_v0, %s8505_s28  ;;  %v1964_v19 = vld [vmem:[#allocation3 + $0xa0] sm:$0x3f]  ;;  %12560 = vst [vmem:[#allocation29_spill] sm:$0xff] %v9674_v10  ;;  %v3014_v32 = vld [vmem:[#allocation3 + $0x2e] sm:$0xff] }
 0x1ee   :  { %1972 = vst.msk [vmem:[#allocation4 + $0xe0] sm:$0x3f] %vm1968_vm2, %v1964_v19  ;;  %v4443_v17 = vld [vmem:[#allocation3 + $0x1e] sm:$0x3f]  ;;  %v3015_v36 = vld [vmem:[#allocation3 + $0x36] sm:$0x3f] }
 0x1ef   :  { %1910 = vst [vmem:[#allocation3 + $0x118] sm:$0xff] %v1873_v33  ;;  %v1872_v34 = vmax.f32 %v1836_v47, 0.0  ;;  %2793 = vrot.lane.b32.xlu0 %v2780_v63, %s12360_s12  ;;  %3785 = vst.msk [vmem:[#allocation4 + $0x130] sm:$0xff] %vm1965_vm1, %v9674_v10  ;;  %v3667_v47 = vld [vmem:[#allocation3 + $0x31] sm:$0xff]  ;;  %v2743_v10 = vld [vmem:[#allocation3 + $0x40] sm:$0x3f] }
 0x1f0   :  { %v2438_v12 = vld [vmem:[#allocation3 + $0x33] sm:$0xff]  ;;  %v3303_v4 = vld [vmem:[#allocation3 + $0x3b] sm:$0x3f] }
 0x1f1   :  { %1909 = vst [vmem:[#allocation3 + $0x110] sm:$0xff] %v1872_v34  ;;  %4381 = vrot.lane.b32.xlu1 %v9556_v56, %s12433_s15  ;;  %v3231_v34 = vld [vmem:[#allocation3 + $0x3a] sm:$0x3f] }
 0x1f3   :  { %2869 = vrot.lane.b32.xlu0 %v9580_v6, %s12356_s14 }
 0x1f4   :  { %v9680_v20 = vld [vmem:[#allocation3 + $0x104] sm:$0xff]  ;;  %v4660_v28 = vld [vmem:[#allocation3 + $0xfc] sm:$0xff] }
 0x1f5   :  { %4453 = vrot.lane.b32.xlu1 %v9538_v48, %s8514_s16  ;;  %12561 = vst [vmem:[#allocation10_spill] sm:$0xff] %v9680_v20  ;;  %4667 = vst.msk [vmem:[#allocation4 + $0x160] sm:$0xff] %vm1965_vm1, %v9680_v20 }
 0x1f6   :  { %4666 = vst.msk [vmem:[#allocation4 + $0x150] sm:$0xff] %vm1965_vm1, %v4660_v28 }
 0x1f7   :  { %3357 = vrot.lane.b32.xlu0 %v9393_v25, %s8496_s20 }
 0x1f8   :  { %v4662_v15 = vld [vmem:[#allocation3 + $0x10c] sm:$0x3f] }
 0x1f9   :  { %3945 = vrot.lane.b32.xlu1 %v9538_v48, %s12427_s27  ;;  %4668 = vst.msk [vmem:[#allocation4 + $0x170] sm:$0x3f] %vm1968_vm2, %v4662_v15 }
 0x1fb   :  { %2919 = vrot.lane.b32.xlu0 %v9491_v8, %s12431_s24  ;;  %v2907_v8 = vld [vmem:[#allocation3 + $0x11] sm:$0x3f] }
 0x1fd   :  { %4017 = vrot.lane.b32.xlu1 %v9528_v0, %s12423_s29  ;;  %v9636_v0 = vld [vmem:[#allocation3 + $0xbc] sm:$0xff] }
 0x1fe   :  { %12559 = vst [vmem:[#allocation48_spill] sm:$0xff] %v9636_v0  ;;  %2903 = vst.msk [vmem:[#allocation4 + $0x100] sm:$0xff] %vm1965_vm1, %v9636_v0  ;;  %vm12385_vm1 = vcmask 177248  }
 0x1ff   :  { %2331 = vrot.lane.b32.xlu0 %v2317_v1, %s12358_s22  ;;  %v3969_v1 = vld [vmem:[#allocation3 + $0x3a] sm:$0x3f] }
 0x201   :  { %4089 = vrot.lane.b32.xlu1 %v9393_v25, %s8497_s21  ;;  %v2979_v25 = vld [vmem:[#allocation3 + $0x12] sm:$0x3f] }
 0x203   :  { %2991 = vrot.lane.b32.xlu0 %v9505_v26, %s12429_s25  ;;  %v2781_v26 = vld [vmem:[#allocation3 + $0x1d] sm:$0x3f] }
 0x205   :  { %5299 = vrot.lane.b32.xlu1 %v9538_v48, %s8515_s17  ;;  %v2857_v48 = vld [vmem:[#allocation3 + $0x1e] sm:$0x3f] }
 0x207   :  { %2921 = vrot.lane.b32.xlu0 %v2907_v8, %s12431_s24 }
 0x209   :  { %2719 = vrot.lane.b32.xlu1 %v2705_v49, %s8507_s30 }
 0x20b   :  { %2993 = vrot.lane.b32.xlu0 %v2979_v25, %s12429_s25 }
 0x20d   :  { %3025 = vrot.lane.b32.xlu1 %v3013_v22, %s12366_s1  ;;  %v2051_v22 = vld [vmem:[#allocation3 + $0x35] sm:$0x3f] }
 0x20f   :  { %3645 = vrot.lane.b32.xlu0 %v2780_v63, %s12364_s10 }
 0x211   :  { %2795 = vrot.lane.b32.xlu1 %v2781_v26, %s12360_s12 }
 0x213   :  { %4311 = vrot.lane.b32.xlu0 %v9518_v13, %s12437_s13  ;;  %v2898_v13 = vld [vmem:[#allocation3 + $0xc4] sm:$0x3f] }
 0x214   :  { %2904 = vst.msk [vmem:[#allocation4 + $0x110] sm:$0x3f] %vm1968_vm2, %v2898_v13  ;;  %vm12408_vm2 = vcmask 490896  }
 0x215   :  { %2871 = vrot.lane.b32.xlu1 %v2857_v48, %s12356_s14 }
 0x217   :  { %3281 = vrot.lane.b32.xlu0 %v3267_v3, %s8505_s28 }
 0x219   :  { %3719 = vrot.lane.b32.xlu1 %v3705_v38, %s12362_s11 }
 0x21b   :  { %4383 = vrot.lane.b32.xlu0 %v2780_v63, %s12433_s15 }
 0x21d   :  { %4313 = vrot.lane.b32.xlu1 %v4299_v51, %s12437_s13  ;;  %v9653_v16 = vpop.permute.xlu0 %2487 }
 0x21f   :  { %4455 = vrot.lane.b32.xlu0 %v9580_v6, %s8514_s16 }
 0x221   :  { %4385 = vrot.lane.b32.xlu1 %v4371_v50, %s12433_s15  ;;  %v9659_v54 = vpop.permute.xlu0 %3355 }
 0x223   :  { %3947 = vrot.lane.b32.xlu0 %v3933_v5, %s12427_s27 }
 0x225   :  { %2755 = vrot.lane.b32.xlu1 %v9413_v55, %s12364_s10  ;;  %v9664_v42 = vpop.permute.xlu0 %4087 }
 0x227   :  { %v9667_v18 = vpop.permute.xlu1 %2327  ;;  %4019 = vrot.lane.b32.xlu0 %v4005_v2, %s12423_s29 }
 0x229   :  { %4347 = vrot.lane.b32.xlu1 %v9413_v55, %s12435_s18  ;;  %v9672_v6 = vpop.permute.xlu0 %2023 }
 0x22b   :  { %v2918_v53 = vpop.permute.xlu1 %2917  ;;  %5227 = vrot.lane.b32.xlu0 %v9556_v56, %s12435_s18 }
 0x22c   :  { %2935 = vst.msk [vmem:[#allocation4 + $0x30] sm:$0xff] %vm12396_vm3, %v2918_v53 }
 0x22d   :  { %1989 = vrot.lane.b32.xlu1 %v1975_v14, %s12431_s24  ;;  %v9686_v46 = vpop.permute.xlu0 %2099  ;;  %v3380_v14 = vld [vmem:[#allocation3 + $0x34] sm:$0xff] }
 0x22f   :  { %v9688_v62 = vpop.permute.xlu1 %2989  ;;  %1985 = vrot.lane.b32.xlu0 %v9444_v7, %s12431_s24  ;;  %v9704_v7 = vld [vmem:[#allocation3 + $0x2b] sm:$0xff] }
 0x231   :  { %2063 = vrot.lane.b32.xlu1 %v9692_v39, %s12429_s25  ;;  %v9696_v56 = vpop.permute.xlu0 %2403 }
 0x232   :  { %2424 = vst.msk [vmem:[#allocation4 + $0x8] sm:$0xff] %vm12389_vm4, %v9696_v56 }
 0x233   :  { %v9701_v57 = vpop.permute.xlu1 %3943  ;;  %2061 = vrot.lane.b32.xlu0 %v2049_v40, %s12429_s25 }
 0x235   :  { %2449 = vrot.lane.b32.xlu1 %v9704_v7, %s8496_s20  ;;  %v9708_v41 = vpop.permute.xlu0 %3277 }
 0x237   :  { %v9711_v11 = vpop.permute.xlu1 %4015  ;;  %2953 = vrot.lane.b32.xlu0 %v2049_v40, %s12369_s23  ;;  %v2439_v40 = vld [vmem:[#allocation3 + $0x3b] sm:$0x3f] }
 0x239   :  { %2753 = vrot.lane.b32.xlu1 %v9423_v58, %s12364_s10  ;;  %v9716_v37 = vpop.permute.xlu0 %2491 }
 0x23b   :  { %v9718_v59 = vpop.permute.xlu1 %3359  ;;  %3647 = vrot.lane.b32.xlu0 %v3633_v27, %s12364_s10 }
 0x23d   :  { %2365 = vrot.lane.b32.xlu1 %v9721_v30, %s8505_s28  ;;  %v9725_v43 = vpop.permute.xlu0 %4091 }
 0x23e   :  { %12562 = vst [vmem:[#allocation49_spill] sm:$0xff] %v9725_v43 }
 0x23f   :  { %v9727_v35 = vpop.permute.xlu1 %2025  ;;  %4457 = vrot.lane.b32.xlu0 %v4443_v17, %s8514_s16  ;;  %v2818_v17 = vld [vmem:[#allocation3 + $0x39] sm:$0xff] }
 0x241   :  { %3313 = vrot.lane.b32.xlu1 %v9704_v7, %s8503_s26  ;;  %v9733_v45 = vpop.permute.xlu0 %2027 }
 0x243   :  { %v9735_v61 = vpop.permute.xlu1 %2101  ;;  %2369 = vrot.lane.b32.xlu0 %v2355_v9, %s8505_s28 }
 0x245   :  { %3027 = vrot.lane.b32.xlu1 %v3014_v32, %s12366_s1  ;;  %v9739_v52 = vpop.permute.xlu0 %2103  ;;  %v2819_v32 = vld [vmem:[#allocation3 + $0x41] sm:$0x3f] }
 0x247   :  { %v9741_v33 = vpop.permute.xlu1 %2717  ;;  %3609 = vrot.lane.b32.xlu0 %v9413_v55, %s8507_s30 }
 0x248   :  { %12563 = vst [vmem:[#allocation30_spill] sm:$0xff] %v9741_v33  ;;  %v2165_v33 = vld [vmem:[#allocation3 + $0x7c] sm:$0x3f] }
 0x249   :  { %3679 = vrot.lane.b32.xlu1 %v3667_v47, %s12360_s12  ;;  %v9746_v63 = vpop.permute.xlu0 %2405 }
 0x24a   :  { %2426 = vst.msk [vmem:[#allocation4 + $0x18] sm:$0xff] %vm12389_vm4, %v9746_v63 }
 0x24b   :  { %v9750_v21 = vpop.permute.xlu1 %2329  ;;  %3245 = vrot.lane.b32.xlu0 %v3231_v34, %s12358_s22  ;;  %v2943_v34 = vld [vmem:[#allocation3 + $0x35] sm:$0x3f] }
 0x24d   :  { %3751 = vrot.lane.b32.xlu1 %v3739_v31, %s12356_s14  ;;  %v9754_v19 = vpop.permute.xlu0 %2489 }
 0x24f   :  { %v9756_v55 = vpop.permute.xlu1 %3643  ;;  %3983 = vrot.lane.b32.xlu0 %v3969_v1, %s12425_s0 }
 0x251   :  { %3029 = vrot.lane.b32.xlu1 %v3015_v36, %s12366_s1  ;;  %v9760_v8 = vpop.permute.xlu0 %2407 }
 0x252   :  { %12564 = vst [vmem:[#allocation11_spill] sm:$0xff] %v9760_v8  ;;  %2430 = vst.msk [vmem:[#allocation4 + $0x28] sm:$0x3f] %vm12393_vm5, %v9760_v8 }
 0x253   :  { %v9764_v49 = vpop.permute.xlu1 %3715  ;;  %1987 = vrot.lane.b32.xlu0 %v9469_v24, %s12431_s24 }
 0x255   :  { %3243 = vrot.lane.b32.xlu1 %v3739_v31, %s12358_s22  ;;  %v9769_v25 = vpop.permute.xlu0 %2715 }
 0x257   :  { %v9771_v26 = vpop.permute.xlu1 %3717  ;;  %2065 = vrot.lane.b32.xlu0 %v2051_v22, %s12429_s25  ;;  %v4333_v22 = vld [vmem:[#allocation3 + $0x30] sm:$0xff] }
 0x258   :  { %12565 = vst [vmem:[#allocation50_spill] sm:$0xff] %v9771_v26 }
 0x259   :  { %4417 = vrot.lane.b32.xlu1 %v3667_v47, %s8515_s17  ;;  %v9775_v48 = vpop.permute.xlu0 %2791 }
 0x25b   :  { %v9777_v3 = vpop.permute.xlu1 %4309  ;;  %2451 = vrot.lane.b32.xlu0 %v2438_v12, %s8496_s20 }
 0x25d   :  { %3979 = vrot.lane.b32.xlu1 %v9721_v30, %s12425_s0  ;;  %v9782_v38 = vpop.permute.xlu0 %2867 }
 0x25f   :  { %v9784_v51 = vpop.permute.xlu1 %3279  ;;  %2829 = vrot.lane.b32.xlu0 %v3667_v47, %s12362_s11 }
 0x260   :  { %12566 = vst [vmem:[#allocation31_spill] sm:$0xff] %v9784_v51 }
 0x261   :  { %3981 = vrot.lane.b32.xlu1 %v3739_v31, %s12425_s0  ;;  %v9788_v13 = vpop.permute.xlu0 %2793 }
 0x262   :  { %12567 = vst [vmem:[#allocation12_spill] sm:$0xff] %v9788_v13  ;;  %v5566_v13 = vld [vmem:[%s12344_s3 + $0x18] sm:$0xff] }
 0x263   :  { %v9790_v50 = vpop.permute.xlu1 %4381  ;;  %3391 = vrot.lane.b32.xlu0 %v9469_v24, %s12371_s2 }
 0x265   :  { %5191 = vrot.lane.b32.xlu1 %v9423_v58, %s12437_s13  ;;  %v9796_v5 = vpop.permute.xlu0 %2869 }
 0x266   :  { %12568 = vst [vmem:[#allocation51_spill] sm:$0xff] %v9796_v5 }
 0x267   :  { %v9798_v44 = vpop.permute.xlu1 %4453  ;;  %2367 = vrot.lane.b32.xlu0 %v3739_v31, %s8505_s28 }
 0x268   :  { %12569 = vst [vmem:[#allocation32_spill] sm:$0xff] %v9798_v44 }
 0x269   :  { %5263 = vrot.lane.b32.xlu1 %v3667_v47, %s12433_s15  ;;  %v9802_v2 = vpop.permute.xlu0 %3357 }
 0x26b   :  { %v9804_v53 = vpop.permute.xlu1 %3945  ;;  %3315 = vrot.lane.b32.xlu0 %v2438_v12, %s8503_s26 }
 0x26d   :  { %4825 = vrot.lane.b32.xlu1 %v9721_v30, %s12427_s27  ;;  %v2920_v24 = vpop.permute.xlu0 %2919 }
 0x26e   :  { %2936 = vst.msk [vmem:[#allocation4 + $0x40] sm:$0xff] %vm12396_vm3, %v2920_v24 }
 0x26f   :  { %v9810_v29 = vpop.permute.xlu1 %4017  ;;  %3393 = vrot.lane.b32.xlu0 %v3380_v14, %s12371_s2  ;;  %v3740_v14 = vld [vmem:[#allocation3 + $0x3a] sm:$0xff] }
 0x271   :  { %2453 = vrot.lane.b32.xlu1 %v2439_v40, %s8496_s20  ;;  %v9814_v28 = vpop.permute.xlu0 %2331 }
 0x272   :  { %12570 = vst [vmem:[#allocation13_spill] sm:$0xff] %v9814_v28 }
 0x273   :  { %v9816_v27 = vpop.permute.xlu1 %4089  ;;  %2955 = vrot.lane.b32.xlu0 %v9692_v39, %s12369_s23  ;;  %v3381_v39 = vld [vmem:[#allocation3 + $0x3c] sm:$0x3f] }
 0x275   :  { %2831 = vrot.lane.b32.xlu1 %v2818_v17, %s12362_s11  ;;  %v9821_v15 = vpop.permute.xlu0 %2991 }
 0x277   :  { %v9823_v9 = vpop.permute.xlu1 %5299  ;;  %3607 = vrot.lane.b32.xlu0 %v9423_v58, %s8507_s30 }
 0x278   :  { %12571 = vst [vmem:[#allocation52_spill] sm:$0xff] %v9823_v9 }
 0x279   :  { %2833 = vrot.lane.b32.xlu1 %v2819_v32, %s12362_s11  ;;  %v2922_v47 = vpop.permute.xlu0 %2921  ;;  %s12653_s11 = smov 100  }
 0x27a   :  { %2937 = vst.msk [vmem:[#allocation4 + $0x50] sm:$0x3f] %vm12383_vm6, %v2922_v47 }
 0x27b   :  { %v9829_v31 = vpop.permute.xlu1 %2719  ;;  %2957 = vrot.lane.b32.xlu0 %v2943_v34, %s12369_s23 }
 0x27c   :  { %12572 = vst [vmem:[#allocation33_spill] sm:$0xff] %v9829_v31 }
 0x27d   :  { %3395 = vrot.lane.b32.xlu1 %v3381_v39, %s12371_s2  ;;  %v9833_v1 = vpop.permute.xlu0 %2993  ;;  %v3741_v39 = vld [vmem:[#allocation3 + $0x42] sm:$0x3f] }
 0x27f   :  { %v9835_v36 = vpop.permute.xlu1 %3025  ;;  %3241 = vrot.lane.b32.xlu0 %v9721_v30, %s12358_s22  ;;  %v3669_v30 = vld [vmem:[#allocation3 + $0x41] sm:$0x3f] }
 0x281   :  { %3681 = vrot.lane.b32.xlu1 %v2818_v17, %s12360_s12  ;;  %v9840_v58 = vpop.permute.xlu0 %3645 }
 0x282   :  { %12573 = vst [vmem:[#allocation14_spill] sm:$0xff] %v9840_v58  ;;  %v9973_v58 = vld [vmem:[#allocation3 + $0x49] sm:$0xff] }
 0x283   :  { %v9842_v24 = vpop.permute.xlu1 %2795  ;;  %4345 = vrot.lane.b32.xlu0 %v4333_v22, %s12435_s18 }
 0x284   :  { %12574 = vst [vmem:[#allocation53_spill] sm:$0xff] %v9842_v24 }
 0x285   :  { %3753 = vrot.lane.b32.xlu1 %v3740_v14, %s12356_s14  ;;  %v9846_v40 = vpop.permute.xlu0 %4311  ;;  %v2125_v14 = vld [vmem:[#allocation3 + $0x48] sm:$0xff] }
 0x286   :  { %12575 = vst [vmem:[#allocation34_spill] sm:$0xff] %v9846_v40 }
 0x287   :  { %v9848_v32 = vpop.permute.xlu1 %2871  ;;  %4051 = vrot.lane.b32.xlu0 %v9704_v7, %s12421_s19  ;;  %v4335_v7 = vld [vmem:[#allocation3 + $0x40] sm:$0x3f] }
 0x288   :  { %12576 = vst [vmem:[#allocation15_spill] sm:$0xff] %v9848_v32  ;;  %v4549_v32 = vld [vmem:[#allocation3 + $0x55] sm:$0xff] }
 0x289   :  { %3683 = vrot.lane.b32.xlu1 %v3669_v30, %s12360_s12  ;;  %v9853_v47 = vpop.permute.xlu0 %3281 }
 0x28a   :  { %12577 = vst [vmem:[#allocation54_spill] sm:$0xff] %v9853_v47  ;;  %v3597_v47 = vld [vmem:[#allocation3 + $0x40] sm:$0x3f] }
 0x28b   :  { %v9855_v34 = vpop.permute.xlu1 %3719  ;;  %4053 = vrot.lane.b32.xlu0 %v2438_v12, %s12421_s19  ;;  %v4041_v12 = vld [vmem:[#allocation3 + $0x3b] sm:$0x3f] }
 0x28c   :  { %12578 = vst [vmem:[#allocation35_spill] sm:$0xff] %v9855_v34 }
 0x28d   :  { %3755 = vrot.lane.b32.xlu1 %v3741_v39, %s12356_s14  ;;  %v9859_v22 = vpop.permute.xlu0 %4383 }
 0x28e   :  { %12579 = vst [vmem:[#allocation16_spill] sm:$0xff] %v9859_v22  ;;  %v3087_v22 = vld [vmem:[#allocation3 + $0x59] sm:$0x3f] }
 0x28f   :  { %v9861_v20 = vpop.permute.xlu1 %4313  ;;  %2137 = vrot.lane.b32.xlu0 %v2125_v14, %s12427_s27  ;;  %v9876_v14 = vld [vmem:[#allocation3 + $0x58] sm:$0xff] }
 0x290   :  { %12580 = vst [vmem:[#allocation55_spill] sm:$0xff] %v9861_v20 }
 0x291   :  { %4349 = vrot.lane.b32.xlu1 %v4335_v7, %s12435_s18  ;;  %v9865_v30 = vpop.permute.xlu0 %4455 }
 0x292   :  { %12581 = vst [vmem:[#allocation36_spill] sm:$0xff] %v9865_v30 }
 0x293   :  { %v9867_v0 = vpop.permute.xlu1 %4385  ;;  %2757 = vrot.lane.b32.xlu0 %v2743_v10, %s12364_s10  ;;  %v3159_v10 = vld [vmem:[#allocation3 + $0x5a] sm:$0x3f] }
 0x294   :  { %12582 = vst [vmem:[#allocation17_spill] sm:$0xff] %v9867_v0 }
 0x295   :  { %4055 = vrot.lane.b32.xlu1 %v4041_v12, %s12421_s19  ;;  %v9871_v39 = vpop.permute.xlu0 %3947 }
 0x296   :  { %12583 = vst [vmem:[#allocation56_spill] sm:$0xff] %v9871_v39 }
 0x297   :  { %v9873_v43 = vpop.permute.xlu1 %2755  ;;  %3317 = vrot.lane.b32.xlu0 %v3303_v4, %s8503_s26  ;;  %v3897_v4 = vld [vmem:[#allocation3 + $0x5a] sm:$0x3f] }
 0x298   :  { %12584 = vst [vmem:[#allocation37_spill] sm:$0xff] %v9873_v43 }
 0x299   :  { %2679 = vrot.lane.b32.xlu1 %v9876_v14, %s8514_s16  ;;  %v9880_v7 = vpop.permute.xlu0 %4019 }
 0x29a   :  { %12585 = vst [vmem:[#allocation18_spill] sm:$0xff] %v9880_v7 }
 0x29b   :  { %v9882_v30 = vpop.permute.xlu1 %4347  ;;  %3611 = vrot.lane.b32.xlu0 %v3597_v47, %s8507_s30  ;;  %v4407_v47 = vld [vmem:[#allocation3 + $0x41] sm:$0x3f] }
 0x29c   :  { %12586 = vst [vmem:[#allocation57_spill] sm:$0xff] %v9882_v30 }
 0x29d   :  { %3173 = vrot.lane.b32.xlu1 %v3159_v10, %s12421_s19  ;;  %v9886_v12 = vpop.permute.xlu0 %5227 }
 0x29e   :  { %12587 = vst [vmem:[#allocation38_spill] sm:$0xff] %v9886_v12  ;;  %v4227_v12 = vld [vmem:[#allocation3 + $0x83] sm:$0x3f] }
 0x29f   :  { %v1990_v39 = vpop.permute.xlu1 %1989  ;;  %4419 = vrot.lane.b32.xlu0 %v2818_v17, %s8515_s17  ;;  %v9899_v17 = vld [vmem:[#allocation3 + $0x50] sm:$0xff] }
 0x2a0   :  { %2007 = vst.msk [vmem:[#allocation4 + $0x20] sm:$0x3f] %vm12383_vm6, %v1990_v39  ;;  %vm12406_vm6 = vcmask 654896  }
 0x2a1   :  { %3911 = vrot.lane.b32.xlu1 %v3897_v4, %s12366_s1  ;;  %v1986_v7 = vpop.permute.xlu0 %1985  ;;  %2045 = vst.msk [vmem:[#allocation4 + $0x20] sm:$0x3f] %vm12382_vm7, %v9733_v45  ;;  %v2127_v45 = vld [vmem:[#allocation3 + $0x58] sm:$0x3f] }
 0x2a2   :  { %2004 = vst.msk [vmem:[#allocation4] sm:$0xff] %vm12396_vm3, %v1986_v7 }
 0x2a3   :  { %v9894_v10 = vpop.permute.xlu1 %2063  ;;  %4421 = vrot.lane.b32.xlu0 %v4407_v47, %s8515_s17  ;;  %2042 = vst.msk [vmem:[#allocation4] sm:$0xff] %vm12395_vm8, %v9672_v6  ;;  %v9908_v6 = vld [vmem:[#allocation3 + $0x51] sm:$0xff]  ;;  %v2203_v47 = vld [vmem:[#allocation3 + $0x59] sm:$0x3f] }
 0x2a5   :  { %2139 = vrot.lane.b32.xlu1 %v9899_v17, %s12427_s27  ;;  %v2062_v39 = vpop.permute.xlu0 %2061 }
 0x2a6   :  { %2080 = vst.msk [vmem:[#allocation4] sm:$0xff] %vm12394_vm9, %v2062_v39 }
 0x2a7   :  { %v2450_v7 = vpop.permute.xlu1 %2449  ;;  %2141 = vrot.lane.b32.xlu0 %v2127_v45, %s12427_s27  ;;  %2118 = vst.msk [vmem:[#allocation4] sm:$0xff] %vm12392_vm10, %v9686_v46  ;;  %v9920_v46 = vld [vmem:[#allocation3 + $0x52] sm:$0xff] }
 0x2a8   :  { %2468 = vst.msk [vmem:[#allocation4 + $0x8] sm:$0xff] %vm12391_vm11, %v2450_v7 }
 0x2a9   :  { %2215 = vrot.lane.b32.xlu1 %v9908_v6, %s12423_s29  ;;  %v2954_v4 = vpop.permute.xlu0 %2953  ;;  %2506 = vst.msk [vmem:[#allocation4 + $0x8] sm:$0xff] %vm12390_vm12, %v9653_v16  ;;  %v2279_v16 = vld [vmem:[#allocation3 + $0x5a] sm:$0x3f] }
 0x2aa   :  { %2971 = vst.msk [vmem:[#allocation4 + $0x30] sm:$0xff] %vm12395_vm8, %v2954_v4  ;;  %v9931_v4 = vld [vmem:[#allocation3 + $0x4e] sm:$0xff] }
 0x2ab   :  { %v9915_v39 = vpop.permute.xlu1 %2753  ;;  %3007 = vst.msk [vmem:[#allocation4 + $0x30] sm:$0xff] %vm12394_vm9, %v9688_v62  ;;  %2217 = vrot.lane.b32.xlu0 %v2203_v47, %s12423_s29 }
 0x2ac   :  { %3043 = vst.msk [vmem:[#allocation4 + $0x30] sm:$0xff] %vm12392_vm10, %v9835_v36  ;;  %v2589_v36 = vld [vmem:[#allocation3 + $0x4f] sm:$0xff] }
 0x2ad   :  { %2291 = vrot.lane.b32.xlu1 %v9920_v46, %s8497_s21  ;;  %v9926_v45 = vpop.permute.xlu0 %3647 }
 0x2ae   :  { %12588 = vst [vmem:[#allocation19_spill] sm:$0xff] %v9926_v45  ;;  %v3825_v45 = vld [vmem:[#allocation3 + $0x59] sm:$0x3f] }
 0x2af   :  { %v9928_v7 = vpop.permute.xlu1 %2365  ;;  %2293 = vrot.lane.b32.xlu0 %v2279_v16, %s8497_s21 }
 0x2b1   :  { %2525 = vrot.lane.b32.xlu1 %v9931_v4, %s12437_s13  ;;  %v9935_v62 = vpop.permute.xlu0 %4457 }
 0x2b2   :  { %12589 = vst [vmem:[#allocation58_spill] sm:$0xff] %v9935_v62 }
 0x2b3   :  { %v9937_v47 = vpop.permute.xlu1 %3313  ;;  %3537 = vrot.lane.b32.xlu0 %v9876_v14, %s8515_s17 }
 0x2b4   :  { %3332 = vst.msk [vmem:[#allocation4 + $0x38] sm:$0xff] %vm12389_vm4, %v9937_v47 }
 0x2b5   :  { %3373 = vst.msk [vmem:[#allocation4 + $0x38] sm:$0xff] %vm12391_vm11, %v9659_v54  ;;  %2601 = vrot.lane.b32.xlu1 %v2589_v36, %s12433_s15  ;;  %v9946_v16 = vpop.permute.xlu0 %2369 }
 0x2b6   :  { %12590 = vst [vmem:[#allocation39_spill] sm:$0xff] %v9946_v16  ;;  %v5583_v16 = vld [vmem:[%s12344_s3 + $0xa0] sm:$0xff] }
 0x2b7   :  { %v9948_v30 = vpop.permute.xlu1 %3027  ;;  %3101 = vrot.lane.b32.xlu0 %v3087_v22, %s12425_s0 }
 0x2b9   :  { %2677 = vrot.lane.b32.xlu1 %v9899_v17, %s8514_s16  ;;  %v9953_v40 = vpop.permute.xlu0 %3609 }
 0x2ba   :  { %12591 = vst [vmem:[#allocation20_spill] sm:$0xff] %v9953_v40 }
 0x2bb   :  { %v9955_v34 = vpop.permute.xlu1 %3679  ;;  %4275 = vrot.lane.b32.xlu0 %v9876_v14, %s12371_s2 }
 0x2bd   :  { %3463 = vrot.lane.b32.xlu1 %v2589_v36, %s12435_s18  ;;  %v9960_v54 = vpop.permute.xlu0 %3245 }
 0x2be   :  { %12592 = vst [vmem:[#allocation59_spill] sm:$0xff] %v9960_v54 }
 0x2bf   :  { %v9962_v26 = vpop.permute.xlu1 %3751  ;;  %3839 = vrot.lane.b32.xlu0 %v3825_v45, %s12369_s23  ;;  %v3452_v45 = vld [vmem:[#allocation3 + $0x57] sm:$0xff] }
 0x2c1   :  { %3535 = vrot.lane.b32.xlu1 %v9899_v17, %s8515_s17  ;;  %v9967_v22 = vpop.permute.xlu0 %3983 }
 0x2c2   :  { %12593 = vst [vmem:[#allocation40_spill] sm:$0xff] %v9967_v22  ;;  %v2514_v22 = vld [vmem:[#allocation3 + $0x56] sm:$0xff] }
 0x2c3   :  { %v9969_v62 = vpop.permute.xlu1 %3029  ;;  %5121 = vrot.lane.b32.xlu0 %v9876_v14, %s8496_s20 }
 0x2c5   :  { %3097 = vrot.lane.b32.xlu1 %v9973_v58, %s12425_s0  ;;  %v1988_v54 = vpop.permute.xlu0 %1987 }
 0x2c6   :  { %2005 = vst.msk [vmem:[#allocation4 + $0x10] sm:$0xff] %vm12396_vm3, %v1988_v54  ;;  %v9990_v54 = vld [vmem:[#allocation3 + $0x4a] sm:$0xff] }
 0x2c7   :  { %v9978_v0 = vpop.permute.xlu1 %3243  ;;  %2043 = vst.msk [vmem:[#allocation4 + $0x10] sm:$0xff] %vm12395_vm8, %v9727_v35  ;;  %2213 = vrot.lane.b32.xlu0 %v9973_v58, %s12423_s29 }
 0x2c8   :  { %12594 = vst [vmem:[#allocation21_spill] sm:$0xff] %v9978_v0  ;;  %2081 = vst.msk [vmem:[#allocation4 + $0x10] sm:$0xff] %vm12394_vm9, %v9894_v10 }
 0x2c9   :  { %3465 = vrot.lane.b32.xlu1 %v3452_v45, %s12435_s18  ;;  %v2066_v14 = vpop.permute.xlu0 %2065  ;;  %2119 = vst.msk [vmem:[#allocation4 + $0x10] sm:$0xff] %vm12392_vm10, %v9735_v61 }
 0x2ca   :  { %2083 = vst.msk [vmem:[#allocation4 + $0x20] sm:$0x3f] %vm12381_vm13, %v2066_v14 }
 0x2cb   :  { %v9992_v35 = vpop.permute.xlu1 %4417  ;;  %2289 = vrot.lane.b32.xlu0 %v9990_v54, %s8497_s21  ;;  %2121 = vst.msk [vmem:[#allocation4 + $0x20] sm:$0x3f] %vm12375_vm14, %v9739_v52 }
 0x2cd   :  { %3099 = vrot.lane.b32.xlu1 %v9908_v6, %s12425_s0  ;;  %v2452_v10 = vpop.permute.xlu0 %2451 }
 0x2ce   :  { %2469 = vst.msk [vmem:[#allocation4 + $0x18] sm:$0xff] %vm12391_vm11, %v2452_v10 }
 0x2cf   :  { %v10001_v61 = vpop.permute.xlu1 %3979  ;;  %2527 = vrot.lane.b32.xlu0 %v2514_v22, %s12437_s13  ;;  %2507 = vst.msk [vmem:[#allocation4 + $0x18] sm:$0xff] %vm12390_vm12, %v9754_v19 }
 0x2d1   :  { %4273 = vrot.lane.b32.xlu1 %v9899_v17, %s12371_s2  ;;  %v10008_v14 = vpop.permute.xlu0 %2829 }
 0x2d3   :  { %v10010_v52 = vpop.permute.xlu1 %3981  ;;  %2603 = vrot.lane.b32.xlu0 %v3452_v45, %s12433_s15 }
 0x2d5   :  { %4197 = vrot.lane.b32.xlu1 %v3452_v45, %s8503_s26  ;;  %v3392_v10 = vpop.permute.xlu0 %3391 }
 0x2d6   :  { %3409 = vst.msk [vmem:[#allocation4 + $0x38] sm:$0xff] %vm12390_vm12, %v3392_v10 }
 0x2d7   :  { %v10015_v40 = vpop.permute.xlu1 %5191  ;;  %3169 = vrot.lane.b32.xlu0 %v9990_v54, %s12421_s19 }
 0x2d8   :  { %12595 = vst [vmem:[#allocation60_spill] sm:$0xff] %v10015_v40 }
 0x2d9   :  { %3907 = vrot.lane.b32.xlu1 %v9990_v54, %s12366_s1  ;;  %v10021_v19 = vpop.permute.xlu0 %2367 }
 0x2db   :  { %v10023_v20 = vpop.permute.xlu1 %5263  ;;  %4195 = vrot.lane.b32.xlu0 %v2589_v36, %s8503_s26 }
 0x2dc   :  { %12596 = vst [vmem:[#allocation41_spill] sm:$0xff] %v10023_v20 }
 0x2dd   :  { %3909 = vrot.lane.b32.xlu1 %v9920_v46, %s12366_s1  ;;  %v10028_v45 = vpop.permute.xlu0 %3315  ;;  %s12686_s1 = smov 112  }
 0x2de   :  { %12597 = vst [vmem:[#allocation22_spill] sm:$0xff] %v10028_v45  ;;  %3334 = vst.msk [vmem:[#allocation4 + $0x48] sm:$0xff] %vm12389_vm4, %v10028_v45 }
 0x2df   :  { %v10032_v10 = vpop.permute.xlu1 %4825  ;;  %3374 = vst.msk [vmem:[#allocation4 + $0x48] sm:$0xff] %vm12391_vm11, %v9802_v2  ;;  %3171 = vrot.lane.b32.xlu0 %v9920_v46, %s12421_s19  ;;  %v4477_v46 = vld [vmem:[#allocation3 + $0x54] sm:$0xff]  ;;  %vm12400_vm11 = vcmask 425296  }
 0x2e0   :  { %12598 = vst [vmem:[#allocation61_spill] sm:$0xff] %v10032_v10 }
 0x2e1   :  { %4561 = vrot.lane.b32.xlu1 %v4549_v32, %s12360_s12  ;;  %v3394_v36 = vpop.permute.xlu0 %3393 }
 0x2e2   :  { %3410 = vst.msk [vmem:[#allocation4 + $0x48] sm:$0xff] %vm12390_vm12, %v3394_v36  ;;  %vm12415_vm12 = vcmask 343296  }
 0x2e3   :  { %v2454_v24 = vpop.permute.xlu1 %2453  ;;  %3835 = vrot.lane.b32.xlu0 %v9973_v58, %s12369_s23 }
 0x2e4   :  { %2471 = vst.msk [vmem:[#allocation4 + $0x28] sm:$0x3f] %vm12386_vm15, %v2454_v24 }
 0x2e5   :  { %4633 = vrot.lane.b32.xlu1 %v2514_v22, %s12356_s14  ;;  %v2956_v2 = vpop.permute.xlu0 %2955  ;;  %2509 = vst.msk [vmem:[#allocation4 + $0x28] sm:$0x3f] %vm12385_vm1, %v9716_v37 }
 0x2e6   :  { %2972 = vst.msk [vmem:[#allocation4 + $0x40] sm:$0xff] %vm12395_vm8, %v2956_v2  ;;  %vm2771_vm8 = vcmask 753296  }
 0x2e7   :  { %v10047_v32 = vpop.permute.xlu1 %2831  ;;  %3008 = vst.msk [vmem:[#allocation4 + $0x40] sm:$0xff] %vm12394_vm9, %v9821_v15  ;;  %3837 = vrot.lane.b32.xlu0 %v9908_v6, %s12369_s23  ;;  %s12626_s23 = smov 20   ;;  %vm2733_vm9 = vcmask 671296  }
 0x2e8   :  { %12599 = vst [vmem:[#allocation42_spill] sm:$0xff] %v10047_v32  ;;  %3044 = vst.msk [vmem:[#allocation4 + $0x40] sm:$0xff] %vm12392_vm10, %v9948_v30  ;;  %v3453_v30 = vld [vmem:[#allocation3 + $0x5f] sm:$0x3f]  ;;  %v3193_v32 = vld [vmem:[#allocation3 + $0x6e] sm:$0xff]  ;;  %vm12399_vm10 = vcmask 507296  }
 0x2e9   :  { %5119 = vrot.lane.b32.xlu1 %v9899_v17, %s8496_s20  ;;  %v10057_v24 = vpop.permute.xlu0 %3607 }
 0x2eb   :  { %v10059_v37 = vpop.permute.xlu1 %2833  ;;  %4489 = vrot.lane.b32.xlu0 %v4477_v46, %s8507_s30 }
 0x2ec   :  { %12600 = vst [vmem:[#allocation23_spill] sm:$0xff] %v10059_v37 }
 0x2ed   :  { %4125 = vrot.lane.b32.xlu1 %v2514_v22, %s12358_s22  ;;  %v2958_v36 = vpop.permute.xlu0 %2957  ;;  %v4263_v22 = vld [vmem:[#allocation3 + $0x60] sm:$0x3f] }
 0x2ee   :  { %2973 = vst.msk [vmem:[#allocation4 + $0x50] sm:$0x3f] %vm12382_vm7, %v2958_v36  ;;  %vm12407_vm7 = vcmask 572896  }
 0x2ef   :  { %v3396_v15 = vpop.permute.xlu1 %3395  ;;  %3009 = vst.msk [vmem:[#allocation4 + $0x50] sm:$0x3f] %vm12381_vm13, %v9833_v1  ;;  %4123 = vrot.lane.b32.xlu0 %v9931_v4, %s12358_s22  ;;  %v4550_v4 = vld [vmem:[#allocation3 + $0x5d] sm:$0xff]  ;;  %s12635_s22 = smov 102   ;;  %vm12387_vm13 = vcmask 259248  }
 0x2f0   :  { %3045 = vst.msk [vmem:[#allocation4 + $0x50] sm:$0x3f] %vm12375_vm14, %v9969_v62  ;;  %vm12416_vm14 = vcmask 261296  }
 0x2f1   :  { %3467 = vrot.lane.b32.xlu1 %v3453_v30, %s12435_s18  ;;  %v10071_v17 = vpop.permute.xlu0 %3241 }
 0x2f3   :  { %v10073_v2 = vpop.permute.xlu1 %3681  ;;  %4681 = vrot.lane.b32.xlu0 %v9973_v58, %s12431_s24  ;;  %v4622_v58 = vld [vmem:[#allocation3 + $0x5e] sm:$0xff] }
 0x2f4   :  { %12601 = vst [vmem:[#allocation62_spill] sm:$0xff] %v10073_v2 }
 0x2f5   :  { %4277 = vrot.lane.b32.xlu1 %v4263_v22, %s12371_s2  ;;  %v10078_v1 = vpop.permute.xlu0 %4345  ;;  %v2515_v22 = vld [vmem:[#allocation3 + $0x5e] sm:$0x3f]  ;;  %s12625_s2 = smov 12  }
 0x2f7   :  { %v10080_v46 = vpop.permute.xlu1 %3753  ;;  %4753 = vrot.lane.b32.xlu0 %v9990_v54, %s12429_s25  ;;  %v4551_v54 = vld [vmem:[#allocation3 + $0x65] sm:$0x3f] }
 0x2f8   :  { %12602 = vst [vmem:[#allocation43_spill] sm:$0xff] %v10080_v46 }
 0x2f9   :  { %4563 = vrot.lane.b32.xlu1 %v4550_v4, %s12360_s12  ;;  %v10085_v62 = vpop.permute.xlu0 %4051 }
 0x2fb   :  { %v10087_v36 = vpop.permute.xlu1 %3683  ;;  %4683 = vrot.lane.b32.xlu0 %v9908_v6, %s12431_s24  ;;  %v10102_v6 = vld [vmem:[#allocation3 + $0x78] sm:$0xff] }
 0x2fc   :  { %12603 = vst [vmem:[#allocation24_spill] sm:$0xff] %v10087_v36  ;;  %v2591_v36 = vld [vmem:[#allocation3 + $0x5f] sm:$0x3f]  ;;  %12606 = vst [vmem:[#allocation25_spill] sm:$0xff] %v10102_v6 }
 0x2fd   :  { %4635 = vrot.lane.b32.xlu1 %v4622_v58, %s12356_s14  ;;  %v10092_v30 = vpop.permute.xlu0 %4053  ;;  %s12628_s14 = smov 82  }
 0x2ff   :  { %v10094_v46 = vpop.permute.xlu1 %3755  ;;  %2529 = vrot.lane.b32.xlu0 %v2515_v22, %s12437_s13  ;;  %v5594_v22 = vld [vmem:[%s12344_s3 + $0xf8] sm:$0xff] }
 0x300   :  { %12604 = vst [vmem:[#allocation63_spill] sm:$0xff] %v10094_v46  ;;  %7795 = vmatprep.subr.mxu1 %v5594_v22  ;;  %v10128_v22 = vld [vmem:[#allocation3 + $0x75] sm:$0xff] }
 0x301   :  { %4565 = vrot.lane.b32.xlu1 %v4551_v54, %s12360_s12  ;;  %v2138_v4 = vpop.permute.xlu0 %2137  ;;  %v5578_v54 = vld [vmem:[%s12344_s3 + $0x78] sm:$0xff]  ;;  %s12627_s12 = smov 40  }
 0x302   :  { %2156 = vst.msk [vmem:[#allocation4] sm:$0xff] %vm12408_vm2, %v2138_v4  ;;  %v2667_v4 = vld [vmem:[#allocation3 + $0x60] sm:$0x3f]  ;;  %7796 = vmatpush3.msra.mxu1 %v5578_v54 }
 0x303   :  { %v10099_v2 = vpop.permute.xlu1 %4349  ;;  %2605 = vrot.lane.b32.xlu0 %v2591_v36, %s12433_s15 }
 0x304   :  { %12605 = vst [vmem:[#allocation44_spill] sm:$0xff] %v10099_v2  ;;  %v3525_v2 = vld [vmem:[#allocation3 + $0x60] sm:$0x3f] }
 0x305   :  { %4525 = vrot.lane.b32.xlu1 %v10102_v6, %s12364_s10  ;;  %v10106_v58 = vpop.permute.xlu0 %2757  ;;  %s12740_s10 = smov 92  }
 0x306   :  { %12607 = vst [vmem:[#allocation64_spill] sm:$0xff] %v10106_v58  ;;  %v5591_v58 = vld [vmem:[%s12344_s3 + $0xe0] sm:$0xff] }
 0x307   :  { %v10114_v46 = vpop.permute.xlu1 %4055  ;;  %2681 = vrot.lane.b32.xlu0 %v2667_v4, %s8514_s16  ;;  %v4185_v4 = vld [vmem:[#allocation3 + $0x5f] sm:$0x3f] }
 0x308   :  { %12608 = vst [vmem:[#allocation45_spill] sm:$0xff] %v10114_v46  ;;  %v5593_v46 = vld [vmem:[%s12344_s3 + $0xf0] sm:$0xff] }
 0x309   :  { %2177 = vrot.lane.b32.xlu1 %v9524_v60, %s12425_s0  ;;  %v10119_v36 = vpop.permute.xlu0 %3317  ;;  %7797 = vmatprep.subr.mxu1 %v5593_v46  ;;  %v5575_v46 = vld [vmem:[%s12344_s3 + $0x60] sm:$0xff] }
 0x30a   :  { %12609 = vst [vmem:[#allocation26_spill] sm:$0xff] %v10119_v36  ;;  %3336 = vst.msk [vmem:[#allocation4 + $0x58] sm:$0x3f] %vm12393_vm5, %v10119_v36 }
 0x30b   :  { %v10123_v37 = vpop.permute.xlu1 %2679  ;;  %3375 = vst.msk [vmem:[#allocation4 + $0x58] sm:$0x3f] %vm12386_vm15, %v9718_v59  ;;  %3539 = vrot.lane.b32.xlu0 %v3525_v2, %s8515_s17  ;;  %v5577_v59 = vld [vmem:[%s12344_s3 + $0x70] sm:$0xff]  ;;  %v5592_v2 = vld [vmem:[%s12344_s3 + $0xe8] sm:$0xff]  ;;  %vm12403_vm15 = vcmask 900896  }
 0x30c   :  { %12610 = vst [vmem:[#allocation65_spill] sm:$0xff] %v10123_v37  ;;  %3411 = vst.msk [vmem:[#allocation4 + $0x58] sm:$0x3f] %vm12385_vm1, %v3396_v15  ;;  %v5576_v15 = vld [vmem:[%s12344_s3 + $0x68] sm:$0xff]  ;;  %7798 = vmatpush3.msra.mxu1 %v5577_v59  ;;  %v5590_v59 = vld [vmem:[%s12344_s3 + $0xd8] sm:$0xff]  ;;  %vm12404_vm1 = vcmask 818896  }
 0x30d   :  { %2253 = vrot.lane.b32.xlu1 %v10128_v22, %s12421_s19  ;;  %v10133_v54 = vpop.permute.xlu0 %3611  ;;  %7799 = vmatprep.subr.mxu1 %v5592_v2  ;;  %v10171_v2 = vld [vmem:[#allocation3 + $0x73] sm:$0xff] }
 0x30e   :  { %12611 = vst [vmem:[#allocation46_spill] sm:$0xff] %v10133_v54  ;;  %v10150_v54 = vld [vmem:[#allocation3 + $0x72] sm:$0xff]  ;;  %7800 = vmatpush3.msra.mxu1 %v5576_v15 }
 0x30f   :  { %v10144_v36 = vpop.permute.xlu1 %3173  ;;  %4199 = vrot.lane.b32.xlu0 %v4185_v4, %s8503_s26  ;;  %v4478_v4 = vld [vmem:[#allocation3 + $0x5c] sm:$0xff]  ;;  %7801 = vmatprep.subr.mxu1 %v5591_v58  ;;  %v5589_v15 = vld [vmem:[%s12344_s3 + $0xd0] sm:$0xff] }
 0x310   :  { %12612 = vst [vmem:[#allocation27_spill] sm:$0xff] %v10144_v36  ;;  %7802 = vmatpush3.msra.mxu1 %v5575_v46  ;;  %v5573_v58 = vld [vmem:[%s12344_s3 + $0x50] sm:$0xff]  ;;  %v5588_v46 = vld [vmem:[%s12344_s3 + $0xc8] sm:$0xff] }
 0x311   :  { %2563 = vrot.lane.b32.xlu1 %v10150_v54, %s12435_s18  ;;  %v10157_v31 = vpop.permute.xlu0 %4419  ;;  %7803 = vmatprep.subr.mxu1 %v5590_v59 }
 0x312   :  { %12613 = vst [vmem:[#allocation66_spill] sm:$0xff] %v10157_v31  ;;  %v5574_v31 = vld [vmem:[%s12344_s3 + $0x58] sm:$0xff] }
 0x313   :  { %v10165_v36 = vpop.permute.xlu1 %3911  ;;  %4491 = vrot.lane.b32.xlu0 %v4478_v4, %s8507_s30  ;;  %v4479_v4 = vld [vmem:[#allocation3 + $0x64] sm:$0x3f]  ;;  %7804 = vmatpush3.msra.mxu1 %v5574_v31 }
 0x314   :  { %12614 = vst [vmem:[#allocation47_spill] sm:$0xff] %v10165_v36  ;;  %7805 = vmatprep.subr.mxu1 %v5589_v15  ;;  %v5587_v31 = vld [vmem:[%s12344_s3 + $0xc0] sm:$0xff] }
 0x315   :  { %2639 = vrot.lane.b32.xlu1 %v10171_v2, %s8515_s17  ;;  %v10178_v8 = vpop.permute.xlu0 %4421  ;;  %7806 = vmatpush3.msra.mxu1 %v5573_v58  ;;  %v5571_v15 = vld [vmem:[%s12344_s3 + $0x40] sm:$0xff] }
 0x316   :  { %12615 = vst [vmem:[#allocation28_spill] sm:$0xff] %v10178_v8  ;;  %v5572_v8 = vld [vmem:[%s12344_s3 + $0x48] sm:$0xff]  ;;  %7807 = vmatprep.subr.mxu1 %v5588_v46 }
 0x317   :  { %v2140_v36 = vpop.permute.xlu1 %2139  ;;  %4493 = vrot.lane.b32.xlu0 %v4479_v4, %s8507_s30  ;;  %7808 = vmatpush3.msra.mxu1 %v5572_v8  ;;  %v5570_v4 = vld [vmem:[%s12344_s3 + $0x38] sm:$0xff]  ;;  %v5585_v8 = vld [vmem:[%s12344_s3 + $0xb0] sm:$0xff] }
 0x318   :  { %2157 = vst.msk [vmem:[#allocation4 + $0x10] sm:$0xff] %vm12408_vm2, %v2140_v36  ;;  %v5586_v36 = vld [vmem:[%s12344_s3 + $0xb8] sm:$0xff]  ;;  %7809 = vmatprep.subr.mxu1 %v5587_v31  ;;  %v10220_v31 = vld [vmem:[#allocation3 + $0x6d] sm:$0xff] }
 0x319   :  { %3427 = vrot.lane.b32.xlu1 %v10150_v54, %s12437_s13  ;;  %v2142_v59 = vpop.permute.xlu0 %2141  ;;  %7810 = vmatpush3.msra.mxu1 %v5571_v15  ;;  %v5584_v15 = vld [vmem:[%s12344_s3 + $0xa8] sm:$0xff] }
 0x31a   :  { %2159 = vst.msk [vmem:[#allocation4 + $0x20] sm:$0x3f] %vm12384_vm0, %v2142_v59  ;;  %7811 = vmatprep.subr.mxu1 %v5586_v36  ;;  %v5569_v59 = vld [vmem:[%s12344_s3 + $0x30] sm:$0xff]  ;;  %v5568_v36 = vld [vmem:[%s12344_s3 + $0x28] sm:$0xff]  ;;  %vm12405_vm0 = vcmask 736896  }
 0x31b   :  { %v10203_v58 = vpop.permute.xlu1 %2215  ;;  %2175 = vrot.lane.b32.xlu0 %v9540_v23, %s12425_s0  ;;  %7812 = vmatpush3.msra.mxu1 %v5570_v4 }
 0x31c   :  { %7813 = vmatprep.subr.mxu1 %v5585_v8  ;;  %v5567_v8 = vld [vmem:[%s12344_s3 + $0x20] sm:$0xff] }
 0x31d   :  { %3499 = vrot.lane.b32.xlu1 %v10171_v2, %s12433_s15  ;;  %v10212_v46 = vpop.permute.xlu0 %2217  ;;  %7814 = vmatpush3.msra.mxu1 %v5569_v59  ;;  %v5582_v59 = vld [vmem:[%s12344_s3 + $0x98] sm:$0xff] }
 0x31e   :  { %12616 = vst [vmem:[#allocation67_spill] sm:$0xff] %v10212_v46  ;;  %7815 = vmatprep.subr.mxu1 %v5584_v15  ;;  %v5581_v15 = vld [vmem:[%s12344_s3 + $0x90] sm:$0xff]  ;;  %v2629_v46 = vld [vmem:[#allocation3 + $0x83] sm:$0x3f] }
 0x31f   :  { %v10225_v5 = vpop.permute.xlu1 %2291  ;;  %2251 = vrot.lane.b32.xlu0 %v10220_v31, %s12421_s19  ;;  %7816 = vmatpush3.msra.mxu1 %v5568_v36 }
 0x320   :  { %7817 = vmatprep.subr.mxu1 %v5583_v16  ;;  %v5565_v16 = vld [vmem:[%s12344_s3 + $0x10] sm:$0xff] }
 0x321   :  { %3061 = vrot.lane.b32.xlu1 %v9540_v23, %s12427_s27  ;;  %v10237_v4 = vpop.permute.xlu0 %2293  ;;  %7818 = vmatpush3.msra.mxu1 %v5567_v8 }
 0x322   :  { %12617 = vst [vmem:[#allocation68_spill] sm:$0xff] %v10237_v4  ;;  %7819 = vmatprep.subr.mxu1 %v5582_v59  ;;  %v5579_v59 = vld [vmem:[%s12344_s3 + $0x80] sm:$0xff] }
 0x323   :  { %v2526_v28 = vpop.permute.xlu1 %2525  ;;  %3205 = vrot.lane.b32.xlu0 %v3193_v32, %s8497_s21  ;;  %7820 = vmatpush3.msra.mxu1 %v5566_v13 }
 0x324   :  { %2544 = vst.msk [vmem:[#allocation4 + $0x8] sm:$0xff] %vm12416_vm14, %v2526_v28  ;;  %v5580_v28 = vld [vmem:[%s12344_s3 + $0x88] sm:$0xff]  ;;  %7821 = vmatprep.subr.mxu1 %v5581_v15 }
 0x325   :  { %3571 = vrot.lane.b32.xlu1 %v9524_v60, %s8514_s16  ;;  %v10255_v36 = vpop.permute.xlu0 %3537  ;;  %7822 = vmatpush3.msra.mxu1 %v5565_v16 }
 0x326   :  { %12618 = vst [vmem:[#allocation69_spill] sm:$0xff] %v10255_v36  ;;  %v5564_v36 = vld [vmem:[%s12344_s3 + $0x8] sm:$0xff]  ;;  %7823 = vmatprep.subr.mxu1 %v5580_v28 }
 0x327   :  { %v10263_v8 = vpop.permute.xlu1 %2601  ;;  %3799 = vrot.lane.b32.xlu0 %v9540_v23, %s12431_s24  ;;  %v5563_v23 = vld [vmem:[%s12344_s3] sm:$0xff]  ;;  %7824 = vmatpush3.msra.mxu1 %v5564_v36 }
 0x328   :  { %7825 = vmatprep.subr.mxu1 %v5579_v59 }
 0x329   :  { %3133 = vrot.lane.b32.xlu1 %v10220_v31, %s12423_s29  ;;  %v10275_v13 = vpop.permute.xlu0 %3101  ;;  %7826 = vmatpush3.msra.mxu1 %v5563_v23 }
 0x32a   :  { %12619 = vst [vmem:[#allocation70_spill] sm:$0xff] %v10275_v13 }
 0x32b   :  { %v10280_v15 = vpop.permute.xlu1 %2677  ;;  %3871 = vrot.lane.b32.xlu0 %v10220_v31, %s12429_s25 }
 0x32d   :  { %3063 = vrot.lane.b32.xlu1 %v9524_v60, %s12427_s27  ;;  %v10286_v16 = vpop.permute.xlu0 %4275 }
 0x32e   :  { %12620 = vst [vmem:[#allocation71_spill] sm:$0xff] %v10286_v16  ;;  %v10308_v16 = vld [vmem:[#allocation3 + $0x76] sm:$0xff] }
 0x32f   :  { %v10288_v4 = vpop.permute.xlu1 %3463  ;;  %3801 = vrot.lane.b32.xlu0 %v9524_v60, %s12431_s24  ;;  %12623 = vst [vmem:[#allocation74_spill] sm:$0xff] %v10308_v16 }
 0x331   :  { %3135 = vrot.lane.b32.xlu1 %v10128_v22, %s12423_s29  ;;  %v10294_v36 = vpop.permute.xlu0 %3839 }
 0x332   :  { %12621 = vst [vmem:[#allocation72_spill] sm:$0xff] %v10294_v36 }
 0x333   :  { %v10296_v28 = vpop.permute.xlu1 %3535  ;;  %3873 = vrot.lane.b32.xlu0 %v10128_v22, %s12429_s25 }
 0x335   :  { %4237 = vrot.lane.b32.xlu1 %v10171_v2, %s8496_s20  ;;  %v10302_v59 = vpop.permute.xlu0 %5121 }
 0x336   :  { %12622 = vst [vmem:[#allocation73_spill] sm:$0xff] %v10302_v59 }
 0x337   :  { %v10304_v23 = vpop.permute.xlu1 %3097  ;;  %4159 = vrot.lane.b32.xlu0 %v10150_v54, %s8505_s28 }
 0x339   :  { %3207 = vrot.lane.b32.xlu1 %v10308_v16, %s8497_s21  ;;  %v10312_v36 = vpop.permute.xlu0 %2213  ;;  %v4515_v16 = vld [vmem:[#allocation3 + $0x88] sm:$0x3f] }
 0x33b   :  { %v10314_v13 = vpop.permute.xlu1 %3465  ;;  %5077 = vrot.lane.b32.xlu0 %v10171_v2, %s8503_s26  ;;  %v2552_v2 = vld [vmem:[#allocation3 + $0x7a] sm:$0xff] }
 0x33c   :  { %12624 = vst [vmem:[#allocation75_spill] sm:$0xff] %v10314_v13 }
 0x33d   :  { %5155 = vrot.lane.b32.xlu1 %v9524_v60, %s12625_s2  ;;  %v10320_v59 = vpop.permute.xlu0 %2289 }
 0x33f   :  { %v10322_v43 = vpop.permute.xlu1 %3099  ;;  %4717 = vrot.lane.b32.xlu0 %v10220_v31, %s12626_s23 }
 0x341   :  { %4789 = vrot.lane.b32.xlu1 %v3193_v32, %s12627_s12  ;;  %v2528_v54 = vpop.permute.xlu0 %2527  ;;  %v2628_v32 = vld [vmem:[#allocation3 + $0x7b] sm:$0xff] }
 0x342   :  { %2545 = vst.msk [vmem:[#allocation4 + $0x18] sm:$0xff] %vm12416_vm14, %v2528_v54  ;;  %v2241_v54 = vld [vmem:[#allocation3 + $0x7d] sm:$0x3f] }
 0x343   :  { %v10328_v13 = vpop.permute.xlu1 %4273  ;;  %4529 = vrot.lane.b32.xlu0 %v4515_v16, %s12628_s14 }
 0x345   :  { %2565 = vrot.lane.b32.xlu1 %v2552_v2, %s12435_s18  ;;  %v10332_v60 = vpop.permute.xlu0 %2603 }
 0x346   :  { %12629 = vst [vmem:[#allocation76_spill] sm:$0xff] %v10332_v60  ;;  %v3417_v60 = vld [vmem:[#allocation3 + $0x82] sm:$0x3f] }
 0x347   :  { %v10334_v37 = vpop.permute.xlu1 %4197  ;;  %2179 = vrot.lane.b32.xlu0 %v2165_v33, %s12425_s0  ;;  %v2553_v33 = vld [vmem:[#allocation3 + $0x82] sm:$0x3f] }
 0x348   :  { %12630 = vst [vmem:[#allocation77_spill] sm:$0xff] %v10334_v37  ;;  %4216 = vst.msk [vmem:[#allocation4 + $0x78] sm:$0xff] %vm12389_vm4, %v10334_v37 }
 0x349   :  { %2641 = vrot.lane.b32.xlu1 %v2628_v32, %s8515_s17  ;;  %v10340_v31 = vpop.permute.xlu0 %3169 }
 0x34b   :  { %v10342_v16 = vpop.permute.xlu1 %3907  ;;  %2255 = vrot.lane.b32.xlu0 %v2241_v54, %s12421_s19 }
 0x34d   :  { %2643 = vrot.lane.b32.xlu1 %v2629_v46, %s8515_s17  ;;  %v10346_v6 = vpop.permute.xlu0 %4195  ;;  %v3489_v46 = vld [vmem:[#allocation3 + $0x83] sm:$0x3f] }
 0x34e   :  { %4214 = vst.msk [vmem:[#allocation4 + $0x68] sm:$0xff] %vm12389_vm4, %v10346_v6  ;;  %vm12397_vm4 = vcmask 1048512  }
 0x34f   :  { %v10350_v37 = vpop.permute.xlu1 %3909  ;;  %2567 = vrot.lane.b32.xlu0 %v2553_v33, %s12435_s18 }
 0x351   :  { %3431 = vrot.lane.b32.xlu1 %v3417_v60, %s12437_s13  ;;  %v10354_v10 = vpop.permute.xlu0 %3171  ;;  %v3560_v60 = vld [vmem:[#allocation3 + $0x7c] sm:$0xff] }
 0x353   :  { %v10356_v9 = vpop.permute.xlu1 %4561  ;;  %3429 = vrot.lane.b32.xlu0 %v2552_v2, %s12437_s13 }
 0x354   :  { %12631 = vst [vmem:[#allocation78_spill] sm:$0xff] %v10356_v9  ;;  %v10371_v9 = vld [vmem:[#allocation3 + $0x79] sm:$0xff] }
 0x355   :  { %3503 = vrot.lane.b32.xlu1 %v3489_v46, %s12433_s15  ;;  %v10360_v54 = vpop.permute.xlu0 %3835  ;;  %12634 = vst [vmem:[#allocation81_spill] sm:$0xff] %v10371_v9 }
 0x357   :  { %v10362_v20 = vpop.permute.xlu1 %4633  ;;  %3501 = vrot.lane.b32.xlu0 %v2628_v32, %s12433_s15 }
 0x358   :  { %12632 = vst [vmem:[#allocation79_spill] sm:$0xff] %v10362_v20  ;;  %v3051_v20 = vld [vmem:[#allocation3 + $0x7c] sm:$0x3f] }
 0x359   :  { %4241 = vrot.lane.b32.xlu1 %v4227_v12, %s8496_s20  ;;  %v10366_v33 = vpop.permute.xlu0 %3837  ;;  %v4586_v12 = vld [vmem:[#allocation3 + $0x81] sm:$0xff] }
 0x35b   :  { %v10368_v40 = vpop.permute.xlu1 %5119  ;;  %3573 = vrot.lane.b32.xlu0 %v3560_v60, %s8514_s16 }
 0x35c   :  { %12633 = vst [vmem:[#allocation80_spill] sm:$0xff] %v10368_v40  ;;  %v3561_v40 = vld [vmem:[#allocation3 + $0x84] sm:$0x3f] }
 0x35d   :  { %4597 = vrot.lane.b32.xlu1 %v10371_v9, %s12635_s22  ;;  %v10375_v46 = vpop.permute.xlu0 %4489 }
 0x35e   :  { %12636 = vst [vmem:[#allocation82_spill] sm:$0xff] %v10375_v46  ;;  %v3123_v46 = vld [vmem:[#allocation3 + $0x7d] sm:$0x3f] }
 0x35f   :  { %v10377_v45 = vpop.permute.xlu1 %4125  ;;  %3065 = vrot.lane.b32.xlu0 %v3051_v20, %s12427_s27 }
 0x361   :  { %4599 = vrot.lane.b32.xlu1 %v4586_v12, %s12635_s22  ;;  %v10381_v51 = vpop.permute.xlu0 %4123 }
 0x363   :  { %v10383_v44 = vpop.permute.xlu1 %3467  ;;  %3575 = vrot.lane.b32.xlu0 %v3561_v40, %s8514_s16 }
 0x364   :  { %12637 = vst [vmem:[#allocation83_spill] sm:$0xff] %v10383_v44  ;;  %v2014_v44 = vld [vmem:[#allocation3 + $0x91] sm:$0xff] }
 0x365   :  { %4161 = vrot.lane.b32.xlu1 %v2552_v2, %s8505_s28  ;;  %v4682_v9 = vpop.permute.xlu0 %4681 }
 0x366   :  { %4699 = vst.msk [vmem:[#allocation4 + $0x90] sm:$0xff] %vm12396_vm3, %v4682_v9  ;;  %v3195_v9 = vld [vmem:[#allocation3 + $0x7e] sm:$0x3f] }
 0x367   :  { %v10388_v0 = vpop.permute.xlu1 %4277  ;;  %3137 = vrot.lane.b32.xlu0 %v3123_v46, %s12423_s29  ;;  %v2090_v46 = vld [vmem:[#allocation3 + $0x92] sm:$0xff] }
 0x368   :  { %12638 = vst [vmem:[#allocation84_spill] sm:$0xff] %v10388_v0 }
 0x369   :  { %5079 = vrot.lane.b32.xlu1 %v2628_v32, %s8503_s26  ;;  %v10392_v20 = vpop.permute.xlu0 %4753 }
 0x36a   :  { %12639 = vst [vmem:[#allocation85_spill] sm:$0xff] %v10392_v20 }
 0x36b   :  { %v10394_v12 = vpop.permute.xlu1 %4563  ;;  %4239 = vrot.lane.b32.xlu0 %v2628_v32, %s8496_s20 }
 0x36c   :  { %12640 = vst [vmem:[#allocation86_spill] sm:$0xff] %v10394_v12  ;;  %v3789_v12 = vld [vmem:[#allocation3 + $0x7c] sm:$0x3f] }
 0x36d   :  { %2029 = vrot.lane.b32.xlu1 %v2014_v44, %s12626_s23  ;;  %v4684_v40 = vpop.permute.xlu0 %4683  ;;  %v2016_v44 = vld [vmem:[#allocation3 + $0xa1] sm:$0x3f] }
 0x36e   :  { %4700 = vst.msk [vmem:[#allocation4 + $0xa0] sm:$0xff] %vm12396_vm3, %v4684_v40  ;;  %vm2809_vm3 = vcmask 835296  }
 0x36f   :  { %v10399_v2 = vpop.permute.xlu1 %4635  ;;  %3209 = vrot.lane.b32.xlu0 %v3195_v9, %s8497_s21  ;;  %v2092_v9 = vld [vmem:[#allocation3 + $0xa2] sm:$0x3f] }
 0x370   :  { %12641 = vst [vmem:[#allocation87_spill] sm:$0xff] %v10399_v2  ;;  %v3861_v2 = vld [vmem:[#allocation3 + $0x7d] sm:$0x3f] }
 0x371   :  { %2105 = vrot.lane.b32.xlu1 %v2090_v46, %s12627_s12  ;;  %v2530_v0 = vpop.permute.xlu0 %2529  ;;  %v10416_v46 = vld [vmem:[#allocation3 + $0x80] sm:$0xff] }
 0x372   :  { %2547 = vst.msk [vmem:[#allocation4 + $0x28] sm:$0x3f] %vm12387_vm13, %v2530_v0  ;;  %12642 = vst [vmem:[#allocation88_spill] sm:$0xff] %v10416_v46  ;;  %vm12398_vm13 = vcmask 982896  }
 0x373   :  { %v10404_v32 = vpop.permute.xlu1 %4565  ;;  %3803 = vrot.lane.b32.xlu0 %v3789_v12, %s12431_s24 }
 0x375   :  { %2033 = vrot.lane.b32.xlu1 %v2016_v44, %s12626_s23  ;;  %v10408_v40 = vpop.permute.xlu0 %2605  ;;  %v1976_v44 = vld [vmem:[#allocation3 + $0xb4] sm:$0xff] }
 0x377   :  { %v10410_v20 = vpop.permute.xlu1 %4525  ;;  %3875 = vrot.lane.b32.xlu0 %v3861_v2, %s12429_s25 }
 0x379   :  { %2109 = vrot.lane.b32.xlu1 %v2092_v9, %s12627_s12  ;;  %v10414_v0 = vpop.permute.xlu0 %2681 }
 0x37b   :  { %v2178_v12 = vpop.permute.xlu1 %2177  ;;  %4527 = vrot.lane.b32.xlu0 %v10416_v46, %s12628_s14  ;;  %v2052_v46 = vld [vmem:[#allocation3 + $0xb5] sm:$0xff] }
 0x37c   :  { %2195 = vst.msk [vmem:[#allocation4 + $0x10] sm:$0xff] %vm12407_vm7, %v2178_v12 }
 0x37d   :  { %1991 = vrot.lane.b32.xlu1 %v1976_v44, %s12431_s24  ;;  %2233 = vst.msk [vmem:[#allocation4 + $0x10] sm:$0xff] %vm12406_vm6, %v10203_v58  ;;  %v10424_v2 = vpop.permute.xlu0 %3539  ;;  %v1977_v44 = vld [vmem:[#allocation3 + $0xbc] sm:$0xff] }
 0x37f   :  { %v2254_v9 = vpop.permute.xlu1 %2253  ;;  %5157 = vrot.lane.b32.xlu0 %v3560_v60, %s12625_s2  ;;  %v2015_v60 = vld [vmem:[#allocation3 + $0x99] sm:$0xff] }
 0x380   :  { %2271 = vst.msk [vmem:[#allocation4 + $0x10] sm:$0xff] %vm12405_vm0, %v2254_v9 }
 0x381   :  { %2309 = vst.msk [vmem:[#allocation4 + $0x10] sm:$0xff] %vm12404_vm1, %v10225_v5  ;;  %2067 = vrot.lane.b32.xlu1 %v2052_v46, %s12429_s25  ;;  %v10431_v58 = vpop.permute.xlu0 %4199  ;;  %v1978_v5 = vld [vmem:[#allocation3 + $0xc4] sm:$0x3f]  ;;  %v2091_v46 = vld [vmem:[#allocation3 + $0x9a] sm:$0xff] }
 0x382   :  { %2347 = vst.msk [vmem:[#allocation4 + $0x10] sm:$0xff] %vm12403_vm15, %v9750_v21 }
 0x383   :  { %4218 = vst.msk [vmem:[#allocation4 + $0x88] sm:$0x3f] %vm12393_vm5, %v10431_v58  ;;  %v2564_v12 = vpop.permute.xlu1 %2563  ;;  %2031 = vrot.lane.b32.xlu0 %v2015_v60, %s12626_s23  ;;  %vm2695_vm5 = vcmask 589296  }
 0x384   :  { %2385 = vst.msk [vmem:[#allocation4 + $0x10] sm:$0xff] %vm12398_vm13, %v10021_v19  ;;  %vm12401_vm13 = vcmask 999296  }
 0x385   :  { %2425 = vst.msk [vmem:[#allocation4 + $0x10] sm:$0xff] %vm12397_vm4, %v9746_v63  ;;  %1995 = vrot.lane.b32.xlu1 %v1978_v5, %s12431_s24  ;;  %v10446_v21 = vpop.permute.xlu0 %4491  ;;  %v2054_v63 = vld [vmem:[#allocation3 + $0xc5] sm:$0x3f]  ;;  %vm12402_vm4 = vcmask 917296  }
 0x386   :  { %2582 = vst.msk [vmem:[#allocation4 + $0x8] sm:$0xff] %vm12415_vm12, %v2564_v12 }
 0x387   :  { %2620 = vst.msk [vmem:[#allocation4 + $0x8] sm:$0xff] %vm12400_vm11, %v10263_v8  ;;  %v2640_v19 = vpop.permute.xlu1 %2639  ;;  %2107 = vrot.lane.b32.xlu0 %v2091_v46, %s12627_s12  ;;  %v10619_v46 = vld [vmem:[#allocation3 + $0x32] sm:$0xff] }
 0x388   :  { %2658 = vst.msk [vmem:[#allocation4 + $0x8] sm:$0xff] %vm12399_vm10, %v2640_v19  ;;  %v12680_v19 = vld [vmem:[#allocation52_spill] sm:$0xff] }
 0x389   :  { %2696 = vst.msk [vmem:[#allocation4 + $0x8] sm:$0xff] %vm2695_vm5, %v10280_v15  ;;  %2071 = vrot.lane.b32.xlu1 %v2054_v63, %s12429_s25  ;;  %v10453_v8 = vpop.permute.xlu0 %4493  ;;  %v2128_v15 = vld [vmem:[#allocation3 + $0xd8] sm:$0xff] }
 0x38a   :  { %2734 = vst.msk [vmem:[#allocation4 + $0x8] sm:$0xff] %vm2733_vm9, %v9769_v25  ;;  %v12683_v63 = vld [vmem:[#allocation61_spill] sm:$0xff] }
 0x38b   :  { %2772 = vst.msk [vmem:[#allocation4 + $0x8] sm:$0xff] %vm2771_vm8, %v9915_v39  ;;  %v3428_v9 = vpop.permute.xlu1 %3427  ;;  %1993 = vrot.lane.b32.xlu0 %v1977_v44, %s12431_s24  ;;  %v2053_v39 = vld [vmem:[#allocation3 + $0xbd] sm:$0xff] }
 0x38c   :  { %2810 = vst.msk [vmem:[#allocation4 + $0x8] sm:$0xff] %vm2809_vm3, %v9775_v48  ;;  %v2130_v48 = vld [vmem:[#allocation3 + $0xe8] sm:$0x3f] }
 0x38d   :  { %3445 = vst.msk [vmem:[#allocation4 + $0x38] sm:$0xff] %vm12416_vm14, %v3428_v9  ;;  %2143 = vrot.lane.b32.xlu1 %v2128_v15, %s12427_s27  ;;  %v2176_v25 = vpop.permute.xlu0 %2175  ;;  %v5067_v9 = vld [vmem:[#allocation3 + $0x83] sm:$0x3f] }
 0x38e   :  { %2848 = vst.msk [vmem:[#allocation4 + $0x8] sm:$0xff] %vm12402_vm4, %v10008_v14 }
 0x38f   :  { %3481 = vst.msk [vmem:[#allocation4 + $0x38] sm:$0xff] %vm12415_vm12, %v10288_v4  ;;  %v3500_v60 = vpop.permute.xlu1 %3499  ;;  %2069 = vrot.lane.b32.xlu0 %v2053_v39, %s12429_s25  ;;  %v12684_v39 = vld [vmem:[#allocation76_spill] sm:$0xff] }
 0x390   :  { %2886 = vst.msk [vmem:[#allocation4 + $0x8] sm:$0xff] %vm12401_vm13, %v9782_v38  ;;  %v10479_v38 = vld [vmem:[#allocation3 + $0xe0] sm:$0xff] }
 0x391   :  { %2194 = vst.msk [vmem:[#allocation4] sm:$0xff] %vm12407_vm7, %v2176_v25  ;;  %2147 = vrot.lane.b32.xlu1 %v2130_v48, %s12427_s27  ;;  %v2252_v14 = vpop.permute.xlu0 %2251  ;;  %v4623_v25 = vld [vmem:[#allocation3 + $0x66] sm:$0x3f] }
 0x392   :  { %2232 = vst.msk [vmem:[#allocation4] sm:$0xff] %vm12406_vm6, %v10312_v36  ;;  %v2206_v36 = vld [vmem:[#allocation3 + $0xe9] sm:$0x3f] }
 0x393   :  { %3517 = vst.msk [vmem:[#allocation4 + $0x38] sm:$0xff] %vm12400_vm11, %v3500_v60  ;;  %v3062_v4 = vpop.permute.xlu1 %3061  ;;  %2145 = vrot.lane.b32.xlu0 %v10479_v38, %s12427_s27  ;;  %vm12644_vm11 = vcmask 1048512  }
 0x394   :  { %3553 = vst.msk [vmem:[#allocation4 + $0x38] sm:$0xff] %vm12399_vm10, %v10296_v28  ;;  %vm12643_vm10 = vcmask 982896  }
 0x395   :  { %2270 = vst.msk [vmem:[#allocation4] sm:$0xff] %vm12405_vm0, %v2252_v14  ;;  %2223 = vrot.lane.b32.xlu1 %v2206_v36, %s12423_s29  ;;  %v3206_v12 = vpop.permute.xlu0 %3205  ;;  %v12687_v14 = vld [vmem:[#allocation25_spill] sm:$0xff] }
 0x396   :  { %2308 = vst.msk [vmem:[#allocation4] sm:$0xff] %vm12404_vm1, %v10320_v59  ;;  %v2205_v59 = vld [vmem:[#allocation3 + $0xe1] sm:$0xff]  ;;  %v4885_v36 = vld [vmem:[#allocation3 + $0x2b] sm:$0xff] }
 0x397   :  { %3079 = vst.msk [vmem:[#allocation4 + $0x30] sm:$0xff] %vm12408_vm2, %v3062_v4  ;;  %v5540_v28 = vld [vmem:[#allocation4 + $0x8] sm:$0xff]  ;;  %v3572_v5 = vpop.permute.xlu1 %3571  ;;  %2221 = vrot.lane.b32.xlu0 %v2205_v59, %s12423_s29  ;;  %v12690_v59 = vld [vmem:[#allocation30_spill] sm:$0xff] }
 0x398   :  { %2346 = vst.msk [vmem:[#allocation4] sm:$0xff] %vm12403_vm15, %v9667_v18  ;;  %5659 = vmatprep.mubr.f32.mxu1 %v5540_v28  ;;  %v2204_v18 = vld [vmem:[#allocation3 + $0xd9] sm:$0xff]  ;;  %v12688_v4 = vld [vmem:[#allocation67_spill] sm:$0xff] }
 0x399   :  { %3115 = vst.msk [vmem:[#allocation4 + $0x30] sm:$0xff] %vm12407_vm7, %v10304_v23  ;;  %2219 = vrot.lane.b32.xlu1 %v2204_v18, %s12423_s29  ;;  %v3800_v23 = vpop.permute.xlu0 %3799  ;;  %v12689_v28 = vld [vmem:[#allocation65_spill] sm:$0xff] }
 0x39a   :  { %2384 = vst.msk [vmem:[#allocation4] sm:$0xff] %vm12643_vm10, %v9928_v7  ;;  %vm12645_vm10 = vcmask 162896   ;;  %v2167_v7 = vld [vmem:[#allocation3 + $0x104] sm:$0xff]  ;;  %v12691_v18 = vld [vmem:[#allocation37_spill] sm:$0xff] }
 0x39b   :  { %2422 = vst.msk [vmem:[#allocation4] sm:$0xff] %vm12644_vm11, %v9696_v56  ;;  %v3134_v56 = vpop.permute.xlu1 %3133  ;;  %vm12646_vm11 = vcmask 244896   ;;  %2183 = vrot.lane.b32.xlu0 %v2167_v7, %s12425_s0  ;;  %v12692_v7 = vld [vmem:[#allocation68_spill] sm:$0xff] }
 0x39c   :  { %3589 = vst.msk [vmem:[#allocation4 + $0x38] sm:$0xff] %vm2695_vm5, %v3572_v5  ;;  %v4921_v5 = vld [vmem:[#allocation3 + $0x8] sm:$0xff] }
 0x39d   :  { %3625 = vst.msk [vmem:[#allocation4 + $0x38] sm:$0xff] %vm2733_vm9, %v10057_v24  ;;  %v2166_v24 = vld [vmem:[#allocation3 + $0xfc] sm:$0xff] }
 0x39e   :  { %3661 = vst.msk [vmem:[#allocation4 + $0x38] sm:$0xff] %vm2771_vm8, %v9756_v55  ;;  %2181 = vrot.lane.b32.xlu1 %v2166_v24, %s12425_s0  ;;  %v3872_v55 = vpop.permute.xlu0 %3871  ;;  %v5216_v24 = vld [vmem:[#allocation3 + $0x15] sm:$0xff] }
 0x39f   :  { %3817 = vst.msk [vmem:[#allocation4 + $0x60] sm:$0xff] %vm12645_vm10, %v3800_v23  ;;  %vm12647_vm10 = vcmask 326896  }
 0x3a0   :  { %3697 = vst.msk [vmem:[#allocation4 + $0x38] sm:$0xff] %vm2809_vm3, %v9955_v34 }
 0x3a1   :  { %3853 = vst.msk [vmem:[#allocation4 + $0x60] sm:$0xff] %vm12646_vm11, %v10360_v54  ;;  %v2243_v54 = vld [vmem:[#allocation3 + $0x105] sm:$0xff]  ;;  %vm12648_vm11 = vcmask 408896  }
 0x3a2   :  { %3733 = vst.msk [vmem:[#allocation4 + $0x38] sm:$0xff] %vm12402_vm4, %v9764_v49  ;;  %v5539_v34 = vld [vmem:[#allocation4] sm:$0xff]  ;;  %v3064_v49 = vpop.permute.xlu1 %3063  ;;  %2259 = vrot.lane.b32.xlu0 %v2243_v54, %s12421_s19  ;;  %vm12657_vm4 = vcmask 179296  }
 0x3a3   :  { %3151 = vst.msk [vmem:[#allocation4 + $0x30] sm:$0xff] %vm12406_vm6, %v3134_v56  ;;  %5660 = vmatmul.mubr.f32.vlgmr.msra.gmra.mxu1 %v5539_v34  ;;  %v12693_v56 = vld [vmem:[#allocation12_spill] sm:$0xff]  ;;  %v12695_v34 = vld [vmem:[#allocation42_spill] sm:$0xff]  ;;  %v12697_v54 = vld [vmem:[#allocation39_spill] sm:$0xff] }
 0x3a4   :  { %3769 = vst.msk [vmem:[#allocation4 + $0x38] sm:$0xff] %vm12401_vm13, %v9962_v26  ;;  %vm12649_vm13 = vcmask 982896   ;;  %v2242_v26 = vld [vmem:[#allocation3 + $0xfd] sm:$0xff] }
 0x3a5   :  { %3187 = vst.msk [vmem:[#allocation4 + $0x30] sm:$0xff] %vm12405_vm0, %v10340_v31  ;;  %2257 = vrot.lane.b32.xlu1 %v2242_v26, %s12421_s19  ;;  %v12698_v26 = vld [vmem:[#allocation51_spill] sm:$0xff] }
 0x3a6   :  { %3223 = vst.msk [vmem:[#allocation4 + $0x30] sm:$0xff] %vm12404_vm1, %v3206_v12  ;;  %v3136_v31 = vpop.permute.xlu1 %3135 }
 0x3a7   :  { %3889 = vst.msk [vmem:[#allocation4 + $0x60] sm:$0xff] %vm12647_vm10, %v3872_v55  ;;  %vm12650_vm10 = vcmask 1048512   ;;  %v12694_v55 = vld [vmem:[#allocation13_spill] sm:$0xff] }
 0x3a8   :  { %3259 = vst.msk [vmem:[#allocation4 + $0x30] sm:$0xff] %vm12403_vm15, %v10071_v17  ;;  %v3802_v17 = vpop.permute.xlu0 %3801 }
 0x3a9   :  { %3925 = vst.msk [vmem:[#allocation4 + $0x60] sm:$0xff] %vm12648_vm11, %v10342_v16  ;;  %vm12652_vm11 = vcmask 244896  }
 0x3aa   :  { %3295 = vst.msk [vmem:[#allocation4 + $0x30] sm:$0xff] %vm12649_vm13, %v9708_v41  ;;  %vm12651_vm13 = vcmask 162896   ;;  %v4113_v41 = vld [vmem:[#allocation3 + $0x5e] sm:$0x3f] }
 0x3ab   :  { %3080 = vst.msk [vmem:[#allocation4 + $0x40] sm:$0xff] %vm12408_vm2, %v3064_v49  ;;  %3961 = vst.msk [vmem:[#allocation4 + $0x60] sm:$0xff] %vm12408_vm2, %v9701_v57  ;;  %4127 = vrot.lane.b32.xlu0 %v4113_v41, %s12653_s11  ;;  %v4587_v57 = vld [vmem:[#allocation3 + $0x89] sm:$0x3f]  ;;  %v5252_v41 = vld [vmem:[#allocation3 + $0x39] sm:$0xff] }
 0x3ac   :  { %3331 = vst.msk [vmem:[#allocation4 + $0x30] sm:$0xff] %vm12650_vm10, %v9937_v47  ;;  %4601 = vrot.lane.b32.xlu1 %v4587_v57, %s12635_s22  ;;  %vm12654_vm10 = vcmask 326896   ;;  %v5180_v47 = vld [vmem:[#allocation3 + $0x38] sm:$0xff] }
 0x3ad   :  { %3116 = vst.msk [vmem:[#allocation4 + $0x40] sm:$0xff] %vm12407_vm7, %v10322_v43  ;;  %3997 = vst.msk [vmem:[#allocation4 + $0x60] sm:$0xff] %vm12407_vm7, %v10001_v61  ;;  %v4238_v43 = vpop.permute.xlu1 %4237  ;;  %v12702_v57 = vld [vmem:[#allocation74_spill] sm:$0xff] }
 0x3ae   :  { %4033 = vst.msk [vmem:[#allocation4 + $0x60] sm:$0xff] %vm12406_vm6, %v9711_v11  ;;  %3152 = vst.msk [vmem:[#allocation4 + $0x40] sm:$0xff] %vm12406_vm6, %v3136_v31  ;;  %v3874_v11 = vpop.permute.xlu0 %3873 }
 0x3af   :  { %3818 = vst.msk [vmem:[#allocation4 + $0x70] sm:$0xff] %vm12651_vm13, %v3802_v17  ;;  %vm12655_vm13 = vcmask 408896   ;;  %4719 = vrot.lane.b32.xlu0 %v10128_v22, %s12626_s23  ;;  %v12674_v22 = vld [vmem:[#allocation38_spill] sm:$0xff]  ;;  %v12700_v17 = vld [vmem:[#allocation11_spill] sm:$0xff] }
 0x3b0   :  { %4069 = vst.msk [vmem:[#allocation4 + $0x60] sm:$0xff] %vm12405_vm0, %v10085_v62  ;;  %3188 = vst.msk [vmem:[#allocation4 + $0x40] sm:$0xff] %vm12405_vm0, %v10354_v10  ;;  %v12667_v10 = vld [vmem:[#allocation22_spill] sm:$0xff] }
 0x3b1   :  { %3854 = vst.msk [vmem:[#allocation4 + $0x70] sm:$0xff] %vm12652_vm11, %v10366_v33  ;;  %vm12656_vm11 = vcmask 97296   ;;  %v12672_v62 = vld [vmem:[#allocation78_spill] sm:$0xff]  ;;  %v12676_v33 = vld [vmem:[#allocation41_spill] sm:$0xff] }
 0x3b2   :  { %4105 = vst.msk [vmem:[#allocation4 + $0x60] sm:$0xff] %vm12404_vm1, %v9664_v42  ;;  %v2168_v42 = vld [vmem:[#allocation3 + $0x10c] sm:$0x3f] }
 0x3b3   :  { %4141 = vst.msk [vmem:[#allocation4 + $0x60] sm:$0xff] %vm12403_vm15, %v10381_v51  ;;  %2185 = vrot.lane.b32.xlu1 %v2168_v42, %s12425_s0  ;;  %v4160_v51 = vpop.permute.xlu0 %4159  ;;  %5193 = vrot.lane.b32.xlu0 %v5180_v47, %s12437_s13  ;;  %v4671_v42 = vld [vmem:[#allocation3 + $0x59] sm:$0x3f]  ;;  %v12705_v47 = vld [vmem:[#allocation64_spill] sm:$0xff] }
 0x3b4   :  { %3890 = vst.msk [vmem:[#allocation4 + $0x70] sm:$0xff] %vm12654_vm10, %v3874_v11  ;;  %vm12658_vm10 = vcmask 982896   ;;  %v12703_v11 = vld [vmem:[#allocation83_spill] sm:$0xff] }
 0x3b5   :  { %3926 = vst.msk [vmem:[#allocation4 + $0x70] sm:$0xff] %vm12655_vm13, %v10350_v37  ;;  %vm12660_vm13 = vcmask 425296  }
 0x3b6   :  { %4255 = vst.msk [vmem:[#allocation4 + $0x68] sm:$0xff] %vm12656_vm11, %v4238_v43  ;;  %vm12661_vm11 = vcmask 507296  }
 0x3b7   :  { %3962 = vst.msk [vmem:[#allocation4 + $0x70] sm:$0xff] %vm12408_vm2, %v9804_v53  ;;  %v3208_v53 = vpop.permute.xlu1 %3207  ;;  %v10588_v61 = vpop.permute.xlu0 %5077 }
 0x3b8   :  { %4291 = vst.msk [vmem:[#allocation4 + $0x68] sm:$0xff] %vm12657_vm4, %v10328_v13  ;;  %vm12659_vm4 = vcmask 1048512   ;;  %v4742_v13 = vld [vmem:[#allocation3 + $0x52] sm:$0xff] }
 0x3b9   :  { %3998 = vst.msk [vmem:[#allocation4 + $0x70] sm:$0xff] %vm12407_vm7, %v10010_v52  ;;  %v12664_v52 = vld [vmem:[#allocation31_spill] sm:$0xff]  ;;  %vm2622_vm7 = vcmask 423248  }
 0x3ba   :  { %4327 = vst.msk [vmem:[#allocation4 + $0x68] sm:$0xff] %vm12416_vm14, %v9777_v3  ;;  %v2244_v3 = vld [vmem:[#allocation3 + $0x10d] sm:$0x3f] }
 0x3bb   :  { %4034 = vst.msk [vmem:[#allocation4 + $0x70] sm:$0xff] %vm12406_vm6, %v9810_v29  ;;  %v12662_v29 = vld [vmem:[#allocation21_spill] sm:$0xff]  ;;  %2261 = vrot.lane.b32.xlu1 %v2244_v3, %s12421_s19  ;;  %v5156_v37 = vpop.permute.xlu1 %5155  ;;  %vm2584_vm6 = vcmask 341248   ;;  %v5109_v3 = vld [vmem:[#allocation3 + $0x60] sm:$0x3f] }
 0x3bc   :  { %4177 = vst.msk [vmem:[#allocation4 + $0x60] sm:$0xff] %vm12658_vm10, %v4160_v51 }
 0x3bd   :  { %4363 = vst.msk [vmem:[#allocation4 + $0x68] sm:$0xff] %vm12415_vm12, %v10078_v1  ;;  %v4849_v1 = vld [vmem:[#allocation3 + $0x7] sm:$0xff] }
 0x3be   :  { %4070 = vst.msk [vmem:[#allocation4 + $0x70] sm:$0xff] %vm12405_vm0, %v10092_v30  ;;  %v12673_v30 = vld [vmem:[#allocation60_spill] sm:$0xff]  ;;  %vm12413_vm0 = vcmask 980848  }
 0x3bf   :  { %4213 = vst.msk [vmem:[#allocation4 + $0x60] sm:$0xff] %vm12659_vm4, %v10346_v6  ;;  %vm12665_vm4 = vcmask 15360   ;;  %4861 = vrot.lane.b32.xlu1 %v4849_v1, %s12425_s0  ;;  %v4718_v6 = vpop.permute.xlu0 %4717  ;;  %v4790_v16 = vpop.permute.xlu1 %4789  ;;  %v12714_v1 = vld [vmem:[#allocation84_spill] sm:$0xff] }
 0x3c0   :  { %4399 = vst.msk [vmem:[#allocation4 + $0x68] sm:$0xff] %vm12660_vm13, %v9790_v50  ;;  %v12663_v50 = vld [vmem:[#allocation32_spill] sm:$0xff]  ;;  %vm12668_vm13 = vcmask 1048512  }
 0x3c1   :  { %3224 = vst.msk [vmem:[#allocation4 + $0x40] sm:$0xff] %vm12404_vm1, %v3208_v53  ;;  %4106 = vst.msk [vmem:[#allocation4 + $0x70] sm:$0xff] %vm12404_vm1, %v9816_v27  ;;  %v4149_v27 = vld [vmem:[#allocation3 + $0x82] sm:$0x3f]  ;;  %vm12409_vm1 = vcmask 816848  }
 0x3c2   :  { %4435 = vst.msk [vmem:[#allocation4 + $0x68] sm:$0xff] %vm12661_vm11, %v9992_v35  ;;  %v12666_v35 = vld [vmem:[#allocation82_spill] sm:$0xff]  ;;  %vm12670_vm11 = vcmask 97296   ;;  %4163 = vrot.lane.b32.xlu0 %v4149_v27, %s8505_s28  ;;  %v12706_v53 = vld [vmem:[#allocation75_spill] sm:$0xff] }
 0x3c3   :  { %3260 = vst.msk [vmem:[#allocation4 + $0x40] sm:$0xff] %vm12403_vm15, %v12662_v29  ;;  %4142 = vst.msk [vmem:[#allocation4 + $0x70] sm:$0xff] %vm12403_vm15, %v10377_v45  ;;  %v12669_v45 = vld [vmem:[#allocation80_spill] sm:$0xff]  ;;  %vm12682_vm15 = vcmask 408896   ;;  %5335 = vrot.lane.b32.xlu1 %v10619_v46, %s8514_s16  ;;  %v10628_v44 = vpop.permute.xlu0 %4529  ;;  %v2566_v15 = vpop.permute.xlu1 %2565  ;;  %v12708_v29 = vld [vmem:[#allocation23_spill] sm:$0xff] }
 0x3c4   :  { %4471 = vst.msk [vmem:[#allocation4 + $0x68] sm:$0xff] %vm2695_vm5, %v12663_v50  ;;  %v12709_v27 = vld [vmem:[#allocation15_spill] sm:$0xff] }
 0x3c5   :  { %3296 = vst.msk [vmem:[#allocation4 + $0x40] sm:$0xff] %vm12658_vm10, %v12664_v52  ;;  %vm12671_vm10 = vcmask 179296  }
 0x3c6   :  { %5096 = vst.msk [vmem:[#allocation4 + $0x98] sm:$0xff] %vm12665_vm4, %v10588_v61  ;;  %vm12675_vm4 = vcmask 244896   ;;  %4755 = vrot.lane.b32.xlu0 %v4742_v13, %s12429_s25 }
 0x3c7   :  { %4507 = vst.msk [vmem:[#allocation4 + $0x68] sm:$0xff] %vm2733_vm9, %v12666_v35  ;;  %4637 = vrot.lane.b32.xlu1 %v4623_v25, %s12686_s1  ;;  %v2180_v60 = vpop.permute.xlu0 %2179  ;;  %v2642_v48 = vpop.permute.xlu1 %2641  ;;  %v5541_v35 = vld [vmem:[#allocation4 + $0x10] sm:$0xff] }
 0x3c8   :  { %3333 = vst.msk [vmem:[#allocation4 + $0x40] sm:$0xff] %vm12668_vm13, %v12667_v10  ;;  %vm12677_vm13 = vcmask 425296   ;;  %v4957_v10 = vld [vmem:[#allocation3 + $0x2c] sm:$0xff] }
 0x3c9   :  { %5137 = vst.msk [vmem:[#allocation4 + $0x98] sm:$0xff] %vm12670_vm11, %v12669_v45  ;;  %vm12679_vm11 = vcmask 326896   ;;  %v12711_v45 = vld [vmem:[#allocation69_spill] sm:$0xff] }
 0x3ca   :  { %4543 = vst.msk [vmem:[#allocation4 + $0x68] sm:$0xff] %vm2771_vm8, %v10410_v20  ;;  %v12678_v20 = vld [vmem:[#allocation85_spill] sm:$0xff]  ;;  %5081 = vrot.lane.b32.xlu0 %v5067_v9, %s8503_s26  ;;  %v12726_v9 = vld [vmem:[#allocation62_spill] sm:$0xff] }
 0x3cb   :  { %5173 = vst.msk [vmem:[#allocation4 + $0x98] sm:$0xff] %vm12671_vm10, %v5156_v37  ;;  %vm12681_vm10 = vcmask 507296   ;;  %4897 = vrot.lane.b32.xlu1 %v4885_v36, %s12423_s29  ;;  %v2256_v12 = vpop.permute.xlu0 %2255  ;;  %v2644_v23 = vpop.permute.xlu1 %2643  ;;  %v12733_v36 = vld [vmem:[#allocation70_spill] sm:$0xff] }
 0x3cc   :  { %4579 = vst.msk [vmem:[#allocation4 + $0x68] sm:$0xff] %vm2809_vm3, %v12672_v62 }
 0x3cd   :  { %5209 = vst.msk [vmem:[#allocation4 + $0x98] sm:$0xff] %vm12416_vm14, %v12673_v30  ;;  %v12716_v30 = vld [vmem:[#allocation55_spill] sm:$0xff] }
 0x3ce   :  { %5245 = vst.msk [vmem:[#allocation4 + $0x98] sm:$0xff] %vm12415_vm12, %v12674_v22  ;;  %2583 = vst.msk [vmem:[#allocation4 + $0x18] sm:$0xff] %vm12415_vm12, %v2566_v15  ;;  %5371 = vrot.lane.b32.xlu0 %v12687_v14, %s8507_s30  ;;  %v12718_v22 = vld [vmem:[#allocation44_spill] sm:$0xff]  ;;  %v4707_v14 = vld [vmem:[#allocation3 + $0x7d] sm:$0x3f] }
 0x3cf   :  { %4735 = vst.msk [vmem:[#allocation4 + $0x90] sm:$0xff] %vm12675_vm4, %v4718_v6  ;;  %vm2196_vm4 = vcmask 570848   ;;  %5229 = vrot.lane.b32.xlu1 %v5216_v24, %s12435_s18  ;;  %v2568_v49 = vpop.permute.xlu0 %2567  ;;  %v3432_v31 = vpop.permute.xlu1 %3431  ;;  %v5288_v6 = vld [vmem:[#allocation3 + $0x16] sm:$0xff] }
 0x3d0   :  { %5281 = vst.msk [vmem:[#allocation4 + $0x98] sm:$0xff] %vm12677_vm13, %v12676_v33  ;;  %vm12411_vm13 = vcmask 652848   ;;  %v12720_v33 = vld [vmem:[#allocation17_spill] sm:$0xff] }
 0x3d1   :  { %4771 = vst.msk [vmem:[#allocation4 + $0x90] sm:$0xff] %vm12679_vm11, %v12678_v20  ;;  %vm12685_vm11 = vcmask 425296   ;;  %v12722_v20 = vld [vmem:[#allocation14_spill] sm:$0xff] }
 0x3d2   :  { %5317 = vst.msk [vmem:[#allocation4 + $0x98] sm:$0xff] %vm12681_vm10, %v12680_v19  ;;  %4933 = vrot.lane.b32.xlu0 %v4921_v5, %s12421_s19  ;;  %v12723_v19 = vld [vmem:[#allocation28_spill] sm:$0xff]  ;;  %v4993_v5 = vld [vmem:[#allocation3 + $0x72] sm:$0xff] }
 0x3d3   :  { %4807 = vst.msk [vmem:[#allocation4 + $0x90] sm:$0xff] %vm12682_vm15, %v4790_v16  ;;  %vm12410_vm15 = vcmask 734848   ;;  %4791 = vrot.lane.b32.xlu1 %v12702_v57, %s12627_s12  ;;  %v3430_v43 = vpop.permute.xlu0 %3429  ;;  %v3504_v51 = vpop.permute.xlu1 %3503  ;;  %v12719_v16 = vld [vmem:[#allocation20_spill] sm:$0xff]  ;;  %v12752_v57 = vld [vmem:[#allocation73_spill] sm:$0xff] }
 0x3d4   :  { %4843 = vst.msk [vmem:[#allocation4 + $0x90] sm:$0xff] %vm12408_vm2, %v12683_v63  ;;  %vm12696_vm2 = vcmask 917296   ;;  %v12724_v63 = vld [vmem:[#allocation79_spill] sm:$0xff] }
 0x3d5   :  { %2621 = vst.msk [vmem:[#allocation4 + $0x18] sm:$0xff] %vm12685_vm11, %v12684_v39  ;;  %vm12412_vm11 = vcmask 898848   ;;  %v12727_v39 = vld [vmem:[#allocation58_spill] sm:$0xff] }
 0x3d6   :  { %2197 = vst.msk [vmem:[#allocation4 + $0x20] sm:$0x3f] %vm2196_vm4, %v2180_v60  ;;  %5265 = vrot.lane.b32.xlu0 %v5252_v41, %s12433_s15  ;;  %v12728_v60 = vld [vmem:[#allocation50_spill] sm:$0xff] }
 0x3d7   :  { %2235 = vst.msk [vmem:[#allocation4 + $0x20] sm:$0x3f] %vm12411_vm13, %v12688_v4  ;;  %vm2698_vm13 = vcmask 587248   ;;  %5123 = vrot.lane.b32.xlu1 %v5109_v3, %s8496_s20  ;;  %v3502_v52 = vpop.permute.xlu0 %3501  ;;  %v4242_v37 = vpop.permute.xlu1 %4241  ;;  %v12731_v4 = vld [vmem:[#allocation43_spill] sm:$0xff]  ;;  %v12761_v3 = vld [vmem:[#allocation16_spill] sm:$0xff] }
 0x3d8   :  { %2659 = vst.msk [vmem:[#allocation4 + $0x18] sm:$0xff] %vm12681_vm10, %v2642_v48  ;;  %vm12414_vm10 = vcmask 1046464   ;;  %v5547_v41 = vld [vmem:[#allocation4 + $0x40] sm:$0xff] }
 0x3d9   :  { %2697 = vst.msk [vmem:[#allocation4 + $0x18] sm:$0xff] %vm2695_vm5, %v12689_v28  ;;  %v5546_v28 = vld [vmem:[#allocation4 + $0x38] sm:$0xff] }
 0x3da   :  { %2735 = vst.msk [vmem:[#allocation4 + $0x18] sm:$0xff] %vm2733_vm9, %v12690_v59  ;;  %4685 = vrot.lane.b32.xlu0 %v4671_v42, %s12431_s24  ;;  %v5545_v59 = vld [vmem:[#allocation4 + $0x30] sm:$0xff]  ;;  %v12755_v42 = vld [vmem:[#allocation71_spill] sm:$0xff]  ;;  %s12874_s24 = smov 50  }
 0x3db   :  { %2273 = vst.msk [vmem:[#allocation4 + $0x20] sm:$0x3f] %vm12410_vm15, %v2256_v12  ;;  %vm12699_vm15 = vcmask 999296   ;;  %v3574_v62 = vpop.permute.xlu0 %3573  ;;  %v4598_v13 = vpop.permute.xlu1 %4597  ;;  %v5145_v12 = vld [vmem:[#allocation3 + $0x84] sm:$0x3f] }
 0x3dc   :  { %2773 = vst.msk [vmem:[#allocation4 + $0x18] sm:$0xff] %vm2771_vm8, %v12691_v18 }
 0x3dd   :  { %2311 = vst.msk [vmem:[#allocation4 + $0x20] sm:$0x3f] %vm12409_vm1, %v12692_v7  ;;  %vm2660_vm1 = vcmask 505248   ;;  %v12741_v7 = vld [vmem:[#allocation81_spill] sm:$0xff] }
 0x3de   :  { %2811 = vst.msk [vmem:[#allocation4 + $0x18] sm:$0xff] %vm2809_vm3, %v12693_v56  ;;  %4969 = vrot.lane.b32.xlu0 %v4957_v10, %s8497_s21  ;;  %v12742_v56 = vld [vmem:[#allocation24_spill] sm:$0xff]  ;;  %v5467_v10 = vld [vmem:[#allocation3 + $0x56] sm:$0xff] }
 0x3df   :  { %2349 = vst.msk [vmem:[#allocation4 + $0x20] sm:$0x3f] %vm12412_vm11, %v12694_v55  ;;  %vm12439_vm11 = vcmask 669248   ;;  %v3066_v15 = vpop.permute.xlu0 %3065  ;;  %v12744_v55 = vld [vmem:[#allocation35_spill] sm:$0xff] }
 0x3e0   :  { %2849 = vst.msk [vmem:[#allocation4 + $0x18] sm:$0xff] %vm12696_vm2, %v12695_v34  ;;  %vm12701_vm2 = vcmask 259248  }
 0x3e1   :  { %2387 = vst.msk [vmem:[#allocation4 + $0x20] sm:$0x3f] %vm12413_vm0, %v12697_v54  ;;  %vm12420_vm0 = vcmask 751248   ;;  %v5324_v54 = vld [vmem:[#allocation3 + $0x3a] sm:$0xff] }
 0x3e2   :  { %2887 = vst.msk [vmem:[#allocation4 + $0x18] sm:$0xff] %vm12699_vm15, %v12698_v26  ;;  %vm12418_vm15 = vcmask 833248   ;;  %5301 = vrot.lane.b32.xlu0 %v5288_v6, %s8515_s17  ;;  %v12747_v26 = vld [vmem:[#allocation63_spill] sm:$0xff]  ;;  %v12774_v6 = vld [vmem:[#allocation72_spill] sm:$0xff] }
 0x3e3   :  { %2428 = vst.msk [vmem:[#allocation4 + $0x20] sm:$0x3f] %vm12414_vm10, %v12700_v17  ;;  %vm12417_vm10 = vcmask 915248   ;;  %v12749_v17 = vld [vmem:[#allocation27_spill] sm:$0xff] }
 0x3e4   :  { %2585 = vst.msk [vmem:[#allocation4 + $0x28] sm:$0x3f] %vm2584_vm6, %v2568_v49 }
 0x3e5   :  { %2623 = vst.msk [vmem:[#allocation4 + $0x28] sm:$0x3f] %vm2622_vm7, %v10408_v40  ;;  %v12704_v40 = vld [vmem:[#allocation33_spill] sm:$0xff] }
 0x3e6   :  { %3447 = vst.msk [vmem:[#allocation4 + $0x58] sm:$0x3f] %vm12701_vm2, %v3432_v31  ;;  %vm12419_vm2 = vcmask 997248   ;;  %4721 = vrot.lane.b32.xlu0 %v4707_v14, %s12626_s23  ;;  %v4850_v31 = vld [vmem:[#allocation3 + $0xf] sm:$0xff] }
 0x3e7   :  { %2661 = vst.msk [vmem:[#allocation4 + $0x28] sm:$0x3f] %vm2660_vm1, %v2644_v23  ;;  %v12735_v23 = vld [vmem:[#allocation46_spill] sm:$0xff]  ;;  %v12784_v14 = vld [vmem:[#allocation45_spill] sm:$0xff] }
 0x3e8   :  { %3483 = vst.msk [vmem:[#allocation4 + $0x58] sm:$0x3f] %vm2584_vm6, %v12703_v11 }
 0x3e9   :  { %2699 = vst.msk [vmem:[#allocation4 + $0x28] sm:$0x3f] %vm2698_vm13, %v10414_v0  ;;  %v12707_v0 = vld [vmem:[#allocation53_spill] sm:$0xff] }
 0x3ea   :  { %2737 = vst.msk [vmem:[#allocation4 + $0x28] sm:$0x3f] %vm12439_vm11, %v12704_v40  ;;  %v5542_v50 = vld [vmem:[#allocation4 + $0x18] sm:$0xff]  ;;  %v5543_v48 = vld [vmem:[#allocation4 + $0x20] sm:$0xff]  ;;  %5005 = vrot.lane.b32.xlu0 %v4993_v5, %s12653_s11 }
 0x3eb   :  { %3446 = vst.msk [vmem:[#allocation4 + $0x48] sm:$0xff] %vm12416_vm14, %v3430_v43  ;;  %5664 = vmatprep.mubr.f32.mxu1 %v5542_v50  ;;  %vm12712_vm14 = vcmask 507296   ;;  %v2394_v43 = vld [vmem:[#allocation3 + $0x97] sm:$0xff]  ;;  %v5253_v5 = vld [vmem:[#allocation3 + $0x41] sm:$0x3f] }
 0x3ec   :  { %2775 = vst.msk [vmem:[#allocation4 + $0x28] sm:$0x3f] %vm12420_vm0, %v12705_v47  ;;  %5665 = vmatmul.mubr.f32.gmra.mxu1 %v5541_v35  ;;  %v12757_v47 = vld [vmem:[#allocation34_spill] sm:$0xff]  ;;  %v12766_v35 = vld [vmem:[#allocation59_spill] sm:$0xff] }
 0x3ed   :  { %3482 = vst.msk [vmem:[#allocation4 + $0x48] sm:$0xff] %vm12415_vm12, %v12706_v53  ;;  %vm12710_vm12 = vcmask 425296   ;;  %v12759_v53 = vld [vmem:[#allocation57_spill] sm:$0xff] }
 0x3ee   :  { %3519 = vst.msk [vmem:[#allocation4 + $0x58] sm:$0x3f] %vm2622_vm7, %v3504_v51  ;;  %5337 = vrot.lane.b32.xlu0 %v5324_v54, %s8514_s16  ;;  %v5181_v51 = vld [vmem:[#allocation3 + $0x40] sm:$0x3f]  ;;  %v4886_v50 = vld [vmem:[#allocation3 + $0x33] sm:$0xff] }
 0x3ef   :  { %2813 = vst.msk [vmem:[#allocation4 + $0x28] sm:$0x3f] %vm12418_vm15, %v12707_v0  ;;  %vm12715_vm15 = vcmask 177248  }
 0x3f0   :  { %2851 = vst.msk [vmem:[#allocation4 + $0x28] sm:$0x3f] %vm12417_vm10, %v12708_v29  ;;  %vm12713_vm10 = vcmask 95248  }
 0x3f1   :  { %3555 = vst.msk [vmem:[#allocation4 + $0x58] sm:$0x3f] %vm2660_vm1, %v10424_v2  ;;  %v5395_v2 = vld [vmem:[#allocation3 + $0x55] sm:$0xff] }
 0x3f2   :  { %2889 = vst.msk [vmem:[#allocation4 + $0x28] sm:$0x3f] %vm12419_vm2, %v12709_v27  ;;  %5407 = vrot.lane.b32.xlu1 %v5395_v2, %s12628_s14  ;;  %vm12717_vm2 = vcmask 259248   ;;  %2409 = vrot.lane.b32.xlu0 %v2394_v43, %s8503_s26  ;;  %v12764_v27 = vld [vmem:[#allocation66_spill] sm:$0xff] }
 0x3f3   :  { %3518 = vst.msk [vmem:[#allocation4 + $0x48] sm:$0xff] %vm12710_vm12, %v3502_v52  ;;  %vm12721_vm12 = vcmask 917296   ;;  %v12771_v2 = vld [vmem:[#allocation26_spill] sm:$0xff] }
 0x3f4   :  { %3554 = vst.msk [vmem:[#allocation4 + $0x48] sm:$0xff] %vm12712_vm14, %v12711_v45  ;;  %vm12725_vm14 = vcmask 999296   ;;  %v12769_v45 = vld [vmem:[#allocation54_spill] sm:$0xff] }
 0x3f5   :  { %4257 = vst.msk [vmem:[#allocation4 + $0x88] sm:$0x3f] %vm12713_vm10, %v4242_v37  ;;  %vm12729_vm10 = vmmov %vm12721_vm12  ;;  %v12768_v37 = vld [vmem:[#allocation36_spill] sm:$0xff]  ;;  %v4851_v43 = vld [vmem:[#allocation3 + $0x17] sm:$0x3f] }
 0x3f6   :  { %4293 = vst.msk [vmem:[#allocation4 + $0x88] sm:$0x3f] %vm12715_vm15, %v12714_v1  ;;  %4827 = vrot.lane.b32.xlu1 %v10619_v46, %s12427_s27  ;;  %vm12730_vm15 = vcmask 488848   ;;  %v10731_v46 = vpop.permute.xlu1 %4599  ;;  %4899 = vrot.lane.b32.xlu0 %v4886_v50, %s12423_s29 }
 0x3f7   :  { %4329 = vst.msk [vmem:[#allocation4 + $0x88] sm:$0x3f] %vm12717_vm2, %v12716_v30  ;;  %vm12732_vm2 = vmmov %vm12725_vm14 }
 0x3f8   :  { %3590 = vst.msk [vmem:[#allocation4 + $0x48] sm:$0xff] %vm2695_vm5, %v3574_v62  ;;  %v5217_v62 = vld [vmem:[#allocation3 + $0x1d] sm:$0x3f] }
 0x3f9   :  { %4365 = vst.msk [vmem:[#allocation4 + $0x88] sm:$0x3f] %vm2584_vm6, %v12718_v22  ;;  %v5544_v25 = vld [vmem:[#allocation4 + $0x28] sm:$0xff]  ;;  %v4743_v22 = vld [vmem:[#allocation3 + $0x5a] sm:$0x3f] }
 0x3fa   :  { %3626 = vst.msk [vmem:[#allocation4 + $0x48] sm:$0xff] %vm2733_vm9, %v12719_v16  ;;  %5669 = vmatprep.mubr.f32.mxu1 %v5544_v25  ;;  %5159 = vrot.lane.b32.xlu1 %v5145_v12, %s12625_s2  ;;  %v4162_v18 = vpop.permute.xlu1 %4161  ;;  %v12792_v12 = vld [vmem:[#allocation88_spill] sm:$0xff] }
 0x3fb   :  { %4401 = vst.msk [vmem:[#allocation4 + $0x88] sm:$0x3f] %vm2622_vm7, %v12720_v33  ;;  %5670 = vmatmul.mubr.f32.gmra.mxu1 %v5543_v48  ;;  %5231 = vrot.lane.b32.xlu0 %v5217_v62, %s12435_s18  ;;  %v12777_v33 = vld [vmem:[#allocation47_spill] sm:$0xff] }
 0x3fc   :  { %4615 = vst.msk [vmem:[#allocation4 + $0x68] sm:$0xff] %vm12721_vm12, %v4598_v13  ;;  %5674 = vmatprep.mubr.f32.mxu1 %v5546_v28  ;;  %vm12734_vm12 = vcmask 833248   ;;  %v5551_v28 = vld [vmem:[#allocation4 + $0x60] sm:$0xff] }
 0x3fd   :  { %3662 = vst.msk [vmem:[#allocation4 + $0x48] sm:$0xff] %vm2771_vm8, %v12722_v20  ;;  %v5029_v20 = vld [vmem:[#allocation3 + $0x4f] sm:$0xff] }
 0x3fe   :  { %4437 = vst.msk [vmem:[#allocation4 + $0x88] sm:$0x3f] %vm2660_vm1, %v12723_v19  ;;  %5443 = vrot.lane.b32.xlu1 %v12741_v7, %s12740_s10  ;;  %v10759_v49 = vpop.permute.xlu1 %5079  ;;  %v12779_v19 = vld [vmem:[#allocation56_spill] sm:$0xff] }
 0x3ff   :  { %4651 = vst.msk [vmem:[#allocation4 + $0x68] sm:$0xff] %vm12725_vm14, %v12724_v63  ;;  %5675 = vmatmul.mubr.f32.gmra.mxu1 %v5545_v59  ;;  %vm12736_vm14 = vcmask 982896   ;;  %v4922_v7 = vld [vmem:[#allocation3 + $0x10] sm:$0xff] }
 0x400   :  { %3698 = vst.msk [vmem:[#allocation4 + $0x48] sm:$0xff] %vm2809_vm3, %v12726_v9  ;;  %v12781_v9 = vld [vmem:[#allocation40_spill] sm:$0xff] }
 0x401   :  { %4473 = vst.msk [vmem:[#allocation4 + $0x88] sm:$0x3f] %vm2698_vm13, %v12727_v39  ;;  %v12782_v39 = vld [vmem:[#allocation18_spill] sm:$0xff] }
 0x402   :  { %3734 = vst.msk [vmem:[#allocation4 + $0x48] sm:$0xff] %vm12729_vm10, %v12728_v60  ;;  %vm12739_vm10 = vcmask 1048512   ;;  %4863 = vrot.lane.b32.xlu1 %v4850_v31, %s12425_s0  ;;  %v2030_v40 = vpop.permute.xlu1 %2029  ;;  %v4779_v60 = vld [vmem:[#allocation3 + $0x7e] sm:$0x3f] }
 0x403   :  { %3081 = vst.msk [vmem:[#allocation4 + $0x50] sm:$0x3f] %vm12730_vm15, %v3066_v15  ;;  %vm12743_vm15 = vmmov %vm12734_vm12 }
 0x404   :  { %4509 = vst.msk [vmem:[#allocation4 + $0x88] sm:$0x3f] %vm12439_vm11, %v10453_v8  ;;  %v3576_v8 = vpop.permute.xlu0 %3575 }
 0x405   :  { %3770 = vst.msk [vmem:[#allocation4 + $0x48] sm:$0xff] %vm12732_vm2, %v12731_v4  ;;  %vm12745_vm2 = vcmask 915248   ;;  %v12786_v4 = vld [vmem:[#allocation86_spill] sm:$0xff] }
 0x406   :  { %3117 = vst.msk [vmem:[#allocation4 + $0x50] sm:$0x3f] %vm2196_vm4, %v12733_v36  ;;  %5195 = vrot.lane.b32.xlu1 %v5181_v51, %s12437_s13  ;;  %v2106_v52 = vpop.permute.xlu1 %2105  ;;  %v5552_v25 = vld [vmem:[#allocation4 + $0x68] sm:$0xff]  ;;  %v12788_v36 = vld [vmem:[#allocation49_spill] sm:$0xff] }
 0x407   :  { %4545 = vst.msk [vmem:[#allocation4 + $0x88] sm:$0x3f] %vm12420_vm0, %v10628_v44  ;;  %v12737_v44 = vld [vmem:[#allocation19_spill] sm:$0xff] }
 0x408   :  { %4581 = vst.msk [vmem:[#allocation4 + $0x88] sm:$0x3f] %vm12734_vm12, %v10404_v32  ;;  %v12738_v32 = vld [vmem:[#allocation77_spill] sm:$0xff]  ;;  %v3138_v24 = vpop.permute.xlu0 %3137  ;;  %vm12746_vm12 = vcmask 652848  }
 0x409   :  { %3591 = vst.msk [vmem:[#allocation4 + $0x58] sm:$0x3f] %vm2698_vm13, %v3576_v8  ;;  %v12793_v8 = vld [vmem:[#allocation87_spill] sm:$0xff] }
 0x40a   :  { %3627 = vst.msk [vmem:[#allocation4 + $0x58] sm:$0x3f] %vm12439_vm11, %v12735_v23  ;;  %5479 = vrot.lane.b32.xlu1 %v5467_v10, %s12635_s22  ;;  %v2034_v30 = vpop.permute.xlu1 %2033  ;;  %v5468_v10 = vld [vmem:[#allocation3 + $0x5e] sm:$0xff] }
 0x40b   :  { %4178 = vst.msk [vmem:[#allocation4 + $0x70] sm:$0xff] %vm12736_vm14, %v4162_v18  ;;  %vm12748_vm14 = vcmask 997248  }
 0x40c   :  { %3663 = vst.msk [vmem:[#allocation4 + $0x58] sm:$0x3f] %vm12420_vm0, %v12737_v44  ;;  %v5548_v34 = vld [vmem:[#allocation4 + $0x48] sm:$0xff]  ;;  %v4240_v11 = vpop.permute.xlu0 %4239  ;;  %vm12767_vm0 = vcmask 898848  }
 0x40d   :  { %4215 = vst.msk [vmem:[#allocation4 + $0x70] sm:$0xff] %vm12739_vm10, %v12738_v32  ;;  %vm12750_vm10 = vcmask 734848   ;;  %5679 = vmatprep.mubr.f32.mxu1 %v5548_v34  ;;  %v12798_v32 = vld [vmem:[#allocation9_spill] sm:$0xff] }
 0x40e   :  { %3699 = vst.msk [vmem:[#allocation4 + $0x58] sm:$0x3f] %vm12743_vm15, %v12742_v56  ;;  %vm12751_vm15 = vcmask 15360   ;;  %5680 = vmatmul.mubr.f32.gmra.mxu1 %v5547_v41  ;;  %4757 = vrot.lane.b32.xlu1 %v4743_v22, %s12429_s25  ;;  %v2110_v16 = vpop.permute.xlu1 %2109  ;;  %v4958_v34 = vld [vmem:[#allocation3 + $0x34] sm:$0xff]  ;;  %v5432_v41 = vld [vmem:[#allocation3 + $0x81] sm:$0xff]  ;;  %s12881_s25 = smov 60  }
 0x40f   :  { %3735 = vst.msk [vmem:[#allocation4 + $0x58] sm:$0x3f] %vm12745_vm2, %v12744_v55  ;;  %vm12753_vm2 = vcmask 97296   ;;  %v5030_v22 = vld [vmem:[#allocation3 + $0x57] sm:$0xff] }
 0x410   :  { %3153 = vst.msk [vmem:[#allocation4 + $0x50] sm:$0x3f] %vm12746_vm12, %v3138_v24  ;;  %vm12754_vm12 = vmmov %vm12753_vm2  ;;  %v3210_v0 = vpop.permute.xlu0 %3209 }
 0x411   :  { %3771 = vst.msk [vmem:[#allocation4 + $0x58] sm:$0x3f] %vm12748_vm14, %v12747_v26  ;;  %vm12756_vm14 = vcmask 179296   ;;  %v5396_v26 = vld [vmem:[#allocation3 + $0x5d] sm:$0xff] }
 0x412   :  { %3189 = vst.msk [vmem:[#allocation4 + $0x50] sm:$0x3f] %vm12750_vm10, %v12749_v17  ;;  %vm12758_vm10 = vcmask 261296   ;;  %5041 = vrot.lane.b32.xlu1 %v5029_v20, %s8505_s28  ;;  %v1992_v48 = vpop.permute.xlu1 %1991 }
 0x413   :  { %5098 = vst.msk [vmem:[#allocation4 + $0xa8] sm:$0xff] %vm12751_vm15, %v10759_v49  ;;  %vm12760_vm15 = vcmask 343296  }
 0x414   :  { %5138 = vst.msk [vmem:[#allocation4 + $0xa8] sm:$0xff] %vm12753_vm2, %v12752_v57  ;;  %vm12762_vm2 = vcmask 425296   ;;  %v3804_v1 = vpop.permute.xlu0 %3803  ;;  %v5553_v55 = vld [vmem:[#allocation4 + $0x70] sm:$0xff]  ;;  %v4815_v57 = vld [vmem:[#allocation3 + $0x3a] sm:$0x3f] }
 0x415   :  { %4256 = vst.msk [vmem:[#allocation4 + $0x78] sm:$0xff] %vm12754_vm12, %v4240_v11  ;;  %vm12763_vm12 = vcmask 816848  }
 0x416   :  { %4292 = vst.msk [vmem:[#allocation4 + $0x78] sm:$0xff] %vm12756_vm14, %v12755_v42  ;;  %vm12765_vm14 = vcmask 507296   ;;  %5373 = vrot.lane.b32.xlu1 %v12792_v12, %s8507_s30  ;;  %v2068_v18 = vpop.permute.xlu1 %2067  ;;  %v5289_v42 = vld [vmem:[#allocation3 + $0x1e] sm:$0x3f] }
 0x417   :  { %4328 = vst.msk [vmem:[#allocation4 + $0x78] sm:$0xff] %vm12758_vm10, %v12757_v47  ;;  %vm12770_vm10 = vcmask 980848   ;;  %v5325_v47 = vld [vmem:[#allocation3 + $0x42] sm:$0x3f] }
 0x418   :  { %4364 = vst.msk [vmem:[#allocation4 + $0x78] sm:$0xff] %vm12760_vm15, %v12759_v53  ;;  %v5550_v29 = vld [vmem:[#allocation4 + $0x58] sm:$0xff]  ;;  %vm12772_vm15 = vcmask 1046464   ;;  %v3876_v13 = vpop.permute.xlu0 %3875 }
 0x419   :  { %4400 = vst.msk [vmem:[#allocation4 + $0x78] sm:$0xff] %vm12762_vm2, %v12761_v3  ;;  %5684 = vmatprep.mubr.f32.mxu1 %v5550_v29  ;;  %vm12775_vm2 = vcmask 242848   ;;  %v2395_v29 = vld [vmem:[#allocation3 + $0x9f] sm:$0xff] }
 0x41a   :  { %3225 = vst.msk [vmem:[#allocation4 + $0x50] sm:$0x3f] %vm12763_vm12, %v3210_v0  ;;  %vm12776_vm12 = vcmask 324848   ;;  %v1996_v44 = vpop.permute.xlu1 %1995  ;;  %v2516_v0 = vld [vmem:[#allocation3 + $0xde] sm:$0xff] }
 0x41b   :  { %4436 = vst.msk [vmem:[#allocation4 + $0x78] sm:$0xff] %vm12765_vm14, %v12764_v27  ;;  %vm12778_vm14 = vcmask 406848   ;;  %v4887_v27 = vld [vmem:[#allocation3 + $0x3b] sm:$0x3f] }
 0x41c   :  { %3261 = vst.msk [vmem:[#allocation4 + $0x50] sm:$0x3f] %vm12767_vm0, %v12766_v35  ;;  %vm12773_vm0 = vcmask 160848   ;;  %v4528_v15 = vpop.permute.xlu0 %4527 }
 0x41d   :  { %4472 = vst.msk [vmem:[#allocation4 + $0x78] sm:$0xff] %vm2695_vm5, %v12768_v37 }
 0x41e   :  { %3297 = vst.msk [vmem:[#allocation4 + $0x50] sm:$0x3f] %vm12770_vm10, %v12769_v45  ;;  %vm12780_vm10 = vcmask 488848   ;;  %v2072_v54 = vpop.permute.xlu1 %2071  ;;  %v5361_v45 = vld [vmem:[#allocation3 + $0x88] sm:$0x3f] }
 0x41f   :  { %4508 = vst.msk [vmem:[#allocation4 + $0x78] sm:$0xff] %vm2733_vm9, %v10446_v21  ;;  %v10803_v21 = vld [vmem:[#allocation3 + $0x7a] sm:$0xff] }
 0x420   :  { %3335 = vst.msk [vmem:[#allocation4 + $0x50] sm:$0x3f] %vm12772_vm15, %v12771_v2  ;;  %5515 = vrot.lane.b32.xlu0 %v10803_v21, %s12686_s1  ;;  %vm12783_vm15 = vcmask 652848   ;;  %v5158_v59 = vpop.permute.xlu0 %5157 }
 0x421   :  { %3819 = vst.msk [vmem:[#allocation4 + $0x80] sm:$0x3f] %vm12773_vm0, %v3804_v1  ;;  %vm12785_vm0 = vcmask 734848   ;;  %v10874_v1 = vld [vmem:[#allocation3 + $0x102] sm:$0xff] }
 0x422   :  { %3855 = vst.msk [vmem:[#allocation4 + $0x80] sm:$0x3f] %vm12775_vm2, %v12774_v6  ;;  %vm12787_vm2 = vcmask 162896   ;;  %v2144_v31 = vpop.permute.xlu1 %2143 }
 0x423   :  { %3891 = vst.msk [vmem:[#allocation4 + $0x80] sm:$0x3f] %vm12776_vm12, %v3876_v13  ;;  %vm12789_vm12 = vcmask 816848  }
 0x424   :  { %3927 = vst.msk [vmem:[#allocation4 + $0x80] sm:$0x3f] %vm12778_vm14, %v12777_v33  ;;  %4793 = vrot.lane.b32.xlu0 %v4779_v60, %s12627_s12  ;;  %vm12790_vm14 = vcmask 917296   ;;  %v2032_v23 = vpop.permute.xlu0 %2031  ;;  %v5504_v33 = vld [vmem:[#allocation3 + $0x82] sm:$0xff] }
 0x425   :  { %3963 = vst.msk [vmem:[#allocation4 + $0x80] sm:$0x3f] %vm12780_vm10, %v12779_v19  ;;  %vm12791_vm10 = vcmask 244896   ;;  %v10891_v19 = vld [vmem:[#allocation3 + $0xa0] sm:$0xff] }
 0x426   :  { %3999 = vst.msk [vmem:[#allocation4 + $0x80] sm:$0x3f] %vm2196_vm4, %v12781_v9  ;;  %v10896_v9 = vld [vmem:[#allocation3 + $0xdf] sm:$0xff] }
 0x427   :  { %v5549_v63 = vld [vmem:[#allocation4 + $0x50] sm:$0xff]  ;;  %4035 = vst.msk [vmem:[#allocation4 + $0x80] sm:$0x3f] %vm12783_vm15, %v12782_v39  ;;  %vm12794_vm15 = vcmask 999296   ;;  %v5397_v60 = vld [vmem:[#allocation3 + $0x65] sm:$0x3f] }
 0x428   :  { %5685 = vmatmul.mubr.f32.gmra.mxu1 %v5549_v63  ;;  %4544 = vst.msk [vmem:[#allocation4 + $0x78] sm:$0xff] %vm2771_vm8, %v4528_v15  ;;  %5267 = vrot.lane.b32.xlu0 %v5253_v5, %s12433_s15  ;;  %v2108_v24 = vpop.permute.xlu0 %2107  ;;  %v2396_v5 = vld [vmem:[#allocation3 + $0xa7] sm:$0x3f] }
 0x429   :  { %5689 = vmatprep.mubr.f32.mxu1 %v5552_v25  ;;  %4071 = vst.msk [vmem:[#allocation4 + $0x80] sm:$0x3f] %vm12785_vm0, %v12784_v14  ;;  %vm12795_vm0 = vcmask 179296   ;;  %v4959_v25 = vld [vmem:[#allocation3 + $0x3c] sm:$0x3f]  ;;  %v2517_v14 = vld [vmem:[#allocation3 + $0xe6] sm:$0xff] }
 0x42a   :  { %4580 = vst.msk [vmem:[#allocation4 + $0x78] sm:$0xff] %vm2809_vm3, %v12786_v4 }
 0x42b   :  { %2008 = vst.msk [vmem:[#allocation4 + $0xc0] sm:$0xff] %vm12787_vm2, %v1992_v48  ;;  %vm12796_vm2 = vcmask 326896  }
 0x42c   :  { %4107 = vst.msk [vmem:[#allocation4 + $0x80] sm:$0x3f] %vm12789_vm12, %v12788_v36  ;;  %5690 = vmatmul.mubr.f32.gmra.mxu1 %v5551_v28  ;;  %vm12797_vm12 = vcmask 408896   ;;  %2493 = vrot.lane.b32.xlu0 %v12798_v32, %s12625_s2  ;;  %v1994_v17 = vpop.permute.xlu0 %1993  ;;  %v10909_v36 = vld [vmem:[#allocation3 + $0x103] sm:$0xff] }
 0x42d   :  { %4616 = vst.msk [vmem:[#allocation4 + $0x78] sm:$0xff] %vm12790_vm14, %v10731_v46  ;;  %v10835_v46 = vld [vmem:[#allocation3 + $0xbb] sm:$0xff]  ;;  %vm12799_vm14 = vcmask 160848  }
 0x42e   :  { %2046 = vst.msk [vmem:[#allocation4 + $0xc0] sm:$0xff] %vm12791_vm10, %v2030_v40  ;;  %2455 = vrot.lane.b32.xlu1 %v10835_v46, %s8496_s20  ;;  %vm12800_vm10 = vcmask 242848   ;;  %v2148_v40 = vpop.permute.xlu1 %2147  ;;  %v4995_v28 = vld [vmem:[#allocation3 + $0x82] sm:$0x3f] }
 0x42f   :  { %4652 = vst.msk [vmem:[#allocation4 + $0x78] sm:$0xff] %vm12794_vm15, %v12793_v8  ;;  %vm12801_vm15 = vcmask 324848   ;;  %v5433_v8 = vld [vmem:[#allocation3 + $0x89] sm:$0x3f] }
 0x430   :  { %5174 = vst.msk [vmem:[#allocation4 + $0xa8] sm:$0xff] %vm12795_vm0, %v5158_v59  ;;  %4971 = vrot.lane.b32.xlu0 %v4958_v34, %s8497_s21  ;;  %vm12802_vm0 = vcmask 406848   ;;  %v2070_v11 = vpop.permute.xlu0 %2069 }
 0x431   :  { %2084 = vst.msk [vmem:[#allocation4 + $0xc0] sm:$0xff] %vm12796_vm2, %v2068_v18  ;;  %vm12803_vm2 = vcmask 162896  }
 0x432   :  { %2122 = vst.msk [vmem:[#allocation4 + $0xc0] sm:$0xff] %vm12797_vm12, %v2106_v52  ;;  %4935 = vrot.lane.b32.xlu1 %v4922_v7, %s12421_s19  ;;  %vm12804_vm12 = vcmask 244896   ;;  %v2224_v53 = vpop.permute.xlu1 %2223 }
 0x433   :  { %2010 = vst.msk [vmem:[#allocation4 + $0xe0] sm:$0x3f] %vm12799_vm14, %v1996_v44  ;;  %vm12805_vm14 = vcmask 490896   ;;  %v2706_v44 = vld [vmem:[#allocation3 + $0x9c] sm:$0xff] }
 0x434   :  { %2048 = vst.msk [vmem:[#allocation4 + $0xe0] sm:$0x3f] %vm12800_vm10, %v2034_v30  ;;  %5445 = vrot.lane.b32.xlu0 %v5432_v41, %s12740_s10  ;;  %vm12806_vm10 = vcmask 326896   ;;  %v2146_v51 = vpop.permute.xlu0 %2145  ;;  %v10879_v30 = vld [vmem:[#allocation3 + $0xc3] sm:$0xff] }
 0x435   :  { %2086 = vst.msk [vmem:[#allocation4 + $0xe0] sm:$0x3f] %vm12801_vm15, %v2072_v54  ;;  %vm12807_vm15 = vcmask 408896  }
 0x436   :  { %v5554_v56 = vld [vmem:[#allocation4 + $0x78] sm:$0xff]  ;;  %2124 = vst.msk [vmem:[#allocation4 + $0xe0] sm:$0x3f] %vm12802_vm0, %v2110_v16  ;;  %5409 = vrot.lane.b32.xlu1 %v5396_v26, %s12628_s14  ;;  %vm12808_vm0 = vcmask 488848   ;;  %v2220_v50 = vpop.permute.xlu1 %2219  ;;  %v10932_v26 = vld [vmem:[#allocation3 + $0x10a] sm:$0xff] }
 0x437   :  { %5694 = vmatprep.mubr.f32.mxu1 %v5554_v56  ;;  %2009 = vst.msk [vmem:[#allocation4 + $0xd0] sm:$0xff] %vm12803_vm2, %v1994_v17  ;;  %vm12809_vm2 = vmmov %vm12805_vm14  ;;  %v5801_v17 = vld [vmem:[%s12344_s3 + $0xf8] sm:$0xff] }
 0x438   :  { %5695 = vmatmul.mubr.f32.gmra.mxu1 %v5553_v55  ;;  %2047 = vst.msk [vmem:[#allocation4 + $0xd0] sm:$0xff] %vm12804_vm12, %v2032_v23  ;;  %4865 = vrot.lane.b32.xlu0 %v4851_v43, %s12425_s0  ;;  %v2222_v3 = vpop.permute.xlu0 %2221  ;;  %vm12810_vm12 = vcmask 572896   ;;  %s12863_s0 = smov 30  }
 0x439   :  { %2160 = vst.msk [vmem:[#allocation4 + $0xc0] sm:$0xff] %vm12805_vm14, %v2144_v31  ;;  %vm12811_vm14 = vcmask 654896   ;;  %7863 = vmatprep.subr.mxu1 %v5801_v17  ;;  %v5785_v31 = vld [vmem:[%s12344_s3 + $0x78] sm:$0xff] }
 0x43a   :  { %4829 = vrot.lane.b32.xlu1 %v4815_v57, %s12427_s27  ;;  %2085 = vst.msk [vmem:[#allocation4 + $0xd0] sm:$0xff] %vm12806_vm10, %v2070_v11  ;;  %v2182_v35 = vpop.permute.xlu1 %2181  ;;  %vm12812_vm10 = vmmov %vm12810_vm12  ;;  %v5800_v57 = vld [vmem:[%s12344_s3 + $0xf0] sm:$0xff]  ;;  %v10946_v11 = vld [vmem:[#allocation3 + $0xe7] sm:$0xff]  ;;  %7864 = vmatpush3.msra.mxu1 %v5785_v31 }
 0x43b   :  { %2123 = vst.msk [vmem:[#allocation4 + $0xd0] sm:$0xff] %vm12807_vm15, %v2108_v24  ;;  %vm12813_vm15 = vmmov %vm12811_vm14  ;;  %v5469_v24 = vld [vmem:[#allocation3 + $0x66] sm:$0x3f]  ;;  %7865 = vmatprep.subr.mxu1 %v5800_v57  ;;  %v5772_v31 = vld [vmem:[%s12344_s3 + $0x10] sm:$0xff] }
 0x43c   :  { %2162 = vst.msk [vmem:[#allocation4 + $0xe0] sm:$0x3f] %vm12808_vm0, %v2148_v40  ;;  %5339 = vrot.lane.b32.xlu0 %v5325_v47, %s8514_s16  ;;  %v2184_v52 = vpop.permute.xlu0 %2183  ;;  %vm12814_vm0 = vcmask 736896   ;;  %v5031_v40 = vld [vmem:[#allocation3 + $0x5f] sm:$0x3f]  ;;  %v5787_v57 = vld [vmem:[%s12344_s3 + $0x88] sm:$0xff] }
 0x43d   :  { %2161 = vst.msk [vmem:[#allocation4 + $0xd0] sm:$0xff] %vm12809_vm2, %v2146_v51  ;;  %vm12815_vm2 = vmmov %vm12814_vm0  ;;  %v5799_v51 = vld [vmem:[%s12344_s3 + $0xe8] sm:$0xff] }
 0x43e   :  { %5303 = vrot.lane.b32.xlu1 %v5289_v42, %s8515_s17  ;;  %2199 = vst.msk [vmem:[#allocation4 + $0xd0] sm:$0xff] %vm12810_vm12, %v2184_v52  ;;  %v2258_v2 = vpop.permute.xlu1 %2257  ;;  %vm12816_vm12 = vcmask 898848   ;;  %v5784_v42 = vld [vmem:[%s12344_s3 + $0x70] sm:$0xff]  ;;  %v5782_v52 = vld [vmem:[%s12344_s3 + $0x60] sm:$0xff] }
 0x43f   :  { %2237 = vst.msk [vmem:[#allocation4 + $0xd0] sm:$0xff] %vm12811_vm14, %v2222_v3  ;;  %vm12817_vm14 = vcmask 915248   ;;  %7866 = vmatpush3.msra.mxu1 %v5784_v42  ;;  %v10965_v3 = vld [vmem:[#allocation3 + $0xda] sm:$0xff] }
 0x440   :  { %2411 = vrot.lane.b32.xlu0 %v2395_v29, %s8503_s26  ;;  %2198 = vst.msk [vmem:[#allocation4 + $0xc0] sm:$0xff] %vm12812_vm10, %v2182_v35  ;;  %v2260_v37 = vpop.permute.xlu0 %2259  ;;  %vm12818_vm10 = vcmask 244896   ;;  %7867 = vmatprep.subr.mxu1 %v5799_v51  ;;  %v5786_v42 = vld [vmem:[%s12344_s3 + $0x80] sm:$0xff] }
 0x441   :  { %2236 = vst.msk [vmem:[#allocation4 + $0xc0] sm:$0xff] %vm12813_vm15, %v2220_v50  ;;  %vm12819_vm15 = vcmask 652848   ;;  %v2442_v50 = vld [vmem:[#allocation3 + $0xcb] sm:$0x3f] }
 0x442   :  { %2531 = vrot.lane.b32.xlu1 %v2516_v0, %s12437_s13  ;;  %2275 = vst.msk [vmem:[#allocation4 + $0xd0] sm:$0xff] %vm12814_vm0, %v2260_v37  ;;  %v4602_v6 = vpop.permute.xlu1 %4601  ;;  %vm12820_vm0 = vcmask 261296   ;;  %v5798_v0 = vld [vmem:[%s12344_s3 + $0xe0] sm:$0xff]  ;;  %v5796_v37 = vld [vmem:[%s12344_s3 + $0xd0] sm:$0xff] }
 0x443   :  { %2274 = vst.msk [vmem:[#allocation4 + $0xc0] sm:$0xff] %vm12815_vm2, %v2258_v2  ;;  %vm12821_vm2 = vcmask 734848  }
 0x444   :  { %4901 = vrot.lane.b32.xlu0 %v4887_v27, %s12423_s29  ;;  %v4128_v62 = vpop.permute.xlu0 %4127  ;;  %4617 = vst.msk [vmem:[#allocation4 + $0x88] sm:$0x3f] %vm12817_vm14, %v4602_v6  ;;  %vm12823_vm14 = vcmask 1046464   ;;  %v5797_v27 = vld [vmem:[%s12344_s3 + $0xd8] sm:$0xff]  ;;  %v5780_v6 = vld [vmem:[%s12344_s3 + $0x50] sm:$0xff]  ;;  %s12888_s29 = smov 80  }
 0x445   :  { %4143 = vst.msk [vmem:[#allocation4 + $0x80] sm:$0x3f] %vm12816_vm12, %v4128_v62  ;;  %vm12822_vm12 = vcmask 980848   ;;  %v10989_v62 = vld [vmem:[#allocation3 + $0xc0] sm:$0xff] }
 0x446   :  { %5007 = vrot.lane.b32.xlu1 %v10803_v21, %s12653_s11  ;;  %v4923_v21 = vld [vmem:[#allocation3 + $0x18] sm:$0x3f]  ;;  %v2186_v16 = vpop.permute.xlu1 %2185 }
 0x447   :  { %2200 = vst.msk [vmem:[#allocation4 + $0xe0] sm:$0x3f] %vm2196_vm4, %v2186_v16  ;;  %v5794_v16 = vld [vmem:[%s12344_s3 + $0xc0] sm:$0xff] }
 0x448   :  { %5375 = vrot.lane.b32.xlu0 %v5361_v45, %s8507_s30  ;;  %v4720_v13 = vpop.permute.xlu0 %4719  ;;  %2238 = vst.msk [vmem:[#allocation4 + $0xe0] sm:$0x3f] %vm12819_vm15, %v2224_v53  ;;  %vm12825_vm15 = vcmask 326896   ;;  %v5783_v53 = vld [vmem:[%s12344_s3 + $0x68] sm:$0xff] }
 0x449   :  { %4736 = vst.msk [vmem:[#allocation4 + $0xa0] sm:$0xff] %vm12818_vm10, %v4720_v13  ;;  %vm12824_vm10 = vcmask 572896   ;;  %7868 = vmatpush3.msra.mxu1 %v5783_v53  ;;  %v10984_v45 = vld [vmem:[#allocation3 + $0x10b] sm:$0xff]  ;;  %v5770_v53 = vld [vmem:[%s12344_s3] sm:$0xff] }
 0x44a   :  { %5481 = vrot.lane.b32.xlu1 %v5468_v10, %s12635_s22  ;;  %v2262_v63 = vpop.permute.xlu1 %2261  ;;  %7869 = vmatprep.subr.mxu1 %v5798_v0  ;;  %v5781_v10 = vld [vmem:[%s12344_s3 + $0x58] sm:$0xff] }
 0x44b   :  { %2276 = vst.msk [vmem:[#allocation4 + $0xe0] sm:$0x3f] %vm12821_vm2, %v2262_v63  ;;  %vm12827_vm2 = vcmask 997248   ;;  %7870 = vmatpush3.msra.mxu1 %v5782_v52  ;;  %v2480_v63 = vld [vmem:[#allocation3 + $0xa8] sm:$0x3f]  ;;  %v11098_v52 = vld [vmem:[#allocation3 + $0x9e] sm:$0xff] }
 0x44c   :  { %2457 = vrot.lane.b32.xlu0 %v10879_v30, %s8496_s20  ;;  %v5194_v20 = vpop.permute.xlu0 %5193  ;;  %7871 = vmatprep.subr.mxu1 %v5797_v27 }
 0x44d   :  { %5210 = vst.msk [vmem:[#allocation4 + $0xa8] sm:$0xff] %vm12820_vm0, %v5194_v20  ;;  %vm12826_vm0 = vcmask 13312   ;;  %7872 = vmatpush3.msra.mxu1 %v5781_v10 }
 0x44e   :  { %2569 = vrot.lane.b32.xlu1 %v10874_v1, %s12435_s18  ;;  %v4862_v39 = vpop.permute.xlu1 %4861  ;;  %7873 = vmatprep.subr.mxu1 %v5796_v37  ;;  %v2594_v37 = vld [vmem:[#allocation3 + $0xef] sm:$0x3f] }
 0x44f   :  { %4879 = vst.msk [vmem:[#allocation4 + $0x90] sm:$0xff] %vm12824_vm10, %v4862_v39  ;;  %vm12830_vm10 = vcmask 343296   ;;  %7874 = vmatpush3.msra.mxu1 %v5780_v6  ;;  %v11112_v6 = vld [vmem:[#allocation3 + $0xa5] sm:$0xff] }
 0x450   :  { %4937 = vrot.lane.b32.xlu0 %v4923_v21, %s12421_s19  ;;  %v4164_v15 = vpop.permute.xlu0 %4163  ;;  %v5779_v21 = vld [vmem:[%s12344_s3 + $0x48] sm:$0xff]  ;;  %s12886_s19 = smov 70  }
 0x451   :  { %4179 = vst.msk [vmem:[#allocation4 + $0x80] sm:$0x3f] %vm12822_vm12, %v4164_v15  ;;  %vm12828_vm12 = vcmask 654896   ;;  %v5778_v15 = vld [vmem:[%s12344_s3 + $0x40] sm:$0xff] }
 0x452   :  { %5043 = vrot.lane.b32.xlu1 %v5030_v22, %s8505_s28  ;;  %4217 = vst.msk [vmem:[#allocation4 + $0x80] sm:$0x3f] %vm12823_vm14, %v10431_v58  ;;  %v5336_v4 = vpop.permute.xlu1 %5335  ;;  %vm12829_vm14 = vcmask 736896   ;;  %v5795_v22 = vld [vmem:[%s12344_s3 + $0xc8] sm:$0xff] }
 0x453   :  { %5353 = vst.msk [vmem:[#allocation4 + $0x98] sm:$0xff] %vm2695_vm5, %v5336_v4  ;;  %7875 = vmatprep.subr.mxu1 %v5795_v22 }
 0x454   :  { %2495 = vrot.lane.b32.xlu0 %v10891_v19, %s12625_s2  ;;  %v4756_v48 = vpop.permute.xlu0 %4755  ;;  %7876 = vmatpush3.msra.mxu1 %v5779_v21 }
 0x455   :  { %4772 = vst.msk [vmem:[#allocation4 + $0xa0] sm:$0xff] %vm12825_vm15, %v4756_v48  ;;  %vm12831_vm15 = vcmask 425296   ;;  %7877 = vmatprep.subr.mxu1 %v5794_v16  ;;  %v5792_v48 = vld [vmem:[%s12344_s3 + $0xb0] sm:$0xff] }
 0x456   :  { %5517 = vrot.lane.b32.xlu1 %v5504_v33, %s12686_s1  ;;  %v4638_v12 = vpop.permute.xlu1 %4637  ;;  %v2318_v33 = vld [vmem:[#allocation3 + $0x96] sm:$0xff]  ;;  %7878 = vmatpush3.msra.mxu1 %v5778_v15  ;;  %v12853_v16 = vld [vmem:[#allocation48_spill] sm:$0xff] }
 0x457   :  { %4653 = vst.msk [vmem:[#allocation4 + $0x88] sm:$0x3f] %vm12827_vm2, %v4638_v12  ;;  %vm12833_vm2 = vcmask 160848   ;;  %v5776_v12 = vld [vmem:[%s12344_s3 + $0x30] sm:$0xff] }
 0x458   :  { %4973 = vrot.lane.b32.xlu0 %v4959_v25, %s8497_s21  ;;  %v10913_v58 = vpop.permute.xlu0 %5081  ;;  %v5793_v25 = vld [vmem:[%s12344_s3 + $0xb8] sm:$0xff] }
 0x459   :  { %5100 = vst.msk [vmem:[#allocation4 + $0xb8] sm:$0x3f] %vm12826_vm0, %v10913_v58  ;;  %v5555_v55 = vld [vmem:[#allocation4 + $0x80] sm:$0xff]  ;;  %vm12832_vm0 = vcmask 408896   ;;  %7879 = vmatprep.subr.mxu1 %v5793_v25  ;;  %v2908_v25 = vld [vmem:[#allocation3 + $0x91] sm:$0xff] }
 0x45a   :  { %2607 = vrot.lane.b32.xlu1 %v10896_v9, %s12433_s15  ;;  %v4898_v18 = vpop.permute.xlu1 %4897 }
 0x45b   :  { %4915 = vst.msk [vmem:[#allocation4 + $0x90] sm:$0xff] %vm12828_vm12, %v4898_v18  ;;  %vm12834_vm12 = vcmask 95248   ;;  %v5790_v18 = vld [vmem:[%s12344_s3 + $0xa0] sm:$0xff] }
 0x45c   :  { %2533 = vrot.lane.b32.xlu0 %v2517_v14, %s12437_s13  ;;  %v5372_v59 = vpop.permute.xlu0 %5371  ;;  %v11022_v14 = vld [vmem:[#allocation3 + $0xe8] sm:$0xff] }
 0x45d   :  { %5389 = vst.msk [vmem:[#allocation4 + $0x98] sm:$0xff] %vm2733_vm9, %v5372_v59 }
 0x45e   :  { %5411 = vrot.lane.b32.xlu1 %v5397_v60, %s12628_s14  ;;  %v5230_v7 = vpop.permute.xlu1 %5229  ;;  %v5556_v56 = vld [vmem:[#allocation4 + $0x88] sm:$0xff]  ;;  %v5777_v60 = vld [vmem:[%s12344_s3 + $0x38] sm:$0xff] }
 0x45f   :  { %5246 = vst.msk [vmem:[#allocation4 + $0xa8] sm:$0xff] %vm12830_vm10, %v5230_v7  ;;  %5699 = vmatprep.mubr.f32.mxu1 %v5556_v56  ;;  %vm12836_vm10 = vcmask 507296   ;;  %7880 = vmatpush3.msra.mxu1 %v5777_v60  ;;  %v2518_v7 = vld [vmem:[#allocation3 + $0xee] sm:$0x3f]  ;;  %v5774_v56 = vld [vmem:[%s12344_s3 + $0x20] sm:$0xff]  ;;  %v2944_v60 = vld [vmem:[#allocation3 + $0xb5] sm:$0xff] }
 0x460   :  { %5009 = vrot.lane.b32.xlu0 %v4995_v28, %s12653_s11  ;;  %v4934_v23 = vpop.permute.xlu0 %4933  ;;  %5700 = vmatmul.mubr.f32.gmra.mxu1 %v5555_v55  ;;  %v11027_v28 = vld [vmem:[#allocation3 + $0x9d] sm:$0xff] }
 0x461   :  { %4951 = vst.msk [vmem:[#allocation4 + $0x90] sm:$0xff] %vm12829_vm14, %v4934_v23  ;;  %vm12835_vm14 = vcmask 818896   ;;  %7881 = vmatprep.subr.mxu1 %v5792_v48  ;;  %v11044_v23 = vld [vmem:[#allocation3 + $0xba] sm:$0xff] }
 0x462   :  { %2645 = vrot.lane.b32.xlu1 %v10909_v36, %s8515_s17  ;;  %v4792_v54 = vpop.permute.xlu1 %4791  ;;  %7882 = vmatpush3.msra.mxu1 %v5776_v12  ;;  %v11134_v12 = vld [vmem:[#allocation3 + $0xc2] sm:$0xff] }
 0x463   :  { %4808 = vst.msk [vmem:[#allocation4 + $0xa0] sm:$0xff] %vm12832_vm0, %v4792_v54  ;;  %vm12838_vm0 = vcmask 242848   ;;  %v2707_v54 = vld [vmem:[#allocation3 + $0xa4] sm:$0xff] }
 0x464   :  { %2413 = vrot.lane.b32.xlu0 %v2396_v5, %s8503_s26  ;;  %v5266_v34 = vpop.permute.xlu0 %5265  ;;  %v5775_v5 = vld [vmem:[%s12344_s3 + $0x28] sm:$0xff] }
 0x465   :  { %5282 = vst.msk [vmem:[#allocation4 + $0xa8] sm:$0xff] %vm12831_vm15, %v5266_v34  ;;  %vm12837_vm15 = vcmask 490896   ;;  %v5773_v34 = vld [vmem:[%s12344_s3 + $0x18] sm:$0xff] }
 0x466   :  { %5447 = vrot.lane.b32.xlu1 %v5433_v8, %s12740_s10  ;;  %v5124_v43 = vpop.permute.xlu1 %5123  ;;  %v5791_v8 = vld [vmem:[%s12344_s3 + $0xa8] sm:$0xff] }
 0x467   :  { %5139 = vst.msk [vmem:[#allocation4 + $0xb8] sm:$0x3f] %vm12834_vm12, %v5124_v43  ;;  %vm12840_vm12 = vcmask 900896   ;;  %7883 = vmatprep.subr.mxu1 %v5791_v8 }
 0x468   :  { %2721 = vrot.lane.b32.xlu0 %v2706_v44, %s8507_s30  ;;  %v4686_v41 = vpop.permute.xlu0 %4685  ;;  %7884 = vmatpush3.msra.mxu1 %v5775_v5 }
 0x469   :  { %4701 = vst.msk [vmem:[#allocation4 + $0xb0] sm:$0x3f] %vm12833_vm2, %v4686_v41  ;;  %vm12839_vm2 = vcmask 177248   ;;  %7885 = vmatprep.subr.mxu1 %v5790_v18  ;;  %v11068_v41 = vld [vmem:[#allocation3 + $0xc1] sm:$0xff] }
 0x46a   :  { %2683 = vrot.lane.b32.xlu1 %v10479_v38, %s8514_s16  ;;  %v5505_v38 = vld [vmem:[#allocation3 + $0x8a] sm:$0x3f]  ;;  %v5408_v29 = vpop.permute.xlu1 %5407  ;;  %7886 = vmatpush3.msra.mxu1 %v5774_v56 }
 0x46b   :  { %5425 = vst.msk [vmem:[#allocation4 + $0x98] sm:$0xff] %vm2771_vm8, %v5408_v29  ;;  %v11093_v29 = vld [vmem:[#allocation3 + $0xc8] sm:$0xff] }
 0x46c   :  { %5519 = vrot.lane.b32.xlu0 %v5505_v38, %s12686_s1  ;;  %v4970_v47 = vpop.permute.xlu0 %4969  ;;  %v5788_v38 = vld [vmem:[%s12344_s3 + $0x90] sm:$0xff]  ;;  %v11144_v18 = vld [vmem:[#allocation3 + $0xa6] sm:$0xff] }
 0x46d   :  { %4987 = vst.msk [vmem:[#allocation4 + $0x90] sm:$0xff] %vm12835_vm14, %v4970_v47  ;;  %vm12841_vm14 = vcmask 572896   ;;  %v2556_v47 = vld [vmem:[#allocation3 + $0x112] sm:$0x3f] }
 0x46e   :  { %5483 = vrot.lane.b32.xlu1 %v5469_v24, %s12635_s22  ;;  %v4828_v2 = vpop.permute.xlu1 %4827  ;;  %v5789_v24 = vld [vmem:[%s12344_s3 + $0x98] sm:$0xff] }
 0x46f   :  { %4844 = vst.msk [vmem:[#allocation4 + $0xa0] sm:$0xff] %vm12837_vm15, %v4828_v2  ;;  %7887 = vmatprep.subr.mxu1 %v5789_v24  ;;  %vm12843_vm15 = vcmask 259248   ;;  %v2708_v24 = vld [vmem:[#allocation3 + $0xac] sm:$0x3f] }
 0x470   :  { %2609 = vrot.lane.b32.xlu0 %v10946_v11, %s12433_s15  ;;  %v5302_v35 = vpop.permute.xlu0 %5301  ;;  %7888 = vmatpush3.msra.mxu1 %v5773_v34  ;;  %s12846_s15 = smov 32  }
 0x471   :  { %5318 = vst.msk [vmem:[#allocation4 + $0xa8] sm:$0xff] %vm12836_vm10, %v5302_v35  ;;  %vm12842_vm10 = vcmask 15360   ;;  %7889 = vmatprep.subr.mxu1 %v5788_v38  ;;  %v11103_v35 = vld [vmem:[#allocation3 + $0xe2] sm:$0xff]  ;;  %v2746_v38 = vld [vmem:[#allocation3 + $0xd0] sm:$0x3f] }
 0x472   :  { %2571 = vrot.lane.b32.xlu1 %v10932_v26, %s12435_s18  ;;  %v5160_v20 = vpop.permute.xlu1 %5159  ;;  %7890 = vmatpush3.msra.mxu1 %v5772_v31  ;;  %s12857_s18 = smov 10   ;;  %v11167_v31 = vpop.f32.mrf.mxu1 }
 0x473   :  { %5175 = vst.msk [vmem:[#allocation4 + $0xb8] sm:$0x3f] %vm12839_vm2, %v5160_v20  ;;  %7891 = vmatprep.subr.mxu1 %v5787_v57  ;;  %vm12845_vm2 = vcmask 917296  }
 0x474   :  { %2295 = vrot.lane.b32.xlu0 %v10965_v3, %s8497_s21  ;;  %v4722_v13 = vpop.permute.xlu0 %4721 }
 0x475   :  { %4737 = vst.msk [vmem:[#allocation4 + $0xb0] sm:$0x3f] %vm12838_vm0, %v4722_v13  ;;  %vm12844_vm0 = vcmask 654896  }
 0x476   :  { %5045 = vrot.lane.b32.xlu1 %v5031_v40, %s8505_s28  ;;  %v5444_v4 = vpop.permute.xlu1 %5443  ;;  %v5771_v40 = vld [vmem:[%s12344_s3 + $0x8] sm:$0xff]  ;;  %s12851_s3 = smov 42  }
 0x477   :  { %5461 = vst.msk [vmem:[#allocation4 + $0x98] sm:$0xff] %vm2809_vm3, %v5444_v4  ;;  %7892 = vmatpush3.msra.mxu1 %v5771_v40 }
 0x478   :  { %2647 = vrot.lane.b32.xlu0 %v10984_v45, %s8515_s17  ;;  %v5006_v39 = vpop.permute.xlu0 %5005  ;;  %7893 = vmatprep.subr.mxu1 %v5786_v42  ;;  %v3016_v42 = vld [vmem:[#allocation3 + $0xb6] sm:$0xff] }
 0x479   :  { %5023 = vst.msk [vmem:[#allocation4 + $0x90] sm:$0xff] %vm12840_vm12, %v5006_v39  ;;  %7894 = vmatpush3.msra.mxu1 %v5770_v53  ;;  %vm12847_vm12 = vcmask 324848  }
 0x47a   :  { %2459 = vrot.lane.b32.xlu1 %v2442_v50, %s8496_s20  ;;  %v4864_v44 = vpop.permute.xlu1 %4863  ;;  %v8470_v50 = vld [vmem:[#allocation4 + $0xd8] sm:$0xff] }
 0x47b   :  { %4880 = vst.msk [vmem:[#allocation4 + $0xa0] sm:$0xff] %vm12841_vm14, %v4864_v44  ;;  %8244 = vmatprep.subr.mxu1 %v8470_v50  ;;  %vm12848_vm14 = vcmask 999296  }
 0x47c   :  { %2333 = vrot.lane.b32.xlu0 %v2318_v33, %s12653_s11  ;;  %v5338_v59 = vpop.permute.xlu0 %5337  ;;  %v2632_v33 = vld [vmem:[#allocation3 + $0x113] sm:$0x3f] }
 0x47d   :  { %5354 = vst.msk [vmem:[#allocation4 + $0xa8] sm:$0xff] %vm2695_vm5, %v5338_v59  ;;  %v11139_v59 = vld [vmem:[#allocation3 + $0xc9] sm:$0xff] }
 0x47e   :  { %2759 = vrot.lane.b32.xlu1 %v10989_v62, %s12628_s14  ;;  %v5196_v17 = vpop.permute.xlu1 %5195 }
 0x47f   :  { %5211 = vst.msk [vmem:[#allocation4 + $0xb8] sm:$0x3f] %vm12843_vm15, %v5196_v17  ;;  %vm12850_vm15 = vcmask 1048512  }
 0x480   :  { %2685 = vrot.lane.b32.xlu0 %v11022_v14, %s8514_s16  ;;  %v11056_v55 = vpop.permute.xlu0 %2409 }
 0x481   :  { %2432 = vst.msk [vmem:[#allocation4 + $0xc8] sm:$0xff] %vm12842_vm10, %v11056_v55  ;;  %vm12849_vm10 = vcmask 982896  }
 0x482   :  { %2497 = vrot.lane.b32.xlu1 %v2480_v63, %s12625_s2  ;;  %v5480_v51 = vpop.permute.xlu1 %5479 }
 0x483   :  { %5497 = vst.msk [vmem:[#allocation4 + $0x98] sm:$0xff] %vm12845_vm2, %v5480_v51  ;;  %vm12854_vm2 = vcmask 97296   ;;  %v11174_v51 = vpop.f32.mrf.mxu1 }
 0x484   :  { %2371 = vrot.lane.b32.xlu0 %v11044_v23, %s8505_s28  ;;  %v4900_v43 = vpop.permute.xlu0 %4899 }
 0x485   :  { %4916 = vst.msk [vmem:[#allocation4 + $0xa0] sm:$0xff] %vm12844_vm0, %v4900_v43  ;;  %vm12852_vm0 = vcmask 406848   ;;  %v2282_v43 = vld [vmem:[#allocation3 + $0xea] sm:$0x3f] }
 0x486   :  { %2797 = vrot.lane.b32.xlu1 %v11027_v28, %s12740_s10 }
 0x488   :  { %2723 = vrot.lane.b32.xlu0 %v2707_v54, %s8507_s30  ;;  %v5232_v0 = vpop.permute.xlu0 %5231 }
 0x489   :  { %5247 = vst.msk [vmem:[#allocation4 + $0xb8] sm:$0x3f] %vm2584_vm6, %v5232_v0 }
 0x48a   :  { %2535 = vrot.lane.b32.xlu1 %v2518_v7, %s12437_s13 }
 0x48c   :  { %3319 = vrot.lane.b32.xlu0 %v10835_v46, %s8503_s26  ;;  %v4758_v46 = vpop.permute.xlu1 %4757 }
 0x48d   :  { %4773 = vst.msk [vmem:[#allocation4 + $0xb0] sm:$0x3f] %vm12847_vm12, %v4758_v46  ;;  %vm12855_vm12 = vcmask 179296  }
 0x48e   :  { %2835 = vrot.lane.b32.xlu1 %v11068_v41, %s12635_s22 }
 0x490   :  { %2761 = vrot.lane.b32.xlu0 %v11093_v29, %s12628_s14  ;;  %v5042_v10 = vpop.permute.xlu1 %5041 }
 0x491   :  { %5059 = vst.msk [vmem:[#allocation4 + $0x90] sm:$0xff] %vm12849_vm10, %v5042_v10  ;;  %vm12858_vm10 = vcmask 818896   ;;  %v3383_v10 = vld [vmem:[#allocation3 + $0xc4] sm:$0xff] }
 0x492   :  { %2573 = vrot.lane.b32.xlu1 %v2556_v47, %s12846_s15  ;;  %v5516_v27 = vpop.permute.xlu0 %5515  ;;  %5095 = vst.msk [vmem:[#allocation4 + $0x90] sm:$0xff] %vm12850_vm15, %v10588_v61  ;;  %vm12859_vm15 = vcmask 488848   ;;  %v2909_v47 = vld [vmem:[#allocation3 + $0x99] sm:$0xff] }
 0x493   :  { %5533 = vst.msk [vmem:[#allocation4 + $0x98] sm:$0xff] %vm12848_vm14, %v5516_v27  ;;  %vm12856_vm14 = vcmask 736896  }
 0x494   :  { %2297 = vrot.lane.b32.xlu0 %v11103_v35, %s8497_s21  ;;  %v5374_v22 = vpop.permute.xlu1 %5373 }
 0x495   :  { %5390 = vst.msk [vmem:[#allocation4 + $0xa8] sm:$0xff] %vm2733_vm9, %v5374_v22 }
 0x496   :  { %2873 = vrot.lane.b32.xlu1 %v11098_v52, %s12686_s1  ;;  %v4794_v2 = vpop.permute.xlu0 %4793 }
 0x497   :  { %4809 = vst.msk [vmem:[#allocation4 + $0xb0] sm:$0x3f] %vm12852_vm0, %v4794_v2  ;;  %vm12860_vm0 = vcmask 261296   ;;  %v2784_v2 = vld [vmem:[#allocation3 + $0xad] sm:$0x3f] }
 0x498   :  { %2799 = vrot.lane.b32.xlu0 %v11112_v6, %s12740_s10 }
 0x499   :  { %v5557_v20 = vld [vmem:[#allocation4 + $0x90] sm:$0xff] }
 0x49a   :  { %2611 = vrot.lane.b32.xlu1 %v2594_v37, %s12851_s3  ;;  %v5268_v13 = vpop.permute.xlu0 %5267  ;;  %v5558_v21 = vld [vmem:[#allocation4 + $0x98] sm:$0xff] }
 0x49b   :  { %5283 = vst.msk [vmem:[#allocation4 + $0xb8] sm:$0x3f] %vm2622_vm7, %v5268_v13  ;;  %5704 = vmatprep.mubr.f32.mxu1 %v5558_v21 }
 0x49c   :  { %3397 = vrot.lane.b32.xlu0 %v12853_v16, %s12625_s2  ;;  %5705 = vmatmul.mubr.f32.gmra.mxu1 %v5557_v20 }
 0x49e   :  { %3361 = vrot.lane.b32.xlu1 %v12798_v32, %s8496_s20  ;;  %v2494_v63 = vpop.permute.xlu0 %2493  ;;  %v2670_v32 = vld [vmem:[#allocation3 + $0xf0] sm:$0x3f] }
 0x4a0   :  { %v2456_v61 = vpop.permute.xlu1 %2455  ;;  %2687 = vrot.lane.b32.xlu0 %v2670_v32, %s8514_s16 }
 0x4a1   :  { %2472 = vst.msk [vmem:[#allocation4 + $0xc8] sm:$0xff] %vm12854_vm2, %v2456_v61  ;;  %vm12861_vm2 = vcmask 15360   ;;  %v11193_v61 = vld [vmem:[#allocation3 + $0xfc] sm:$0xff] }
 0x4a2   :  { %2649 = vrot.lane.b32.xlu1 %v2632_v33, %s8515_s17  ;;  %2510 = vst.msk [vmem:[#allocation4 + $0xc8] sm:$0xff] %vm12855_vm12, %v2494_v63  ;;  %v4972_v39 = vpop.permute.xlu0 %4971  ;;  %vm12862_vm12 = vcmask 900896   ;;  %v2945_v63 = vld [vmem:[#allocation3 + $0xbd] sm:$0xff] }
 0x4a4   :  { %v4936_v15 = vpop.permute.xlu1 %4935  ;;  %2959 = vrot.lane.b32.xlu0 %v2944_v60, %s12626_s23 }
 0x4a5   :  { %4952 = vst.msk [vmem:[#allocation4 + $0xa0] sm:$0xff] %vm12856_vm14, %v4936_v15  ;;  %vm12864_vm14 = vcmask 652848  }
 0x4a6   :  { %2923 = vrot.lane.b32.xlu1 %v2908_v25, %s12857_s18  ;;  %4988 = vst.msk [vmem:[#allocation4 + $0xa0] sm:$0xff] %vm12858_vm10, %v4972_v39  ;;  %v5446_v4 = vpop.permute.xlu0 %5445  ;;  %vm12865_vm10 = vcmask 917296   ;;  %v11204_v39 = vld [vmem:[#allocation3 + $0xe0] sm:$0xff] }
 0x4a8   :  { %v5410_v48 = vpop.permute.xlu1 %5409  ;;  %2373 = vrot.lane.b32.xlu0 %v11134_v12, %s8505_s28 }
 0x4a9   :  { %5426 = vst.msk [vmem:[#allocation4 + $0xa8] sm:$0xff] %vm2771_vm8, %v5410_v48 }
 0x4aa   :  { %2335 = vrot.lane.b32.xlu1 %v11098_v52, %s12653_s11  ;;  %5462 = vst.msk [vmem:[#allocation4 + $0xa8] sm:$0xff] %vm2809_vm3, %v5446_v4  ;;  %v4866_v5 = vpop.permute.xlu0 %4865 }
 0x4ac   :  { %v4830_v8 = vpop.permute.xlu1 %4829  ;;  %2875 = vrot.lane.b32.xlu0 %v11144_v18, %s12686_s1  ;;  %v7830_v53 = vpop.f32.mrf.mxu1 }
 0x4ad   :  { %4845 = vst.msk [vmem:[#allocation4 + $0xb0] sm:$0x3f] %vm12859_vm15, %v4830_v8  ;;  %vm12866_vm15 = vcmask 343296  }
 0x4ae   :  { %2837 = vrot.lane.b32.xlu1 %v11139_v59, %s12635_s22  ;;  %4881 = vst.msk [vmem:[#allocation4 + $0xb0] sm:$0x3f] %vm2196_vm4, %v4866_v5  ;;  %v5340_v7 = vpop.permute.xlu0 %5339  ;;  %v7831_v50 = vpop.f32.mrf.mxu1  ;;  %v2822_v5 = vld [vmem:[#allocation3 + $0xd1] sm:$0x3f] }
 0x4af   :  { %v11184_v27 = vadd.f32 %v7831_v50, %v7830_v53  ;;  %v11244_v50 = vld [vmem:[#allocation3 + $0xfd] sm:$0xff] }
 0x4b0   :  { %v5304_v44 = vpop.permute.xlu1 %5303  ;;  %3321 = vrot.lane.b32.xlu0 %v10879_v30, %s8503_s26 }
 0x4b1   :  { %5319 = vst.msk [vmem:[#allocation4 + $0xb8] sm:$0x3f] %vm2660_vm1, %v5304_v44 }
 0x4b2   :  { %3433 = vrot.lane.b32.xlu1 %v10874_v1, %s12437_s13  ;;  %5355 = vst.msk [vmem:[#allocation4 + $0xb8] sm:$0x3f] %vm2698_vm13, %v5340_v7  ;;  %v11156_v34 = vpop.permute.xlu0 %2411  ;;  %v2980_v1 = vld [vmem:[#allocation3 + $0x92] sm:$0xff] }
 0x4b3   :  { %2434 = vst.msk [vmem:[#allocation4 + $0xd8] sm:$0xff] %vm12861_vm2, %v11156_v34  ;;  %vm12868_vm2 = vcmask 982896  }
 0x4b4   :  { %v2532_v56 = vpop.permute.xlu1 %2531  ;;  %2763 = vrot.lane.b32.xlu0 %v2746_v38, %s12628_s14 }
 0x4b5   :  { %2548 = vst.msk [vmem:[#allocation4 + $0xc8] sm:$0xff] %vm12860_vm0, %v2532_v56  ;;  %vm12867_vm0 = vcmask 97296  }
 0x4b6   :  { %2725 = vrot.lane.b32.xlu1 %v2708_v24, %s8507_s30  ;;  %v4902_v30 = vpop.permute.xlu0 %4901  ;;  %v2358_v24 = vld [vmem:[#allocation3 + $0xca] sm:$0x3f] }
 0x4b7   :  { %4917 = vst.msk [vmem:[#allocation4 + $0xb0] sm:$0x3f] %vm12864_vm14, %v4902_v30  ;;  %vm12870_vm14 = vcmask 734848  }
 0x4b8   :  { %v5008_v54 = vpop.permute.xlu1 %5007  ;;  %3363 = vrot.lane.b32.xlu0 %v10891_v19, %s8496_s20 }
 0x4b9   :  { %5024 = vst.msk [vmem:[#allocation4 + $0xa0] sm:$0xff] %vm12862_vm12, %v5008_v54  ;;  %vm12869_vm12 = vcmask 1048512  }
 0x4ba   :  { %2995 = vrot.lane.b32.xlu1 %v2980_v1, %s12863_s0  ;;  %v5376_v57 = vpop.permute.xlu0 %5375  ;;  %v11220_v1 = vld [vmem:[#allocation3 + $0xd9] sm:$0xff] }
 0x4bb   :  { %5391 = vst.msk [vmem:[#allocation4 + $0xb8] sm:$0x3f] %vm12439_vm11, %v5376_v57  ;;  %v7833_v21 = vpop.f32.mrf.mxu1 }
 0x4bc   :  { %v5482_v17 = vpop.permute.xlu1 %5481  ;;  %2299 = vrot.lane.b32.xlu0 %v2282_v43, %s8497_s21  ;;  %v11232_v43 = vld [vmem:[#allocation3 + $0x104] sm:$0xff] }
 0x4bd   :  { %5498 = vst.msk [vmem:[#allocation4 + $0xa8] sm:$0xff] %vm12865_vm10, %v5482_v17  ;;  %vm12871_vm10 = vcmask 999296   ;;  %v7834_v16 = vpop.f32.mrf.mxu1  ;;  %v2981_v17 = vld [vmem:[#allocation3 + $0x9a] sm:$0xff] }
 0x4be   :  { %3469 = vrot.lane.b32.xlu1 %v10896_v9, %s12846_s15  ;;  %v2458_v19 = vpop.permute.xlu0 %2457  ;;  %v11197_v20 = vadd.f32 %v7834_v16, %v7833_v21 }
 0x4bf   :  { %2473 = vst.msk [vmem:[#allocation4 + $0xd8] sm:$0xff] %vm12867_vm0, %v2458_v19  ;;  %vm12873_vm0 = vcmask 425296   ;;  %v11200_v25 = vpop.f32.mrf.mxu1 }
 0x4c0   :  { %v2570_v40 = vpop.permute.xlu1 %2569  ;;  %2925 = vrot.lane.b32.xlu0 %v2909_v47, %s12857_s18  ;;  %v2860_v47 = vld [vmem:[#allocation3 + $0xae] sm:$0x3f] }
 0x4c1   :  { %2586 = vst.msk [vmem:[#allocation4 + $0xc8] sm:$0xff] %vm12866_vm15, %v2570_v40  ;;  %vm12872_vm15 = vcmask 179296   ;;  %v11208_v48 = vpop.f32.mrf.mxu1 }
 0x4c2   :  { %3031 = vrot.lane.b32.xlu1 %v3016_v42, %s12627_s12  ;;  %v4938_v46 = vpop.permute.xlu0 %4937  ;;  %v3306_v42 = vld [vmem:[#allocation3 + $0xcb] sm:$0x3f] }
 0x4c3   :  { %4953 = vst.msk [vmem:[#allocation4 + $0xb0] sm:$0x3f] %vm12870_vm14, %v4938_v46  ;;  %vm12877_vm14 = vcmask 261296  }
 0x4c4   :  { %v5044_v0 = vpop.permute.xlu1 %5043  ;;  %3399 = vrot.lane.b32.xlu0 %v3383_v10, %s12625_s2 }
 0x4c5   :  { %5060 = vst.msk [vmem:[#allocation4 + $0xa0] sm:$0xff] %vm12868_vm2, %v5044_v0  ;;  %vm12875_vm2 = vcmask 816848  }
 0x4c6   :  { %5097 = vst.msk [vmem:[#allocation4 + $0xa0] sm:$0xff] %vm12869_vm12, %v10759_v49  ;;  %3505 = vrot.lane.b32.xlu1 %v10909_v36, %s12851_s3  ;;  %v2496_v22 = vpop.permute.xlu0 %2495  ;;  %v2320_v49 = vld [vmem:[#allocation3 + $0xa6] sm:$0x3f]  ;;  %vm12876_vm12 = vcmask 751248  }
 0x4c7   :  { %2511 = vst.msk [vmem:[#allocation4 + $0xd8] sm:$0xff] %vm12872_vm15, %v2496_v22  ;;  %vm12879_vm15 = vcmask 898848  }
 0x4c8   :  { %v5518_v37 = vpop.permute.xlu1 %5517  ;;  %2337 = vrot.lane.b32.xlu0 %v2320_v49, %s12653_s11 }
 0x4c9   :  { %5534 = vst.msk [vmem:[#allocation4 + $0xa8] sm:$0xff] %vm12871_vm10, %v5518_v37  ;;  %vm12878_vm10 = vcmask 507296  }
 0x4ca   :  { %2801 = vrot.lane.b32.xlu1 %v2784_v2, %s12740_s10  ;;  %v4974_v33 = vpop.permute.xlu0 %4973 }
 0x4cb   :  { %4989 = vst.msk [vmem:[#allocation4 + $0xb0] sm:$0x3f] %vm12875_vm2, %v4974_v33  ;;  %vm12882_vm2 = vcmask 13312   ;;  %v3348_v33 = vld [vmem:[#allocation3 + $0xa8] sm:$0x3f] }
 0x4cc   :  { %v2608_v13 = vpop.permute.xlu1 %2607  ;;  %2961 = vrot.lane.b32.xlu0 %v2945_v63, %s12626_s23 }
 0x4cd   :  { %2624 = vst.msk [vmem:[#allocation4 + $0xc8] sm:$0xff] %vm12873_vm0, %v2608_v13  ;;  %v5559_v60 = vld [vmem:[#allocation4 + $0xa0] sm:$0xff]  ;;  %vm12880_vm0 = vcmask 833248  }
 0x4ce   :  { %3067 = vrot.lane.b32.xlu1 %v11193_v61, %s12874_s24  ;;  %v2534_v4 = vpop.permute.xlu0 %2533  ;;  %v7839_v44 = vpop.f32.mrf.mxu1 }
 0x4cf   :  { %2549 = vst.msk [vmem:[#allocation4 + $0xd8] sm:$0xff] %vm12877_vm14, %v2534_v4  ;;  %vm12884_vm14 = vcmask 997248  }
 0x4d0   :  { %v5412_v32 = vpop.permute.xlu1 %5411  ;;  %v5560_v15 = vld [vmem:[#allocation4 + $0xa8] sm:$0xff]  ;;  %3435 = vrot.lane.b32.xlu0 %v10932_v26, %s12437_s13  ;;  %v7840_v56 = vpop.f32.mrf.mxu1 }
 0x4d1   :  { %5427 = vst.msk [vmem:[#allocation4 + $0xb8] sm:$0x3f] %vm12876_vm12, %v5412_v32  ;;  %5709 = vmatprep.mubr.f32.mxu1 %v5560_v15  ;;  %v11216_v54 = vadd.f32 %v7840_v56, %v7839_v44  ;;  %vm12883_vm12 = vcmask 915248   ;;  %v3196_v32 = vld [vmem:[#allocation3 + $0xfe] sm:$0xff]  ;;  %v3563_v56 = vld [vmem:[#allocation3 + $0x10c] sm:$0xff] }
 0x4d2   :  { %3541 = vrot.lane.b32.xlu1 %v11204_v39, %s8515_s17  ;;  %5710 = vmatmul.mubr.f32.gmra.mxu1 %v5559_v60  ;;  %v5010_v7 = vpop.permute.xlu0 %5009 }
 0x4d3   :  { %5025 = vst.msk [vmem:[#allocation4 + $0xb0] sm:$0x3f] %vm12879_vm15, %v5010_v7  ;;  %v5721_v26 = vmax.f32 %v11184_v27, %v11216_v54  ;;  %vm12887_vm15 = vcmask 425296   ;;  %v11581_v27 = vld [vmem:[#allocation3 + $0x109] sm:$0xff] }
 0x4d4   :  { %v2646_v8 = vpop.permute.xlu1 %2645  ;;  %2375 = vrot.lane.b32.xlu0 %v2358_v24, %s8505_s28 }
 0x4d5   :  { %2662 = vst.msk [vmem:[#allocation4 + $0xc8] sm:$0xff] %vm12878_vm10, %v2646_v8  ;;  %vm12885_vm10 = vcmask 343296  }
 0x4d6   :  { %2839 = vrot.lane.b32.xlu1 %v2822_v5, %s12635_s22  ;;  %v11226_v30 = vpop.permute.xlu0 %2413  ;;  %v2946_v5 = vld [vmem:[#allocation3 + $0xc5] sm:$0x3f] }
 0x4d7   :  { %2436 = vst.msk [vmem:[#allocation4 + $0xe8] sm:$0x3f] %vm12882_vm2, %v11226_v30  ;;  %vm12890_vm2 = vcmask 1046464  }
 0x4d8   :  { %v5448_v38 = vpop.permute.xlu1 %5447  ;;  %2997 = vrot.lane.b32.xlu0 %v2981_v17, %s12863_s0 }
 0x4d9   :  { %5463 = vst.msk [vmem:[#allocation4 + $0xb8] sm:$0x3f] %vm12880_vm0, %v5448_v38  ;;  %vm12889_vm0 = vcmask 980848   ;;  %v11298_v38 = vld [vmem:[#allocation3 + $0xe1] sm:$0xff] }
 0x4da   :  { %3103 = vrot.lane.b32.xlu1 %v11220_v1, %s12881_s25  ;;  %v2722_v40 = vpop.permute.xlu0 %2721 }
 0x4dc   :  { %v2684_v57 = vpop.permute.xlu1 %2683  ;;  %3323 = vrot.lane.b32.xlu0 %v3306_v42, %s8503_s26  ;;  %v11307_v42 = vld [vmem:[#allocation3 + $0x97] sm:$0xff] }
 0x4dd   :  { %2700 = vst.msk [vmem:[#allocation4 + $0xc8] sm:$0xff] %vm2695_vm5, %v2684_v57  ;;  %v3420_v57 = vld [vmem:[#allocation3 + $0x112] sm:$0x3f] }
 0x4de   :  { %3577 = vrot.lane.b32.xlu1 %v11232_v43, %s8514_s16  ;;  %2738 = vst.msk [vmem:[#allocation4 + $0xc8] sm:$0xff] %vm2733_vm9, %v2722_v40  ;;  %v5520_v53 = vpop.permute.xlu0 %5519 }
 0x4e0   :  { %v5484_v19 = vpop.permute.xlu1 %5483  ;;  %3613 = vrot.lane.b32.xlu0 %v10989_v62, %s8507_s30 }
 0x4e1   :  { %5499 = vst.msk [vmem:[#allocation4 + $0xb8] sm:$0x3f] %vm12883_vm12, %v5484_v19  ;;  %vm12891_vm12 = vcmask 818896  }
 0x4e2   :  { %2877 = vrot.lane.b32.xlu1 %v2860_v47, %s12686_s1  ;;  %5535 = vst.msk [vmem:[#allocation4 + $0xb8] sm:$0x3f] %vm12884_vm14, %v5520_v53  ;;  %v2610_v10 = vpop.permute.xlu0 %2609  ;;  %vm12892_vm14 = vcmask 95248  }
 0x4e4   :  { %v2572_v0 = vpop.permute.xlu1 %2571  ;;  %3175 = vrot.lane.b32.xlu0 %v10965_v3, %s12888_s29  ;;  %v3017_v3 = vld [vmem:[#allocation3 + $0xbe] sm:$0xff] }
 0x4e5   :  { %2587 = vst.msk [vmem:[#allocation4 + $0xd8] sm:$0xff] %vm12885_vm10, %v2572_v0  ;;  %vm12893_vm10 = vcmask 507296  }
 0x4e6   :  { %3139 = vrot.lane.b32.xlu1 %v11244_v50, %s12886_s19  ;;  %2625 = vst.msk [vmem:[#allocation4 + $0xd8] sm:$0xff] %vm12887_vm15, %v2610_v10  ;;  %v2296_v62 = vpop.permute.xlu0 %2295  ;;  %vm12894_vm15 = vcmask 900896  }
 0x4e7   :  { %2312 = vst.msk [vmem:[#allocation4 + $0xc0] sm:$0xff] %vm12891_vm12, %v2296_v62  ;;  %vm12897_vm12 = vcmask 1048512  }
 0x4e8   :  { %v7842_v46 = vpop.f32.mrf.mxu1  ;;  %v5046_v37 = vpop.permute.xlu1 %5045  ;;  %3507 = vrot.lane.b32.xlu0 %v10984_v45, %s12851_s3 }
 0x4e9   :  { %5061 = vst.msk [vmem:[#allocation4 + $0xb0] sm:$0x3f] %vm12889_vm0, %v5046_v37  ;;  %v5562_v49 = vld [vmem:[#allocation4 + $0xb8] sm:$0xff]  ;;  %vm12895_vm0 = vcmask 177248  }
 0x4ea   :  { %v7843_v2 = vpop.f32.mrf.mxu1  ;;  %5099 = vst.msk [vmem:[#allocation4 + $0xb0] sm:$0x3f] %vm12890_vm2, %v10913_v58  ;;  %3471 = vrot.lane.b32.xlu1 %v10946_v11, %s12846_s15  ;;  %5714 = vmatprep.mubr.f32.mxu1 %v5562_v49  ;;  %v2648_v58 = vpop.permute.xlu0 %2647  ;;  %v2910_v11 = vld [vmem:[#allocation3 + $0xa1] sm:$0x3f]  ;;  %vm12896_vm2 = vcmask 982896  }
 0x4eb   :  { %v11252_v22 = vadd.f32 %v7843_v2, %v7842_v46  ;;  %2663 = vst.msk [vmem:[#allocation4 + $0xd8] sm:$0xff] %vm12893_vm10, %v2648_v58  ;;  %vm12899_vm10 = vcmask 917296   ;;  %v11318_v46 = vld [vmem:[#allocation3 + $0x105] sm:$0xff] }
 0x4ec   :  { %v2460_v21 = vpop.permute.xlu1 %2459  ;;  %2927 = vrot.lane.b32.xlu0 %v2910_v11, %s12857_s18  ;;  %v3492_v11 = vld [vmem:[#allocation3 + $0x113] sm:$0x3f] }
 0x4ed   :  { %v5722_v13 = vmax.f32 %v11197_v20, %v11252_v22  ;;  %2474 = vst.msk [vmem:[#allocation4 + $0xe8] sm:$0x3f] %vm12892_vm14, %v2460_v21  ;;  %vm12898_vm14 = vcmask 259248   ;;  %v3018_v21 = vld [vmem:[#allocation3 + $0xc6] sm:$0x3f]  ;;  %v11640_v20 = vld [vmem:[#allocation3 + $0xed] sm:$0xff] }
 0x4ee   :  { %3033 = vrot.lane.b32.xlu1 %v3017_v3, %s12627_s12  ;;  %v2334_v45 = vpop.permute.xlu0 %2333 }
 0x4ef   :  { %2350 = vst.msk [vmem:[#allocation4 + $0xc0] sm:$0xff] %vm12894_vm15, %v2334_v45  ;;  %vm12900_vm15 = vcmask 15360  }
 0x4f0   :  { %v2760_v16 = vpop.permute.xlu1 %2759  ;;  %3211 = vrot.lane.b32.xlu0 %v3196_v32, %s8497_s21 }
 0x4f1   :  { %2776 = vst.msk [vmem:[#allocation4 + $0xc8] sm:$0xff] %vm2771_vm8, %v2760_v16  ;;  %v5561_v63 = vld [vmem:[#allocation4 + $0xb0] sm:$0xff]  ;;  %v11343_v16 = vpop.f32.mrf.mxu1 }
 0x4f2   :  { %3365 = vrot.lane.b32.xlu1 %v3348_v33, %s8496_s20  ;;  %5715 = vmatmul.mubr.f32.gmra.mxu1 %v5561_v63  ;;  %v2686_v60 = vpop.permute.xlu0 %2685  ;;  %v3528_v33 = vld [vmem:[#allocation3 + $0xf0] sm:$0x3f] }
 0x4f3   :  { %2701 = vst.msk [vmem:[#allocation4 + $0xd8] sm:$0xff] %vm2695_vm5, %v2686_v60  ;;  %v11349_v45 = vpop.f32.mrf.mxu1  ;;  %v3197_v60 = vld [vmem:[#allocation3 + $0x106] sm:$0xff] }
 0x4f4   :  { %v2498_v15 = vpop.permute.xlu1 %2497  ;;  %3543 = vrot.lane.b32.xlu0 %v11022_v14, %s8515_s17 }
 0x4f5   :  { %2512 = vst.msk [vmem:[#allocation4 + $0xe8] sm:$0x3f] %vm12895_vm0, %v2498_v15  ;;  %vm12901_vm0 = vcmask 999296  }
 0x4f6   :  { %3649 = vrot.lane.b32.xlu1 %v11027_v28, %s12628_s14  ;;  %v2372_v8 = vpop.permute.xlu0 %2371  ;;  %v3384_v28 = vld [vmem:[#allocation3 + $0xcc] sm:$0x3f] }
 0x4f7   :  { %2388 = vst.msk [vmem:[#allocation4 + $0xc0] sm:$0xff] %vm12896_vm2, %v2372_v8  ;;  %vm12902_vm2 = vcmask 818896  }
 0x4f8   :  { %v2798_v4 = vpop.permute.xlu1 %2797  ;;  %2431 = vst.msk [vmem:[#allocation4 + $0xc0] sm:$0xff] %vm12897_vm12, %v11056_v55  ;;  %2963 = vrot.lane.b32.xlu0 %v2946_v5, %s12626_s23  ;;  %vm12903_vm12 = vcmask 97296   ;;  %v11357_v32 = vpop.f32.mrf.mxu1 }
 0x4f9   :  { %2814 = vst.msk [vmem:[#allocation4 + $0xc8] sm:$0xff] %vm2809_vm3, %v2798_v4 }
 0x4fa   :  { %3069 = vrot.lane.b32.xlu1 %v11232_v43, %s12874_s24  ;;  %v2724_v14 = vpop.permute.xlu0 %2723 }
 0x4fb   :  { %2739 = vst.msk [vmem:[#allocation4 + $0xd8] sm:$0xff] %vm2733_vm9, %v2724_v14 }
 0x4fc   :  { %v2536_v44 = vpop.permute.xlu1 %2535  ;;  %3247 = vrot.lane.b32.xlu0 %v11044_v23, %s12653_s11 }
 0x4fd   :  { %2550 = vst.msk [vmem:[#allocation4 + $0xe8] sm:$0x3f] %vm12898_vm14, %v2536_v44  ;;  %vm12904_vm14 = vcmask 179296   ;;  %v11364_v44 = vpop.f32.mrf.mxu1 }
 0x4fe   :  { %3401 = vrot.lane.b32.xlu1 %v3384_v28, %s12625_s2  ;;  %v11292_v55 = vpop.permute.xlu0 %3319 }
 0x4ff   :  { %3338 = vst.msk [vmem:[#allocation4 + $0xf8] sm:$0xff] %vm12900_vm15, %v11292_v55  ;;  %v5746_v10 = vld [vmem:[#allocation4 + $0xc0] sm:$0xff]  ;;  %vm12906_vm15 = vcmask 244896  }
 0x500   :  { %v2836_v7 = vpop.permute.xlu1 %2835  ;;  %3579 = vrot.lane.b32.xlu0 %v3563_v56, %s8514_s16 }
 0x501   :  { %2852 = vst.msk [vmem:[#allocation4 + $0xc8] sm:$0xff] %vm12899_vm10, %v2836_v7  ;;  %vm12905_vm10 = vcmask 162896   ;;  %v3564_v7 = vld [vmem:[#allocation3 + $0x114] sm:$0x3f] }
 0x502   :  { %3685 = vrot.lane.b32.xlu1 %v11068_v41, %s12740_s10  ;;  %v2762_v23 = vpop.permute.xlu0 %2761  ;;  %v2982_v41 = vld [vmem:[#allocation3 + $0xa2] sm:$0x3f] }
 0x503   :  { %2777 = vst.msk [vmem:[#allocation4 + $0xd8] sm:$0xff] %vm2771_vm8, %v2762_v23 }
 0x504   :  { %v2574_v24 = vpop.permute.xlu1 %2573  ;;  %2999 = vrot.lane.b32.xlu0 %v2982_v41, %s12863_s0 }
 0x505   :  { %2588 = vst.msk [vmem:[#allocation4 + $0xe8] sm:$0x3f] %vm2584_vm6, %v2574_v24 }
 0x506   :  { %3105 = vrot.lane.b32.xlu1 %v11298_v38, %s12881_s25  ;;  %v2298_v40 = vpop.permute.xlu0 %2297 }
 0x507   :  { %2313 = vst.msk [vmem:[#allocation4 + $0xd0] sm:$0xff] %vm12902_vm2, %v2298_v40  ;;  %vm12908_vm2 = vcmask 982896  }
 0x508   :  { %v2874_v17 = vpop.permute.xlu1 %2873  ;;  %3283 = vrot.lane.b32.xlu0 %v11307_v42, %s8505_s28 }
 0x509   :  { %2890 = vst.msk [vmem:[#allocation4 + $0xc8] sm:$0xff] %vm12901_vm0, %v2874_v17  ;;  %vm12907_vm0 = vcmask 900896  }
 0x50a   :  { %3437 = vrot.lane.b32.xlu1 %v3420_v57, %s12437_s13  ;;  %v2800_v47 = vpop.permute.xlu0 %2799  ;;  %v3126_v57 = vld [vmem:[#allocation3 + $0x10d] sm:$0x3f] }
 0x50b   :  { %2815 = vst.msk [vmem:[#allocation4 + $0xd8] sm:$0xff] %vm2809_vm3, %v2800_v47 }
 0x50c   :  { %v2612_v19 = vpop.permute.xlu1 %2611  ;;  %3615 = vrot.lane.b32.xlu0 %v11093_v29, %s8507_s30  ;;  %v3456_v29 = vld [vmem:[#allocation3 + $0xef] sm:$0x3f] }
 0x50d   :  { %2626 = vst.msk [vmem:[#allocation4 + $0xe8] sm:$0x3f] %vm2622_vm7, %v2612_v19 }
 0x50e   :  { %3721 = vrot.lane.b32.xlu1 %v11098_v52, %s12635_s22  ;;  %v3398_v37 = vpop.permute.xlu0 %3397 }
 0x510   :  { %v3362_v53 = vpop.permute.xlu1 %3361  ;;  %v5747_v0 = vld [vmem:[#allocation4 + $0xc8] sm:$0xff]  ;;  %4201 = vrot.lane.b32.xlu0 %v10896_v9, %s8503_s26 }
 0x511   :  { %3376 = vst.msk [vmem:[#allocation4 + $0xf8] sm:$0xff] %vm12903_vm12, %v3362_v53  ;;  %5866 = vmatprep.mubr.f32.mxu1 %v5747_v0  ;;  %vm12909_vm12 = vcmask 1048512  }
 0x512   :  { %3141 = vrot.lane.b32.xlu1 %v11318_v46, %s12886_s19  ;;  %5867 = vmatmul.mubr.f32.vlgmr.msra.gmra.mxu1 %v5746_v10  ;;  %3412 = vst.msk [vmem:[#allocation4 + $0xf8] sm:$0xff] %vm12904_vm14, %v3398_v37  ;;  %v2688_v2 = vpop.permute.xlu0 %2687  ;;  %vm12910_vm14 = vcmask 917296   ;;  %v11401_v10 = vld [vmem:[#allocation3 + $0xc0] sm:$0xff] }
 0x514   :  { %v2650_v52 = vpop.permute.xlu1 %2649  ;;  %3177 = vrot.lane.b32.xlu0 %v11103_v35, %s12888_s29  ;;  %v3054_v35 = vld [vmem:[#allocation3 + $0x10c] sm:$0x3f] }
 0x515   :  { %2664 = vst.msk [vmem:[#allocation4 + $0xe8] sm:$0x3f] %vm2660_vm1, %v2650_v52  ;;  %v3743_v52 = vld [vmem:[#allocation3 + $0xca] sm:$0xff] }
 0x516   :  { %3473 = vrot.lane.b32.xlu1 %v3456_v29, %s12846_s15  ;;  %2702 = vst.msk [vmem:[#allocation4 + $0xe8] sm:$0x3f] %vm2698_vm13, %v2688_v2  ;;  %v2960_v49 = vpop.permute.xlu0 %2959  ;;  %v3636_v29 = vld [vmem:[#allocation3 + $0xad] sm:$0x3f] }
 0x518   :  { %v2924_v62 = vpop.permute.xlu1 %2923  ;;  %3651 = vrot.lane.b32.xlu0 %v11112_v6, %s12628_s14 }
 0x519   :  { %2938 = vst.msk [vmem:[#allocation4 + $0xf0] sm:$0xff] %vm12905_vm10, %v2924_v62  ;;  %vm12911_vm10 = vcmask 999296   ;;  %v4187_v62 = vld [vmem:[#allocation3 + $0xe7] sm:$0xff] }
 0x51a   :  { %3757 = vrot.lane.b32.xlu1 %v11134_v12, %s12686_s1  ;;  %2974 = vst.msk [vmem:[#allocation4 + $0xf0] sm:$0xff] %vm12906_vm15, %v2960_v49  ;;  %v2374_v3 = vpop.permute.xlu0 %2373  ;;  %vm12912_vm15 = vcmask 261296  }
 0x51c   :  { %v2336_v9 = vpop.permute.xlu1 %2335  ;;  %3071 = vrot.lane.b32.xlu0 %v3054_v35, %s12874_s24 }
 0x51d   :  { %2351 = vst.msk [vmem:[#allocation4 + $0xd0] sm:$0xff] %vm12907_vm0, %v2336_v9  ;;  %vm12913_vm0 = vcmask 15360   ;;  %v11412_v9 = vld [vmem:[#allocation3 + $0x10b] sm:$0xff] }
 0x51e   :  { %3035 = vrot.lane.b32.xlu1 %v3018_v21, %s12627_s12  ;;  %2389 = vst.msk [vmem:[#allocation4 + $0xd0] sm:$0xff] %vm12908_vm2, %v2374_v3  ;;  %v2876_v6 = vpop.permute.xlu0 %2875  ;;  %vm12914_vm2 = vcmask 751248   ;;  %v3162_v3 = vld [vmem:[#allocation3 + $0xea] sm:$0x3f] }
 0x51f   :  { %2433 = vst.msk [vmem:[#allocation4 + $0xd0] sm:$0xff] %vm12909_vm12, %v11156_v34  ;;  %vm12915_vm12 = vcmask 326896  }
 0x520   :  { %v2838_v58 = vpop.permute.xlu1 %2837  ;;  %3545 = vrot.lane.b32.xlu0 %v3528_v33, %s8515_s17 }
 0x521   :  { %2853 = vst.msk [vmem:[#allocation4 + $0xd8] sm:$0xff] %vm12910_vm14, %v2838_v58  ;;  %vm12916_vm14 = vcmask 97296   ;;  %v3198_v58 = vld [vmem:[#allocation3 + $0x10e] sm:$0x3f] }
 0x522   :  { %3509 = vrot.lane.b32.xlu1 %v3492_v11, %s12851_s3  ;;  %2891 = vst.msk [vmem:[#allocation4 + $0xd8] sm:$0xff] %vm12911_vm10, %v2876_v6  ;;  %v11353_v34 = vpop.permute.xlu0 %3321  ;;  %vm12917_vm10 = vcmask 343296   ;;  %v11423_v6 = vld [vmem:[#allocation3 + $0xda] sm:$0xff] }
 0x523   :  { %3340 = vst.msk [vmem:[#allocation4 + $0x108] sm:$0xff] %vm12913_vm0, %v11353_v34  ;;  %vm12919_vm0 = vcmask 408896  }
 0x524   :  { %v3434_v63 = vpop.permute.xlu1 %3433  ;;  %3805 = vrot.lane.b32.xlu0 %v11193_v61, %s12857_s18  ;;  %v7851_v61 = vpop.f32.mrf.mxu1 }
 0x525   :  { %3448 = vst.msk [vmem:[#allocation4 + $0xf8] sm:$0xff] %vm12912_vm15, %v3434_v63  ;;  %vm12918_vm15 = vcmask 816848   ;;  %v11434_v63 = vld [vmem:[#allocation3 + $0x9d] sm:$0xff] }
 0x526   :  { %4243 = vrot.lane.b32.xlu1 %v10909_v36, %s8496_s20  ;;  %v2764_v4 = vpop.permute.xlu0 %2763  ;;  %v3090_v36 = vld [vmem:[#allocation3 + $0xe9] sm:$0x3f]  ;;  %v5748_v5 = vld [vmem:[#allocation4 + $0xd0] sm:$0xff]  ;;  %v7852_v56 = vpop.f32.mrf.mxu1 }
 0x527   :  { %v11372_v23 = vadd.f32 %v7852_v56, %v7851_v61  ;;  %v3934_v61 = vld [vmem:[#allocation3 + $0x96] sm:$0xff] }
 0x528   :  { %v2726_v15 = vpop.permute.xlu1 %2725  ;;  %3107 = vrot.lane.b32.xlu0 %v3090_v36, %s12881_s25  ;;  %v3234_v36 = vld [vmem:[#allocation3 + $0xca] sm:$0x3f] }
 0x529   :  { %2740 = vst.msk [vmem:[#allocation4 + $0xe8] sm:$0x3f] %vm12439_vm11, %v2726_v15  ;;  %v5749_v8 = vld [vmem:[#allocation4 + $0xd8] sm:$0xff] }
 0x52a   :  { %3213 = vrot.lane.b32.xlu1 %v3197_v60, %s8497_s21  ;;  %2778 = vst.msk [vmem:[#allocation4 + $0xe8] sm:$0x3f] %vm12914_vm2, %v2764_v4  ;;  %5871 = vmatprep.mubr.f32.mxu1 %v5749_v8  ;;  %v3364_v14 = vpop.permute.xlu0 %3363  ;;  %vm12920_vm2 = vcmask 162896   ;;  %v11439_v60 = vld [vmem:[#allocation3 + $0xe8] sm:$0xff]  ;;  %v3672_v8 = vld [vmem:[#allocation3 + $0xd1] sm:$0x3f] }
 0x52b   :  { %5872 = vmatmul.mubr.f32.gmra.mxu1 %v5748_v5  ;;  %3377 = vst.msk [vmem:[#allocation4 + $0x108] sm:$0xff] %vm12916_vm14, %v3364_v14  ;;  %vm12922_vm14 = vcmask 179296  }
 0x52c   :  { %v2996_v28 = vpop.permute.xlu1 %2995  ;;  %3581 = vrot.lane.b32.xlu0 %v3564_v7, %s8514_s16 }
 0x52d   :  { %3010 = vst.msk [vmem:[#allocation4 + $0xf0] sm:$0xff] %vm12915_vm12, %v2996_v28  ;;  %vm12921_vm12 = vcmask 425296  }
 0x52e   :  { %3687 = vrot.lane.b32.xlu1 %v11139_v59, %s12740_s10  ;;  %v2300_v41 = vpop.permute.xlu0 %2299 }
 0x52f   :  { %2314 = vst.msk [vmem:[#allocation4 + $0xe0] sm:$0x3f] %vm12918_vm15, %v2300_v41  ;;  %vm12924_vm15 = vcmask 898848  }
 0x530   :  { %v3470_v24 = vpop.permute.xlu1 %3469  ;;  %3841 = vrot.lane.b32.xlu0 %v11220_v1, %s12626_s23  ;;  %v3600_v1 = vld [vmem:[#allocation3 + $0xd0] sm:$0x3f] }
 0x531   :  { %3484 = vst.msk [vmem:[#allocation4 + $0xf8] sm:$0xff] %vm12917_vm10, %v3470_v24  ;;  %vm12923_vm10 = vcmask 833248   ;;  %v11453_v24 = vld [vmem:[#allocation3 + $0xc1] sm:$0xff] }
 0x532   :  { %4279 = vrot.lane.b32.xlu1 %v11204_v39, %s12625_s2  ;;  %v2926_v59 = vpop.permute.xlu0 %2925 }
 0x533   :  { %2939 = vst.msk [vmem:[#allocation4 + $0x100] sm:$0xff] %vm12920_vm2, %v2926_v59  ;;  %vm12926_vm2 = vcmask 244896   ;;  %v7838_v59 = vadd.f32 %v11208_v48, %v11200_v25 }
 0x534   :  { %v3032_v17 = vpop.permute.xlu1 %3031  ;;  %3143 = vrot.lane.b32.xlu0 %v3126_v57, %s12886_s19  ;;  %v4301_v57 = vld [vmem:[#allocation3 + $0xa4] sm:$0xff] }
 0x535   :  { %3046 = vst.msk [vmem:[#allocation4 + $0xf0] sm:$0xff] %vm12919_vm0, %v3032_v17  ;;  %vm12925_vm0 = vcmask 490896  }
 0x536   :  { %3249 = vrot.lane.b32.xlu1 %v11134_v12, %s12653_s11  ;;  %v3400_v39 = vpop.permute.xlu0 %3399  ;;  %v4300_v12 = vld [vmem:[#allocation3 + $0x9c] sm:$0xff] }
 0x537   :  { %3413 = vst.msk [vmem:[#allocation4 + $0x108] sm:$0xff] %vm12922_vm14, %v3400_v39  ;;  %vm12928_vm14 = vcmask 261296  }
 0x538   :  { %v3506_v40 = vpop.permute.xlu1 %3505  ;;  %3617 = vrot.lane.b32.xlu0 %v3600_v1, %s8507_s30  ;;  %v7847_v1 = vadd.f32 %v11349_v45, %v11343_v16  ;;  %v11475_v16 = vld [vmem:[#allocation3 + $0xba] sm:$0xff] }
 0x539   :  { %3520 = vst.msk [vmem:[#allocation4 + $0xf8] sm:$0xff] %vm12921_vm12, %v3506_v40  ;;  %vm12927_vm12 = vcmask 507296  }
 0x53a   :  { %3723 = vrot.lane.b32.xlu1 %v11144_v18, %s12635_s22  ;;  %v2338_v47 = vpop.permute.xlu0 %2337  ;;  %v11396_v18 = vld [vmem:[#allocation3 + $0x9f] sm:$0xff] }
 0x53b   :  { %2352 = vst.msk [vmem:[#allocation4 + $0xe0] sm:$0x3f] %vm12924_vm15, %v2338_v47  ;;  %vm12930_vm15 = vcmask 980848  }
 0x53c   :  { %v2802_v19 = vpop.permute.xlu1 %2801  ;;  %3877 = vrot.lane.b32.xlu0 %v11244_v50, %s12863_s0 }
 0x53d   :  { %2816 = vst.msk [vmem:[#allocation4 + $0xe8] sm:$0x3f] %vm12923_vm10, %v2802_v19  ;;  %vm12929_vm10 = vcmask 915248   ;;  %v3708_v19 = vld [vmem:[#allocation3 + $0xae] sm:$0x3f] }
 0x53e   :  { %4315 = vrot.lane.b32.xlu1 %v4300_v12, %s12437_s13  ;;  %v2962_v0 = vpop.permute.xlu0 %2961 }
 0x53f   :  { %2975 = vst.msk [vmem:[#allocation4 + $0x100] sm:$0xff] %vm12926_vm2, %v2962_v0  ;;  %vm12932_vm2 = vcmask 572896  }
 0x540   :  { %v3068_v53 = vpop.permute.xlu1 %3067  ;;  %4351 = vrot.lane.b32.xlu0 %v11401_v10, %s12846_s15 }
 0x541   :  { %3082 = vst.msk [vmem:[#allocation4 + $0xf0] sm:$0xff] %vm12925_vm0, %v3068_v53  ;;  %vm12931_vm0 = vcmask 1046464   ;;  %v3270_v53 = vld [vmem:[#allocation3 + $0xa7] sm:$0x3f] }
 0x542   :  { %3285 = vrot.lane.b32.xlu1 %v11396_v18, %s8505_s28  ;;  %v3436_v50 = vpop.permute.xlu0 %3435 }
 0x543   :  { %3449 = vst.msk [vmem:[#allocation4 + $0x108] sm:$0xff] %vm12928_vm14, %v3436_v50  ;;  %vm12934_vm14 = vcmask 13312  }
 0x544   :  { %v3542_v37 = vpop.permute.xlu1 %3541  ;;  %3653 = vrot.lane.b32.xlu0 %v3636_v29, %s12628_s14  ;;  %v11484_v29 = vld [vmem:[#allocation3 + $0x9e] sm:$0xff] }
 0x545   :  { %3556 = vst.msk [vmem:[#allocation4 + $0xf8] sm:$0xff] %vm12927_vm12, %v3542_v37  ;;  %vm12933_vm12 = vcmask 326896  }
 0x546   :  { %3759 = vrot.lane.b32.xlu1 %v3743_v52, %s12686_s1  ;;  %v2376_v49 = vpop.permute.xlu0 %2375 }
 0x547   :  { %2390 = vst.msk [vmem:[#allocation4 + $0xe0] sm:$0x3f] %vm12930_vm15, %v2376_v49  ;;  %vm12936_vm15 = vcmask 654896  }
 0x548   :  { %v2840_v2 = vpop.permute.xlu1 %2839  ;;  %2435 = vst.msk [vmem:[#allocation4 + $0xe0] sm:$0x3f] %vm12931_vm0, %v11226_v30  ;;  %4245 = vrot.lane.b32.xlu0 %v11412_v9, %s8496_s20  ;;  %vm12937_vm0 = vcmask 736896  }
 0x549   :  { %2854 = vst.msk [vmem:[#allocation4 + $0xe8] sm:$0x3f] %vm12929_vm10, %v2840_v2  ;;  %vm12935_vm10 = vcmask 997248  }
 0x54a   :  { %4203 = vrot.lane.b32.xlu1 %v4187_v62, %s8503_s26  ;;  %v2998_v35 = vpop.permute.xlu0 %2997  ;;  %v4188_v62 = vld [vmem:[#allocation3 + $0xef] sm:$0x3f] }
 0x54b   :  { %3011 = vst.msk [vmem:[#allocation4 + $0x100] sm:$0xff] %vm12933_vm12, %v2998_v35  ;;  %vm12939_vm12 = vcmask 425296  }
 0x54c   :  { %v3104_v21 = vpop.permute.xlu1 %3103  ;;  %3215 = vrot.lane.b32.xlu0 %v3198_v58, %s8497_s21 }
 0x54d   :  { %3118 = vst.msk [vmem:[#allocation4 + $0xf0] sm:$0xff] %vm12932_vm2, %v3104_v21  ;;  %vm12938_vm2 = vcmask 343296   ;;  %v3744_v21 = vld [vmem:[#allocation3 + $0xd2] sm:$0x3f] }
 0x54e   :  { %3179 = vrot.lane.b32.xlu1 %v3162_v3, %s12888_s29  ;;  %v11427_v30 = vpop.permute.xlu0 %3323  ;;  %v4480_v3 = vld [vmem:[#allocation3 + $0xe4] sm:$0xff] }
 0x54f   :  { %3342 = vst.msk [vmem:[#allocation4 + $0x118] sm:$0x3f] %vm12934_vm14, %v11427_v30  ;;  %v5750_v14 = vld [vmem:[#allocation4 + $0xe0] sm:$0xff]  ;;  %vm12940_vm14 = vcmask 408896  }
 0x550   :  { %v3578_v11 = vpop.permute.xlu1 %3577  ;;  %3807 = vrot.lane.b32.xlu0 %v11232_v43, %s12857_s18 }
 0x551   :  { %3592 = vst.msk [vmem:[#allocation4 + $0xf8] sm:$0xff] %vm2695_vm5, %v3578_v11  ;;  %v11498_v11 = vld [vmem:[#allocation3 + $0xbb] sm:$0xff] }
 0x552   :  { %3913 = vrot.lane.b32.xlu1 %v11423_v6, %s12627_s12  ;;  %v3614_v15 = vpop.permute.xlu0 %3613 }
 0x553   :  { %3628 = vst.msk [vmem:[#allocation4 + $0xf8] sm:$0xff] %vm2733_vm9, %v3614_v15  ;;  %v11503_v15 = vld [vmem:[#allocation3 + $0xc8] sm:$0xff] }
 0x554   :  { %v2878_v33 = vpop.permute.xlu1 %2877  ;;  %4281 = vrot.lane.b32.xlu0 %v11439_v60, %s12625_s2 }
 0x555   :  { %2892 = vst.msk [vmem:[#allocation4 + $0xe8] sm:$0x3f] %vm12935_vm10, %v2878_v33  ;;  %vm12941_vm10 = vcmask 160848  }
 0x556   :  { %4387 = vrot.lane.b32.xlu1 %v11434_v63, %s12851_s3  ;;  %v3176_v43 = vpop.permute.xlu0 %3175 }
 0x558   :  { %v3140_v4 = vpop.permute.xlu1 %3139  ;;  %3251 = vrot.lane.b32.xlu0 %v3234_v36, %s12653_s11  ;;  %v11513_v36 = vld [vmem:[#allocation3 + $0xe2] sm:$0xff] }
 0x559   :  { %3154 = vst.msk [vmem:[#allocation4 + $0xf0] sm:$0xff] %vm12936_vm15, %v3140_v4  ;;  %vm12942_vm15 = vcmask 95248  }
 0x55a   :  { %3689 = vrot.lane.b32.xlu1 %v3672_v8, %s12740_s10  ;;  %3190 = vst.msk [vmem:[#allocation4 + $0xf0] sm:$0xff] %vm12937_vm0, %v3176_v43  ;;  %v3508_v7 = vpop.permute.xlu0 %3507  ;;  %vm12943_vm0 = vcmask 818896   ;;  %v11508_v8 = vld [vmem:[#allocation3 + $0xa5] sm:$0xff] }
 0x55c   :  { %v3472_v5 = vpop.permute.xlu1 %3471  ;;  %v5751_v28 = vld [vmem:[#allocation4 + $0xe8] sm:$0xff]  ;;  %3843 = vrot.lane.b32.xlu0 %v11298_v38, %s12626_s23  ;;  %v7854_v41 = vpop.f32.mrf.mxu1  ;;  %v7829_v38 = vadd.f32 %v11174_v51, %v11167_v31  ;;  %v11471_v31 = vld [vmem:[%s12345_s4] ss:$0 sm:$0xff] }
 0x55d   :  { %3485 = vst.msk [vmem:[#allocation4 + $0x108] sm:$0xff] %vm12938_vm2, %v3472_v5  ;;  %5876 = vmatprep.mubr.f32.mxu1 %v5751_v28  ;;  %vm12944_vm2 = vcmask 507296   ;;  %v3792_v28 = vld [vmem:[#allocation3 + $0x10c] sm:$0x3f] }
 0x55e   :  { %3949 = vrot.lane.b32.xlu1 %v3934_v61, %s12874_s24  ;;  %5877 = vmatmul.mubr.f32.gmra.mxu1 %v5750_v14  ;;  %3521 = vst.msk [vmem:[#allocation4 + $0x108] sm:$0xff] %vm12939_vm12, %v3508_v7  ;;  %v2928_v17 = vpop.permute.xlu0 %2927  ;;  %v7855_v39 = vpop.f32.mrf.mxu1  ;;  %v5720_v48 = vmax.f32 %v7829_v38, %v7838_v59  ;;  %vm12945_vm12 = vcmask 490896   ;;  %v4230_v14 = vld [vmem:[#allocation3 + $0x113] sm:$0x3f]  ;;  %v11537_v59 = vld [vmem:[#allocation3 + $0xc9] sm:$0xff] }
 0x55f   :  { %2940 = vst.msk [vmem:[#allocation4 + $0x110] sm:$0x3f] %vm12941_vm10, %v2928_v17  ;;  %v7856_v12 = vadd.f32 %v7855_v39, %v7854_v41  ;;  %vm12947_vm10 = vcmask 177248   ;;  %v11529_v17 = vld [vmem:[#allocation3 + $0x108] sm:$0xff] }
 0x560   :  { %v3034_v56 = vpop.permute.xlu1 %3033  ;;  %4317 = vrot.lane.b32.xlu0 %v4301_v57, %s12437_s13  ;;  %v3828_v39 = vld [vmem:[#allocation3 + $0xe9] sm:$0x3f]  ;;  %s12962_s13 = smov 22  }
 0x561   :  { %3047 = vst.msk [vmem:[#allocation4 + $0x100] sm:$0xff] %vm12940_vm14, %v3034_v56  ;;  %v5723_v47 = vmax.f32 %v7847_v1, %v7856_v12  ;;  %vm12946_vm14 = vcmask 242848   ;;  %v11524_v56 = vld [vmem:[#allocation3 + $0x98] sm:$0xff]  ;;  %v4266_v1 = vld [vmem:[#allocation3 + $0xf0] sm:$0x3f] }
 0x562   :  { %4423 = vrot.lane.b32.xlu1 %v11453_v24, %s8515_s17  ;;  %v3212_v25 = vpop.permute.xlu0 %3211  ;;  %v4114_v12 = vld [vmem:[#allocation3 + $0xde] sm:$0xff] }
 0x563   :  { %3226 = vst.msk [vmem:[#allocation4 + $0xf0] sm:$0xff] %vm12943_vm0, %v3212_v25  ;;  %v5726_v51 = vmax.f32 %v5720_v48, %v5723_v47  ;;  %vm12949_vm0 = vcmask 572896   ;;  %v11551_v48 = vld [vmem:[#allocation3 + $0xe5] sm:$0xff] }
 0x564   :  { %v3366_v40 = vpop.permute.xlu1 %3365  ;;  %3287 = vrot.lane.b32.xlu0 %v3270_v53, %s8505_s28 }
 0x565   :  { %3378 = vst.msk [vmem:[#allocation4 + $0x118] sm:$0x3f] %vm12942_vm15, %v3366_v40  ;;  %v5736_v37 = vadd.f32 %v11471_v31, %v5726_v51  ;;  %vm12948_vm15 = vcmask 900896  }
 0x566   :  { %3725 = vrot.lane.b32.xlu1 %v3708_v19, %s12635_s22  ;;  %v3544_v45 = vpop.permute.xlu0 %3543 }
 0x567   :  { %3557 = vst.msk [vmem:[#allocation4 + $0x108] sm:$0xff] %vm12944_vm2, %v3544_v45  ;;  %v5739_v50 = vmax.f32 %v5736_v37, 0.0  ;;  %vm12950_vm2 = vcmask 324848  }
 0x568   :  { %v3650_v0 = vpop.permute.xlu1 %3649  ;;  %3879 = vrot.lane.b32.xlu0 %v11318_v46, %s12863_s0 }
 0x569   :  { %3664 = vst.msk [vmem:[#allocation4 + $0xf8] sm:$0xff] %vm2771_vm8, %v3650_v0  ;;  %5742 = vst [vmem:[#allocation5] sm:$0xff] %v5739_v50  ;;  %v11556_v0 = vld [vmem:[#allocation3 + $0xa6] sm:$0xff] }
 0x56a   :  { %3985 = vrot.lane.b32.xlu1 %v11475_v16, %s12881_s25  ;;  %v2964_v2 = vpop.permute.xlu0 %2963 }
 0x56b   :  { %2976 = vst.msk [vmem:[#allocation4 + $0x110] sm:$0x3f] %vm12946_vm14, %v2964_v2  ;;  %vm12952_vm14 = vcmask 982896   ;;  %v11563_v2 = vld [vmem:[#allocation3 + $0xc2] sm:$0xff] }
 0x56c   :  { %v3070_v52 = vpop.permute.xlu1 %3069  ;;  %4205 = vrot.lane.b32.xlu0 %v4188_v62, %s8503_s26 }
 0x56d   :  { %3083 = vst.msk [vmem:[#allocation4 + $0x100] sm:$0xff] %vm12945_vm12, %v3070_v52  ;;  %vm12951_vm12 = vcmask 259248   ;;  %v7850_v52 = vadd.f32 %v11364_v44, %v11357_v32  ;;  %v4302_v44 = vld [vmem:[#allocation3 + $0xac] sm:$0x3f] }
 0x56e   :  { %4459 = vrot.lane.b32.xlu1 %v11484_v29, %s8514_s16  ;;  %v3248_v46 = vpop.permute.xlu0 %3247 }
 0x56f   :  { %3262 = vst.msk [vmem:[#allocation4 + $0xf0] sm:$0xff] %vm12948_vm15, %v3248_v46  ;;  %vm12954_vm15 = vcmask 917296   ;;  %v3864_v46 = vld [vmem:[#allocation3 + $0x10d] sm:$0x3f] }
 0x570   :  { %v3402_v49 = vpop.permute.xlu1 %3401  ;;  %4495 = vrot.lane.b32.xlu0 %v4480_v3, %s8507_s30 }
 0x571   :  { %3414 = vst.msk [vmem:[#allocation4 + $0x118] sm:$0x3f] %vm12947_vm10, %v3402_v49  ;;  %vm12953_vm10 = vcmask 1048512  }
 0x572   :  { %3761 = vrot.lane.b32.xlu1 %v3744_v21, %s12686_s1  ;;  %v3580_v58 = vpop.permute.xlu0 %3579 }
 0x573   :  { %3593 = vst.msk [vmem:[#allocation4 + $0x108] sm:$0xff] %vm2695_vm5, %v3580_v58 }
 0x574   :  { %v3686_v35 = vpop.permute.xlu1 %3685  ;;  %4057 = vrot.lane.b32.xlu0 %v11498_v11, %s12888_s29 }
 0x575   :  { %3700 = vst.msk [vmem:[#allocation4 + $0xf8] sm:$0xff] %vm2809_vm3, %v3686_v35 }
 0x576   :  { %4021 = vrot.lane.b32.xlu1 %v11307_v42, %s12886_s19  ;;  %v3000_v4 = vpop.permute.xlu0 %2999 }
 0x577   :  { %3012 = vst.msk [vmem:[#allocation4 + $0x110] sm:$0x3f] %vm12950_vm2, %v3000_v4  ;;  %vm12956_vm2 = vcmask 15360  }
 0x578   :  { %v3106_v33 = vpop.permute.xlu1 %3105  ;;  %4389 = vrot.lane.b32.xlu0 %v11508_v8, %s12851_s3 }
 0x579   :  { %3119 = vst.msk [vmem:[#allocation4 + $0x100] sm:$0xff] %vm12949_vm0, %v3106_v33  ;;  %vm12955_vm0 = vcmask 654896   ;;  %v11576_v33 = vld [vmem:[#allocation3 + $0x102] sm:$0xff] }
 0x57a   :  { %4353 = vrot.lane.b32.xlu1 %v11503_v15, %s12846_s15  ;;  %v3284_v5 = vpop.permute.xlu0 %3283 }
 0x57b   :  { %3298 = vst.msk [vmem:[#allocation4 + $0xf0] sm:$0xff] %vm12952_vm14, %v3284_v5  ;;  %vm12958_vm14 = vcmask 999296  }
 0x57c   :  { %v3438_v43 = vpop.permute.xlu1 %3437  ;;  %3337 = vst.msk [vmem:[#allocation4 + $0xf0] sm:$0xff] %vm12953_vm10, %v11292_v55  ;;  %3809 = vrot.lane.b32.xlu0 %v3792_v28, %s12857_s18  ;;  %vm12959_vm10 = vcmask 406848  }
 0x57d   :  { %3450 = vst.msk [vmem:[#allocation4 + $0x118] sm:$0x3f] %vm12951_vm12, %v3438_v43  ;;  %vm12957_vm12 = vcmask 736896  }
 0x57e   :  { %3915 = vrot.lane.b32.xlu1 %v11513_v36, %s12627_s12  ;;  %v3616_v7 = vpop.permute.xlu0 %3615 }
 0x57f   :  { %3629 = vst.msk [vmem:[#allocation4 + $0x108] sm:$0xff] %vm2733_vm9, %v3616_v7  ;;  %v4338_v7 = vld [vmem:[#allocation3 + $0xd0] sm:$0x3f] }
 0x580   :  { %v3722_v61 = vpop.permute.xlu1 %3721  ;;  %4093 = vrot.lane.b32.xlu0 %v11524_v56, %s8497_s21 }
 0x581   :  { %3736 = vst.msk [vmem:[#allocation4 + $0xf8] sm:$0xff] %vm12954_vm15, %v3722_v61  ;;  %vm12960_vm15 = vcmask 488848   ;;  %v5068_v61 = vld [vmem:[#allocation3 + $0x103] sm:$0xff] }
 0x582   :  { %4247 = vrot.lane.b32.xlu1 %v4230_v14, %s8496_s20  ;;  %v11533_v55 = vpop.permute.xlu0 %4201 }
 0x583   :  { %4220 = vst.msk [vmem:[#allocation4 + $0x128] sm:$0xff] %vm12956_vm2, %v11533_v55  ;;  %v5752_v62 = vld [vmem:[#allocation4 + $0xf0] sm:$0xff]  ;;  %vm12963_vm2 = vcmask 162896  }
 0x584   :  { %v3142_v41 = vpop.permute.xlu1 %3141  ;;  %4425 = vrot.lane.b32.xlu0 %v11537_v59, %s8515_s17 }
 0x585   :  { %3155 = vst.msk [vmem:[#allocation4 + $0x100] sm:$0xff] %vm12955_vm0, %v3142_v41  ;;  %vm12961_vm0 = vcmask 97296  }
 0x586   :  { %4531 = vrot.lane.b32.xlu1 %v11529_v17, %s12628_s14  ;;  %v3178_v40 = vpop.permute.xlu0 %3177 }
 0x587   :  { %3191 = vst.msk [vmem:[#allocation4 + $0x100] sm:$0xff] %vm12957_vm12, %v3178_v40  ;;  %vm12964_vm12 = vcmask 818896  }
 0x588   :  { %v3474_v57 = vpop.permute.xlu1 %3473  ;;  %3845 = vrot.lane.b32.xlu0 %v3828_v39, %s12626_s23 }
 0x589   :  { %3486 = vst.msk [vmem:[#allocation4 + $0x118] sm:$0x3f] %vm2584_vm6, %v3474_v57  ;;  %v11595_v57 = vld [vmem:[#allocation3 + $0xc3] sm:$0xff] }
 0x58a   :  { %3951 = vrot.lane.b32.xlu1 %v11484_v29, %s12874_s24  ;;  %v3652_v19 = vpop.permute.xlu0 %3651 }
 0x58b   :  { %3665 = vst.msk [vmem:[#allocation4 + $0x108] sm:$0xff] %vm2771_vm8, %v3652_v19  ;;  %v3900_v19 = vld [vmem:[#allocation3 + $0xea] sm:$0x3f] }
 0x58c   :  { %v3758_v38 = vpop.permute.xlu1 %3757  ;;  %4129 = vrot.lane.b32.xlu0 %v4114_v12, %s12653_s11 }
 0x58d   :  { %3772 = vst.msk [vmem:[#allocation4 + $0xf8] sm:$0xff] %vm12958_vm14, %v3758_v38  ;;  %vm12965_vm14 = vcmask 179296   ;;  %v11605_v38 = vld [vmem:[#allocation3 + $0x110] sm:$0xff] }
 0x58e   :  { %4283 = vrot.lane.b32.xlu1 %v4266_v1, %s12625_s2  ;;  %v3072_v53 = vpop.permute.xlu0 %3071 }
 0x590   :  { %v3036_v25 = vpop.permute.xlu1 %3035  ;;  %4461 = vrot.lane.b32.xlu0 %v11556_v0, %s8514_s16 }
 0x591   :  { %3048 = vst.msk [vmem:[#allocation4 + $0x110] sm:$0x3f] %vm12959_vm10, %v3036_v25  ;;  %vm12966_vm10 = vcmask 244896   ;;  %v3936_v25 = vld [vmem:[#allocation3 + $0xa6] sm:$0x3f] }
 0x592   :  { %v7857_v47 = vpop.f32.mrf.mxu1  ;;  %4567 = vrot.lane.b32.xlu1 %v11551_v48, %s12740_s10  ;;  %3084 = vst.msk [vmem:[#allocation4 + $0x110] sm:$0x3f] %vm12960_vm15, %v3072_v53  ;;  %v3546_v49 = vpop.permute.xlu0 %3545  ;;  %vm12967_vm15 = vcmask 900896   ;;  %v4374_v53 = vld [vmem:[#allocation3 + $0xad] sm:$0x3f] }
 0x594   :  { %v7858_v51 = vpop.f32.mrf.mxu1  ;;  %v3510_v45 = vpop.permute.xlu1 %3509  ;;  %v5753_v37 = vld [vmem:[#allocation4 + $0xf8] sm:$0xff]  ;;  %3881 = vrot.lane.b32.xlu0 %v3864_v46, %s12863_s0 }
 0x595   :  { %v7859_v50 = vadd.f32 %v7858_v51, %v7857_v47  ;;  %3522 = vst.msk [vmem:[#allocation4 + $0x118] sm:$0x3f] %vm2622_vm7, %v3510_v45  ;;  %5881 = vmatprep.mubr.f32.mxu1 %v5753_v37  ;;  %v4410_v37 = vld [vmem:[#allocation3 + $0xd1] sm:$0x3f] }
 0x596   :  { %3987 = vrot.lane.b32.xlu1 %v11563_v2, %s12881_s25  ;;  %5882 = vmatmul.mubr.f32.gmra.mxu1 %v5752_v62  ;;  %3558 = vst.msk [vmem:[#allocation4 + $0x118] sm:$0x3f] %vm2660_vm1, %v3546_v49  ;;  %v3806_v35 = vpop.permute.xlu0 %3805  ;;  %v12974_v49 = vld [vmem:[#allocation29_spill] sm:$0xff] }
 0x597   :  { %v5724_v21 = vmax.f32 %v7850_v52, %v7859_v50  ;;  %3820 = vst.msk [vmem:[#allocation4 + $0x120] sm:$0xff] %vm12963_vm2, %v3806_v35  ;;  %vm12969_vm2 = vcmask 917296   ;;  %v11629_v35 = vld [vmem:[#allocation3 + $0xa0] sm:$0xff] }
 0x598   :  { %v4244_v3 = vpop.permute.xlu1 %4243  ;;  %4165 = vrot.lane.b32.xlu0 %v11576_v33, %s8505_s28 }
 0x599   :  { %v5727_v32 = vmax.f32 %v5721_v26, %v5724_v21  ;;  %4258 = vst.msk [vmem:[#allocation4 + $0x128] sm:$0xff] %vm12961_vm0, %v4244_v3  ;;  %v4481_v26 = vld [vmem:[#allocation3 + $0xec] sm:$0xff]  ;;  %vm12968_vm0 = vcmask 652848   ;;  %v4672_v3 = vld [vmem:[#allocation3 + $0xd9] sm:$0xff] }
 0x59a   :  { %4319 = vrot.lane.b32.xlu1 %v4302_v44, %s12962_s13  ;;  %v3108_v54 = vpop.permute.xlu0 %3107 }
 0x59b   :  { %v5737_v58 = vadd.f32 %v11471_v31, %v5727_v32  ;;  %3120 = vst.msk [vmem:[#allocation4 + $0x110] sm:$0x3f] %vm2196_vm4, %v3108_v54 }
 0x59c   :  { %v3214_v4 = vpop.permute.xlu1 %3213  ;;  %4497 = vrot.lane.b32.xlu0 %v4481_v26, %s8507_s30 }
 0x59d   :  { %v5740_v43 = vmax.f32 %v5737_v58, 0.0  ;;  %3227 = vst.msk [vmem:[#allocation4 + $0x100] sm:$0xff] %vm12964_vm12, %v3214_v4  ;;  %vm12970_vm12 = vcmask 261296   ;;  %v3972_v58 = vld [vmem:[#allocation3 + $0xca] sm:$0x3f] }
 0x59e   :  { %4603 = vrot.lane.b32.xlu1 %v11581_v27, %s12635_s22  ;;  %v3582_v28 = vpop.permute.xlu0 %3581 }
 0x59f   :  { %5743 = vst [vmem:[#allocation5 + $0x8] sm:$0xff] %v5740_v43  ;;  %3594 = vst.msk [vmem:[#allocation4 + $0x118] sm:$0x3f] %vm2698_vm13, %v3582_v28 }
 0x5a0   :  { %v3688_v5 = vpop.permute.xlu1 %3687  ;;  %5083 = vrot.lane.b32.xlu0 %v5068_v61, %s8503_s26  ;;  %v4708_v61 = vld [vmem:[#allocation3 + $0xfd] sm:$0xff] }
 0x5a1   :  { %3701 = vst.msk [vmem:[#allocation4 + $0x108] sm:$0xff] %vm2809_vm3, %v3688_v5  ;;  %v12981_v5 = vld [vmem:[#allocation10_spill] sm:$0xff] }
 0x5a2   :  { %4023 = vrot.lane.b32.xlu1 %v11396_v18, %s12886_s19  ;;  %v3842_v41 = vpop.permute.xlu0 %3841  ;;  %v11600_v18 = vld [vmem:[#allocation3 + $0xe6] sm:$0xff] }
 0x5a3   :  { %3856 = vst.msk [vmem:[#allocation4 + $0x120] sm:$0xff] %vm12966_vm10, %v3842_v41  ;;  %vm12972_vm10 = vcmask 982896   ;;  %v4008_v41 = vld [vmem:[#allocation3 + $0xa7] sm:$0x3f] }
 0x5a4   :  { %v4280_v14 = vpop.permute.xlu1 %4279  ;;  %4059 = vrot.lane.b32.xlu0 %v11595_v57, %s12888_s29 }
 0x5a5   :  { %4294 = vst.msk [vmem:[#allocation4 + $0x128] sm:$0xff] %vm12965_vm14, %v4280_v14  ;;  %vm12971_vm14 = vcmask 326896  }
 0x5a6   :  { %4355 = vrot.lane.b32.xlu1 %v4338_v7, %s12846_s15  ;;  %v3144_v39 = vpop.permute.xlu0 %3143 }
 0x5a7   :  { %3156 = vst.msk [vmem:[#allocation4 + $0x110] sm:$0x3f] %vm12968_vm0, %v3144_v39  ;;  %vm12975_vm0 = vcmask 343296   ;;  %v11657_v39 = vld [vmem:[#allocation3 + $0x111] sm:$0xff] }
 0x5a8   :  { %v3250_v40 = vpop.permute.xlu1 %3249  ;;  %4533 = vrot.lane.b32.xlu0 %v11605_v38, %s12628_s14 }
 0x5a9   :  { %3263 = vst.msk [vmem:[#allocation4 + $0x100] sm:$0xff] %vm12967_vm15, %v3250_v40  ;;  %vm12973_vm15 = vcmask 1048512  }
 0x5aa   :  { %4639 = vrot.lane.b32.xlu1 %v11600_v18, %s12686_s1  ;;  %v3618_v12 = vpop.permute.xlu0 %3617 }
 0x5ab   :  { %3630 = vst.msk [vmem:[#allocation4 + $0x118] sm:$0x3f] %vm12439_vm11, %v3618_v12 }
 0x5ac   :  { %v3724_v1 = vpop.permute.xlu1 %3723  ;;  %3953 = vrot.lane.b32.xlu0 %v3936_v25, %s12874_s24 }
 0x5ad   :  { %3737 = vst.msk [vmem:[#allocation4 + $0x108] sm:$0xff] %vm12969_vm2, %v3724_v1  ;;  %vm12976_vm2 = vcmask 999296  }
 0x5ae   :  { %3917 = vrot.lane.b32.xlu1 %v3900_v19, %s12627_s12  ;;  %v3878_v45 = vpop.permute.xlu0 %3877  ;;  %v4482_v19 = vld [vmem:[#allocation3 + $0xf4] sm:$0x3f] }
 0x5af   :  { %3892 = vst.msk [vmem:[#allocation4 + $0x120] sm:$0xff] %vm12971_vm14, %v3878_v45  ;;  %vm12978_vm14 = vcmask 15360   ;;  %v4044_v45 = vld [vmem:[#allocation3 + $0xcb] sm:$0x3f] }
 0x5b0   :  { %v4316_v47 = vpop.permute.xlu1 %4315  ;;  %4427 = vrot.lane.b32.xlu0 %v4410_v37, %s8515_s17 }
 0x5b1   :  { %4330 = vst.msk [vmem:[#allocation4 + $0x128] sm:$0xff] %vm12970_vm12, %v4316_v47  ;;  %vm12977_vm12 = vcmask 751248  }
 0x5b2   :  { %4391 = vrot.lane.b32.xlu1 %v4374_v53, %s12851_s3  ;;  %v7860_v51 = vpop.f32.mrf.mxu1  ;;  %v4352_v21 = vpop.permute.xlu0 %4351  ;;  %v11670_v53 = vld [vmem:[#allocation3 + $0x10a] sm:$0xff] }
 0x5b3   :  { %4366 = vst.msk [vmem:[#allocation4 + $0x128] sm:$0xff] %vm12975_vm0, %v4352_v21  ;;  %vm12982_vm0 = vcmask 816848  }
 0x5b4   :  { %v3286_v52 = vpop.permute.xlu1 %3285  ;;  %v7861_v50 = vpop.f32.mrf.mxu1  ;;  %4687 = vrot.lane.b32.xlu0 %v4672_v3, %s12857_s18 }
 0x5b5   :  { %3299 = vst.msk [vmem:[#allocation4 + $0x100] sm:$0xff] %vm12972_vm10, %v3286_v52  ;;  %v7862_v62 = vadd.f32 %v7861_v50, %v7860_v51  ;;  %vm12979_vm10 = vcmask 97296   ;;  %v4780_v52 = vld [vmem:[#allocation3 + $0xfe] sm:$0xff] }
 0x5b6   :  { %3339 = vst.msk [vmem:[#allocation4 + $0x100] sm:$0xff] %vm12973_vm15, %v11353_v34  ;;  %5125 = vrot.lane.b32.xlu1 %v12974_v49, %s8496_s20  ;;  %v3654_v34 = vpop.permute.xlu0 %3653  ;;  %vm12980_vm15 = vcmask 734848   ;;  %v4080_v49 = vld [vmem:[#allocation3 + $0xa8] sm:$0x3f] }
 0x5b7   :  { %v5725_v46 = vmax.f32 %v11372_v23, %v7862_v62  ;;  %3666 = vst.msk [vmem:[#allocation4 + $0x118] sm:$0x3f] %vm12977_vm12, %v3654_v34  ;;  %vm12984_vm12 = vcmask 162896   ;;  %v4554_v34 = vld [vmem:[#allocation3 + $0xf5] sm:$0x3f] }
 0x5b8   :  { %v3760_v32 = vpop.permute.xlu1 %3759  ;;  %3989 = vrot.lane.b32.xlu0 %v3972_v58, %s12881_s25 }
 0x5b9   :  { %v5728_v44 = vmax.f32 %v5722_v13, %v5725_v46  ;;  %3773 = vst.msk [vmem:[#allocation4 + $0x108] sm:$0xff] %vm12976_vm2, %v3760_v32  ;;  %v4446_v13 = vld [vmem:[#allocation3 + $0xae] sm:$0x3f]  ;;  %vm12983_vm2 = vcmask 408896   ;;  %v4518_v46 = vld [vmem:[#allocation3 + $0x118] sm:$0x3f] }
 0x5ba   :  { %4095 = vrot.lane.b32.xlu1 %v11629_v35, %s8497_s21  ;;  %v4246_v22 = vpop.permute.xlu0 %4245 }
 0x5bb   :  { %v5738_v23 = vadd.f32 %v11471_v31, %v5728_v44 }
 0x5bc   :  { %v11635_v4 = vpop.permute.xlu1 %4203  ;;  %4463 = vrot.lane.b32.xlu0 %v4446_v13, %s8514_s16 }
 0x5bd   :  { %v5741_v43 = vmax.f32 %v5738_v23, 0.0  ;;  %4222 = vst.msk [vmem:[#allocation4 + $0x138] sm:$0xff] %vm12978_vm14, %v11635_v4  ;;  %v5754_v26 = vld [vmem:[#allocation4 + $0x100] sm:$0xff]  ;;  %vm12985_vm14 = vcmask 425296  }
 0x5be   :  { %4569 = vrot.lane.b32.xlu1 %v11640_v20, %s12740_s10  ;;  %4259 = vst.msk [vmem:[#allocation4 + $0x138] sm:$0xff] %vm12979_vm10, %v4246_v22  ;;  %v3216_v28 = vpop.permute.xlu0 %3215  ;;  %vm12986_vm10 = vcmask 179296   ;;  %v4152_v22 = vld [vmem:[#allocation3 + $0x112] sm:$0x3f] }
 0x5bf   :  { %5744 = vst [vmem:[#allocation5 + $0x10] sm:$0xff] %v5741_v43 }
 0x5c0   :  { %v3180_v31 = vpop.permute.xlu1 %3179  ;;  %v5755_v54 = vld [vmem:[#allocation4 + $0x108] sm:$0xff]  ;;  %4723 = vrot.lane.b32.xlu0 %v4708_v61, %s12626_s23 }
 0x5c1   :  { %3192 = vst.msk [vmem:[#allocation4 + $0x110] sm:$0x3f] %vm12980_vm15, %v3180_v31  ;;  %5886 = vmatprep.mubr.f32.mxu1 %v5755_v54  ;;  %vm12987_vm15 = vcmask 833248  }
 0x5c2   :  { %5161 = vrot.lane.b32.xlu1 %v12981_v5, %s12625_s2  ;;  %5887 = vmatmul.mubr.f32.gmra.mxu1 %v5754_v26  ;;  %3228 = vst.msk [vmem:[#allocation4 + $0x110] sm:$0x3f] %vm12982_vm0, %v3216_v28  ;;  %v3808_v7 = vpop.permute.xlu0 %3807  ;;  %vm12988_vm0 = vcmask 898848  }
 0x5c3   :  { %3821 = vst.msk [vmem:[#allocation4 + $0x130] sm:$0xff] %vm12984_vm12, %v3808_v7  ;;  %vm12990_vm12 = vcmask 244896  }
 0x5c4   :  { %v3914_v14 = vpop.permute.xlu1 %3913  ;;  %4025 = vrot.lane.b32.xlu0 %v4008_v41, %s12886_s19  ;;  %v4626_v41 = vld [vmem:[#allocation3 + $0xf6] sm:$0x3f] }
 0x5c5   :  { %3928 = vst.msk [vmem:[#allocation4 + $0x120] sm:$0xff] %vm12983_vm2, %v3914_v14  ;;  %vm12989_vm2 = vcmask 490896  }
 0x5c6   :  { %4131 = vrot.lane.b32.xlu1 %v11600_v18, %s12653_s11  ;;  %v4282_v1 = vpop.permute.xlu0 %4281 }
 0x5c7   :  { %4295 = vst.msk [vmem:[#allocation4 + $0x138] sm:$0xff] %vm12986_vm10, %v4282_v1  ;;  %vm12992_vm10 = vcmask 261296  }
 0x5c8   :  { %v4388_v40 = vpop.permute.xlu1 %4387  ;;  %4499 = vrot.lane.b32.xlu0 %v4482_v19, %s8507_s30 }
 0x5c9   :  { %4402 = vst.msk [vmem:[#allocation4 + $0x128] sm:$0xff] %vm12985_vm14, %v4388_v40  ;;  %vm12991_vm14 = vcmask 507296  }
 0x5ca   :  { %4605 = vrot.lane.b32.xlu1 %v11657_v39, %s12635_s22  ;;  %v3252_v25 = vpop.permute.xlu0 %3251 }
 0x5cb   :  { %3264 = vst.msk [vmem:[#allocation4 + $0x110] sm:$0x3f] %vm12988_vm0, %v3252_v25  ;;  %vm12994_vm0 = vcmask 980848   ;;  %v5032_v25 = vld [vmem:[#allocation3 + $0xdf] sm:$0xff] }
 0x5cc   :  { %v3690_v12 = vpop.permute.xlu1 %3689  ;;  %4759 = vrot.lane.b32.xlu0 %v11423_v6, %s12863_s0 }
 0x5cd   :  { %3702 = vst.msk [vmem:[#allocation4 + $0x118] sm:$0x3f] %vm12987_vm15, %v3690_v12  ;;  %vm12993_vm15 = vcmask 915248  }
 0x5ce   :  { %5197 = vrot.lane.b32.xlu1 %v11401_v10, %s12962_s13  ;;  %v3844_v51 = vpop.permute.xlu0 %3843  ;;  %v11677_v10 = vld [vmem:[#allocation3 + $0xee] sm:$0xff] }
 0x5cf   :  { %3857 = vst.msk [vmem:[#allocation4 + $0x130] sm:$0xff] %vm12990_vm12, %v3844_v51  ;;  %vm12996_vm12 = vcmask 572896   ;;  %v4673_v51 = vld [vmem:[#allocation3 + $0xe1] sm:$0xff] }
 0x5d0   :  { %v3950_v47 = vpop.permute.xlu1 %3949  ;;  %4061 = vrot.lane.b32.xlu0 %v4044_v45, %s12888_s29 }
 0x5d1   :  { %3964 = vst.msk [vmem:[#allocation4 + $0x120] sm:$0xff] %vm12989_vm2, %v3950_v47  ;;  %vm12995_vm2 = vcmask 1046464  }
 0x5d2   :  { %4167 = vrot.lane.b32.xlu1 %v11670_v53, %s8505_s28  ;;  %v4318_v6 = vpop.permute.xlu0 %4317  ;;  %v11704_v23 = vpop.f32.mrf.mxu1 }
 0x5d3   :  { %4331 = vst.msk [vmem:[#allocation4 + $0x138] sm:$0xff] %vm12992_vm10, %v4318_v6  ;;  %vm12998_vm10 = vcmask 13312  }
 0x5d4   :  { %v4424_v37 = vpop.permute.xlu1 %4423  ;;  %4795 = vrot.lane.b32.xlu0 %v4780_v52, %s12627_s12  ;;  %v11711_v58 = vpop.f32.mrf.mxu1  ;;  %v5147_v52 = vld [vmem:[#allocation3 + $0x10c] sm:$0xff] }
 0x5d5   :  { %4438 = vst.msk [vmem:[#allocation4 + $0x128] sm:$0xff] %vm12991_vm14, %v4424_v37  ;;  %vm12997_vm14 = vcmask 326896  }
 0x5d6   :  { %4641 = vrot.lane.b32.xlu1 %v11677_v10, %s12686_s1  ;;  %v3288_v62 = vpop.permute.xlu0 %3287 }
 0x5d7   :  { %3300 = vst.msk [vmem:[#allocation4 + $0x110] sm:$0x3f] %vm12994_vm0, %v3288_v62  ;;  %vm13000_vm0 = vcmask 654896   ;;  %v4781_v62 = vld [vmem:[#allocation3 + $0x106] sm:$0xff] }
 0x5d8   :  { %v3726_v50 = vpop.permute.xlu1 %3725  ;;  %3341 = vst.msk [vmem:[#allocation4 + $0x110] sm:$0x3f] %vm12995_vm2, %v11427_v30  ;;  %4097 = vrot.lane.b32.xlu0 %v4080_v49, %s8497_s21  ;;  %vm13001_vm2 = vcmask 736896  }
 0x5d9   :  { %3738 = vst.msk [vmem:[#allocation4 + $0x118] sm:$0x3f] %vm12993_vm15, %v3726_v50  ;;  %vm12999_vm15 = vcmask 997248  }
 0x5da   :  { %5233 = vrot.lane.b32.xlu1 %v11434_v63, %s12846_s15  ;;  %v3880_v3 = vpop.permute.xlu0 %3879  ;;  %v4116_v63 = vld [vmem:[#allocation3 + $0xee] sm:$0x3f] }
 0x5db   :  { %3893 = vst.msk [vmem:[#allocation4 + $0x130] sm:$0xff] %vm12997_vm14, %v3880_v3  ;;  %vm13003_vm14 = vcmask 425296  }
 0x5dc   :  { %v3986_v21 = vpop.permute.xlu1 %3985  ;;  %4831 = vrot.lane.b32.xlu0 %v11475_v16, %s12874_s24 }
 0x5dd   :  { %4000 = vst.msk [vmem:[#allocation4 + $0x120] sm:$0xff] %vm12996_vm12, %v3986_v21  ;;  %vm13002_vm12 = vcmask 343296   ;;  %v4853_v21 = vld [vmem:[#allocation3 + $0x9f] sm:$0xff] }
 0x5de   :  { %4535 = vrot.lane.b32.xlu1 %v4518_v46, %s12628_s14  ;;  %v11698_v30 = vpop.permute.xlu0 %4205 }
 0x5df   :  { %4224 = vst.msk [vmem:[#allocation4 + $0x148] sm:$0x3f] %vm12998_vm10, %v11698_v30  ;;  %v5756_v26 = vld [vmem:[#allocation4 + $0x110] sm:$0xff]  ;;  %vm13004_vm10 = vcmask 408896  }
 0x5e0   :  { %v4460_v32 = vpop.permute.xlu1 %4459  ;;  %4133 = vrot.lane.b32.xlu0 %v4116_v63, %s12653_s11 }
 0x5e1   :  { %4474 = vst.msk [vmem:[#allocation4 + $0x128] sm:$0xff] %vm2695_vm5, %v4460_v32 }
 0x5e2   :  { %5269 = vrot.lane.b32.xlu1 %v11453_v24, %s12851_s3  ;;  %v4496_v16 = vpop.permute.xlu0 %4495 }
 0x5e3   :  { %4510 = vst.msk [vmem:[#allocation4 + $0x128] sm:$0xff] %vm2733_vm9, %v4496_v16 }
 0x5e4   :  { %v3762_v44 = vpop.permute.xlu1 %3761  ;;  %4867 = vrot.lane.b32.xlu0 %v11307_v42, %s12881_s25  ;;  %v4590_v42 = vld [vmem:[#allocation3 + $0x119] sm:$0x3f] }
 0x5e5   :  { %3774 = vst.msk [vmem:[#allocation4 + $0x118] sm:$0x3f] %vm12999_vm15, %v3762_v44  ;;  %vm13005_vm15 = vcmask 160848  }
 0x5e6   :  { %4571 = vrot.lane.b32.xlu1 %v4554_v34, %s12740_s10  ;;  %v4058_v43 = vpop.permute.xlu0 %4057  ;;  %v5327_v34 = vld [vmem:[#allocation3 + $0xca] sm:$0xff] }
 0x5e8   :  { %v4022_v24 = vpop.permute.xlu1 %4021  ;;  %4169 = vrot.lane.b32.xlu0 %v4152_v22, %s8505_s28 }
 0x5e9   :  { %4036 = vst.msk [vmem:[#allocation4 + $0x120] sm:$0xff] %vm13000_vm0, %v4022_v24  ;;  %vm13006_vm0 = vcmask 95248  }
 0x5ea   :  { %5305 = vrot.lane.b32.xlu1 %v11484_v29, %s8515_s17  ;;  %4072 = vst.msk [vmem:[#allocation4 + $0x120] sm:$0xff] %vm13001_vm2, %v4058_v43  ;;  %v4390_v5 = vpop.permute.xlu0 %4389  ;;  %vm13007_vm2 = vcmask 818896  }
 0x5eb   :  { %v7898_v54 = vpop.f32.mrf.mxu1 }
 0x5ec   :  { %v4354_v13 = vpop.permute.xlu1 %4353  ;;  %v5757_v31 = vld [vmem:[#allocation4 + $0x118] sm:$0xff]  ;;  %4903 = vrot.lane.b32.xlu0 %v11498_v11, %s12886_s19 }
 0x5ed   :  { %4367 = vst.msk [vmem:[#allocation4 + $0x138] sm:$0xff] %vm13002_vm12, %v4354_v13  ;;  %5891 = vmatprep.mubr.f32.mxu1 %v5757_v31  ;;  %v7899_v28 = vpop.f32.mrf.mxu1  ;;  %v4960_v11 = vld [vmem:[#allocation3 + $0xbc] sm:$0xff]  ;;  %vm13008_vm12 = vcmask 507296   ;;  %v5033_v13 = vld [vmem:[#allocation3 + $0xe7] sm:$0xff] }
 0x5ee   :  { %4607 = vrot.lane.b32.xlu1 %v4590_v42, %s12635_s22  ;;  %5892 = vmatmul.mubr.f32.gmra.mxu1 %v5756_v26  ;;  %4403 = vst.msk [vmem:[#allocation4 + $0x138] sm:$0xff] %vm13003_vm14, %v4390_v5  ;;  %v11720_v29 = vadd.f32 %v7899_v28, %v7898_v54  ;;  %v3810_v14 = vpop.permute.xlu0 %3809  ;;  %vm13009_vm14 = vcmask 490896   ;;  %v4674_v42 = vld [vmem:[#allocation3 + $0xe9] sm:$0x3f] }
 0x5ef   :  { %3822 = vst.msk [vmem:[#allocation4 + $0x140] sm:$0x3f] %vm13005_vm15, %v3810_v14  ;;  %vm13011_vm15 = vcmask 177248   ;;  %v4710_v28 = vld [vmem:[#allocation3 + $0x10d] sm:$0x3f] }
 0x5f0   :  { %v3916_v61 = vpop.permute.xlu1 %3915  ;;  %4939 = vrot.lane.b32.xlu0 %v11524_v56, %s12888_s29 }
 0x5f1   :  { %3929 = vst.msk [vmem:[#allocation4 + $0x130] sm:$0xff] %vm13004_vm10, %v3916_v61  ;;  %vm13010_vm10 = vcmask 242848  }
 0x5f2   :  { %5341 = vrot.lane.b32.xlu1 %v11563_v2, %s8514_s16  ;;  %v4094_v40 = vpop.permute.xlu0 %4093 }
 0x5f3   :  { %4108 = vst.msk [vmem:[#allocation4 + $0x120] sm:$0xff] %vm13007_vm2, %v4094_v40  ;;  %vm13013_vm2 = vcmask 572896   ;;  %v5148_v40 = vld [vmem:[#allocation3 + $0x114] sm:$0x3f] }
 0x5f4   :  { %v4248_v7 = vpop.permute.xlu1 %4247  ;;  %4975 = vrot.lane.b32.xlu0 %v4960_v11, %s8497_s21 }
 0x5f5   :  { %4260 = vst.msk [vmem:[#allocation4 + $0x148] sm:$0x3f] %vm13006_vm0, %v4248_v7  ;;  %vm13012_vm0 = vcmask 900896   ;;  %v4746_v7 = vld [vmem:[#allocation3 + $0xea] sm:$0x3f] }
 0x5f6   :  { %4643 = vrot.lane.b32.xlu1 %v4626_v41, %s12686_s1  ;;  %v4426_v19 = vpop.permute.xlu0 %4425 }
 0x5f7   :  { %4439 = vst.msk [vmem:[#allocation4 + $0x138] sm:$0xff] %vm13008_vm12, %v4426_v19  ;;  %vm13014_vm12 = vcmask 324848  }
 0x5f8   :  { %v4532_v1 = vpop.permute.xlu1 %4531  ;;  %5011 = vrot.lane.b32.xlu0 %v11576_v33, %s12653_s11 }
 0x5f9   :  { %4546 = vst.msk [vmem:[#allocation4 + $0x128] sm:$0xff] %vm2771_vm8, %v4532_v1  ;;  %v4782_v1 = vld [vmem:[#allocation3 + $0x10e] sm:$0x3f] }
 0x5fa   :  { %5377 = vrot.lane.b32.xlu1 %v11529_v17, %s8507_s30  ;;  %v3846_v12 = vpop.permute.xlu0 %3845 }
 0x5fb   :  { %3858 = vst.msk [vmem:[#allocation4 + $0x140] sm:$0x3f] %vm13010_vm10, %v3846_v12  ;;  %vm13016_vm10 = vcmask 982896  }
 0x5fc   :  { %v3952_v56 = vpop.permute.xlu1 %3951  ;;  %5047 = vrot.lane.b32.xlu0 %v5032_v25, %s8505_s28  ;;  %v4818_v25 = vld [vmem:[#allocation3 + $0xca] sm:$0x3f] }
 0x5fd   :  { %3965 = vst.msk [vmem:[#allocation4 + $0x130] sm:$0xff] %vm13009_vm14, %v3952_v56  ;;  %vm13015_vm14 = vcmask 259248   ;;  %v5184_v56 = vld [vmem:[#allocation3 + $0xd0] sm:$0x3f] }
 0x5fe   :  { %5413 = vrot.lane.b32.xlu1 %v11551_v48, %s12628_s14  ;;  %v4130_v17 = vpop.permute.xlu0 %4129 }
 0x5ff   :  { %4144 = vst.msk [vmem:[#allocation4 + $0x120] sm:$0xff] %vm13012_vm0, %v4130_v17  ;;  %vm13018_vm0 = vcmask 917296   ;;  %v5220_v17 = vld [vmem:[#allocation3 + $0xad] sm:$0x3f] }
 0x600   :  { %v4284_v47 = vpop.permute.xlu1 %4283  ;;  %5085 = vrot.lane.b32.xlu0 %v11412_v9, %s8503_s26  ;;  %v4709_v9 = vld [vmem:[#allocation3 + $0x105] sm:$0xff] }
 0x601   :  { %4296 = vst.msk [vmem:[#allocation4 + $0x148] sm:$0x3f] %vm13011_vm15, %v4284_v47  ;;  %vm13017_vm15 = vcmask 1048512  }
 0x602   :  { %5449 = vrot.lane.b32.xlu1 %v11581_v27, %s12740_s10  ;;  %v4462_v48 = vpop.permute.xlu0 %4461 }
 0x603   :  { %4475 = vst.msk [vmem:[#allocation4 + $0x138] sm:$0xff] %vm2695_vm5, %v4462_v48  ;;  %v4854_v48 = vld [vmem:[#allocation3 + $0xa7] sm:$0x3f] }
 0x604   :  { %v4568_v33 = vpop.permute.xlu1 %4567  ;;  %4689 = vrot.lane.b32.xlu0 %v4673_v51, %s12857_s18 }
 0x605   :  { %4582 = vst.msk [vmem:[#allocation4 + $0x128] sm:$0xff] %vm2809_vm3, %v4568_v33 }
 0x606   :  { %5485 = vrot.lane.b32.xlu1 %v11600_v18, %s12635_s22  ;;  %v3882_v27 = vpop.permute.xlu0 %3881 }
 0x607   :  { %3894 = vst.msk [vmem:[#allocation4 + $0x140] sm:$0x3f] %vm13014_vm12, %v3882_v27  ;;  %vm13020_vm12 = vcmask 15360   ;;  %v4890_v27 = vld [vmem:[#allocation3 + $0xcb] sm:$0x3f] }
 0x608   :  { %v3988_v45 = vpop.permute.xlu1 %3987  ;;  %4725 = vrot.lane.b32.xlu0 %v4709_v9, %s12626_s23 }
 0x609   :  { %4001 = vst.msk [vmem:[#allocation4 + $0x130] sm:$0xff] %vm13013_vm2, %v3988_v45  ;;  %vm13019_vm2 = vcmask 654896  }
 0x60a   :  { %5521 = vrot.lane.b32.xlu1 %v11670_v53, %s12686_s1  ;;  %v4166_v18 = vpop.permute.xlu0 %4165 }
 0x60b   :  { %4180 = vst.msk [vmem:[#allocation4 + $0x120] sm:$0xff] %vm13016_vm10, %v4166_v18  ;;  %vm13022_vm10 = vcmask 999296   ;;  %v5292_v18 = vld [vmem:[#allocation3 + $0xae] sm:$0x3f] }
 0x60c   :  { %v4320_v37 = vpop.permute.xlu1 %4319  ;;  %4219 = vst.msk [vmem:[#allocation4 + $0x120] sm:$0xff] %vm13017_vm15, %v11533_v55  ;;  %4761 = vrot.lane.b32.xlu0 %v11513_v36, %s12863_s0  ;;  %vm13023_vm15 = vcmask 406848  }
 0x60d   :  { %4332 = vst.msk [vmem:[#allocation4 + $0x148] sm:$0x3f] %vm13015_vm14, %v4320_v37  ;;  %vm13021_vm14 = vcmask 736896  }
 0x60e   :  { %5127 = vrot.lane.b32.xlu1 %v11439_v60, %s8496_s20  ;;  %v4498_v50 = vpop.permute.xlu0 %4497 }
 0x60f   :  { %4511 = vst.msk [vmem:[#allocation4 + $0x138] sm:$0xff] %vm2733_vm9, %v4498_v50  ;;  %v4926_v50 = vld [vmem:[#allocation3 + $0xa8] sm:$0x3f] }
 0x610   :  { %v4604_v6 = vpop.permute.xlu1 %4603  ;;  %4797 = vrot.lane.b32.xlu0 %v4781_v62, %s12627_s12 }
 0x611   :  { %4618 = vst.msk [vmem:[#allocation4 + $0x128] sm:$0xff] %vm13018_vm0, %v4604_v6  ;;  %vm13024_vm0 = vcmask 488848  }
 0x612   :  { %5163 = vrot.lane.b32.xlu1 %v5147_v52, %s12625_s2  ;;  %v11776_v55 = vpop.permute.xlu0 %5083 }
 0x613   :  { %5102 = vst.msk [vmem:[#allocation4 + $0x158] sm:$0xff] %vm13020_vm12, %v11776_v55  ;;  %vm13026_vm12 = vcmask 162896  }
 0x614   :  { %v4024_v60 = vpop.permute.xlu1 %4023  ;;  %4833 = vrot.lane.b32.xlu0 %v11563_v2, %s12874_s24 }
 0x615   :  { %4037 = vst.msk [vmem:[#allocation4 + $0x130] sm:$0xff] %vm13019_vm2, %v4024_v60  ;;  %vm13025_vm2 = vcmask 97296   ;;  %v5328_v60 = vld [vmem:[#allocation3 + $0xd2] sm:$0x3f] }
 0x616   :  { %5199 = vrot.lane.b32.xlu1 %v11503_v15, %s12962_s13  ;;  %v4060_v49 = vpop.permute.xlu0 %4059 }
 0x617   :  { %4073 = vst.msk [vmem:[#allocation4 + $0x130] sm:$0xff] %vm13021_vm14, %v4060_v49  ;;  %vm13027_vm14 = vcmask 818896   ;;  %v4962_v49 = vld [vmem:[#allocation3 + $0xcc] sm:$0x3f] }
 0x618   :  { %v4356_v36 = vpop.permute.xlu1 %4355  ;;  %4869 = vrot.lane.b32.xlu0 %v4853_v21, %s12881_s25 }
 0x619   :  { %4368 = vst.msk [vmem:[#allocation4 + $0x148] sm:$0x3f] %vm2584_vm6, %v4356_v36 }
 0x61a   :  { %5235 = vrot.lane.b32.xlu1 %v11508_v8, %s12846_s15  ;;  %v4534_v3 = vpop.permute.xlu0 %4533 }
 0x61b   :  { %4547 = vst.msk [vmem:[#allocation4 + $0x138] sm:$0xff] %vm2771_vm8, %v4534_v3  ;;  %v4998_v3 = vld [vmem:[#allocation3 + $0x112] sm:$0x3f] }
 0x61c   :  { %v4640_v46 = vpop.permute.xlu1 %4639  ;;  %4905 = vrot.lane.b32.xlu0 %v11595_v57, %s12886_s19  ;;  %v5758_v57 = vld [vmem:[#allocation4 + $0x120] sm:$0xff] }
 0x61d   :  { %4654 = vst.msk [vmem:[#allocation4 + $0x128] sm:$0xff] %vm13022_vm10, %v4640_v46  ;;  %vm13028_vm10 = vcmask 179296   ;;  %v5364_v46 = vld [vmem:[#allocation3 + $0x118] sm:$0x3f] }
 0x61e   :  { %v7901_v15 = vpop.f32.mrf.mxu1  ;;  %5271 = vrot.lane.b32.xlu1 %v11537_v59, %s12851_s3  ;;  %v3954_v63 = vpop.permute.xlu0 %3953 }
 0x620   :  { %v7902_v2 = vpop.f32.mrf.mxu1  ;;  %v3918_v32 = vpop.permute.xlu1 %3917  ;;  %4941 = vrot.lane.b32.xlu0 %v11629_v35, %s12888_s29 }
 0x621   :  { %v11793_v8 = vadd.f32 %v7902_v2, %v7901_v15  ;;  %3930 = vst.msk [vmem:[#allocation4 + $0x140] sm:$0x3f] %vm13023_vm15, %v3918_v32  ;;  %vm13029_vm15 = vcmask 244896   ;;  %v5400_v32 = vld [vmem:[#allocation3 + $0xf5] sm:$0x3f] }
 0x622   :  { %5307 = vrot.lane.b32.xlu1 %v11556_v0, %s8515_s17  ;;  %3966 = vst.msk [vmem:[#allocation4 + $0x140] sm:$0x3f] %vm13024_vm0, %v3954_v63  ;;  %v4428_v16 = vpop.permute.xlu0 %4427  ;;  %v4961_v0 = vld [vmem:[#allocation3 + $0xc4] sm:$0xff]  ;;  %vm13030_vm0 = vcmask 900896  }
 0x624   :  { %v4392_v44 = vpop.permute.xlu1 %4391  ;;  %v5759_v59 = vld [vmem:[#allocation4 + $0x128] sm:$0xff]  ;;  %4977 = vrot.lane.b32.xlu0 %v4961_v0, %s8497_s21  ;;  %v5472_v0 = vld [vmem:[#allocation3 + $0xf6] sm:$0x3f] }
 0x625   :  { %4404 = vst.msk [vmem:[#allocation4 + $0x148] sm:$0x3f] %vm2622_vm7, %v4392_v44  ;;  %5896 = vmatprep.mubr.f32.mxu1 %v5759_v59  ;;  %v5034_v44 = vld [vmem:[#allocation3 + $0xef] sm:$0x3f] }
 0x626   :  { %5343 = vrot.lane.b32.xlu1 %v5327_v34, %s8514_s16  ;;  %5897 = vmatmul.mubr.f32.gmra.mxu1 %v5758_v57  ;;  %4440 = vst.msk [vmem:[#allocation4 + $0x148] sm:$0x3f] %vm2660_vm1, %v4428_v16  ;;  %v4688_v35 = vpop.permute.xlu0 %4687  ;;  %v5436_v34 = vld [vmem:[#allocation3 + $0x119] sm:$0x3f] }
 0x627   :  { %4702 = vst.msk [vmem:[#allocation4 + $0x150] sm:$0xff] %vm13026_vm12, %v4688_v35  ;;  %vm13032_vm12 = vcmask 917296   ;;  %v5508_v35 = vld [vmem:[#allocation3 + $0x11a] sm:$0x3f] }
 0x628   :  { %v5126_v24 = vpop.permute.xlu1 %5125  ;;  %5013 = vrot.lane.b32.xlu0 %v11670_v53, %s12653_s11  ;;  %v5070_v53 = vld [vmem:[#allocation3 + $0x113] sm:$0x3f] }
 0x629   :  { %5140 = vst.msk [vmem:[#allocation4 + $0x158] sm:$0xff] %vm13025_vm2, %v5126_v24  ;;  %vm13031_vm2 = vcmask 652848  }
 0x62a   :  { %5379 = vrot.lane.b32.xlu1 %v11605_v38, %s8507_s30  ;;  %v3990_v22 = vpop.permute.xlu0 %3989 }
 0x62b   :  { %4002 = vst.msk [vmem:[#allocation4 + $0x140] sm:$0x3f] %vm2196_vm4, %v3990_v22 }
 0x62c   :  { %v4096_v43 = vpop.permute.xlu1 %4095  ;;  %5049 = vrot.lane.b32.xlu0 %v5033_v13, %s8505_s28 }
 0x62d   :  { %4109 = vst.msk [vmem:[#allocation4 + $0x130] sm:$0xff] %vm13027_vm14, %v4096_v43  ;;  %vm13033_vm14 = vcmask 261296  }
 0x62e   :  { %5415 = vrot.lane.b32.xlu1 %v11640_v20, %s12628_s14  ;;  %v4464_v38 = vpop.permute.xlu0 %4463 }
 0x62f   :  { %4476 = vst.msk [vmem:[#allocation4 + $0x148] sm:$0x3f] %vm2698_vm13, %v4464_v38 }
 0x630   :  { %v4570_v31 = vpop.permute.xlu1 %4569  ;;  %5087 = vrot.lane.b32.xlu0 %v5070_v53, %s8503_s26 }
 0x631   :  { %4583 = vst.msk [vmem:[#allocation4 + $0x138] sm:$0xff] %vm2809_vm3, %v4570_v31 }
 0x632   :  { %5451 = vrot.lane.b32.xlu1 %v11657_v39, %s12740_s10  ;;  %v4724_v20 = vpop.permute.xlu0 %4723  ;;  %v5507_v39 = vld [vmem:[#allocation3 + $0x112] sm:$0xff] }
 0x633   :  { %4738 = vst.msk [vmem:[#allocation4 + $0x150] sm:$0xff] %vm13029_vm15, %v4724_v20  ;;  %vm13035_vm15 = vcmask 982896  }
 0x634   :  { %v5162_v54 = vpop.permute.xlu1 %5161  ;;  %4691 = vrot.lane.b32.xlu0 %v4674_v42, %s12857_s18 }
 0x635   :  { %5176 = vst.msk [vmem:[#allocation4 + $0x158] sm:$0xff] %vm13028_vm10, %v5162_v54  ;;  %vm13034_vm10 = vcmask 326896  }
 0x636   :  { %5487 = vrot.lane.b32.xlu1 %v11677_v10, %s12635_s22  ;;  %v4026_v5 = vpop.permute.xlu0 %4025  ;;  %v5112_v10 = vld [vmem:[#allocation3 + $0xf0] sm:$0x3f] }
 0x637   :  { %4038 = vst.msk [vmem:[#allocation4 + $0x140] sm:$0x3f] %vm13031_vm2, %v4026_v5  ;;  %vm13037_vm2 = vcmask 734848  }
 0x638   :  { %v4132_v26 = vpop.permute.xlu1 %4131  ;;  %4727 = vrot.lane.b32.xlu0 %v4710_v28, %s12626_s23 }
 0x639   :  { %4145 = vst.msk [vmem:[#allocation4 + $0x130] sm:$0xff] %vm13030_vm0, %v4132_v26  ;;  %vm13036_vm0 = vcmask 1048512  }
 0x63a   :  { %5523 = vrot.lane.b32.xlu1 %v5507_v39, %s12686_s1  ;;  %v4500_v14 = vpop.permute.xlu0 %4499 }
 0x63b   :  { %4512 = vst.msk [vmem:[#allocation4 + $0x148] sm:$0x3f] %vm12439_vm11, %v4500_v14  ;;  %vm13073_vm11 = vcmask 654896  }
 0x63c   :  { %v4606_v61 = vpop.permute.xlu1 %4605  ;;  %4763 = vrot.lane.b32.xlu0 %v4746_v7, %s12863_s0 }
 0x63d   :  { %4619 = vst.msk [vmem:[#allocation4 + $0x138] sm:$0xff] %vm13032_vm12, %v4606_v61  ;;  %vm13038_vm12 = vcmask 999296  }
 0x63e   :  { %5129 = vrot.lane.b32.xlu1 %v5112_v10, %s8496_s20  ;;  %v4760_v11 = vpop.permute.xlu0 %4759 }
 0x63f   :  { %4774 = vst.msk [vmem:[#allocation4 + $0x150] sm:$0xff] %vm13034_vm10, %v4760_v11  ;;  %vm13040_vm10 = vcmask 343296  }
 0x640   :  { %v5198_v41 = vpop.permute.xlu1 %5197  ;;  %4799 = vrot.lane.b32.xlu0 %v4782_v1, %s12627_s12 }
 0x641   :  { %5212 = vst.msk [vmem:[#allocation4 + $0x158] sm:$0xff] %vm13033_vm14, %v5198_v41  ;;  %vm13039_vm14 = vcmask 408896  }
 0x642   :  { %5165 = vrot.lane.b32.xlu1 %v5148_v40, %s12625_s2  ;;  %v4062_v12 = vpop.permute.xlu0 %4061 }
 0x643   :  { %4074 = vst.msk [vmem:[#allocation4 + $0x140] sm:$0x3f] %vm13037_vm2, %v4062_v12  ;;  %vm13043_vm2 = vcmask 490896  }
 0x644   :  { %v4168_v19 = vpop.permute.xlu1 %4167  ;;  %4835 = vrot.lane.b32.xlu0 %v4818_v25, %s12874_s24 }
 0x645   :  { %4181 = vst.msk [vmem:[#allocation4 + $0x130] sm:$0xff] %vm13035_vm15, %v4168_v19  ;;  %vm13041_vm15 = vcmask 816848  }
 0x646   :  { %4221 = vst.msk [vmem:[#allocation4 + $0x130] sm:$0xff] %vm13036_vm0, %v11635_v4  ;;  %5201 = vrot.lane.b32.xlu1 %v5184_v56, %s12962_s13  ;;  %v4796_v33 = vpop.permute.xlu0 %4795  ;;  %v5256_v4 = vld [vmem:[#allocation3 + $0xd1] sm:$0x3f]  ;;  %vm13042_vm0 = vcmask 751248  }
 0x647   :  { %4810 = vst.msk [vmem:[#allocation4 + $0x150] sm:$0xff] %vm13039_vm14, %v4796_v33  ;;  %vm13045_vm14 = vcmask 898848  }
 0x648   :  { %v4642_v47 = vpop.permute.xlu1 %4641  ;;  %4871 = vrot.lane.b32.xlu0 %v4854_v48, %s12881_s25 }
 0x649   :  { %4655 = vst.msk [vmem:[#allocation4 + $0x138] sm:$0xff] %vm13038_vm12, %v4642_v47  ;;  %vm13044_vm12 = vcmask 425296  }
 0x64a   :  { %5237 = vrot.lane.b32.xlu1 %v5220_v17, %s12846_s15  ;;  %v4098_v45 = vpop.permute.xlu0 %4097 }
 0x64b   :  { %4110 = vst.msk [vmem:[#allocation4 + $0x140] sm:$0x3f] %vm13041_vm15, %v4098_v45  ;;  %vm13047_vm15 = vcmask 572896   ;;  %v7571_v45 = vld [vmem:[%s12346_s5 + $0x38] sm:$0xff] }
 0x64c   :  { %v5234_v51 = vpop.permute.xlu1 %5233  ;;  %4907 = vrot.lane.b32.xlu0 %v4890_v27, %s12886_s19  ;;  %8245 = vmatpush3.msra.mxu1 %v7571_v45 }
 0x64d   :  { %5248 = vst.msk [vmem:[#allocation4 + $0x158] sm:$0xff] %vm13040_vm10, %v5234_v51  ;;  %v5760_v6 = vld [vmem:[#allocation4 + $0x130] sm:$0xff]  ;;  %vm13046_vm10 = vcmask 833248  }
 0x64e   :  { %5273 = vrot.lane.b32.xlu1 %v5256_v4, %s12851_s3  ;;  %v4832_v52 = vpop.permute.xlu0 %4831 }
 0x64f   :  { %4846 = vst.msk [vmem:[#allocation4 + $0x150] sm:$0xff] %vm13043_vm2, %v4832_v52  ;;  %vm13049_vm2 = vcmask 980848  }
 0x650   :  { %v4536_v9 = vpop.permute.xlu1 %4535  ;;  %v5761_v37 = vld [vmem:[#allocation4 + $0x138] sm:$0xff]  ;;  %4943 = vrot.lane.b32.xlu0 %v4926_v50, %s12888_s29 }
 0x651   :  { %4548 = vst.msk [vmem:[#allocation4 + $0x148] sm:$0x3f] %vm13042_vm0, %v4536_v9  ;;  %5901 = vmatprep.mubr.f32.mxu1 %v5761_v37  ;;  %vm13048_vm0 = vcmask 507296   ;;  %v11914_v9 = vld [vmem:[#allocation4 + $0x178] sm:$0xff] }
 0x652   :  { %5309 = vrot.lane.b32.xlu1 %v5292_v18, %s8515_s17  ;;  %5902 = vmatmul.mubr.f32.gmra.mxu1 %v5760_v6  ;;  %v4134_v36 = vpop.permute.xlu0 %4133 }
 0x653   :  { %4146 = vst.msk [vmem:[#allocation4 + $0x140] sm:$0x3f] %vm13045_vm14, %v4134_v36  ;;  %vm13051_vm14 = vcmask 915248   ;;  %8246 = vmatprep.subr.mxu1 %v11914_v9 }
 0x654   :  { %v5270_v62 = vpop.permute.xlu1 %5269  ;;  %4979 = vrot.lane.b32.xlu0 %v4962_v49, %s8497_s21 }
 0x655   :  { %5284 = vst.msk [vmem:[#allocation4 + $0x158] sm:$0xff] %vm13044_vm12, %v5270_v62  ;;  %vm13050_vm12 = vcmask 1046464  }
 0x656   :  { %5345 = vrot.lane.b32.xlu1 %v5328_v60, %s8514_s16  ;;  %v4868_v15 = vpop.permute.xlu0 %4867  ;;  %v11889_v5 = vpop.f32.mrf.mxu1 }
 0x657   :  { %4882 = vst.msk [vmem:[#allocation4 + $0x150] sm:$0xff] %vm13047_vm15, %v4868_v15  ;;  %vm13053_vm15 = vcmask 736896  }
 0x658   :  { %v4572_v21 = vpop.permute.xlu1 %4571  ;;  %5015 = vrot.lane.b32.xlu0 %v4998_v3, %s12653_s11 }
 0x659   :  { %4584 = vst.msk [vmem:[#allocation4 + $0x148] sm:$0x3f] %vm13046_vm10, %v4572_v21  ;;  %vm13052_vm10 = vcmask 654896  }
 0x65a   :  { %5381 = vrot.lane.b32.xlu1 %v5364_v46, %s8507_s30  ;;  %v4170_v63 = vpop.permute.xlu0 %4169 }
 0x65b   :  { %4182 = vst.msk [vmem:[#allocation4 + $0x140] sm:$0x3f] %vm13049_vm2, %v4170_v63  ;;  %vm13055_vm2 = vcmask 818896  }
 0x65c   :  { %v5306_v2 = vpop.permute.xlu1 %5305  ;;  %4223 = vst.msk [vmem:[#allocation4 + $0x140] sm:$0x3f] %vm13050_vm12, %v11698_v30  ;;  %5051 = vrot.lane.b32.xlu0 %v5034_v44, %s8505_s28  ;;  %vm13056_vm12 = vcmask 900896  }
 0x65d   :  { %5320 = vst.msk [vmem:[#allocation4 + $0x158] sm:$0xff] %vm13048_vm0, %v5306_v2  ;;  %vm13054_vm0 = vcmask 997248  }
 0x65e   :  { %5417 = vrot.lane.b32.xlu1 %v5400_v32, %s12628_s14  ;;  %v4904_v57 = vpop.permute.xlu0 %4903 }
 0x65f   :  { %4918 = vst.msk [vmem:[#allocation4 + $0x150] sm:$0xff] %vm13052_vm10, %v4904_v57  ;;  %vm13058_vm10 = vcmask 1048512  }
 0x660   :  { %v4608_v59 = vpop.permute.xlu1 %4607 }
 0x661   :  { %4620 = vst.msk [vmem:[#allocation4 + $0x148] sm:$0x3f] %vm13051_vm14, %v4608_v59  ;;  %vm13057_vm14 = vcmask 982896  }
 0x662   :  { %5453 = vrot.lane.b32.xlu1 %v5436_v34, %s12740_s10  ;;  %v4940_v24 = vpop.permute.xlu0 %4939 }
 0x663   :  { %4954 = vst.msk [vmem:[#allocation4 + $0x150] sm:$0xff] %vm13053_vm15, %v4940_v24  ;;  %v5762_v53 = vld [vmem:[#allocation4 + $0x140] sm:$0xff]  ;;  %vm13059_vm15 = vcmask 15360  }
 0x664   :  { %v5342_v16 = vpop.permute.xlu1 %5341 }
 0x665   :  { %5356 = vst.msk [vmem:[#allocation4 + $0x158] sm:$0xff] %vm2695_vm5, %v5342_v16 }
 0x666   :  { %5489 = vrot.lane.b32.xlu1 %v5472_v0, %s12635_s22  ;;  %v4976_v43 = vpop.permute.xlu0 %4975  ;;  %v7570_v0 = vld [vmem:[%s12346_s5 + $0x30] sm:$0xff] }
 0x667   :  { %4990 = vst.msk [vmem:[#allocation4 + $0x150] sm:$0xff] %vm13055_vm2, %v4976_v43  ;;  %vm13061_vm2 = vcmask 162896   ;;  %8247 = vmatpush3.msra.mxu1 %v7570_v0  ;;  %v7575_v0 = vld [vmem:[%s12346_s5 + $0x48] sm:$0xff] }
 0x668   :  { %v4644_v30 = vpop.permute.xlu1 %4643  ;;  %8248 = vmatprep.subr.mxu1 %v11914_v9 }
 0x669   :  { %4656 = vst.msk [vmem:[#allocation4 + $0x148] sm:$0x3f] %vm13054_vm0, %v4644_v30  ;;  %vm13060_vm0 = vcmask 917296  }
 0x66a   :  { %5525 = vrot.lane.b32.xlu1 %v5508_v35, %s12686_s1  ;;  %v5012_v13 = vpop.permute.xlu0 %5011 }
 0x66b   :  { %5026 = vst.msk [vmem:[#allocation4 + $0x150] sm:$0xff] %vm13056_vm12, %v5012_v13  ;;  %vm13062_vm12 = vcmask 999296  }
 0x66c   :  { %v5378_v22 = vpop.permute.xlu1 %5377 }
 0x66d   :  { %5392 = vst.msk [vmem:[#allocation4 + $0x158] sm:$0xff] %vm2733_vm9, %v5378_v22 }
 0x66e   :  { %v5048_v54 = vpop.permute.xlu0 %5047 }
 0x66f   :  { %5062 = vst.msk [vmem:[#allocation4 + $0x150] sm:$0xff] %vm13057_vm14, %v5048_v54  ;;  %vm13063_vm14 = vcmask 244896   ;;  %v7569_v54 = vld [vmem:[%s12346_s5 + $0x28] sm:$0xff] }
 0x670   :  { %v5414_v31 = vpop.permute.xlu1 %5413  ;;  %v5763_v38 = vld [vmem:[#allocation4 + $0x148] sm:$0xff]  ;;  %5101 = vst.msk [vmem:[#allocation4 + $0x150] sm:$0xff] %vm13058_vm10, %v11776_v55  ;;  %v11893_v55 = vpop.f32.mrf.mxu1  ;;  %vm13064_vm10 = vcmask 97296   ;;  %8249 = vmatpush3.msra.mxu1 %v7569_v54  ;;  %v7579_v54 = vld [vmem:[%s12346_s5 + $0x60] sm:$0xff] }
 0x671   :  { %5428 = vst.msk [vmem:[#allocation4 + $0x158] sm:$0xff] %vm2771_vm8, %v5414_v31  ;;  %5906 = vmatprep.mubr.f32.mxu1 %v5763_v38  ;;  %8250 = vmatprep.subr.mxu1 %v11914_v9 }
 0x672   :  { %5907 = vmatmul.mubr.f32.gmra.mxu1 %v5762_v53  ;;  %v5086_v42 = vpop.permute.xlu0 %5085 }
 0x673   :  { %5104 = vst.msk [vmem:[#allocation4 + $0x168] sm:$0xff] %vm13059_vm15, %v5086_v42  ;;  %vm13065_vm15 = vcmask 326896  }
 0x674   :  { %v5450_v20 = vpop.permute.xlu1 %5449 }
 0x675   :  { %5464 = vst.msk [vmem:[#allocation4 + $0x158] sm:$0xff] %vm2809_vm3, %v5450_v20 }
 0x676   :  { %v4690_v39 = vpop.permute.xlu0 %4689 }
 0x677   :  { %4703 = vst.msk [vmem:[#allocation4 + $0x160] sm:$0xff] %vm13061_vm2, %v4690_v39  ;;  %v5764_v19 = vld [vmem:[#allocation4 + $0x150] sm:$0xff]  ;;  %vm13067_vm2 = vcmask 408896  }
 0x678   :  { %v5486_v26 = vpop.permute.xlu1 %5485 }
 0x679   :  { %5500 = vst.msk [vmem:[#allocation4 + $0x158] sm:$0xff] %vm13060_vm0, %v5486_v26  ;;  %vm13066_vm0 = vcmask 179296  }
 0x67a   :  { %v4726_v61 = vpop.permute.xlu0 %4725 }
 0x67b   :  { %4739 = vst.msk [vmem:[#allocation4 + $0x160] sm:$0xff] %vm13063_vm14, %v4726_v61  ;;  %vm13069_vm14 = vcmask 490896  }
 0x67c   :  { %v5522_v28 = vpop.permute.xlu1 %5521 }
 0x67d   :  { %5536 = vst.msk [vmem:[#allocation4 + $0x158] sm:$0xff] %vm13062_vm12, %v5522_v28  ;;  %vm13068_vm12 = vcmask 261296  }
 0x67e   :  { %v4762_v7 = vpop.permute.xlu0 %4761 }
 0x67f   :  { %4775 = vst.msk [vmem:[#allocation4 + $0x160] sm:$0xff] %vm13065_vm15, %v4762_v7  ;;  %vm13071_vm15 = vcmask 572896  }
 0x680   :  { %v5128_v10 = vpop.permute.xlu1 %5127 }
 0x681   :  { %5141 = vst.msk [vmem:[#allocation4 + $0x168] sm:$0xff] %vm13064_vm10, %v5128_v10  ;;  %vm13070_vm10 = vcmask 343296   ;;  %v7568_v10 = vld [vmem:[%s12346_s5 + $0x20] sm:$0xff] }
 0x682   :  { %v7907_v14 = vpop.f32.mrf.mxu1  ;;  %v4798_v56 = vpop.permute.xlu0 %4797  ;;  %8251 = vmatpush3.msra.mxu1 %v7568_v10 }
 0x683   :  { %4811 = vst.msk [vmem:[#allocation4 + $0x160] sm:$0xff] %vm13067_vm2, %v4798_v56  ;;  %vm13074_vm2 = vcmask 507296   ;;  %8255 = vmatprep.subr.mxu1 %v11914_v9 }
 0x684   :  { %v7908_v41 = vpop.f32.mrf.mxu1  ;;  %v5164_v40 = vpop.permute.xlu1 %5163  ;;  %v5765_v11 = vld [vmem:[#allocation4 + $0x158] sm:$0xff] }
 0x685   :  { %v11897_v1 = vadd.f32 %v7908_v41, %v7907_v14  ;;  %5177 = vst.msk [vmem:[#allocation4 + $0x168] sm:$0xff] %vm13066_vm0, %v5164_v40  ;;  %5911 = vmatprep.mubr.f32.mxu1 %v5765_v11  ;;  %vm13072_vm0 = vcmask 425296  }
 0x686   :  { %5912 = vmatmul.mubr.f32.gmra.mxu1 %v5764_v19  ;;  %v4834_v47 = vpop.permute.xlu0 %4833 }
 0x687   :  { %v5928_v12 = vmax.f32 %v11720_v29, %v11897_v1  ;;  %4847 = vst.msk [vmem:[#allocation4 + $0x160] sm:$0xff] %vm13069_vm14, %v4834_v47  ;;  %vm13077_vm14 = vcmask 900896   ;;  %v7590_v29 = vld [vmem:[%s12346_s5 + $0xa8] sm:$0xff] }
 0x688   :  { %v5200_v25 = vpop.permute.xlu1 %5199 }
 0x689   :  { %5213 = vst.msk [vmem:[#allocation4 + $0x168] sm:$0xff] %vm13068_vm12, %v5200_v25  ;;  %vm13075_vm12 = vcmask 736896  }
 0x68a   :  { %v4870_v33 = vpop.permute.xlu0 %4869 }
 0x68b   :  { %4883 = vst.msk [vmem:[#allocation4 + $0x160] sm:$0xff] %vm13071_vm15, %v4870_v33  ;;  %vm13079_vm15 = vcmask 1048512  }
 0x68c   :  { %v5236_v17 = vpop.permute.xlu1 %5235 }
 0x68d   :  { %5249 = vst.msk [vmem:[#allocation4 + $0x168] sm:$0xff] %vm13070_vm10, %v5236_v17  ;;  %vm13078_vm10 = vcmask 982896  }
 0x68e   :  { %v4906_v51 = vpop.permute.xlu0 %4905 }
 0x68f   :  { %4919 = vst.msk [vmem:[#allocation4 + $0x160] sm:$0xff] %vm13073_vm11, %v4906_v51  ;;  %vm13076_vm11 = vcmask 818896  }
 0x690   :  { %v5272_v48 = vpop.permute.xlu1 %5271 }
 0x691   :  { %5285 = vst.msk [vmem:[#allocation4 + $0x168] sm:$0xff] %vm13072_vm0, %v5272_v48  ;;  %vm13081_vm0 = vcmask 917296  }
 0x692   :  { %v4942_v27 = vpop.permute.xlu0 %4941 }
 0x693   :  { %4955 = vst.msk [vmem:[#allocation4 + $0x160] sm:$0xff] %vm13075_vm12, %v4942_v27  ;;  %vm13086_vm12 = vcmask 324848   ;;  %v7897_v27 = vadd.f32 %v11711_v58, %v11704_v23  ;;  %v5958_v23 = vld [vmem:[%s12346_s5 + $0x18] sm:$0xff] }
 0x694   :  { %v5308_v4 = vpop.permute.xlu1 %5307 }
 0x695   :  { %5321 = vst.msk [vmem:[#allocation4 + $0x168] sm:$0xff] %vm13074_vm2, %v5308_v4  ;;  %vm13083_vm2 = vcmask 999296   ;;  %v7906_v4 = vadd.f32 %v11893_v55, %v11889_v5  ;;  %v5959_v55 = vld [vmem:[#allocation5 + $0x1] sm:$0x1] }
 0x696   :  { %v4978_v18 = vpop.permute.xlu0 %4977 }
 0x697   :  { %4991 = vst.msk [vmem:[#allocation4 + $0x160] sm:$0xff] %vm13076_vm11, %v4978_v18  ;;  %vm13087_vm11 = vcmask 177248  }
 0x698   :  { %v5344_v37 = vpop.permute.xlu1 %5343 }
 0x699   :  { %5357 = vst.msk [vmem:[#allocation4 + $0x168] sm:$0xff] %vm2695_vm5, %v5344_v37  ;;  %vm13080_vm5 = vcmask 13312  }
 0x69a   :  { %v5014_v52 = vpop.permute.xlu0 %5013 }
 0x69b   :  { %5027 = vst.msk [vmem:[#allocation4 + $0x160] sm:$0xff] %vm13077_vm14, %v5014_v52  ;;  %vm13088_vm14 = vcmask 406848  }
 0x69c   :  { %v5380_v6 = vpop.permute.xlu1 %5379 }
 0x69d   :  { %5393 = vst.msk [vmem:[#allocation4 + $0x168] sm:$0xff] %vm2733_vm9, %v5380_v6  ;;  %vm13082_vm9 = vcmask 160848   ;;  %v5927_v6 = vmax.f32 %v7897_v27, %v7906_v4  ;;  %v6371_v27 = vld [vmem:[#allocation5 + $0x7] sm:$0x1] }
 0x69e   :  { %v5050_v62 = vpop.permute.xlu0 %5049 }
 0x69f   :  { %5063 = vst.msk [vmem:[#allocation4 + $0x160] sm:$0xff] %vm13078_vm10, %v5050_v62  ;;  %vm13089_vm10 = vcmask 259248  }
 0x6a0   :  { %v5416_v50 = vpop.permute.xlu1 %5415  ;;  %5103 = vst.msk [vmem:[#allocation4 + $0x160] sm:$0xff] %vm13079_vm15, %v5086_v42  ;;  %vm13090_vm15 = vcmask 488848  }
 0x6a1   :  { %5429 = vst.msk [vmem:[#allocation4 + $0x168] sm:$0xff] %vm2771_vm8, %v5416_v50  ;;  %vm13084_vm8 = vcmask 242848   ;;  %v11983_v50 = vld [vmem:[%s12345_s4] ss:$0 sm:$0xff] }
 0x6a2   :  { %v5088_v36 = vpop.permute.xlu0 %5087 }
 0x6a3   :  { %5106 = vst.msk [vmem:[#allocation4 + $0x178] sm:$0x3f] %vm13080_vm5, %v5088_v36  ;;  %vm13091_vm5 = vcmask 652848  }
 0x6a4   :  { %v5452_v60 = vpop.permute.xlu1 %5451 }
 0x6a5   :  { %5465 = vst.msk [vmem:[#allocation4 + $0x168] sm:$0xff] %vm2809_vm3, %v5452_v60  ;;  %vm13085_vm3 = vcmask 95248  }
 0x6a6   :  { %v4692_v21 = vpop.permute.xlu0 %4691 }
 0x6a7   :  { %4704 = vst.msk [vmem:[#allocation4 + $0x170] sm:$0x3f] %vm13082_vm9, %v4692_v21  ;;  %v5766_v16 = vld [vmem:[#allocation4 + $0x160] sm:$0xff]  ;;  %vm13097_vm9 = vcmask 980848   ;;  %v5957_v21 = vld [vmem:[%s12346_s5 + $0x10] sm:$0xff] }
 0x6a8   :  { %v5488_v49 = vpop.permute.xlu1 %5487 }
 0x6a9   :  { %5501 = vst.msk [vmem:[#allocation4 + $0x168] sm:$0xff] %vm13081_vm0, %v5488_v49  ;;  %vm13092_vm0 = vcmask 734848  }
 0x6aa   :  { %v4728_v3 = vpop.permute.xlu0 %4727 }
 0x6ab   :  { %4740 = vst.msk [vmem:[#allocation4 + $0x170] sm:$0x3f] %vm13084_vm8, %v4728_v3  ;;  %vm13100_vm8 = vcmask 915248  }
 0x6ac   :  { %v5524_v46 = vpop.permute.xlu1 %5523 }
 0x6ad   :  { %5537 = vst.msk [vmem:[#allocation4 + $0x168] sm:$0xff] %vm13083_vm2, %v5524_v46  ;;  %vm13099_vm2 = vcmask 833248  }
 0x6ae   :  { %v7910_v15 = vpop.f32.mrf.mxu1  ;;  %v4764_v44 = vpop.permute.xlu0 %4763 }
 0x6af   :  { %4776 = vst.msk [vmem:[#allocation4 + $0x170] sm:$0x3f] %vm13086_vm12, %v4764_v44  ;;  %vm8519_vm12 = vmmov 0   ;;  %v7577_v44 = vld [vmem:[%s12346_s5 + $0x58] sm:$0xff] }
 0x6b0   :  { %v7911_v2 = vpop.f32.mrf.mxu1  ;;  %v5130_v32 = vpop.permute.xlu1 %5129 }
 0x6b1   :  { %v11930_v63 = vadd.f32 %v7911_v2, %v7910_v15  ;;  %5142 = vst.msk [vmem:[#allocation4 + $0x178] sm:$0x3f] %vm13085_vm3, %v5130_v32  ;;  %vm13101_vm3 = vcmask 997248   ;;  %v5956_v15 = vld [vmem:[%s12346_s5 + $0x8] sm:$0xff]  ;;  %v5955_v2 = vld [vmem:[%s12346_s5] sm:$0xff] }
 0x6b2   :  { %v4800_v24 = vpop.permute.xlu0 %4799  ;;  %v5953_v32 = vld [vmem:[#allocation5] sm:$0x1] }
 0x6b3   :  { %v5929_v59 = vmax.f32 %v11793_v8, %v11930_v63  ;;  %4812 = vst.msk [vmem:[#allocation4 + $0x170] sm:$0x3f] %vm13088_vm14, %v4800_v24  ;;  %vm13102_vm14 = vcmask 261120   ;;  %v7620_v8 = vld [vmem:[%s12346_s5 + $0x168] sm:$0xff] }
 0x6b4   :  { %v5166_v34 = vpop.permute.xlu1 %5165  ;;  %v5767_v57 = vld [vmem:[#allocation4 + $0x168] sm:$0xff] }
 0x6b5   :  { %5178 = vst.msk [vmem:[#allocation4 + $0x178] sm:$0x3f] %vm13087_vm11, %v5166_v34  ;;  %5916 = vmatprep.mubr.f32.mxu1 %v5767_v57  ;;  %vm5969_vm11 = vcmask 1041409   ;;  %v7576_v57 = vld [vmem:[%s12346_s5 + $0x50] sm:$0xff] }
 0x6b6   :  { %5917 = vmatmul.mubr.f32.gmra.mxu1 %v5766_v16  ;;  %v4836_v35 = vpop.permute.xlu0 %4835 }
 0x6b7   :  { %4848 = vst.msk [vmem:[#allocation4 + $0x170] sm:$0x3f] %vm13090_vm15, %v4836_v35  ;;  %v6119_v35 = vld [vmem:[#allocation5 + $0x2] sm:$0x1] }
 0x6b8   :  { %v5202_v30 = vpop.permute.xlu1 %5201 }
 0x6b9   :  { %5214 = vst.msk [vmem:[#allocation4 + $0x178] sm:$0x3f] %vm13089_vm10, %v5202_v30  ;;  %vm13103_vm10 = vmmov %vm13102_vm14  ;;  %v7574_v30 = vld [vmem:[%s12346_s5 + $0x40] sm:$0xff] }
 0x6ba   :  { %v4872_v22 = vpop.permute.xlu0 %4871  ;;  %vm13104_vm15 = vmmov %vm13103_vm10 }
 0x6bb   :  { %4884 = vst.msk [vmem:[#allocation4 + $0x170] sm:$0x3f] %vm2196_vm4, %v4872_v22  ;;  %vm13096_vm4 = vcmask 751248  }
 0x6bc   :  { %v5238_v43 = vpop.permute.xlu1 %5237 }
 0x6bd   :  { %5250 = vst.msk [vmem:[#allocation4 + $0x178] sm:$0x3f] %vm2584_vm6, %v5238_v43  ;;  %vm13093_vm6 = vcmask 816848   ;;  %v7582_v43 = vld [vmem:[%s12346_s5 + $0x78] sm:$0xff] }
 0x6be   :  { %v4908_v31 = vpop.permute.xlu0 %4907 }
 0x6bf   :  { %4920 = vst.msk [vmem:[#allocation4 + $0x170] sm:$0x3f] %vm13091_vm5, %v4908_v31  ;;  %vm13105_vm5 = vmmov %vm13103_vm10 }
 0x6c0   :  { %v5274_v13 = vpop.permute.xlu1 %5273 }
 0x6c1   :  { %5286 = vst.msk [vmem:[#allocation4 + $0x178] sm:$0x3f] %vm2622_vm7, %v5274_v13  ;;  %vm13094_vm7 = vcmask 669248   ;;  %v7581_v13 = vld [vmem:[%s12346_s5 + $0x70] sm:$0xff] }
 0x6c2   :  { %v4944_v53 = vpop.permute.xlu0 %4943 }
 0x6c3   :  { %4956 = vst.msk [vmem:[#allocation4 + $0x170] sm:$0x3f] %vm13092_vm0, %v4944_v53  ;;  %vm13106_vm0 = vmmov %vm13105_vm5 }
 0x6c4   :  { %v5310_v38 = vpop.permute.xlu1 %5309 }
 0x6c5   :  { %5322 = vst.msk [vmem:[#allocation4 + $0x178] sm:$0x3f] %vm2660_vm1, %v5310_v38  ;;  %vm13095_vm1 = vcmask 898848   ;;  %v7580_v38 = vld [vmem:[%s12346_s5 + $0x68] sm:$0xff] }
 0x6c6   :  { %v4980_v42 = vpop.permute.xlu0 %4979 }
 0x6c7   :  { %4992 = vst.msk [vmem:[#allocation4 + $0x170] sm:$0x3f] %vm13093_vm6, %v4980_v42  ;;  %v7587_v42 = vld [vmem:[%s12346_s5 + $0x98] sm:$0xff]  ;;  %vm13107_vm6 = vmmov %vm13106_vm0 }
 0x6c8   :  { %v5346_v20 = vpop.permute.xlu1 %5345 }
 0x6c9   :  { %5358 = vst.msk [vmem:[#allocation4 + $0x178] sm:$0x3f] %vm2698_vm13, %v5346_v20  ;;  %vm13098_vm13 = vcmask 1046464   ;;  %v6203_v20 = vld [vmem:[#allocation5 + $0x3] sm:$0x1] }
 0x6ca   :  { %v5016_v39 = vpop.permute.xlu0 %5015 }
 0x6cb   :  { %5028 = vst.msk [vmem:[#allocation4 + $0x170] sm:$0x3f] %vm13095_vm1, %v5016_v39  ;;  %vm13109_vm1 = vmmov %vm13106_vm0 }
 0x6cc   :  { %v5382_v26 = vpop.permute.xlu1 %5381 }
 0x6cd   :  { %5394 = vst.msk [vmem:[#allocation4 + $0x178] sm:$0x3f] %vm13094_vm7, %v5382_v26  ;;  %vm13108_vm7 = vmmov %vm13106_vm0 }
 0x6ce   :  { %v5052_v61 = vpop.permute.xlu0 %5051 }
 0x6cf   :  { %5064 = vst.msk [vmem:[#allocation4 + $0x170] sm:$0x3f] %vm13097_vm9, %v5052_v61  ;;  %vm13111_vm9 = vmmov %vm13106_vm0 }
 0x6d0   :  { %v5418_v28 = vpop.permute.xlu1 %5417  ;;  %5105 = vst.msk [vmem:[#allocation4 + $0x170] sm:$0x3f] %vm13098_vm13, %v5088_v36  ;;  %vm13112_vm13 = vmmov %vm13106_vm0 }
 0x6d1   :  { %5430 = vst.msk [vmem:[#allocation4 + $0x178] sm:$0x3f] %vm13096_vm4, %v5418_v28  ;;  %v7586_v28 = vld [vmem:[%s12346_s5 + $0x90] sm:$0xff]  ;;  %vm13110_vm4 = vmmov %vm13106_vm0 }
 0x6d4   :  { %v5454_v14 = vpop.permute.xlu1 %5453 }
 0x6d5   :  { %5466 = vst.msk [vmem:[#allocation4 + $0x178] sm:$0x3f] %vm13099_vm2, %v5454_v14  ;;  %v7585_v14 = vld [vmem:[%s12346_s5 + $0x88] sm:$0xff]  ;;  %vm13113_vm2 = vmmov %vm13106_vm0 }
 0x6d7   :  { %v5768_v11 = vld [vmem:[#allocation4 + $0x170] sm:$0xff] }
 0x6d8   :  { %v5490_v7 = vpop.permute.xlu1 %5489 }
 0x6d9   :  { %5502 = vst.msk [vmem:[#allocation4 + $0x178] sm:$0x3f] %vm13100_vm8, %v5490_v7  ;;  %vm13114_vm8 = vmmov %vm13106_vm0 }
 0x6dc   :  { %v5526_v41 = vpop.permute.xlu1 %5525 }
 0x6dd   :  { %5538 = vst.msk [vmem:[#allocation4 + $0x178] sm:$0x3f] %vm13101_vm3, %v5526_v41  ;;  %vm13115_vm3 = vmmov %vm13106_vm0 }
 0x6e4   :  { %v5769_v40 = vld [vmem:[#allocation4 + $0x178] sm:$0xff] }
 0x6e5   :  { %5921 = vmatprep.mubr.f32.mxu1 %v5769_v40 }
 0x6e6   :  { %5922 = vmatmul.mubr.f32.gmra.mxu1 %v5768_v11  ;;  %v7913_v19 = vpop.f32.mrf.mxu1  ;;  %v7584_v11 = vld [vmem:[%s12346_s5 + $0x80] sm:$0xff] }
 0x6e7   :  { %8252 = vmatprep.mubr.msk.f32.mxu1 %vm8519_vm12, %v11914_v9 }
 0x6e8   :  { %v7914_v56 = vpop.f32.mrf.mxu1 }
 0x6e9   :  { %v7915_v37 = vadd.f32 %v7914_v56, %v7913_v19  ;;  %v6287_v56 = vld [vmem:[#allocation5 + $0x6] sm:$0x1] }
 0x712   :  { %v11970_v25 = vpop.f32.mrf.mxu1 }
 0x714   :  { %v11972_v47 = vpop.f32.mrf.mxu1 }
 0x715   :  { %v7918_v7 = vadd.f32 %v11972_v47, %v11970_v25 }
 0x732   :  { %v7919_v17 = vpop.f32.mrf.mxu1 }
 0x734   :  { %v7920_v33 = vpop.f32.mrf.mxu1 }
 0x735   :  { %v11974_v48 = vadd.f32 %v7920_v33, %v7919_v17  ;;  %v7592_v17 = vld [vmem:[%s12346_s5 + $0xb8] sm:$0xff]  ;;  %v7591_v33 = vld [vmem:[%s12346_s5 + $0xb0] sm:$0xff] }
 0x746   :  { %v7922_v51 = vpop.f32.mrf.mxu1 }
 0x748   :  { %v7923_v45 = vpop.f32.mrf.mxu1 }
 0x749   :  { %v7924_v18 = vadd.f32 %v7923_v45, %v7922_v51  ;;  %v7589_v45 = vld [vmem:[%s12346_s5 + $0xa0] sm:$0xff] }
 0x74b   :  { %v5930_v52 = vmax.f32 %v7915_v37, %v7924_v18  ;;  %v7597_v37 = vld [vmem:[%s12346_s5 + $0xd8] sm:$0xff] }
 0x74d   :  { %v5933_v62 = vmax.f32 %v5927_v6, %v5930_v52  ;;  %v7596_v6 = vld [vmem:[%s12346_s5 + $0xd0] sm:$0xff]  ;;  %v7595_v52 = vld [vmem:[%s12346_s5 + $0xc8] sm:$0xff] }
 0x74f   :  { %v5943_v60 = vadd.f32 %v11983_v50, %v5933_v62  ;;  %v7594_v62 = vld [vmem:[%s12346_s5 + $0xc0] sm:$0xff] }
 0x751   :  { %v5946_v36 = vmax.f32 %v5943_v60, 0.0 }
 0x753   :  { %5950 = vst [vmem:[#allocation5 + $0x18] sm:$0xff] %v5946_v36 }
 0x75a   :  { %v5960_v49 = vld [vmem:[#allocation5 + $0x19] sm:$0x1]  ;;  %v5954_v46 = vld [vmem:[#allocation5 + $0x18] sm:$0x1]  ;;  %v6120_v16 = vld [vmem:[#allocation5 + $0x1a] sm:$0x1] }
 0x75b   :  { %v5968_v5 = vrot.slane %v5960_v49, 7  ;;  %v6045_v3 = vrot.slane %v5954_v46, 7  ;;  %v6128_v24 = vrot.slane %v6120_v16, 7  ;;  %v6204_v31 = vld [vmem:[#allocation5 + $0x1b] sm:$0x1] }
 0x75c   :  { %v6212_v53 = vrot.slane %v6204_v31, 7  ;;  %v6288_v61 = vld [vmem:[#allocation5 + $0x1e] sm:$0x1]  ;;  %v6372_v51 = vld [vmem:[#allocation5 + $0x1f] sm:$0x1] }
 0x75d   :  { %v5970_v58 = vsel %vm5969_vm11, %v5968_v5, %v5959_v55  ;;  %v6046_v34 = vsel %vm5969_vm11, %v6045_v3, %v5953_v32  ;;  %v6129_v22 = vsel %vm5969_vm11, %v6128_v24, %v6119_v35  ;;  %v6296_v40 = vrot.slane %v6288_v61, 7  ;;  %v6455_v49 = vld [vmem:[#allocation5 + $0x8] sm:$0x1]  ;;  %v7602_v5 = vld [vmem:[%s12346_s5 + $0xf8] sm:$0xff]  ;;  %v6539_v3 = vld [vmem:[#allocation5 + $0x9] sm:$0x1] }
 0x75e   :  { %8253 = vmatmul.mubr.msk.f32.vlgmr.msra.gmra.mxu1 %vm13102_vm14, %v5970_v58  ;;  %v6213_v26 = vsel %vm5969_vm11, %v6212_v53, %v6203_v20  ;;  %v6623_v24 = vld [vmem:[#allocation5 + $0xc] sm:$0x1]  ;;  %v6707_v53 = vld [vmem:[#allocation5 + $0xd] sm:$0x1]  ;;  %vm13116_vm14 = vmmov %vm13106_vm0 }
 0x75f   :  { %8256 = vmatpush3.msra.mxu1 %v5958_v23  ;;  %8263 = vmatprep.mubr.msk.f32.mxu1 %vm8519_vm12, %v11914_v9  ;;  %v6297_v47 = vsel %vm5969_vm11, %v6296_v40, %v6287_v56  ;;  %v7601_v23 = vld [vmem:[%s12346_s5 + $0xf0] sm:$0xff]  ;;  %v7615_v61 = vld [vmem:[%s12346_s5 + $0x148] sm:$0xff] }
 0x760   :  { %8257 = vmatprep.subr.mxu1 %v11914_v9  ;;  %v6791_v40 = vld [vmem:[#allocation5 + $0xe] sm:$0x1] }
 0x761   :  { %8258 = vmatpush3.msra.mxu1 %v5957_v21  ;;  %v7600_v21 = vld [vmem:[%s12346_s5 + $0xe8] sm:$0xff] }
 0x762   :  { %8259 = vmatprep.subr.mxu1 %v11914_v9 }
 0x763   :  { %8260 = vmatpush3.msra.mxu1 %v5956_v15  ;;  %v7599_v15 = vld [vmem:[%s12346_s5 + $0xe0] sm:$0xff] }
 0x764   :  { %8261 = vmatprep.subr.mxu1 %v11914_v9 }
 0x765   :  { %8262 = vmatpush3.msra.mxu1 %v5955_v2  ;;  %v7607_v2 = vld [vmem:[%s12346_s5 + $0x118] sm:$0xff] }
 0x766   :  { %8264 = vmatmul.mubr.msk.f32.vlgmr.msra.gmra.mxu1 %vm13103_vm10, %v6046_v34  ;;  %8266 = vmatprep.subr.mxu1 %v11914_v9  ;;  %vm13117_vm10 = vmmov %vm13106_vm0 }
 0x767   :  { %8267 = vmatpush3.msra.mxu1 %v7577_v44  ;;  %8274 = vmatprep.mubr.msk.f32.mxu1 %vm8519_vm12, %v11914_v9  ;;  %v7606_v44 = vld [vmem:[%s12346_s5 + $0x110] sm:$0xff] }
 0x768   :  { %8268 = vmatprep.subr.mxu1 %v11914_v9 }
 0x769   :  { %8269 = vmatpush3.msra.mxu1 %v7576_v57  ;;  %v7605_v57 = vld [vmem:[%s12346_s5 + $0x108] sm:$0xff] }
 0x76a   :  { %8270 = vmatprep.subr.mxu1 %v11914_v9 }
 0x76b   :  { %8271 = vmatpush3.msra.mxu1 %v7575_v0  ;;  %v7604_v0 = vld [vmem:[%s12346_s5 + $0x100] sm:$0xff] }
 0x76c   :  { %8272 = vmatprep.subr.mxu1 %v11914_v9 }
 0x76d   :  { %8273 = vmatpush3.msra.mxu1 %v7574_v30  ;;  %v7612_v30 = vld [vmem:[%s12346_s5 + $0x138] sm:$0xff] }
 0x76e   :  { %8275 = vmatmul.mubr.msk.f32.vlgmr.msra.gmra.mxu1 %vm13104_vm15, %v6129_v22  ;;  %8277 = vmatprep.subr.mxu1 %v11914_v9 }
 0x76f   :  { %8278 = vmatpush3.msra.mxu1 %v7582_v43  ;;  %8285 = vmatprep.mubr.msk.f32.mxu1 %vm8519_vm12, %v11914_v9  ;;  %v7611_v43 = vld [vmem:[%s12346_s5 + $0x130] sm:$0xff] }
 0x770   :  { %8279 = vmatprep.subr.mxu1 %v11914_v9 }
 0x771   :  { %8280 = vmatpush3.msra.mxu1 %v7581_v13  ;;  %v7610_v13 = vld [vmem:[%s12346_s5 + $0x128] sm:$0xff] }
 0x772   :  { %8281 = vmatprep.subr.mxu1 %v11914_v9 }
 0x773   :  { %8282 = vmatpush3.msra.mxu1 %v7580_v38  ;;  %v7609_v38 = vld [vmem:[%s12346_s5 + $0x120] sm:$0xff] }
 0x774   :  { %8283 = vmatprep.subr.mxu1 %v11914_v9 }
 0x775   :  { %8284 = vmatpush3.msra.mxu1 %v7579_v54  ;;  %v7617_v54 = vld [vmem:[%s12346_s5 + $0x158] sm:$0xff] }
 0x776   :  { %8286 = vmatmul.mubr.msk.f32.vlgmr.msra.gmra.mxu1 %vm13105_vm5, %v6213_v26  ;;  %8288 = vmatprep.subr.mxu1 %v11914_v9  ;;  %v7925_v39 = vpop.f32.mrf.mxu1  ;;  %v7616_v26 = vld [vmem:[%s12346_s5 + $0x150] sm:$0xff] }
 0x777   :  { %8289 = vmatpush3.msra.mxu1 %v7587_v42  ;;  %8296 = vmatprep.mubr.msk.f32.mxu1 %vm8519_vm12, %v11914_v9 }
 0x778   :  { %8290 = vmatprep.subr.mxu1 %v11914_v9  ;;  %v7926_v10 = vpop.f32.mrf.mxu1 }
 0x779   :  { %v7927_v41 = vadd.f32 %v7926_v10, %v7925_v39  ;;  %8291 = vmatpush3.msra.mxu1 %v7586_v28 }
 0x77a   :  { %8292 = vmatprep.subr.mxu1 %v11914_v9 }
 0x77b   :  { %v5931_v19 = vmax.f32 %v7918_v7, %v7927_v41  ;;  %8293 = vmatpush3.msra.mxu1 %v7585_v14  ;;  %v7614_v7 = vld [vmem:[%s12346_s5 + $0x140] sm:$0xff] }
 0x77c   :  { %8294 = vmatprep.subr.mxu1 %v11914_v9 }
 0x77d   :  { %v5934_v25 = vmax.f32 %v5928_v12, %v5931_v19  ;;  %8295 = vmatpush3.msra.mxu1 %v7584_v11  ;;  %v6380_v12 = vrot.slane %v6372_v51, 7  ;;  %v7622_v11 = vld [vmem:[%s12346_s5 + $0x178] sm:$0xff] }
 0x77e   :  { %8297 = vmatmul.mubr.msk.f32.vlgmr.msra.gmra.mxu1 %vm13106_vm0, %v6297_v47  ;;  %8299 = vmatprep.subr.mxu1 %v11914_v9  ;;  %v7619_v47 = vld [vmem:[%s12346_s5 + $0x160] sm:$0xff] }
 0x77f   :  { %v5944_v4 = vadd.f32 %v11983_v50, %v5934_v25  ;;  %8300 = vmatpush3.msra.mxu1 %v7592_v17  ;;  %8307 = vmatprep.mubr.msk.f32.mxu1 %vm8519_vm12, %v11914_v9  ;;  %v6381_v18 = vsel %vm5969_vm11, %v6380_v12, %v6371_v27  ;;  %v6959_v27 = vld [vmem:[#allocation5 + $0x12] sm:$0x1] }
 0x780   :  { %8301 = vmatprep.subr.mxu1 %v11914_v9 }
 0x781   :  { %v5947_v1 = vmax.f32 %v5944_v4, 0.0  ;;  %8302 = vmatpush3.msra.mxu1 %v7591_v33  ;;  %v7627_v33 = vld [vmem:[%s12346_s5 + $0x198] sm:$0xff]  ;;  %v7626_v4 = vld [vmem:[%s12346_s5 + $0x190] sm:$0xff] }
 0x782   :  { %8303 = vmatprep.subr.mxu1 %v11914_v9 }
 0x783   :  { %5951 = vst [vmem:[#allocation5 + $0x20] sm:$0xff] %v5947_v1  ;;  %8304 = vmatpush3.msra.mxu1 %v7590_v29  ;;  %v7625_v29 = vld [vmem:[%s12346_s5 + $0x188] sm:$0xff]  ;;  %v7624_v1 = vld [vmem:[%s12346_s5 + $0x180] sm:$0xff] }
 0x784   :  { %8305 = vmatprep.subr.mxu1 %v11914_v9 }
 0x785   :  { %8306 = vmatpush3.msra.mxu1 %v7589_v45 }
 0x786   :  { %8308 = vmatmul.mubr.msk.f32.vlgmr.msra.gmra.mxu1 %vm13107_vm6, %v6381_v18  ;;  %8310 = vmatprep.subr.mxu1 %v11914_v9 }
 0x787   :  { %8311 = vmatpush3.msra.mxu1 %v7597_v37  ;;  %8318 = vmatprep.mubr.msk.f32.mxu1 %vm8519_vm12, %v11914_v9  ;;  %v7632_v37 = vld [vmem:[%s12346_s5 + $0x1b8] sm:$0xff] }
 0x788   :  { %8312 = vmatprep.subr.mxu1 %v11914_v9 }
 0x789   :  { %8313 = vmatpush3.msra.mxu1 %v7596_v6  ;;  %v7631_v6 = vld [vmem:[%s12346_s5 + $0x1b0] sm:$0xff] }
 0x78a   :  { %8314 = vmatprep.subr.mxu1 %v11914_v9  ;;  %v6456_v60 = vld [vmem:[#allocation5 + $0x20] sm:$0x1]  ;;  %v6540_v58 = vld [vmem:[#allocation5 + $0x21] sm:$0x1]  ;;  %v6624_v34 = vld [vmem:[#allocation5 + $0x24] sm:$0x1] }
 0x78b   :  { %8315 = vmatpush3.msra.mxu1 %v7595_v52  ;;  %v6464_v36 = vrot.slane %v6456_v60, 7  ;;  %v6548_v46 = vrot.slane %v6540_v58, 7  ;;  %v6632_v16 = vrot.slane %v6624_v34, 7  ;;  %v6708_v22 = vld [vmem:[#allocation5 + $0x25] sm:$0x1] }
 0x78c   :  { %8316 = vmatprep.subr.mxu1 %v11914_v9  ;;  %v6716_v31 = vrot.slane %v6708_v22, 7  ;;  %v6792_v39 = vld [vmem:[#allocation5 + $0x26] sm:$0x1]  ;;  %v6876_v17 = vld [vmem:[#allocation5 + $0x27] sm:$0x1]  ;;  %v7309_v22 = vld [vmem:[%s12348_s7 + $0x28] sm:$0xff] }
 0x78d   :  { %8317 = vmatpush3.msra.mxu1 %v7594_v62  ;;  %v6465_v55 = vsel %vm5969_vm11, %v6464_v36, %v6455_v49  ;;  %v6549_v32 = vsel %vm5969_vm11, %v6548_v46, %v6539_v3  ;;  %v6633_v35 = vsel %vm5969_vm11, %v6632_v16, %v6623_v24  ;;  %v6800_v14 = vrot.slane %v6792_v39, 7  ;;  %v7630_v62 = vld [vmem:[%s12346_s5 + $0x1a8] sm:$0xff]  ;;  %v7629_v36 = vld [vmem:[%s12346_s5 + $0x1a0] sm:$0xff]  ;;  %v7043_v49 = vld [vmem:[#allocation5 + $0x13] sm:$0x1] }
 0x78e   :  { %8321 = vmatprep.subr.mxu1 %v11914_v9  ;;  %8319 = vmatmul.mubr.msk.f32.vlgmr.msra.gmra.mxu1 %vm13108_vm7, %v6465_v55  ;;  %v6717_v20 = vsel %vm5969_vm11, %v6716_v31, %v6707_v53  ;;  %v7127_v3 = vld [vmem:[#allocation5 + $0x14] sm:$0x1]  ;;  %v7211_v24 = vld [vmem:[#allocation5 + $0x15] sm:$0x1]  ;;  %v7307_v31 = vld [vmem:[%s12348_s7 + $0x18] sm:$0xff] }
 0x78f   :  { %8322 = vmatpush3.msra.mxu1 %v7602_v5  ;;  %8329 = vmatprep.mubr.msk.f32.mxu1 %vm8519_vm12, %v11914_v9  ;;  %v6801_v56 = vsel %vm5969_vm11, %v6800_v14, %v6791_v40  ;;  %v7637_v5 = vld [vmem:[%s12346_s5 + $0x1d8] sm:$0xff]  ;;  %v7305_v53 = vld [vmem:[%s12348_s7 + $0x8] sm:$0xff] }
 0x790   :  { %8323 = vmatprep.subr.mxu1 %v11914_v9 }
 0x791   :  { %8324 = vmatpush3.msra.mxu1 %v7601_v23  ;;  %v7636_v23 = vld [vmem:[%s12346_s5 + $0x1d0] sm:$0xff] }
 0x792   :  { %8325 = vmatprep.subr.mxu1 %v11914_v9 }
 0x793   :  { %8326 = vmatpush3.msra.mxu1 %v7600_v21  ;;  %v7635_v21 = vld [vmem:[%s12346_s5 + $0x1c8] sm:$0xff] }
 0x794   :  { %8327 = vmatprep.subr.mxu1 %v11914_v9 }
 0x795   :  { %8328 = vmatpush3.msra.mxu1 %v7599_v15  ;;  %v7634_v15 = vld [vmem:[%s12346_s5 + $0x1c0] sm:$0xff] }
 0x796   :  { %8330 = vmatmul.mubr.msk.f32.vlgmr.msra.gmra.mxu1 %vm13109_vm1, %v6549_v32  ;;  %8332 = vmatprep.subr.mxu1 %v11914_v9 }
 0x797   :  { %8333 = vmatpush3.msra.mxu1 %v7607_v2  ;;  %8340 = vmatprep.mubr.msk.f32.mxu1 %vm8519_vm12, %v11914_v9  ;;  %v7642_v2 = vld [vmem:[%s12346_s5 + $0x1f8] sm:$0xff] }
 0x798   :  { %8334 = vmatprep.subr.mxu1 %v11914_v9 }
 0x799   :  { %8335 = vmatpush3.msra.mxu1 %v7606_v44  ;;  %v7641_v44 = vld [vmem:[%s12346_s5 + $0x1f0] sm:$0xff] }
 0x79a   :  { %8336 = vmatprep.subr.mxu1 %v11914_v9 }
 0x79b   :  { %8337 = vmatpush3.msra.mxu1 %v7605_v57  ;;  %v7640_v57 = vld [vmem:[%s12346_s5 + $0x1e8] sm:$0xff] }
 0x79c   :  { %8338 = vmatprep.subr.mxu1 %v11914_v9 }
 0x79d   :  { %8339 = vmatpush3.msra.mxu1 %v7604_v0  ;;  %v7639_v0 = vld [vmem:[%s12346_s5 + $0x1e0] sm:$0xff] }
 0x79e   :  { %8341 = vmatmul.mubr.msk.f32.vlgmr.msra.gmra.mxu1 %vm13110_vm4, %v6633_v35  ;;  %8343 = vmatprep.subr.mxu1 %v11914_v9  ;;  %v7311_v35 = vld [vmem:[%s12348_s7 + $0x38] sm:$0xff] }
 0x79f   :  { %8344 = vmatpush3.msra.mxu1 %v7612_v30  ;;  %8351 = vmatprep.mubr.msk.f32.mxu1 %vm8519_vm12, %v11914_v9 }
 0x7a0   :  { %8345 = vmatprep.subr.mxu1 %v11914_v9 }
 0x7a1   :  { %8346 = vmatpush3.msra.mxu1 %v7611_v43  ;;  %v7310_v43 = vld [vmem:[%s12348_s7 + $0x30] sm:$0xff] }
 0x7a2   :  { %8347 = vmatprep.subr.mxu1 %v11914_v9 }
 0x7a3   :  { %8348 = vmatpush3.msra.mxu1 %v7610_v13  ;;  %v7308_v13 = vld [vmem:[%s12348_s7 + $0x20] sm:$0xff] }
 0x7a4   :  { %8349 = vmatprep.subr.mxu1 %v11914_v9 }
 0x7a5   :  { %8350 = vmatpush3.msra.mxu1 %v7609_v38  ;;  %v7306_v38 = vld [vmem:[%s12348_s7 + $0x10] sm:$0xff] }
 0x7a6   :  { %8352 = vmatmul.mubr.msk.f32.vlgmr.msra.gmra.mxu1 %vm13111_vm9, %v6717_v20  ;;  %8354 = vmatprep.subr.mxu1 %v11914_v9  ;;  %v7928_v42 = vpop.f32.mrf.mxu1  ;;  %v7304_v20 = vld [vmem:[%s12348_s7] sm:$0xff] }
 0x7a7   :  { %8355 = vmatpush3.msra.mxu1 %v7617_v54  ;;  %8362 = vmatprep.mubr.msk.f32.mxu1 %vm8519_vm12, %v11914_v9 }
 0x7a8   :  { %8356 = vmatprep.subr.mxu1 %v11914_v9  ;;  %v7929_v28 = vpop.f32.mrf.mxu1 }
 0x7a9   :  { %v7930_v10 = vadd.f32 %v7929_v28, %v7928_v42  ;;  %8357 = vmatpush3.msra.mxu1 %v7616_v26 }
 0x7aa   :  { %8358 = vmatprep.subr.mxu1 %v11914_v9 }
 0x7ab   :  { %v5932_v41 = vmax.f32 %v11974_v48, %v7930_v10  ;;  %8359 = vmatpush3.msra.mxu1 %v7615_v61  ;;  %v7621_v48 = vld [vmem:[%s12346_s5 + $0x170] sm:$0xff] }
 0x7ac   :  { %8360 = vmatprep.subr.mxu1 %v11914_v9 }
 0x7ad   :  { %v5935_v19 = vmax.f32 %v5929_v59, %v5932_v41  ;;  %8361 = vmatpush3.msra.mxu1 %v7614_v7  ;;  %v6884_v59 = vrot.slane %v6876_v17, 7 }
 0x7ae   :  { %8363 = vmatmul.mubr.msk.f32.vlgmr.msra.gmra.mxu1 %vm13112_vm13, %v6801_v56  ;;  %8365 = vmatprep.subr.mxu1 %v11914_v9 }
 0x7af   :  { %v5945_v25 = vadd.f32 %v11983_v50, %v5935_v19  ;;  %8366 = vmatpush3.msra.mxu1 %v7622_v11  ;;  %8373 = vmatprep.mubr.msk.f32.mxu1 %vm8519_vm12, %v11914_v9  ;;  %v6875_v50 = vld [vmem:[#allocation5 + $0xf] sm:$0x1] }
 0x7b0   :  { %8367 = vmatprep.subr.mxu1 %v11914_v9  ;;  %v6885_v51 = vsel %vm5969_vm11, %v6884_v59, %v6875_v50 }
 0x7b1   :  { %v5948_v63 = vmax.f32 %v5945_v25, 0.0  ;;  %8368 = vmatpush3.msra.mxu1 %v7621_v48 }
 0x7b2   :  { %8369 = vmatprep.subr.mxu1 %v11914_v9 }
 0x7b3   :  { %5952 = vst [vmem:[#allocation5 + $0x28] sm:$0xff] %v5948_v63  ;;  %8370 = vmatpush3.msra.mxu1 %v7620_v8 }
 0x7b4   :  { %8371 = vmatprep.subr.mxu1 %v11914_v9 }
 0x7b5   :  { %8372 = vmatpush3.msra.mxu1 %v7619_v47 }
 0x7b6   :  { %8374 = vmatmul.mubr.msk.f32.vlgmr.msra.gmra.mxu1 %vm13113_vm2, %v6885_v51  ;;  %8376 = vmatprep.subr.mxu1 %v11914_v9 }
 0x7b7   :  { %8377 = vmatpush3.msra.mxu1 %v7627_v33  ;;  %8384 = vmatprep.mubr.msk.f32.mxu1 %vm8519_vm12, %v11914_v9 }
 0x7b8   :  { %8378 = vmatprep.subr.mxu1 %v11914_v9 }
 0x7b9   :  { %8379 = vmatpush3.msra.mxu1 %v7626_v4 }
 0x7ba   :  { %8380 = vmatprep.subr.mxu1 %v11914_v9  ;;  %v6960_v12 = vld [vmem:[#allocation5 + $0x2a] sm:$0x1]  ;;  %v7044_v52 = vld [vmem:[#allocation5 + $0x2b] sm:$0x1]  ;;  %v7128_v58 = vld [vmem:[#allocation5 + $0x2c] sm:$0x1] }
 0x7bb   :  { %8381 = vmatpush3.msra.mxu1 %v7625_v29  ;;  %v6968_v45 = vrot.slane %v6960_v12, 7  ;;  %v7052_v60 = vrot.slane %v7044_v52, 7  ;;  %v7136_v46 = vrot.slane %v7128_v58, 7  ;;  %v7212_v34 = vld [vmem:[#allocation5 + $0x2d] sm:$0x1] }
 0x7bc   :  { %8382 = vmatprep.subr.mxu1 %v11914_v9  ;;  %v7220_v16 = vrot.slane %v7212_v34, 7  ;;  %v7645_v34 = vld [vmem:[%s12349_s8] ss:$0 sm:$0xff] }
 0x7bd   :  { %8383 = vmatpush3.msra.mxu1 %v7624_v1  ;;  %v6969_v18 = vsel %vm5969_vm11, %v6968_v45, %v6959_v27  ;;  %v7053_v55 = vsel %vm5969_vm11, %v7052_v60, %v7043_v49  ;;  %v7137_v32 = vsel %vm5969_vm11, %v7136_v46, %v7127_v3 }
 0x7be   :  { %8387 = vmatprep.subr.mxu1 %v11914_v9  ;;  %8385 = vmatmul.mubr.msk.f32.vlgmr.msra.gmra.mxu1 %vm13114_vm8, %v6969_v18  ;;  %v7221_v30 = vsel %vm5969_vm11, %v7220_v16, %v7211_v24  ;;  %vm7393_vm11 = vcmask 1041408  }
 0x7bf   :  { %8388 = vmatpush3.msra.mxu1 %v7632_v37  ;;  %8395 = vmatprep.mubr.msk.f32.mxu1 %vm8519_vm12, %v11914_v9 }
 0x7c0   :  { %8389 = vmatprep.subr.mxu1 %v11914_v9 }
 0x7c1   :  { %8390 = vmatpush3.msra.mxu1 %v7631_v6 }
 0x7c2   :  { %8391 = vmatprep.subr.mxu1 %v11914_v9 }
 0x7c3   :  { %8392 = vmatpush3.msra.mxu1 %v7630_v62 }
 0x7c4   :  { %8393 = vmatprep.subr.mxu1 %v11914_v9 }
 0x7c5   :  { %8394 = vmatpush3.msra.mxu1 %v7629_v36 }
 0x7c6   :  { %8396 = vmatmul.mubr.msk.f32.vlgmr.msra.gmra.mxu1 %vm13115_vm3, %v7053_v55  ;;  %8398 = vmatprep.subr.mxu1 %v11914_v9 }
 0x7c7   :  { %8399 = vmatpush3.msra.mxu1 %v7637_v5  ;;  %8406 = vmatprep.mubr.msk.f32.mxu1 %vm8519_vm12, %v11914_v9 }
 0x7c8   :  { %8400 = vmatprep.subr.mxu1 %v11914_v9 }
 0x7c9   :  { %8401 = vmatpush3.msra.mxu1 %v7636_v23 }
 0x7ca   :  { %8402 = vmatprep.subr.mxu1 %v11914_v9 }
 0x7cb   :  { %8403 = vmatpush3.msra.mxu1 %v7635_v21 }
 0x7cc   :  { %8404 = vmatprep.subr.mxu1 %v11914_v9 }
 0x7cd   :  { %8405 = vmatpush3.msra.mxu1 %v7634_v15  ;;  %v7644_v15 = vld [vmem:[%s12347_s6] ss:$0 sm:$0xff]  ;;  %s8520_s6 = smov [#allocation6]  }
 0x7ce   :  { %8407 = vmatmul.mubr.msk.f32.vlgmr.msra.gmra.mxu1 %vm13116_vm14, %v7137_v32  ;;  %8409 = vmatprep.subr.mxu1 %v11914_v9  ;;  %s7413_s18 = sshll.u32 %s8520_s6, 4  ;;  %s7414_s18 = int_to_ptr.vmem [resolvable:$true] %s7413_s18 }
 0x7cf   :  { %8410 = vmatpush3.msra.mxu1 %v7642_v2  ;;  %8417 = vmatprep.mubr.msk.f32.mxu1 %vm8519_vm12, %v11914_v9  ;;  %s8472_s8 = scalar_lea.vmem %s7414_s18, 32  ;;  %p8477_p1 = scmp.lt.s32.totalorder %s7414_s18, %s7414_s18 }
 0x7d0   :  { %8411 = vmatprep.subr.mxu1 %v11914_v9  ;;  %p8473_p0 = scmp.ne.s32.totalorder %s7414_s18, %s8472_s8  ;;  %p8478_p2 = scmp.lt.s32.totalorder %s8472_s8, %s8472_s8 }
 0x7d1   :  { %8412 = vmatpush3.msra.mxu1 %v7641_v44 }
 0x7d2   :  { %8413 = vmatprep.subr.mxu1 %v11914_v9  ;;  %p8479_p3 = por %p8478_p2, %p8477_p1 }
 0x7d3   :  { %8414 = vmatpush3.msra.mxu1 %v7640_v57 }
 0x7d4   :  { %8415 = vmatprep.subr.mxu1 %v11914_v9  ;;  %p8480_p4 = pnand %p8479_p3, %p8473_p0 }
 0x7d5   :  { %8416 = vmatpush3.msra.mxu1 %v7639_v0 }
 0x7d6   :  { %8418 = vmatmul.mubr.msk.f32.vlgmr.msra.gmra.mxu1 %vm13117_vm10, %v7221_v30  ;;  %8420 = vmatprep.subr.mxu1 %v11914_v9 }
 0x7d7   :  { %8436 = vmatprep.mubr.msk.f32.mxu1 %vm8519_vm12, %v11914_v9  ;;  %8421 = vmatpush3.msra.mxu1 %v7311_v35  ;;  %vm7319_vm12 = vcmask 523264  }
 0x7d8   :  { %8422 = vmatprep.subr.mxu1 %v11914_v9 }
 0x7d9   :  { %8423 = vmatpush3.msra.mxu1 %v7310_v43 }
 0x7da   :  { %8424 = vmatprep.subr.mxu1 %v11914_v9 }
 0x7db   :  { %8425 = vmatpush3.msra.mxu1 %v7309_v22 }
 0x7dc   :  { %8426 = vmatprep.subr.mxu1 %v11914_v9 }
 0x7dd   :  { %8427 = vmatpush3.msra.mxu1 %v7308_v13 }
 0x7de   :  { %8428 = vmatprep.subr.mxu1 %v11914_v9 }
 0x7df   :  { %8429 = vmatpush3.msra.mxu1 %v7307_v31 }
 0x7e0   :  { %8430 = vmatprep.subr.mxu1 %v11914_v9 }
 0x7e1   :  { %8431 = vmatpush3.msra.mxu1 %v7306_v38 }
 0x7e2   :  { %8432 = vmatprep.subr.mxu1 %v11914_v9 }
 0x7e3   :  { %8433 = vmatpush3.msra.mxu1 %v7305_v53 }
 0x7e4   :  { %8434 = vmatprep.subr.mxu1 %v11914_v9 }
 0x7e5   :  { %8435 = vmatpush3.msra.mxu1 %v7304_v20 }
 0x81e   :  { %v6039_v54 = vpop.f32.mrf.mxu1 }
 0x820   :  { %v8254_v42 = vpop.f32.mrf.mxu1 }
 0x826   :  { %v6115_v26 = vpop.f32.mrf.mxu1 }
 0x827   :  { %v6116_v39 = vadd.f32 %v6115_v26, %v6039_v54 }
 0x828   :  { %v8265_v28 = vpop.f32.mrf.mxu1 }
 0x82e   :  { %v6198_v61 = vpop.f32.mrf.mxu1 }
 0x82f   :  { %v6202_v10 = vadd.f32 %v6198_v61, %v6116_v39 }
 0x830   :  { %v8276_v14 = vpop.f32.mrf.mxu1 }
 0x836   :  { %v6282_v7 = vpop.f32.mrf.mxu1 }
 0x837   :  { %v6286_v41 = vadd.f32 %v6282_v7, %v6202_v10 }
 0x838   :  { %v8287_v40 = vpop.f32.mrf.mxu1 }
 0x83e   :  { %v6366_v11 = vpop.f32.mrf.mxu1 }
 0x83f   :  { %v6370_v19 = vadd.f32 %v6366_v11, %v6286_v41 }
 0x840   :  { %v8298_v56 = vpop.f32.mrf.mxu1 }
 0x846   :  { %v6450_v48 = vpop.f32.mrf.mxu1 }
 0x847   :  { %v6454_v27 = vadd.f32 %v6450_v48, %v6370_v19 }
 0x848   :  { %v8309_v17 = vpop.f32.mrf.mxu1 }
 0x84e   :  { %v6534_v25 = vpop.f32.mrf.mxu1 }
 0x84f   :  { %v6538_v37 = vadd.f32 %v6534_v25, %v6454_v27 }
 0x850   :  { %v8320_v8 = vpop.f32.mrf.mxu1 }
 0x856   :  { %v6618_v63 = vpop.f32.mrf.mxu1 }
 0x857   :  { %v6622_v6 = vadd.f32 %v6618_v63, %v6538_v37 }
 0x858   :  { %v8331_v59 = vpop.f32.mrf.mxu1 }
 0x85e   :  { %v6702_v9 = vpop.f32.mrf.mxu1 }
 0x85f   :  { %v6706_v62 = vadd.f32 %v6702_v9, %v6622_v6 }
 0x860   :  { %v8342_v47 = vpop.f32.mrf.mxu1 }
 0x866   :  { %v6786_v50 = vpop.f32.mrf.mxu1 }
 0x867   :  { %v6790_v60 = vadd.f32 %v6786_v50, %v6706_v62 }
 0x868   :  { %v8353_v33 = vpop.f32.mrf.mxu1 }
 0x86e   :  { %v6870_v51 = vpop.f32.mrf.mxu1 }
 0x86f   :  { %v6874_v36 = vadd.f32 %v6870_v51, %v6790_v60 }
 0x870   :  { %v8364_v4 = vpop.f32.mrf.mxu1 }
 0x876   :  { %v6954_v29 = vpop.f32.mrf.mxu1 }
 0x877   :  { %v6958_v5 = vadd.f32 %v6954_v29, %v6874_v36 }
 0x878   :  { %v8375_v1 = vpop.f32.mrf.mxu1 }
 0x87e   :  { %v7038_v12 = vpop.f32.mrf.mxu1 }
 0x87f   :  { %v7042_v23 = vadd.f32 %v7038_v12, %v6958_v5 }
 0x880   :  { %v8386_v45 = vpop.f32.mrf.mxu1 }
 0x886   :  { %v7122_v18 = vpop.f32.mrf.mxu1 }
 0x887   :  { %v7126_v58 = vadd.f32 %v7122_v18, %v7042_v23 }
 0x888   :  { %v8397_v52 = vpop.f32.mrf.mxu1 }
 0x88e   :  { %v7206_v49 = vpop.f32.mrf.mxu1 }
 0x88f   :  { %v7210_v21 = vadd.f32 %v7206_v49, %v7126_v58 }
 0x890   :  { %v8408_v55 = vpop.f32.mrf.mxu1 }
 0x896   :  { %v7290_v46 = vpop.f32.mrf.mxu1 }
 0x897   :  { %v7294_v3 = vadd.f32 %v7290_v46, %v7210_v21 }
 0x898   :  { %v8419_v2 = vpop.f32.mrf.mxu1 }
 0x899   :  { %v7302_v32 = vadd.f32 %v7644_v15, %v7294_v3 }
 0x89b   :  { %v7303_v44 = vmax.f32 %v7302_v32, 0.0 }
 0x89d   :  { %8437 = vmatmul.mubr.msk.f32.vlgmr.msra.gmra.mxu1 %vm7319_vm12, %v7303_v44 }
 0x95d   :  { %v7389_v57 = vpop.f32.mrf.mxu1 }
 0x95e   :  { %v7390_v16 = vadd.f32 %v7645_v34, %v7389_v57 }
 0x95f   :  { %v8438_v0 = vpop.f32.mrf.mxu1 }
 0x960   :  { %v7394_v24 = vsel %vm7393_vm11, %v7390_v16, -inf }
 0x961   :  { %7395 = vmax.xlane.f32.xlu0 %v7394_v24 }
 0x9ea   :  { %v7396_v30 = vpop.xlane.xlu0 %7395 }
 0x9eb   :  { %v7397_v35 = vsub.f32 %v7390_v16, %v7396_v30 }
 0x9ed   :  { %v7398_v43 = vmul.f32 1.442695, %v7397_v35 }
 0x9ef   :  { %8466 = vpow2.f32 %v7398_v43 }
 0x9fc   :  { %v8467_v22 = vpop.eup %8466 }
 0x9fd   :  { %v7400_v13 = vsel %vm7393_vm11, %v8467_v22, 0.0 }
 0x9fe   :  { %7401 = vadd.xlane.f32.xlu1 %v7400_v13 }
 0xa87   :  { %v7402_v31 = vpop.xlane.xlu1 %7401 }
 0xa88   :  { %8468 = vlog2.f32 %v7402_v31 }
 0xa95   :  { %v8469_v38 = vpop.eup %8468 }
 0xa96   :  { %v7404_v53 = vmul.f32 0.6931472, %v8469_v38 }
 0xa98   :  { %v7405_v54 = vsub.f32 %v7397_v35, %v7404_v53 }
 0xa9a   :  { %7406 = vst [vmem:[#allocation6] sm:$0x3] %v7405_v54 }
 0xa9b   :  { %8483 = shalt.err (!%p8480_p4)
}
 0xa9c   :  { %7416 = dma.vmem_to_hbm [thread:$0]  %s7414_s18, 32, %s12350_s9, [#allocation7]  }
 0xa9d   :  { %8492 = dma.done.wait [#allocation7], 32  }
 0xa9e   :  { %8493 = vsyncadd [#allocation7], 4294967264 }
 0xa9f   :  { %7420 = vsyncpa [#allocation7], 1 }

</bundles_post_ra>
